<compile_context>
chip_gen: v5e
topology: v5e:2x2
jax: 0.10.0
libtpu: 0.0.40
codegen_flags: <defaults>
</compile_context>

<pallas_src>
import functools
import math

import jax
import jax.numpy as jnp
from jax import lax
from jax.experimental import pallas as pl
from jax.experimental.pallas import tpu as pltpu

# ---- hyper-parameters consistent with the module (scaled down) --------------
N_DIMS = 4          # d_in
N_POSITIONS = 8     # n  -> T = 2n = 16
N_EMBD = 32         # E
N_LAYER = 2         # L
N_HEAD = 4          # H
N_LAST_TOKENS = 4
FREQ = 2
IND = 0
LN_EPS = 1e-5
PRED_TYPE = "regression"

_E = N_EMBD
_D = N_DIMS

# Packed per-layer vector slab (lane offsets), ordered so no field straddles a
# 128-lane tile boundary: [attn_b | ln1_g | fc_b | ln1_b | proj_b | ln2_g | ln2_b | mproj_b]
_VEC_FIELDS = (("attn_b", 3 * _E), ("ln1_g", _E), ("fc_b", 4 * _E), ("ln1_b", _E),
               ("proj_b", _E), ("ln2_g", _E), ("ln2_b", _E), ("mproj_b", _E))
_VEC_OFF = {}
_off = 0
for _name, _w in _VEC_FIELDS:
    _VEC_OFF[_name] = (_off, _off + _w)
    _off += _w
_VEC_WIDTH = _off                                  # 13 * E

# misc slab rows: [read_in_w (D rows) | read_in_b | lnf_g | lnf_b | read_out_w | read_out_b]
_MISC_RIB = _D
_MISC_LNFG = _D + 1
_MISC_LNFB = _D + 2
_MISC_ROW = _D + 3
_MISC_ROB = _D + 4
_MISC_ROWS = _D + 5


def _layernorm(v, g, b):
    mu = jnp.mean(v, axis=-1, keepdims=True)
    xc = v - mu
    var = jnp.mean(xc * xc, axis=-1, keepdims=True)
    return xc * lax.rsqrt(var + LN_EPS) * g + b


def _gelu_tanh(v):  # nanoGPT / GPT-2 "new_gelu"
    return 0.5 * v * (1.0 + jnp.tanh(
        math.sqrt(2.0 / math.pi) * (v + 0.044715 * v * v * v)))


# =============================== fused kernel =================================
def looped_model_kernel(zs_ref, rowc_ref, headc_ref, colc_ref,
                        wrow_ref, mproj_ref, vecs_ref, misc_ref,
                        preds_ref, *, batch, seq, n_loop_start, n_loops):
    B, T, E, H, L, D = batch, seq, N_EMBD, N_HEAD, N_LAYER, N_DIMS
    BT = B * T
    C = B * H * T            # attention-score lane width (= 128 at this config)
    G = B * H                # number of (batch, head) softmax groups
    f32 = jnp.float32

    def vec(name, l):        # (1, width) bias/gain row for layer l (ref slice)
        lo, hi = _VEC_OFF[name]
        return vecs_ref[l:l + 1, lo:hi]

    # ---- read_in (once per call) ----------------------------------------------
    embeds = (jnp.dot(zs_ref[...], misc_ref[0:D, :], preferred_element_type=f32)
              + misc_ref[_MISC_RIB:_MISC_RIB + 1, :])                   # (BT, E)
    # wpe is re-added every loop iteration: the backbone is re-entered per loop.
    base = embeds + rowc_ref[:, 2 * C:2 * C + E]                        # embeds + pos
    keep_w = rowc_ref[:, 2 * C + E:2 * C + 2 * E]                       # n_last_tokens mask

    output = jnp.zeros((BT, E), f32)          # loop_func == 'z=f(x+z)'

    for idx in range(n_loops):
        # f(output, embeds, mask): masked_output + embeds, then GPT-2 backbone.
        x = output * keep_w + base
        for l in range(L):
            wl = slice(l * E, (l + 1) * E)
            # --- causal self-attention (all batches & heads in one score tile) ---
            h1 = _layernorm(x, vec("ln1_g", l), vec("ln1_b", l))
            qkv = (jnp.dot(h1, wrow_ref[wl, 0:3 * E], preferred_element_type=f32)
                   + vec("attn_b", l))
            q = qkv[:, 0:E]                    # 1/sqrt(Dh) folded in at pack time
            k = qkv[:, E:2 * E]
            v = qkv[:, 2 * E:3 * E]
            # kbig[e, c] = k[src(c), e] if head(e) == head(c) else 0
            kbig = headc_ref[0:E, :] * jnp.dot(k.T, rowc_ref[:, 0:C],
                                               preferred_element_type=f32)
            s = jnp.dot(q, kbig, preferred_element_type=f32) + rowc_ref[:, C:2 * C]
            # NOTE: row max is shared across a row's H heads; exact shift cancels,
            # only adversarially-scaled trained weights could underflow a head.
            m = jnp.max(s, axis=-1, keepdims=True)
            p = jnp.exp(s - m)
            # per-(batch, head) denominators: reduce to (BT, G), expand to (BT, C)
            sums = jnp.dot(p, colc_ref[:, 2 * E:2 * E + G], preferred_element_type=f32)
            recip = pl.reciprocal(jnp.maximum(sums, 1e-30))
            pn = p * jnp.dot(recip, headc_ref[E:E + G, :], preferred_element_type=f32)
            # vbig[c, e] = v[src(c), e] if head(e) == head(c) else 0
            vbig = colc_ref[:, E:2 * E] * jnp.dot(colc_ref[:, 0:E], v,
                                                  preferred_element_type=f32)
            att = jnp.dot(pn, vbig, preferred_element_type=f32)          # head-concat
            x = (x + jnp.dot(att, wrow_ref[wl, 3 * E:4 * E], preferred_element_type=f32)
                 + vec("proj_b", l))
            # --- MLP --------------------------------------------------------------
            h2 = _layernorm(x, vec("ln2_g", l), vec("ln2_b", l))
            ff = (jnp.dot(h2, wrow_ref[wl, 4 * E:8 * E], preferred_element_type=f32)
                  + vec("fc_b", l))
            ff = _gelu_tanh(ff)
            x = (x + jnp.dot(ff, mproj_ref[l * 4 * E:(l + 1) * 4 * E, :],
                             preferred_element_type=f32)
                 + vec("mproj_b", l))
        output = _layernorm(x, misc_ref[_MISC_LNFG:_MISC_LNFG + 1, :],
                            misc_ref[_MISC_LNFB:_MISC_LNFB + 1, :])       # ln_f
        if idx >= n_loop_start:
            # read_out fused; store each lane-dense (1, BT) row as it is produced.
            pred = (jnp.dot(misc_ref[_MISC_ROW:_MISC_ROW + 1, :], output.T,
                            preferred_element_type=f32)
                    + misc_ref[_MISC_ROB:_MISC_ROB + 1, 0:1])
            pidx = idx - n_loop_start
            preds_ref[pidx:pidx + 1, :] = pred.astype(preds_ref.dtype)


# ============================ packing (one-time) ===============================
def pack_params(params, batch, seq):
    """One-time packing of module params + static masks into a few VMEM slabs."""
    E, H, L, D = N_EMBD, N_HEAD, N_LAYER, N_DIMS
    Dh = E // H
    B, T = batch, seq
    BT, C, G = B * T, B * H * T, B * H
    f32 = jnp.float32
    scale = 1.0 / math.sqrt(Dh)

    # fold 1/sqrt(Dh) into the Q columns of c_attn (weight AND bias)
    qscale = jnp.concatenate([jnp.full((E,), scale, f32), jnp.ones((2 * E,), f32)])
    attn_w = params["attn_w"] * qscale[None, None, :]
    attn_b = params["attn_b"] * qscale[None, :]

    # per-layer matmul weights: [attn_w | proj_w | fc_w]  -> (L*E, 8E)
    wrow = jnp.concatenate([attn_w, params["proj_w"], params["fc_w"]], axis=2)
    wrow = wrow.reshape(L * E, 8 * E)
    mproj = params["mproj_w"].reshape(L * 4 * E, E)                       # (L*4E, E)

    # per-layer bias / gain vectors -> (L, 13E)
    vparams = dict(params)
    vparams["attn_b"] = attn_b
    vecs = jnp.concatenate([vparams[name] for name, _ in _VEC_FIELDS], axis=1)

    # global vectors -> (D+5, E)
    misc = jnp.concatenate([
        params["read_in_w"],
        params["read_in_b"],
        params["lnf_g"],
        params["lnf_b"],
        params["read_out_w"].reshape(1, E),
        jnp.broadcast_to(params["read_out_b"].reshape(1, 1), (1, E)),
    ], axis=0)

    # ---- static selection / mask constants (built once on host) ----------------
    # score column c encodes (b, h, u): c = (b*H + h)*T + u ; source row = b*T + u
    c = jnp.arange(C)
    src = (c // (H * T)) * T + (c % T)
    head = (c % (H * T)) // T
    grp = c // T                                                  # = b*H + h
    j = jnp.arange(BT)
    e = jnp.arange(E)
    sel = (j[:, None] == src[None, :]).astype(f32)                # (BT, C)
    kmask = ((e[:, None] // Dh) == head[None, :]).astype(f32)     # (E, C)
    vmask = (head[:, None] == (e[None, :] // Dh)).astype(f32)     # (C, E)
    same_b = (c[None, :] // (H * T)) == (j[:, None] // T)
    causal = (c[None, :] % T) <= (j[:, None] % T)
    sbias = jnp.where(same_b & causal, 0.0, -1e30).astype(f32)    # (BT, C) additive
    segr = (grp[:, None] == jnp.arange(G)[None, :]).astype(f32)   # (C, G) reduce
    segx = segr.T                                                 # (G, C) expand
    keep = (jnp.arange(BT) % T >= (T - N_LAST_TOKENS)).astype(f32)  # covers k == 0
    keep_out = jnp.broadcast_to(keep[:, None], (BT, E))
    pos2 = jnp.tile(params["wpe"][:T], (B, 1))                    # (BT, E)

    rowc = jnp.concatenate([sel, sbias, pos2, keep_out], axis=1)  # (BT, 2C+2E)
    headc = jnp.concatenate([kmask, segx], axis=0)                # (E+G, C)
    colc = jnp.concatenate([sel.T, vmask, segr], axis=1)          # (C, 2E+G)

    return {"rowc": rowc, "headc": headc, "colc": colc,
            "wrow": wrow, "mproj": mproj, "vecs": vecs, "misc": misc}


# ============================ pallas_call wrapper ==============================
def _full_spec(shape):
    nd = len(shape)
    return pl.BlockSpec(shape, lambda i, _nd=nd: (0,) * _nd)


def looped_forward_fused(packed, zs2, n_loop_start, n_loops, batch, seq):
    num_preds = n_loops - n_loop_start
    BT = zs2.shape[0]
    inputs = (zs2, packed["rowc"], packed["headc"], packed["colc"],
              packed["wrow"], packed["mproj"], packed["vecs"], packed["misc"])
    kernel = functools.partial(looped_model_kernel, batch=batch, seq=seq,
                               n_loop_start=n_loop_start, n_loops=n_loops)
    return pl.pallas_call(
        kernel,
        out_shape=jax.ShapeDtypeStruct((num_preds, BT), jnp.float32),
        grid=(1,),
        in_specs=[_full_spec(x.shape) for x in inputs],
        out_specs=_full_spec((num_preds, BT)),
        compiler_params=pltpu.CompilerParams(
            dimension_semantics=("arbitrary",)),
    )(*inputs)


# ============================= model (glue in JAX) =============================
def combine(xs, ys):
    """[B,n,d], [B,n] -> interleaved [B, 2n, d] (x_1, y_1', x_2, y_2', ...)."""
    B, n, d = xs.shape
    ys_wide = jnp.concatenate(
        [ys[..., None], jnp.zeros((B, n, d - 1), xs.dtype)], axis=2)
    return jnp.stack([xs, ys_wide], axis=2).reshape(B, FREQ * n, d)


@functools.partial(jax.jit, static_argnames=("n_loop_start", "n_loops"))
def transformer_model_looped(packed, xs, ys, n_loop_start, n_loops):
    B, n, d = xs.shape
    T = FREQ * n
    num_preds = n_loops - n_loop_start
    if num_preds <= 0:
        return []
    zs2 = combine(xs, ys).reshape(B * T, d)                     # [B*T, d_in]
    preds = looped_forward_fused(packed, zs2, n_loop_start, n_loops, B, T)
    preds = preds.reshape(num_preds, B, T)[:, :, IND::FREQ]     # [P, B, n]
    return [preds[i] for i in range(num_preds)]


def init_params(key):
    E, L, D = N_EMBD, N_LAYER, N_DIMS
    block_size = FREQ * N_POSITIONS + 1
    keys = iter(jax.random.split(key, 32))

    def nrm(shape, scale=0.02):
        return (scale * jax.random.normal(next(keys), shape)).astype(jnp.float32)

    return {
        "read_in_w": nrm((D, E)),
        "read_in_b": jnp.zeros((1, E), jnp.float32),
        "wpe": nrm((block_size, E)),
        "ln1_g": jnp.ones((L, E), jnp.float32),
        "ln1_b": jnp.zeros((L, E), jnp.float32),
        "attn_w": nrm((L, E, 3 * E)),
        "attn_b": jnp.zeros((L, 3 * E), jnp.float32),
        "proj_w": nrm((L, E, E)),
        "proj_b": jnp.zeros((L, E), jnp.float32),
        "ln2_g": jnp.ones((L, E), jnp.float32),
        "ln2_b": jnp.zeros((L, E), jnp.float32),
        "fc_w": nrm((L, E, 4 * E)),
        "fc_b": jnp.zeros((L, 4 * E), jnp.float32),
        "mproj_w": nrm((L, 4 * E, E)),
        "mproj_b": jnp.zeros((L, E), jnp.float32),
        "lnf_g": jnp.ones((1, E), jnp.float32),
        "lnf_b": jnp.zeros((1, E), jnp.float32),
        "read_out_w": nrm((E, 1)),
        "read_out_b": jnp.zeros((1, 1), jnp.float32),
    }


if __name__ == "__main__":
    key = jax.random.PRNGKey(0)
    kp, kx, ky = jax.random.split(key, 3)
    params = init_params(kp)

    B, n = 2, N_POSITIONS
    xs = jax.random.normal(kx, (B, n, N_DIMS), dtype=jnp.float32)   # [2, 8, 4]
    ys = jax.random.normal(ky, (B, n), dtype=jnp.float32)           # [2, 8]

    # One-time parameter/constant packing (NOT on the per-call hot path).
    packed = pack_params(params, batch=B, seq=FREQ * n)

    n_loop_start, n_loops = 1, 3
    preds = transformer_model_looped(packed, xs, ys, n_loop_start, n_loops)
    preds = [jax.block_until_ready(p) for p in preds]

    assert len(preds) == n_loops - n_loop_start
    assert all(p.shape == (B, n) for p in preds)
    assert all(bool(jnp.all(jnp.isfinite(p))) for p in preds)
    print("KERNEL_OK")
</pallas_src>

<mosaic_0001>
module attributes {stable_mosaic.version = 11 : i64} {
  func.func @looped_model_kernel(%arg0: i32, %arg1: memref<32x4xf32, #tpu.memory_space<vmem>>, %arg2: memref<32x320xf32, #tpu.memory_space<vmem>>, %arg3: memref<40x128xf32, #tpu.memory_space<vmem>>, %arg4: memref<128x72xf32, #tpu.memory_space<vmem>>, %arg5: memref<64x256xf32, #tpu.memory_space<vmem>>, %arg6: memref<256x32xf32, #tpu.memory_space<vmem>>, %arg7: memref<2x416xf32, #tpu.memory_space<vmem>>, %arg8: memref<9x32xf32, #tpu.memory_space<vmem>>, %arg9: memref<2x32xf32, #tpu.memory_space<vmem>>) attributes {dimension_semantics = [#tpu.dimension_semantics<arbitrary>], iteration_bounds = array<i64: 1>, scalar_prefetch = 0 : i64, scratch_operands = 0 : i64, tpu.core_type = #tpu.core_type<tc>, window_params = [{pipeline_mode = #tpu.pipeline_mode<synchronous>, transform_indices = @transform_0, window_bounds = array<i64: 32, 4>}, {pipeline_mode = #tpu.pipeline_mode<synchronous>, transform_indices = @transform_1, window_bounds = array<i64: 32, 320>}, {pipeline_mode = #tpu.pipeline_mode<synchronous>, transform_indices = @transform_2, window_bounds = array<i64: 40, 128>}, {pipeline_mode = #tpu.pipeline_mode<synchronous>, transform_indices = @transform_3, window_bounds = array<i64: 128, 72>}, {pipeline_mode = #tpu.pipeline_mode<synchronous>, transform_indices = @transform_4, window_bounds = array<i64: 64, 256>}, {pipeline_mode = #tpu.pipeline_mode<synchronous>, transform_indices = @transform_5, window_bounds = array<i64: 256, 32>}, {pipeline_mode = #tpu.pipeline_mode<synchronous>, transform_indices = @transform_6, window_bounds = array<i64: 2, 416>}, {pipeline_mode = #tpu.pipeline_mode<synchronous>, transform_indices = @transform_7, window_bounds = array<i64: 9, 32>}, {pipeline_mode = #tpu.pipeline_mode<synchronous>, transform_indices = @transform_8, window_bounds = array<i64: 2, 32>}]} {
    %c0 = arith.constant 0 : index
    %c0_0 = arith.constant 0 : index
    %0 = vector.load %arg1[%c0, %c0_0] : memref<32x4xf32, #tpu.memory_space<vmem>>, vector<32x4xf32>
    %c0_1 = arith.constant 0 : index
    %c0_2 = arith.constant 0 : index
    %1 = vector.load %arg8[%c0_1, %c0_2] : memref<9x32xf32, #tpu.memory_space<vmem>>, vector<4x32xf32>
    %cst = arith.constant dense<0.000000e+00> : vector<32x32xf32>
    %2 = tpu.matmul %0, %1, %cst {dimension_numbers = #tpu.dot_dimension_numbers<[1], [0], [0], [1], [0, 0, 1, 1], [], []>} : vector<32x4xf32>, vector<4x32xf32>, vector<32x32xf32> -> vector<32x32xf32>
    %c4 = arith.constant 4 : index
    %c0_3 = arith.constant 0 : index
    %3 = vector.load %arg8[%c4, %c0_3] : memref<9x32xf32, #tpu.memory_space<vmem>>, vector<1x32xf32>
    %4 = vector.broadcast %3 : vector<1x32xf32> to vector<32x32xf32>
    %5 = arith.addf %2, %4 : vector<32x32xf32>
    %c0_4 = arith.constant 0 : index
    %c256 = arith.constant 256 : index
    %6 = vector.load %arg2[%c0_4, %c256] : memref<32x320xf32, #tpu.memory_space<vmem>>, vector<32x32xf32>
    %7 = arith.addf %5, %6 : vector<32x32xf32>
    %c0_5 = arith.constant 0 : index
    %c288 = arith.constant 288 : index
    %8 = vector.load %arg2[%c0_5, %c288] : memref<32x320xf32, #tpu.memory_space<vmem>>, vector<32x32xf32>
    %cst_6 = arith.constant 0.000000e+00 : f32
    %9 = vector.broadcast %cst_6 : f32 to vector<32x32xf32>
    %10 = arith.mulf %9, %8 : vector<32x32xf32>
    %11 = arith.addf %10, %7 : vector<32x32xf32>
    %c0_7 = arith.constant 0 : index
    %c96 = arith.constant 96 : index
    %12 = vector.load %arg7[%c0_7, %c96] : memref<2x416xf32, #tpu.memory_space<vmem>>, vector<1x32xf32>
    %c0_8 = arith.constant 0 : index
    %c256_9 = arith.constant 256 : index
    %13 = vector.load %arg7[%c0_8, %c256_9] : memref<2x416xf32, #tpu.memory_space<vmem>>, vector<1x32xf32>
    %cst_10 = arith.constant dense<0.000000e+00> : vector<32xf32>
    %14 = vector.multi_reduction <add>, %11, %cst_10 [1] : vector<32x32xf32> to vector<32xf32>
    %15 = vector.shape_cast %14 : vector<32xf32> to vector<32x1xf32>
    %cst_11 = arith.constant 3.200000e+01 : f32
    %16 = vector.broadcast %cst_11 : f32 to vector<32x1xf32>
    %17 = arith.divf %15, %16 : vector<32x1xf32>
    %18 = vector.broadcast %17 : vector<32x1xf32> to vector<32x32xf32>
    %19 = arith.subf %11, %18 : vector<32x32xf32>
    %20 = arith.mulf %19, %19 : vector<32x32xf32>
    %cst_12 = arith.constant dense<0.000000e+00> : vector<32xf32>
    %21 = vector.multi_reduction <add>, %20, %cst_12 [1] : vector<32x32xf32> to vector<32xf32>
    %22 = vector.shape_cast %21 : vector<32xf32> to vector<32x1xf32>
    %cst_13 = arith.constant 3.200000e+01 : f32
    %23 = vector.broadcast %cst_13 : f32 to vector<32x1xf32>
    %24 = arith.divf %22, %23 : vector<32x1xf32>
    %cst_14 = arith.constant 9.99999974E-6 : f32
    %25 = vector.broadcast %cst_14 : f32 to vector<32x1xf32>
    %26 = arith.addf %24, %25 : vector<32x1xf32>
    %27 = math.rsqrt %26 : vector<32x1xf32>
    %28 = vector.broadcast %27 : vector<32x1xf32> to vector<32x32xf32>
    %29 = arith.mulf %19, %28 : vector<32x32xf32>
    %30 = vector.broadcast %12 : vector<1x32xf32> to vector<32x32xf32>
    %31 = arith.mulf %29, %30 : vector<32x32xf32>
    %32 = vector.broadcast %13 : vector<1x32xf32> to vector<32x32xf32>
    %33 = arith.addf %31, %32 : vector<32x32xf32>
    %c0_15 = arith.constant 0 : index
    %c0_16 = arith.constant 0 : index
    %34 = vector.load %arg5[%c0_15, %c0_16] : memref<64x256xf32, #tpu.memory_space<vmem>>, vector<32x96xf32>
    %cst_17 = arith.constant dense<0.000000e+00> : vector<32x96xf32>
    %35 = tpu.matmul %33, %34, %cst_17 {dimension_numbers = #tpu.dot_dimension_numbers<[1], [0], [0], [1], [0, 0, 1, 1], [], []>} : vector<32x32xf32>, vector<32x96xf32>, vector<32x96xf32> -> vector<32x96xf32>
    %c0_18 = arith.constant 0 : index
    %c0_19 = arith.constant 0 : index
    %36 = vector.load %arg7[%c0_18, %c0_19] : memref<2x416xf32, #tpu.memory_space<vmem>>, vector<1x96xf32>
    %37 = vector.broadcast %36 : vector<1x96xf32> to vector<32x96xf32>
    %38 = arith.addf %35, %37 : vector<32x96xf32>
    %39 = vector.extract_strided_slice %38 {offsets = [0, 0], sizes = [32, 32], strides = [1, 1]} : vector<32x96xf32> to vector<32x32xf32>
    %40 = vector.extract_strided_slice %38 {offsets = [0, 32], sizes = [32, 32], strides = [1, 1]} : vector<32x96xf32> to vector<32x32xf32>
    %41 = vector.extract_strided_slice %38 {offsets = [0, 64], sizes = [32, 32], strides = [1, 1]} : vector<32x96xf32> to vector<32x32xf32>
    %c0_20 = arith.constant 0 : index
    %c0_21 = arith.constant 0 : index
    %42 = vector.load %arg3[%c0_20, %c0_21] : memref<40x128xf32, #tpu.memory_space<vmem>>, vector<32x128xf32>
    %43 = tpu.transpose %40, [1, 0] : vector<32x32xf32> -> vector<32x32xf32>
    %c0_22 = arith.constant 0 : index
    %c0_23 = arith.constant 0 : index
    %44 = vector.load %arg2[%c0_22, %c0_23] : memref<32x320xf32, #tpu.memory_space<vmem>>, vector<32x128xf32>
    %cst_24 = arith.constant dense<0.000000e+00> : vector<32x128xf32>
    %45 = tpu.matmul %43, %44, %cst_24 {dimension_numbers = #tpu.dot_dimension_numbers<[1], [0], [0], [1], [0, 0, 1, 1], [], []>} : vector<32x32xf32>, vector<32x128xf32>, vector<32x128xf32> -> vector<32x128xf32>
    %46 = arith.mulf %42, %45 : vector<32x128xf32>
    %cst_25 = arith.constant dense<0.000000e+00> : vector<32x128xf32>
    %47 = tpu.matmul %39, %46, %cst_25 {dimension_numbers = #tpu.dot_dimension_numbers<[1], [0], [0], [1], [0, 0, 1, 1], [], []>} : vector<32x32xf32>, vector<32x128xf32>, vector<32x128xf32> -> vector<32x128xf32>
    %c0_26 = arith.constant 0 : index
    %c128 = arith.constant 128 : index
    %48 = vector.load %arg2[%c0_26, %c128] : memref<32x320xf32, #tpu.memory_space<vmem>>, vector<32x128xf32>
    %49 = arith.addf %47, %48 : vector<32x128xf32>
    %cst_27 = arith.constant dense<0xFF800000> : vector<32xf32>
    %50 = vector.multi_reduction <maximumf>, %49, %cst_27 [1] : vector<32x128xf32> to vector<32xf32>
    %51 = vector.shape_cast %50 : vector<32xf32> to vector<32x1xf32>
    %52 = vector.broadcast %51 : vector<32x1xf32> to vector<32x128xf32>
    %53 = arith.subf %49, %52 : vector<32x128xf32>
    %54 = math.exp %53 : vector<32x128xf32>
    %c0_28 = arith.constant 0 : index
    %c64 = arith.constant 64 : index
    %55 = vector.load %arg4[%c0_28, %c64] : memref<128x72xf32, #tpu.memory_space<vmem>>, vector<128x8xf32>
    %cst_29 = arith.constant dense<0.000000e+00> : vector<32x8xf32>
    %56 = tpu.matmul %54, %55, %cst_29 {dimension_numbers = #tpu.dot_dimension_numbers<[1], [0], [0], [1], [0, 0, 1, 1], [], []>} : vector<32x128xf32>, vector<128x8xf32>, vector<32x8xf32> -> vector<32x8xf32>
    %cst_30 = arith.constant 1.000000e-30 : f32
    %57 = vector.broadcast %cst_30 : f32 to vector<32x8xf32>
    %58 = arith.maximumf %56, %57 : vector<32x8xf32>
    %59 = tpu.reciprocal %58 : vector<32x8xf32> -> vector<32x8xf32>
    %c32 = arith.constant 32 : index
    %c0_31 = arith.constant 0 : index
    %60 = vector.load %arg3[%c32, %c0_31] : memref<40x128xf32, #tpu.memory_space<vmem>>, vector<8x128xf32>
    %cst_32 = arith.constant dense<0.000000e+00> : vector<32x128xf32>
    %61 = tpu.matmul %59, %60, %cst_32 {dimension_numbers = #tpu.dot_dimension_numbers<[1], [0], [0], [1], [0, 0, 1, 1], [], []>} : vector<32x8xf32>, vector<8x128xf32>, vector<32x128xf32> -> vector<32x128xf32>
    %62 = arith.mulf %54, %61 : vector<32x128xf32>
    %c0_33 = arith.constant 0 : index
    %c32_34 = arith.constant 32 : index
    %63 = vector.load %arg4[%c0_33, %c32_34] : memref<128x72xf32, #tpu.memory_space<vmem>>, vector<128x32xf32>
    %c0_35 = arith.constant 0 : index
    %c0_36 = arith.constant 0 : index
    %64 = vector.load %arg4[%c0_35, %c0_36] : memref<128x72xf32, #tpu.memory_space<vmem>>, vector<128x32xf32>
    %cst_37 = arith.constant dense<0.000000e+00> : vector<128x32xf32>
    %65 = tpu.matmul %64, %41, %cst_37 {dimension_numbers = #tpu.dot_dimension_numbers<[1], [0], [0], [1], [0, 0, 1, 1], [], []>} : vector<128x32xf32>, vector<32x32xf32>, vector<128x32xf32> -> vector<128x32xf32>
    %66 = arith.mulf %63, %65 : vector<128x32xf32>
    %cst_38 = arith.constant dense<0.000000e+00> : vector<32x32xf32>
    %67 = tpu.matmul %62, %66, %cst_38 {dimension_numbers = #tpu.dot_dimension_numbers<[1], [0], [0], [1], [0, 0, 1, 1], [], []>} : vector<32x128xf32>, vector<128x32xf32>, vector<32x32xf32> -> vector<32x32xf32>
    %c0_39 = arith.constant 0 : index
    %c96_40 = arith.constant 96 : index
    %68 = vector.load %arg5[%c0_39, %c96_40] : memref<64x256xf32, #tpu.memory_space<vmem>>, vector<32x32xf32>
    %cst_41 = arith.constant dense<0.000000e+00> : vector<32x32xf32>
    %69 = tpu.matmul %67, %68, %cst_41 {dimension_numbers = #tpu.dot_dimension_numbers<[1], [0], [0], [1], [0, 0, 1, 1], [], []>} : vector<32x32xf32>, vector<32x32xf32>, vector<32x32xf32> -> vector<32x32xf32>
    %70 = arith.addf %11, %69 : vector<32x32xf32>
    %c0_42 = arith.constant 0 : index
    %c288_43 = arith.constant 288 : index
    %71 = vector.load %arg7[%c0_42, %c288_43] : memref<2x416xf32, #tpu.memory_space<vmem>>, vector<1x32xf32>
    %72 = vector.broadcast %71 : vector<1x32xf32> to vector<32x32xf32>
    %73 = arith.addf %70, %72 : vector<32x32xf32>
    %c0_44 = arith.constant 0 : index
    %c320 = arith.constant 320 : index
    %74 = vector.load %arg7[%c0_44, %c320] : memref<2x416xf32, #tpu.memory_space<vmem>>, vector<1x32xf32>
    %c0_45 = arith.constant 0 : index
    %c352 = arith.constant 352 : index
    %75 = vector.load %arg7[%c0_45, %c352] : memref<2x416xf32, #tpu.memory_space<vmem>>, vector<1x32xf32>
    %cst_46 = arith.constant dense<0.000000e+00> : vector<32xf32>
    %76 = vector.multi_reduction <add>, %73, %cst_46 [1] : vector<32x32xf32> to vector<32xf32>
    %77 = vector.shape_cast %76 : vector<32xf32> to vector<32x1xf32>
    %cst_47 = arith.constant 3.200000e+01 : f32
    %78 = vector.broadcast %cst_47 : f32 to vector<32x1xf32>
    %79 = arith.divf %77, %78 : vector<32x1xf32>
    %80 = vector.broadcast %79 : vector<32x1xf32> to vector<32x32xf32>
    %81 = arith.subf %73, %80 : vector<32x32xf32>
    %82 = arith.mulf %81, %81 : vector<32x32xf32>
    %cst_48 = arith.constant dense<0.000000e+00> : vector<32xf32>
    %83 = vector.multi_reduction <add>, %82, %cst_48 [1] : vector<32x32xf32> to vector<32xf32>
    %84 = vector.shape_cast %83 : vector<32xf32> to vector<32x1xf32>
    %cst_49 = arith.constant 3.200000e+01 : f32
    %85 = vector.broadcast %cst_49 : f32 to vector<32x1xf32>
    %86 = arith.divf %84, %85 : vector<32x1xf32>
    %cst_50 = arith.constant 9.99999974E-6 : f32
    %87 = vector.broadcast %cst_50 : f32 to vector<32x1xf32>
    %88 = arith.addf %86, %87 : vector<32x1xf32>
    %89 = math.rsqrt %88 : vector<32x1xf32>
    %90 = vector.broadcast %89 : vector<32x1xf32> to vector<32x32xf32>
    %91 = arith.mulf %81, %90 : vector<32x32xf32>
    %92 = vector.broadcast %74 : vector<1x32xf32> to vector<32x32xf32>
    %93 = arith.mulf %91, %92 : vector<32x32xf32>
    %94 = vector.broadcast %75 : vector<1x32xf32> to vector<32x32xf32>
    %95 = arith.addf %93, %94 : vector<32x32xf32>
    %c0_51 = arith.constant 0 : index
    %c128_52 = arith.constant 128 : index
    %96 = vector.load %arg5[%c0_51, %c128_52] : memref<64x256xf32, #tpu.memory_space<vmem>>, vector<32x128xf32>
    %cst_53 = arith.constant dense<0.000000e+00> : vector<32x128xf32>
    %97 = tpu.matmul %95, %96, %cst_53 {dimension_numbers = #tpu.dot_dimension_numbers<[1], [0], [0], [1], [0, 0, 1, 1], [], []>} : vector<32x32xf32>, vector<32x128xf32>, vector<32x128xf32> -> vector<32x128xf32>
    %c0_54 = arith.constant 0 : index
    %c128_55 = arith.constant 128 : index
    %98 = vector.load %arg7[%c0_54, %c128_55] : memref<2x416xf32, #tpu.memory_space<vmem>>, vector<1x128xf32>
    %99 = vector.broadcast %98 : vector<1x128xf32> to vector<32x128xf32>
    %100 = arith.addf %97, %99 : vector<32x128xf32>
    %cst_56 = arith.constant 5.000000e-01 : f32
    %101 = vector.broadcast %cst_56 : f32 to vector<32x128xf32>
    %102 = arith.mulf %101, %100 : vector<32x128xf32>
    %cst_57 = arith.constant 4.471500e-02 : f32
    %103 = vector.broadcast %cst_57 : f32 to vector<32x128xf32>
    %104 = arith.mulf %103, %100 : vector<32x128xf32>
    %105 = arith.mulf %104, %100 : vector<32x128xf32>
    %106 = arith.mulf %105, %100 : vector<32x128xf32>
    %107 = arith.addf %100, %106 : vector<32x128xf32>
    %cst_58 = arith.constant 0.797884583 : f32
    %108 = vector.broadcast %cst_58 : f32 to vector<32x128xf32>
    %109 = arith.mulf %108, %107 : vector<32x128xf32>
    %110 = math.tanh %109 : vector<32x128xf32>
    %cst_59 = arith.constant 1.000000e+00 : f32
    %111 = vector.broadcast %cst_59 : f32 to vector<32x128xf32>
    %112 = arith.addf %111, %110 : vector<32x128xf32>
    %113 = arith.mulf %102, %112 : vector<32x128xf32>
    %c0_60 = arith.constant 0 : index
    %c0_61 = arith.constant 0 : index
    %114 = vector.load %arg6[%c0_60, %c0_61] : memref<256x32xf32, #tpu.memory_space<vmem>>, vector<128x32xf32>
    %cst_62 = arith.constant dense<0.000000e+00> : vector<32x32xf32>
    %115 = tpu.matmul %113, %114, %cst_62 {dimension_numbers = #tpu.dot_dimension_numbers<[1], [0], [0], [1], [0, 0, 1, 1], [], []>} : vector<32x128xf32>, vector<128x32xf32>, vector<32x32xf32> -> vector<32x32xf32>
    %116 = arith.addf %73, %115 : vector<32x32xf32>
    %c0_63 = arith.constant 0 : index
    %c384 = arith.constant 384 : index
    %117 = vector.load %arg7[%c0_63, %c384] : memref<2x416xf32, #tpu.memory_space<vmem>>, vector<1x32xf32>
    %118 = vector.broadcast %117 : vector<1x32xf32> to vector<32x32xf32>
    %119 = arith.addf %116, %118 : vector<32x32xf32>
    %c1 = arith.constant 1 : index
    %c96_64 = arith.constant 96 : index
    %120 = vector.load %arg7[%c1, %c96_64] : memref<2x416xf32, #tpu.memory_space<vmem>>, vector<1x32xf32>
    %c1_65 = arith.constant 1 : index
    %c256_66 = arith.constant 256 : index
    %121 = vector.load %arg7[%c1_65, %c256_66] : memref<2x416xf32, #tpu.memory_space<vmem>>, vector<1x32xf32>
    %cst_67 = arith.constant dense<0.000000e+00> : vector<32xf32>
    %122 = vector.multi_reduction <add>, %119, %cst_67 [1] : vector<32x32xf32> to vector<32xf32>
    %123 = vector.shape_cast %122 : vector<32xf32> to vector<32x1xf32>
    %cst_68 = arith.constant 3.200000e+01 : f32
    %124 = vector.broadcast %cst_68 : f32 to vector<32x1xf32>
    %125 = arith.divf %123, %124 : vector<32x1xf32>
    %126 = vector.broadcast %125 : vector<32x1xf32> to vector<32x32xf32>
    %127 = arith.subf %119, %126 : vector<32x32xf32>
    %128 = arith.mulf %127, %127 : vector<32x32xf32>
    %cst_69 = arith.constant dense<0.000000e+00> : vector<32xf32>
    %129 = vector.multi_reduction <add>, %128, %cst_69 [1] : vector<32x32xf32> to vector<32xf32>
    %130 = vector.shape_cast %129 : vector<32xf32> to vector<32x1xf32>
    %cst_70 = arith.constant 3.200000e+01 : f32
    %131 = vector.broadcast %cst_70 : f32 to vector<32x1xf32>
    %132 = arith.divf %130, %131 : vector<32x1xf32>
    %cst_71 = arith.constant 9.99999974E-6 : f32
    %133 = vector.broadcast %cst_71 : f32 to vector<32x1xf32>
    %134 = arith.addf %132, %133 : vector<32x1xf32>
    %135 = math.rsqrt %134 : vector<32x1xf32>
    %136 = vector.broadcast %135 : vector<32x1xf32> to vector<32x32xf32>
    %137 = arith.mulf %127, %136 : vector<32x32xf32>
    %138 = vector.broadcast %120 : vector<1x32xf32> to vector<32x32xf32>
    %139 = arith.mulf %137, %138 : vector<32x32xf32>
    %140 = vector.broadcast %121 : vector<1x32xf32> to vector<32x32xf32>
    %141 = arith.addf %139, %140 : vector<32x32xf32>
    %c32_72 = arith.constant 32 : index
    %c0_73 = arith.constant 0 : index
    %142 = vector.load %arg5[%c32_72, %c0_73] : memref<64x256xf32, #tpu.memory_space<vmem>>, vector<32x96xf32>
    %cst_74 = arith.constant dense<0.000000e+00> : vector<32x96xf32>
    %143 = tpu.matmul %141, %142, %cst_74 {dimension_numbers = #tpu.dot_dimension_numbers<[1], [0], [0], [1], [0, 0, 1, 1], [], []>} : vector<32x32xf32>, vector<32x96xf32>, vector<32x96xf32> -> vector<32x96xf32>
    %c1_75 = arith.constant 1 : index
    %c0_76 = arith.constant 0 : index
    %144 = vector.load %arg7[%c1_75, %c0_76] : memref<2x416xf32, #tpu.memory_space<vmem>>, vector<1x96xf32>
    %145 = vector.broadcast %144 : vector<1x96xf32> to vector<32x96xf32>
    %146 = arith.addf %143, %145 : vector<32x96xf32>
    %147 = vector.extract_strided_slice %146 {offsets = [0, 0], sizes = [32, 32], strides = [1, 1]} : vector<32x96xf32> to vector<32x32xf32>
    %148 = vector.extract_strided_slice %146 {offsets = [0, 32], sizes = [32, 32], strides = [1, 1]} : vector<32x96xf32> to vector<32x32xf32>
    %149 = vector.extract_strided_slice %146 {offsets = [0, 64], sizes = [32, 32], strides = [1, 1]} : vector<32x96xf32> to vector<32x32xf32>
    %c0_77 = arith.constant 0 : index
    %c0_78 = arith.constant 0 : index
    %150 = vector.load %arg3[%c0_77, %c0_78] : memref<40x128xf32, #tpu.memory_space<vmem>>, vector<32x128xf32>
    %151 = tpu.transpose %148, [1, 0] : vector<32x32xf32> -> vector<32x32xf32>
    %c0_79 = arith.constant 0 : index
    %c0_80 = arith.constant 0 : index
    %152 = vector.load %arg2[%c0_79, %c0_80] : memref<32x320xf32, #tpu.memory_space<vmem>>, vector<32x128xf32>
    %cst_81 = arith.constant dense<0.000000e+00> : vector<32x128xf32>
    %153 = tpu.matmul %151, %152, %cst_81 {dimension_numbers = #tpu.dot_dimension_numbers<[1], [0], [0], [1], [0, 0, 1, 1], [], []>} : vector<32x32xf32>, vector<32x128xf32>, vector<32x128xf32> -> vector<32x128xf32>
    %154 = arith.mulf %150, %153 : vector<32x128xf32>
    %cst_82 = arith.constant dense<0.000000e+00> : vector<32x128xf32>
    %155 = tpu.matmul %147, %154, %cst_82 {dimension_numbers = #tpu.dot_dimension_numbers<[1], [0], [0], [1], [0, 0, 1, 1], [], []>} : vector<32x32xf32>, vector<32x128xf32>, vector<32x128xf32> -> vector<32x128xf32>
    %c0_83 = arith.constant 0 : index
    %c128_84 = arith.constant 128 : index
    %156 = vector.load %arg2[%c0_83, %c128_84] : memref<32x320xf32, #tpu.memory_space<vmem>>, vector<32x128xf32>
    %157 = arith.addf %155, %156 : vector<32x128xf32>
    %cst_85 = arith.constant dense<0xFF800000> : vector<32xf32>
    %158 = vector.multi_reduction <maximumf>, %157, %cst_85 [1] : vector<32x128xf32> to vector<32xf32>
    %159 = vector.shape_cast %158 : vector<32xf32> to vector<32x1xf32>
    %160 = vector.broadcast %159 : vector<32x1xf32> to vector<32x128xf32>
    %161 = arith.subf %157, %160 : vector<32x128xf32>
    %162 = math.exp %161 : vector<32x128xf32>
    %c0_86 = arith.constant 0 : index
    %c64_87 = arith.constant 64 : index
    %163 = vector.load %arg4[%c0_86, %c64_87] : memref<128x72xf32, #tpu.memory_space<vmem>>, vector<128x8xf32>
    %cst_88 = arith.constant dense<0.000000e+00> : vector<32x8xf32>
    %164 = tpu.matmul %162, %163, %cst_88 {dimension_numbers = #tpu.dot_dimension_numbers<[1], [0], [0], [1], [0, 0, 1, 1], [], []>} : vector<32x128xf32>, vector<128x8xf32>, vector<32x8xf32> -> vector<32x8xf32>
    %cst_89 = arith.constant 1.000000e-30 : f32
    %165 = vector.broadcast %cst_89 : f32 to vector<32x8xf32>
    %166 = arith.maximumf %164, %165 : vector<32x8xf32>
    %167 = tpu.reciprocal %166 : vector<32x8xf32> -> vector<32x8xf32>
    %c32_90 = arith.constant 32 : index
    %c0_91 = arith.constant 0 : index
    %168 = vector.load %arg3[%c32_90, %c0_91] : memref<40x128xf32, #tpu.memory_space<vmem>>, vector<8x128xf32>
    %cst_92 = arith.constant dense<0.000000e+00> : vector<32x128xf32>
    %169 = tpu.matmul %167, %168, %cst_92 {dimension_numbers = #tpu.dot_dimension_numbers<[1], [0], [0], [1], [0, 0, 1, 1], [], []>} : vector<32x8xf32>, vector<8x128xf32>, vector<32x128xf32> -> vector<32x128xf32>
    %170 = arith.mulf %162, %169 : vector<32x128xf32>
    %c0_93 = arith.constant 0 : index
    %c32_94 = arith.constant 32 : index
    %171 = vector.load %arg4[%c0_93, %c32_94] : memref<128x72xf32, #tpu.memory_space<vmem>>, vector<128x32xf32>
    %c0_95 = arith.constant 0 : index
    %c0_96 = arith.constant 0 : index
    %172 = vector.load %arg4[%c0_95, %c0_96] : memref<128x72xf32, #tpu.memory_space<vmem>>, vector<128x32xf32>
    %cst_97 = arith.constant dense<0.000000e+00> : vector<128x32xf32>
    %173 = tpu.matmul %172, %149, %cst_97 {dimension_numbers = #tpu.dot_dimension_numbers<[1], [0], [0], [1], [0, 0, 1, 1], [], []>} : vector<128x32xf32>, vector<32x32xf32>, vector<128x32xf32> -> vector<128x32xf32>
    %174 = arith.mulf %171, %173 : vector<128x32xf32>
    %cst_98 = arith.constant dense<0.000000e+00> : vector<32x32xf32>
    %175 = tpu.matmul %170, %174, %cst_98 {dimension_numbers = #tpu.dot_dimension_numbers<[1], [0], [0], [1], [0, 0, 1, 1], [], []>} : vector<32x128xf32>, vector<128x32xf32>, vector<32x32xf32> -> vector<32x32xf32>
    %c32_99 = arith.constant 32 : index
    %c96_100 = arith.constant 96 : index
    %176 = vector.load %arg5[%c32_99, %c96_100] : memref<64x256xf32, #tpu.memory_space<vmem>>, vector<32x32xf32>
    %cst_101 = arith.constant dense<0.000000e+00> : vector<32x32xf32>
    %177 = tpu.matmul %175, %176, %cst_101 {dimension_numbers = #tpu.dot_dimension_numbers<[1], [0], [0], [1], [0, 0, 1, 1], [], []>} : vector<32x32xf32>, vector<32x32xf32>, vector<32x32xf32> -> vector<32x32xf32>
    %178 = arith.addf %119, %177 : vector<32x32xf32>
    %c1_102 = arith.constant 1 : index
    %c288_103 = arith.constant 288 : index
    %179 = vector.load %arg7[%c1_102, %c288_103] : memref<2x416xf32, #tpu.memory_space<vmem>>, vector<1x32xf32>
    %180 = vector.broadcast %179 : vector<1x32xf32> to vector<32x32xf32>
    %181 = arith.addf %178, %180 : vector<32x32xf32>
    %c1_104 = arith.constant 1 : index
    %c320_105 = arith.constant 320 : index
    %182 = vector.load %arg7[%c1_104, %c320_105] : memref<2x416xf32, #tpu.memory_space<vmem>>, vector<1x32xf32>
    %c1_106 = arith.constant 1 : index
    %c352_107 = arith.constant 352 : index
    %183 = vector.load %arg7[%c1_106, %c352_107] : memref<2x416xf32, #tpu.memory_space<vmem>>, vector<1x32xf32>
    %cst_108 = arith.constant dense<0.000000e+00> : vector<32xf32>
    %184 = vector.multi_reduction <add>, %181, %cst_108 [1] : vector<32x32xf32> to vector<32xf32>
    %185 = vector.shape_cast %184 : vector<32xf32> to vector<32x1xf32>
    %cst_109 = arith.constant 3.200000e+01 : f32
    %186 = vector.broadcast %cst_109 : f32 to vector<32x1xf32>
    %187 = arith.divf %185, %186 : vector<32x1xf32>
    %188 = vector.broadcast %187 : vector<32x1xf32> to vector<32x32xf32>
    %189 = arith.subf %181, %188 : vector<32x32xf32>
    %190 = arith.mulf %189, %189 : vector<32x32xf32>
    %cst_110 = arith.constant dense<0.000000e+00> : vector<32xf32>
    %191 = vector.multi_reduction <add>, %190, %cst_110 [1] : vector<32x32xf32> to vector<32xf32>
    %192 = vector.shape_cast %191 : vector<32xf32> to vector<32x1xf32>
    %cst_111 = arith.constant 3.200000e+01 : f32
    %193 = vector.broadcast %cst_111 : f32 to vector<32x1xf32>
    %194 = arith.divf %192, %193 : vector<32x1xf32>
    %cst_112 = arith.constant 9.99999974E-6 : f32
    %195 = vector.broadcast %cst_112 : f32 to vector<32x1xf32>
    %196 = arith.addf %194, %195 : vector<32x1xf32>
    %197 = math.rsqrt %196 : vector<32x1xf32>
    %198 = vector.broadcast %197 : vector<32x1xf32> to vector<32x32xf32>
    %199 = arith.mulf %189, %198 : vector<32x32xf32>
    %200 = vector.broadcast %182 : vector<1x32xf32> to vector<32x32xf32>
    %201 = arith.mulf %199, %200 : vector<32x32xf32>
    %202 = vector.broadcast %183 : vector<1x32xf32> to vector<32x32xf32>
    %203 = arith.addf %201, %202 : vector<32x32xf32>
    %c32_113 = arith.constant 32 : index
    %c128_114 = arith.constant 128 : index
    %204 = vector.load %arg5[%c32_113, %c128_114] : memref<64x256xf32, #tpu.memory_space<vmem>>, vector<32x128xf32>
    %cst_115 = arith.constant dense<0.000000e+00> : vector<32x128xf32>
    %205 = tpu.matmul %203, %204, %cst_115 {dimension_numbers = #tpu.dot_dimension_numbers<[1], [0], [0], [1], [0, 0, 1, 1], [], []>} : vector<32x32xf32>, vector<32x128xf32>, vector<32x128xf32> -> vector<32x128xf32>
    %c1_116 = arith.constant 1 : index
    %c128_117 = arith.constant 128 : index
    %206 = vector.load %arg7[%c1_116, %c128_117] : memref<2x416xf32, #tpu.memory_space<vmem>>, vector<1x128xf32>
    %207 = vector.broadcast %206 : vector<1x128xf32> to vector<32x128xf32>
    %208 = arith.addf %205, %207 : vector<32x128xf32>
    %cst_118 = arith.constant 5.000000e-01 : f32
    %209 = vector.broadcast %cst_118 : f32 to vector<32x128xf32>
    %210 = arith.mulf %209, %208 : vector<32x128xf32>
    %cst_119 = arith.constant 4.471500e-02 : f32
    %211 = vector.broadcast %cst_119 : f32 to vector<32x128xf32>
    %212 = arith.mulf %211, %208 : vector<32x128xf32>
    %213 = arith.mulf %212, %208 : vector<32x128xf32>
    %214 = arith.mulf %213, %208 : vector<32x128xf32>
    %215 = arith.addf %208, %214 : vector<32x128xf32>
    %cst_120 = arith.constant 0.797884583 : f32
    %216 = vector.broadcast %cst_120 : f32 to vector<32x128xf32>
    %217 = arith.mulf %216, %215 : vector<32x128xf32>
    %218 = math.tanh %217 : vector<32x128xf32>
    %cst_121 = arith.constant 1.000000e+00 : f32
    %219 = vector.broadcast %cst_121 : f32 to vector<32x128xf32>
    %220 = arith.addf %219, %218 : vector<32x128xf32>
    %221 = arith.mulf %210, %220 : vector<32x128xf32>
    %c128_122 = arith.constant 128 : index
    %c0_123 = arith.constant 0 : index
    %222 = vector.load %arg6[%c128_122, %c0_123] : memref<256x32xf32, #tpu.memory_space<vmem>>, vector<128x32xf32>
    %cst_124 = arith.constant dense<0.000000e+00> : vector<32x32xf32>
    %223 = tpu.matmul %221, %222, %cst_124 {dimension_numbers = #tpu.dot_dimension_numbers<[1], [0], [0], [1], [0, 0, 1, 1], [], []>} : vector<32x128xf32>, vector<128x32xf32>, vector<32x32xf32> -> vector<32x32xf32>
    %224 = arith.addf %181, %223 : vector<32x32xf32>
    %c1_125 = arith.constant 1 : index
    %c384_126 = arith.constant 384 : index
    %225 = vector.load %arg7[%c1_125, %c384_126] : memref<2x416xf32, #tpu.memory_space<vmem>>, vector<1x32xf32>
    %226 = vector.broadcast %225 : vector<1x32xf32> to vector<32x32xf32>
    %227 = arith.addf %224, %226 : vector<32x32xf32>
    %c5 = arith.constant 5 : index
    %c0_127 = arith.constant 0 : index
    %228 = vector.load %arg8[%c5, %c0_127] : memref<9x32xf32, #tpu.memory_space<vmem>>, vector<1x32xf32>
    %c6 = arith.constant 6 : index
    %c0_128 = arith.constant 0 : index
    %229 = vector.load %arg8[%c6, %c0_128] : memref<9x32xf32, #tpu.memory_space<vmem>>, vector<1x32xf32>
    %cst_129 = arith.constant dense<0.000000e+00> : vector<32xf32>
    %230 = vector.multi_reduction <add>, %227, %cst_129 [1] : vector<32x32xf32> to vector<32xf32>
    %231 = vector.shape_cast %230 : vector<32xf32> to vector<32x1xf32>
    %cst_130 = arith.constant 3.200000e+01 : f32
    %232 = vector.broadcast %cst_130 : f32 to vector<32x1xf32>
    %233 = arith.divf %231, %232 : vector<32x1xf32>
    %234 = vector.broadcast %233 : vector<32x1xf32> to vector<32x32xf32>
    %235 = arith.subf %227, %234 : vector<32x32xf32>
    %236 = arith.mulf %235, %235 : vector<32x32xf32>
    %cst_131 = arith.constant dense<0.000000e+00> : vector<32xf32>
    %237 = vector.multi_reduction <add>, %236, %cst_131 [1] : vector<32x32xf32> to vector<32xf32>
    %238 = vector.shape_cast %237 : vector<32xf32> to vector<32x1xf32>
    %cst_132 = arith.constant 3.200000e+01 : f32
    %239 = vector.broadcast %cst_132 : f32 to vector<32x1xf32>
    %240 = arith.divf %238, %239 : vector<32x1xf32>
    %cst_133 = arith.constant 9.99999974E-6 : f32
    %241 = vector.broadcast %cst_133 : f32 to vector<32x1xf32>
    %242 = arith.addf %240, %241 : vector<32x1xf32>
    %243 = math.rsqrt %242 : vector<32x1xf32>
    %244 = vector.broadcast %243 : vector<32x1xf32> to vector<32x32xf32>
    %245 = arith.mulf %235, %244 : vector<32x32xf32>
    %246 = vector.broadcast %228 : vector<1x32xf32> to vector<32x32xf32>
    %247 = arith.mulf %245, %246 : vector<32x32xf32>
    %248 = vector.broadcast %229 : vector<1x32xf32> to vector<32x32xf32>
    %249 = arith.addf %247, %248 : vector<32x32xf32>
    %250 = arith.mulf %249, %8 : vector<32x32xf32>
    %251 = arith.addf %250, %7 : vector<32x32xf32>
    %c0_134 = arith.constant 0 : index
    %c96_135 = arith.constant 96 : index
    %252 = vector.load %arg7[%c0_134, %c96_135] : memref<2x416xf32, #tpu.memory_space<vmem>>, vector<1x32xf32>
    %c0_136 = arith.constant 0 : index
    %c256_137 = arith.constant 256 : index
    %253 = vector.load %arg7[%c0_136, %c256_137] : memref<2x416xf32, #tpu.memory_space<vmem>>, vector<1x32xf32>
    %cst_138 = arith.constant dense<0.000000e+00> : vector<32xf32>
    %254 = vector.multi_reduction <add>, %251, %cst_138 [1] : vector<32x32xf32> to vector<32xf32>
    %255 = vector.shape_cast %254 : vector<32xf32> to vector<32x1xf32>
    %cst_139 = arith.constant 3.200000e+01 : f32
    %256 = vector.broadcast %cst_139 : f32 to vector<32x1xf32>
    %257 = arith.divf %255, %256 : vector<32x1xf32>
    %258 = vector.broadcast %257 : vector<32x1xf32> to vector<32x32xf32>
    %259 = arith.subf %251, %258 : vector<32x32xf32>
    %260 = arith.mulf %259, %259 : vector<32x32xf32>
    %cst_140 = arith.constant dense<0.000000e+00> : vector<32xf32>
    %261 = vector.multi_reduction <add>, %260, %cst_140 [1] : vector<32x32xf32> to vector<32xf32>
    %262 = vector.shape_cast %261 : vector<32xf32> to vector<32x1xf32>
    %cst_141 = arith.constant 3.200000e+01 : f32
    %263 = vector.broadcast %cst_141 : f32 to vector<32x1xf32>
    %264 = arith.divf %262, %263 : vector<32x1xf32>
    %cst_142 = arith.constant 9.99999974E-6 : f32
    %265 = vector.broadcast %cst_142 : f32 to vector<32x1xf32>
    %266 = arith.addf %264, %265 : vector<32x1xf32>
    %267 = math.rsqrt %266 : vector<32x1xf32>
    %268 = vector.broadcast %267 : vector<32x1xf32> to vector<32x32xf32>
    %269 = arith.mulf %259, %268 : vector<32x32xf32>
    %270 = vector.broadcast %252 : vector<1x32xf32> to vector<32x32xf32>
    %271 = arith.mulf %269, %270 : vector<32x32xf32>
    %272 = vector.broadcast %253 : vector<1x32xf32> to vector<32x32xf32>
    %273 = arith.addf %271, %272 : vector<32x32xf32>
    %c0_143 = arith.constant 0 : index
    %c0_144 = arith.constant 0 : index
    %274 = vector.load %arg5[%c0_143, %c0_144] : memref<64x256xf32, #tpu.memory_space<vmem>>, vector<32x96xf32>
    %cst_145 = arith.constant dense<0.000000e+00> : vector<32x96xf32>
    %275 = tpu.matmul %273, %274, %cst_145 {dimension_numbers = #tpu.dot_dimension_numbers<[1], [0], [0], [1], [0, 0, 1, 1], [], []>} : vector<32x32xf32>, vector<32x96xf32>, vector<32x96xf32> -> vector<32x96xf32>
    %c0_146 = arith.constant 0 : index
    %c0_147 = arith.constant 0 : index
    %276 = vector.load %arg7[%c0_146, %c0_147] : memref<2x416xf32, #tpu.memory_space<vmem>>, vector<1x96xf32>
    %277 = vector.broadcast %276 : vector<1x96xf32> to vector<32x96xf32>
    %278 = arith.addf %275, %277 : vector<32x96xf32>
    %279 = vector.extract_strided_slice %278 {offsets = [0, 0], sizes = [32, 32], strides = [1, 1]} : vector<32x96xf32> to vector<32x32xf32>
    %280 = vector.extract_strided_slice %278 {offsets = [0, 32], sizes = [32, 32], strides = [1, 1]} : vector<32x96xf32> to vector<32x32xf32>
    %281 = vector.extract_strided_slice %278 {offsets = [0, 64], sizes = [32, 32], strides = [1, 1]} : vector<32x96xf32> to vector<32x32xf32>
    %c0_148 = arith.constant 0 : index
    %c0_149 = arith.constant 0 : index
    %282 = vector.load %arg3[%c0_148, %c0_149] : memref<40x128xf32, #tpu.memory_space<vmem>>, vector<32x128xf32>
    %283 = tpu.transpose %280, [1, 0] : vector<32x32xf32> -> vector<32x32xf32>
    %c0_150 = arith.constant 0 : index
    %c0_151 = arith.constant 0 : index
    %284 = vector.load %arg2[%c0_150, %c0_151] : memref<32x320xf32, #tpu.memory_space<vmem>>, vector<32x128xf32>
    %cst_152 = arith.constant dense<0.000000e+00> : vector<32x128xf32>
    %285 = tpu.matmul %283, %284, %cst_152 {dimension_numbers = #tpu.dot_dimension_numbers<[1], [0], [0], [1], [0, 0, 1, 1], [], []>} : vector<32x32xf32>, vector<32x128xf32>, vector<32x128xf32> -> vector<32x128xf32>
    %286 = arith.mulf %282, %285 : vector<32x128xf32>
    %cst_153 = arith.constant dense<0.000000e+00> : vector<32x128xf32>
    %287 = tpu.matmul %279, %286, %cst_153 {dimension_numbers = #tpu.dot_dimension_numbers<[1], [0], [0], [1], [0, 0, 1, 1], [], []>} : vector<32x32xf32>, vector<32x128xf32>, vector<32x128xf32> -> vector<32x128xf32>
    %c0_154 = arith.constant 0 : index
    %c128_155 = arith.constant 128 : index
    %288 = vector.load %arg2[%c0_154, %c128_155] : memref<32x320xf32, #tpu.memory_space<vmem>>, vector<32x128xf32>
    %289 = arith.addf %287, %288 : vector<32x128xf32>
    %cst_156 = arith.constant dense<0xFF800000> : vector<32xf32>
    %290 = vector.multi_reduction <maximumf>, %289, %cst_156 [1] : vector<32x128xf32> to vector<32xf32>
    %291 = vector.shape_cast %290 : vector<32xf32> to vector<32x1xf32>
    %292 = vector.broadcast %291 : vector<32x1xf32> to vector<32x128xf32>
    %293 = arith.subf %289, %292 : vector<32x128xf32>
    %294 = math.exp %293 : vector<32x128xf32>
    %c0_157 = arith.constant 0 : index
    %c64_158 = arith.constant 64 : index
    %295 = vector.load %arg4[%c0_157, %c64_158] : memref<128x72xf32, #tpu.memory_space<vmem>>, vector<128x8xf32>
    %cst_159 = arith.constant dense<0.000000e+00> : vector<32x8xf32>
    %296 = tpu.matmul %294, %295, %cst_159 {dimension_numbers = #tpu.dot_dimension_numbers<[1], [0], [0], [1], [0, 0, 1, 1], [], []>} : vector<32x128xf32>, vector<128x8xf32>, vector<32x8xf32> -> vector<32x8xf32>
    %cst_160 = arith.constant 1.000000e-30 : f32
    %297 = vector.broadcast %cst_160 : f32 to vector<32x8xf32>
    %298 = arith.maximumf %296, %297 : vector<32x8xf32>
    %299 = tpu.reciprocal %298 : vector<32x8xf32> -> vector<32x8xf32>
    %c32_161 = arith.constant 32 : index
    %c0_162 = arith.constant 0 : index
    %300 = vector.load %arg3[%c32_161, %c0_162] : memref<40x128xf32, #tpu.memory_space<vmem>>, vector<8x128xf32>
    %cst_163 = arith.constant dense<0.000000e+00> : vector<32x128xf32>
    %301 = tpu.matmul %299, %300, %cst_163 {dimension_numbers = #tpu.dot_dimension_numbers<[1], [0], [0], [1], [0, 0, 1, 1], [], []>} : vector<32x8xf32>, vector<8x128xf32>, vector<32x128xf32> -> vector<32x128xf32>
    %302 = arith.mulf %294, %301 : vector<32x128xf32>
    %c0_164 = arith.constant 0 : index
    %c32_165 = arith.constant 32 : index
    %303 = vector.load %arg4[%c0_164, %c32_165] : memref<128x72xf32, #tpu.memory_space<vmem>>, vector<128x32xf32>
    %c0_166 = arith.constant 0 : index
    %c0_167 = arith.constant 0 : index
    %304 = vector.load %arg4[%c0_166, %c0_167] : memref<128x72xf32, #tpu.memory_space<vmem>>, vector<128x32xf32>
    %cst_168 = arith.constant dense<0.000000e+00> : vector<128x32xf32>
    %305 = tpu.matmul %304, %281, %cst_168 {dimension_numbers = #tpu.dot_dimension_numbers<[1], [0], [0], [1], [0, 0, 1, 1], [], []>} : vector<128x32xf32>, vector<32x32xf32>, vector<128x32xf32> -> vector<128x32xf32>
    %306 = arith.mulf %303, %305 : vector<128x32xf32>
    %cst_169 = arith.constant dense<0.000000e+00> : vector<32x32xf32>
    %307 = tpu.matmul %302, %306, %cst_169 {dimension_numbers = #tpu.dot_dimension_numbers<[1], [0], [0], [1], [0, 0, 1, 1], [], []>} : vector<32x128xf32>, vector<128x32xf32>, vector<32x32xf32> -> vector<32x32xf32>
    %c0_170 = arith.constant 0 : index
    %c96_171 = arith.constant 96 : index
    %308 = vector.load %arg5[%c0_170, %c96_171] : memref<64x256xf32, #tpu.memory_space<vmem>>, vector<32x32xf32>
    %cst_172 = arith.constant dense<0.000000e+00> : vector<32x32xf32>
    %309 = tpu.matmul %307, %308, %cst_172 {dimension_numbers = #tpu.dot_dimension_numbers<[1], [0], [0], [1], [0, 0, 1, 1], [], []>} : vector<32x32xf32>, vector<32x32xf32>, vector<32x32xf32> -> vector<32x32xf32>
    %310 = arith.addf %251, %309 : vector<32x32xf32>
    %c0_173 = arith.constant 0 : index
    %c288_174 = arith.constant 288 : index
    %311 = vector.load %arg7[%c0_173, %c288_174] : memref<2x416xf32, #tpu.memory_space<vmem>>, vector<1x32xf32>
    %312 = vector.broadcast %311 : vector<1x32xf32> to vector<32x32xf32>
    %313 = arith.addf %310, %312 : vector<32x32xf32>
    %c0_175 = arith.constant 0 : index
    %c320_176 = arith.constant 320 : index
    %314 = vector.load %arg7[%c0_175, %c320_176] : memref<2x416xf32, #tpu.memory_space<vmem>>, vector<1x32xf32>
    %c0_177 = arith.constant 0 : index
    %c352_178 = arith.constant 352 : index
    %315 = vector.load %arg7[%c0_177, %c352_178] : memref<2x416xf32, #tpu.memory_space<vmem>>, vector<1x32xf32>
    %cst_179 = arith.constant dense<0.000000e+00> : vector<32xf32>
    %316 = vector.multi_reduction <add>, %313, %cst_179 [1] : vector<32x32xf32> to vector<32xf32>
    %317 = vector.shape_cast %316 : vector<32xf32> to vector<32x1xf32>
    %cst_180 = arith.constant 3.200000e+01 : f32
    %318 = vector.broadcast %cst_180 : f32 to vector<32x1xf32>
    %319 = arith.divf %317, %318 : vector<32x1xf32>
    %320 = vector.broadcast %319 : vector<32x1xf32> to vector<32x32xf32>
    %321 = arith.subf %313, %320 : vector<32x32xf32>
    %322 = arith.mulf %321, %321 : vector<32x32xf32>
    %cst_181 = arith.constant dense<0.000000e+00> : vector<32xf32>
    %323 = vector.multi_reduction <add>, %322, %cst_181 [1] : vector<32x32xf32> to vector<32xf32>
    %324 = vector.shape_cast %323 : vector<32xf32> to vector<32x1xf32>
    %cst_182 = arith.constant 3.200000e+01 : f32
    %325 = vector.broadcast %cst_182 : f32 to vector<32x1xf32>
    %326 = arith.divf %324, %325 : vector<32x1xf32>
    %cst_183 = arith.constant 9.99999974E-6 : f32
    %327 = vector.broadcast %cst_183 : f32 to vector<32x1xf32>
    %328 = arith.addf %326, %327 : vector<32x1xf32>
    %329 = math.rsqrt %328 : vector<32x1xf32>
    %330 = vector.broadcast %329 : vector<32x1xf32> to vector<32x32xf32>
    %331 = arith.mulf %321, %330 : vector<32x32xf32>
    %332 = vector.broadcast %314 : vector<1x32xf32> to vector<32x32xf32>
    %333 = arith.mulf %331, %332 : vector<32x32xf32>
    %334 = vector.broadcast %315 : vector<1x32xf32> to vector<32x32xf32>
    %335 = arith.addf %333, %334 : vector<32x32xf32>
    %c0_184 = arith.constant 0 : index
    %c128_185 = arith.constant 128 : index
    %336 = vector.load %arg5[%c0_184, %c128_185] : memref<64x256xf32, #tpu.memory_space<vmem>>, vector<32x128xf32>
    %cst_186 = arith.constant dense<0.000000e+00> : vector<32x128xf32>
    %337 = tpu.matmul %335, %336, %cst_186 {dimension_numbers = #tpu.dot_dimension_numbers<[1], [0], [0], [1], [0, 0, 1, 1], [], []>} : vector<32x32xf32>, vector<32x128xf32>, vector<32x128xf32> -> vector<32x128xf32>
    %c0_187 = arith.constant 0 : index
    %c128_188 = arith.constant 128 : index
    %338 = vector.load %arg7[%c0_187, %c128_188] : memref<2x416xf32, #tpu.memory_space<vmem>>, vector<1x128xf32>
    %339 = vector.broadcast %338 : vector<1x128xf32> to vector<32x128xf32>
    %340 = arith.addf %337, %339 : vector<32x128xf32>
    %cst_189 = arith.constant 5.000000e-01 : f32
    %341 = vector.broadcast %cst_189 : f32 to vector<32x128xf32>
    %342 = arith.mulf %341, %340 : vector<32x128xf32>
    %cst_190 = arith.constant 4.471500e-02 : f32
    %343 = vector.broadcast %cst_190 : f32 to vector<32x128xf32>
    %344 = arith.mulf %343, %340 : vector<32x128xf32>
    %345 = arith.mulf %344, %340 : vector<32x128xf32>
    %346 = arith.mulf %345, %340 : vector<32x128xf32>
    %347 = arith.addf %340, %346 : vector<32x128xf32>
    %cst_191 = arith.constant 0.797884583 : f32
    %348 = vector.broadcast %cst_191 : f32 to vector<32x128xf32>
    %349 = arith.mulf %348, %347 : vector<32x128xf32>
    %350 = math.tanh %349 : vector<32x128xf32>
    %cst_192 = arith.constant 1.000000e+00 : f32
    %351 = vector.broadcast %cst_192 : f32 to vector<32x128xf32>
    %352 = arith.addf %351, %350 : vector<32x128xf32>
    %353 = arith.mulf %342, %352 : vector<32x128xf32>
    %c0_193 = arith.constant 0 : index
    %c0_194 = arith.constant 0 : index
    %354 = vector.load %arg6[%c0_193, %c0_194] : memref<256x32xf32, #tpu.memory_space<vmem>>, vector<128x32xf32>
    %cst_195 = arith.constant dense<0.000000e+00> : vector<32x32xf32>
    %355 = tpu.matmul %353, %354, %cst_195 {dimension_numbers = #tpu.dot_dimension_numbers<[1], [0], [0], [1], [0, 0, 1, 1], [], []>} : vector<32x128xf32>, vector<128x32xf32>, vector<32x32xf32> -> vector<32x32xf32>
    %356 = arith.addf %313, %355 : vector<32x32xf32>
    %c0_196 = arith.constant 0 : index
    %c384_197 = arith.constant 384 : index
    %357 = vector.load %arg7[%c0_196, %c384_197] : memref<2x416xf32, #tpu.memory_space<vmem>>, vector<1x32xf32>
    %358 = vector.broadcast %357 : vector<1x32xf32> to vector<32x32xf32>
    %359 = arith.addf %356, %358 : vector<32x32xf32>
    %c1_198 = arith.constant 1 : index
    %c96_199 = arith.constant 96 : index
    %360 = vector.load %arg7[%c1_198, %c96_199] : memref<2x416xf32, #tpu.memory_space<vmem>>, vector<1x32xf32>
    %c1_200 = arith.constant 1 : index
    %c256_201 = arith.constant 256 : index
    %361 = vector.load %arg7[%c1_200, %c256_201] : memref<2x416xf32, #tpu.memory_space<vmem>>, vector<1x32xf32>
    %cst_202 = arith.constant dense<0.000000e+00> : vector<32xf32>
    %362 = vector.multi_reduction <add>, %359, %cst_202 [1] : vector<32x32xf32> to vector<32xf32>
    %363 = vector.shape_cast %362 : vector<32xf32> to vector<32x1xf32>
    %cst_203 = arith.constant 3.200000e+01 : f32
    %364 = vector.broadcast %cst_203 : f32 to vector<32x1xf32>
    %365 = arith.divf %363, %364 : vector<32x1xf32>
    %366 = vector.broadcast %365 : vector<32x1xf32> to vector<32x32xf32>
    %367 = arith.subf %359, %366 : vector<32x32xf32>
    %368 = arith.mulf %367, %367 : vector<32x32xf32>
    %cst_204 = arith.constant dense<0.000000e+00> : vector<32xf32>
    %369 = vector.multi_reduction <add>, %368, %cst_204 [1] : vector<32x32xf32> to vector<32xf32>
    %370 = vector.shape_cast %369 : vector<32xf32> to vector<32x1xf32>
    %cst_205 = arith.constant 3.200000e+01 : f32
    %371 = vector.broadcast %cst_205 : f32 to vector<32x1xf32>
    %372 = arith.divf %370, %371 : vector<32x1xf32>
    %cst_206 = arith.constant 9.99999974E-6 : f32
    %373 = vector.broadcast %cst_206 : f32 to vector<32x1xf32>
    %374 = arith.addf %372, %373 : vector<32x1xf32>
    %375 = math.rsqrt %374 : vector<32x1xf32>
    %376 = vector.broadcast %375 : vector<32x1xf32> to vector<32x32xf32>
    %377 = arith.mulf %367, %376 : vector<32x32xf32>
    %378 = vector.broadcast %360 : vector<1x32xf32> to vector<32x32xf32>
    %379 = arith.mulf %377, %378 : vector<32x32xf32>
    %380 = vector.broadcast %361 : vector<1x32xf32> to vector<32x32xf32>
    %381 = arith.addf %379, %380 : vector<32x32xf32>
    %c32_207 = arith.constant 32 : index
    %c0_208 = arith.constant 0 : index
    %382 = vector.load %arg5[%c32_207, %c0_208] : memref<64x256xf32, #tpu.memory_space<vmem>>, vector<32x96xf32>
    %cst_209 = arith.constant dense<0.000000e+00> : vector<32x96xf32>
    %383 = tpu.matmul %381, %382, %cst_209 {dimension_numbers = #tpu.dot_dimension_numbers<[1], [0], [0], [1], [0, 0, 1, 1], [], []>} : vector<32x32xf32>, vector<32x96xf32>, vector<32x96xf32> -> vector<32x96xf32>
    %c1_210 = arith.constant 1 : index
    %c0_211 = arith.constant 0 : index
    %384 = vector.load %arg7[%c1_210, %c0_211] : memref<2x416xf32, #tpu.memory_space<vmem>>, vector<1x96xf32>
    %385 = vector.broadcast %384 : vector<1x96xf32> to vector<32x96xf32>
    %386 = arith.addf %383, %385 : vector<32x96xf32>
    %387 = vector.extract_strided_slice %386 {offsets = [0, 0], sizes = [32, 32], strides = [1, 1]} : vector<32x96xf32> to vector<32x32xf32>
    %388 = vector.extract_strided_slice %386 {offsets = [0, 32], sizes = [32, 32], strides = [1, 1]} : vector<32x96xf32> to vector<32x32xf32>
    %389 = vector.extract_strided_slice %386 {offsets = [0, 64], sizes = [32, 32], strides = [1, 1]} : vector<32x96xf32> to vector<32x32xf32>
    %c0_212 = arith.constant 0 : index
    %c0_213 = arith.constant 0 : index
    %390 = vector.load %arg3[%c0_212, %c0_213] : memref<40x128xf32, #tpu.memory_space<vmem>>, vector<32x128xf32>
    %391 = tpu.transpose %388, [1, 0] : vector<32x32xf32> -> vector<32x32xf32>
    %c0_214 = arith.constant 0 : index
    %c0_215 = arith.constant 0 : index
    %392 = vector.load %arg2[%c0_214, %c0_215] : memref<32x320xf32, #tpu.memory_space<vmem>>, vector<32x128xf32>
    %cst_216 = arith.constant dense<0.000000e+00> : vector<32x128xf32>
    %393 = tpu.matmul %391, %392, %cst_216 {dimension_numbers = #tpu.dot_dimension_numbers<[1], [0], [0], [1], [0, 0, 1, 1], [], []>} : vector<32x32xf32>, vector<32x128xf32>, vector<32x128xf32> -> vector<32x128xf32>
    %394 = arith.mulf %390, %393 : vector<32x128xf32>
    %cst_217 = arith.constant dense<0.000000e+00> : vector<32x128xf32>
    %395 = tpu.matmul %387, %394, %cst_217 {dimension_numbers = #tpu.dot_dimension_numbers<[1], [0], [0], [1], [0, 0, 1, 1], [], []>} : vector<32x32xf32>, vector<32x128xf32>, vector<32x128xf32> -> vector<32x128xf32>
    %c0_218 = arith.constant 0 : index
    %c128_219 = arith.constant 128 : index
    %396 = vector.load %arg2[%c0_218, %c128_219] : memref<32x320xf32, #tpu.memory_space<vmem>>, vector<32x128xf32>
    %397 = arith.addf %395, %396 : vector<32x128xf32>
    %cst_220 = arith.constant dense<0xFF800000> : vector<32xf32>
    %398 = vector.multi_reduction <maximumf>, %397, %cst_220 [1] : vector<32x128xf32> to vector<32xf32>
    %399 = vector.shape_cast %398 : vector<32xf32> to vector<32x1xf32>
    %400 = vector.broadcast %399 : vector<32x1xf32> to vector<32x128xf32>
    %401 = arith.subf %397, %400 : vector<32x128xf32>
    %402 = math.exp %401 : vector<32x128xf32>
    %c0_221 = arith.constant 0 : index
    %c64_222 = arith.constant 64 : index
    %403 = vector.load %arg4[%c0_221, %c64_222] : memref<128x72xf32, #tpu.memory_space<vmem>>, vector<128x8xf32>
    %cst_223 = arith.constant dense<0.000000e+00> : vector<32x8xf32>
    %404 = tpu.matmul %402, %403, %cst_223 {dimension_numbers = #tpu.dot_dimension_numbers<[1], [0], [0], [1], [0, 0, 1, 1], [], []>} : vector<32x128xf32>, vector<128x8xf32>, vector<32x8xf32> -> vector<32x8xf32>
    %cst_224 = arith.constant 1.000000e-30 : f32
    %405 = vector.broadcast %cst_224 : f32 to vector<32x8xf32>
    %406 = arith.maximumf %404, %405 : vector<32x8xf32>
    %407 = tpu.reciprocal %406 : vector<32x8xf32> -> vector<32x8xf32>
    %c32_225 = arith.constant 32 : index
    %c0_226 = arith.constant 0 : index
    %408 = vector.load %arg3[%c32_225, %c0_226] : memref<40x128xf32, #tpu.memory_space<vmem>>, vector<8x128xf32>
    %cst_227 = arith.constant dense<0.000000e+00> : vector<32x128xf32>
    %409 = tpu.matmul %407, %408, %cst_227 {dimension_numbers = #tpu.dot_dimension_numbers<[1], [0], [0], [1], [0, 0, 1, 1], [], []>} : vector<32x8xf32>, vector<8x128xf32>, vector<32x128xf32> -> vector<32x128xf32>
    %410 = arith.mulf %402, %409 : vector<32x128xf32>
    %c0_228 = arith.constant 0 : index
    %c32_229 = arith.constant 32 : index
    %411 = vector.load %arg4[%c0_228, %c32_229] : memref<128x72xf32, #tpu.memory_space<vmem>>, vector<128x32xf32>
    %c0_230 = arith.constant 0 : index
    %c0_231 = arith.constant 0 : index
    %412 = vector.load %arg4[%c0_230, %c0_231] : memref<128x72xf32, #tpu.memory_space<vmem>>, vector<128x32xf32>
    %cst_232 = arith.constant dense<0.000000e+00> : vector<128x32xf32>
    %413 = tpu.matmul %412, %389, %cst_232 {dimension_numbers = #tpu.dot_dimension_numbers<[1], [0], [0], [1], [0, 0, 1, 1], [], []>} : vector<128x32xf32>, vector<32x32xf32>, vector<128x32xf32> -> vector<128x32xf32>
    %414 = arith.mulf %411, %413 : vector<128x32xf32>
    %cst_233 = arith.constant dense<0.000000e+00> : vector<32x32xf32>
    %415 = tpu.matmul %410, %414, %cst_233 {dimension_numbers = #tpu.dot_dimension_numbers<[1], [0], [0], [1], [0, 0, 1, 1], [], []>} : vector<32x128xf32>, vector<128x32xf32>, vector<32x32xf32> -> vector<32x32xf32>
    %c32_234 = arith.constant 32 : index
    %c96_235 = arith.constant 96 : index
    %416 = vector.load %arg5[%c32_234, %c96_235] : memref<64x256xf32, #tpu.memory_space<vmem>>, vector<32x32xf32>
    %cst_236 = arith.constant dense<0.000000e+00> : vector<32x32xf32>
    %417 = tpu.matmul %415, %416, %cst_236 {dimension_numbers = #tpu.dot_dimension_numbers<[1], [0], [0], [1], [0, 0, 1, 1], [], []>} : vector<32x32xf32>, vector<32x32xf32>, vector<32x32xf32> -> vector<32x32xf32>
    %418 = arith.addf %359, %417 : vector<32x32xf32>
    %c1_237 = arith.constant 1 : index
    %c288_238 = arith.constant 288 : index
    %419 = vector.load %arg7[%c1_237, %c288_238] : memref<2x416xf32, #tpu.memory_space<vmem>>, vector<1x32xf32>
    %420 = vector.broadcast %419 : vector<1x32xf32> to vector<32x32xf32>
    %421 = arith.addf %418, %420 : vector<32x32xf32>
    %c1_239 = arith.constant 1 : index
    %c320_240 = arith.constant 320 : index
    %422 = vector.load %arg7[%c1_239, %c320_240] : memref<2x416xf32, #tpu.memory_space<vmem>>, vector<1x32xf32>
    %c1_241 = arith.constant 1 : index
    %c352_242 = arith.constant 352 : index
    %423 = vector.load %arg7[%c1_241, %c352_242] : memref<2x416xf32, #tpu.memory_space<vmem>>, vector<1x32xf32>
    %cst_243 = arith.constant dense<0.000000e+00> : vector<32xf32>
    %424 = vector.multi_reduction <add>, %421, %cst_243 [1] : vector<32x32xf32> to vector<32xf32>
    %425 = vector.shape_cast %424 : vector<32xf32> to vector<32x1xf32>
    %cst_244 = arith.constant 3.200000e+01 : f32
    %426 = vector.broadcast %cst_244 : f32 to vector<32x1xf32>
    %427 = arith.divf %425, %426 : vector<32x1xf32>
    %428 = vector.broadcast %427 : vector<32x1xf32> to vector<32x32xf32>
    %429 = arith.subf %421, %428 : vector<32x32xf32>
    %430 = arith.mulf %429, %429 : vector<32x32xf32>
    %cst_245 = arith.constant dense<0.000000e+00> : vector<32xf32>
    %431 = vector.multi_reduction <add>, %430, %cst_245 [1] : vector<32x32xf32> to vector<32xf32>
    %432 = vector.shape_cast %431 : vector<32xf32> to vector<32x1xf32>
    %cst_246 = arith.constant 3.200000e+01 : f32
    %433 = vector.broadcast %cst_246 : f32 to vector<32x1xf32>
    %434 = arith.divf %432, %433 : vector<32x1xf32>
    %cst_247 = arith.constant 9.99999974E-6 : f32
    %435 = vector.broadcast %cst_247 : f32 to vector<32x1xf32>
    %436 = arith.addf %434, %435 : vector<32x1xf32>
    %437 = math.rsqrt %436 : vector<32x1xf32>
    %438 = vector.broadcast %437 : vector<32x1xf32> to vector<32x32xf32>
    %439 = arith.mulf %429, %438 : vector<32x32xf32>
    %440 = vector.broadcast %422 : vector<1x32xf32> to vector<32x32xf32>
    %441 = arith.mulf %439, %440 : vector<32x32xf32>
    %442 = vector.broadcast %423 : vector<1x32xf32> to vector<32x32xf32>
    %443 = arith.addf %441, %442 : vector<32x32xf32>
    %c32_248 = arith.constant 32 : index
    %c128_249 = arith.constant 128 : index
    %444 = vector.load %arg5[%c32_248, %c128_249] : memref<64x256xf32, #tpu.memory_space<vmem>>, vector<32x128xf32>
    %cst_250 = arith.constant dense<0.000000e+00> : vector<32x128xf32>
    %445 = tpu.matmul %443, %444, %cst_250 {dimension_numbers = #tpu.dot_dimension_numbers<[1], [0], [0], [1], [0, 0, 1, 1], [], []>} : vector<32x32xf32>, vector<32x128xf32>, vector<32x128xf32> -> vector<32x128xf32>
    %c1_251 = arith.constant 1 : index
    %c128_252 = arith.constant 128 : index
    %446 = vector.load %arg7[%c1_251, %c128_252] : memref<2x416xf32, #tpu.memory_space<vmem>>, vector<1x128xf32>
    %447 = vector.broadcast %446 : vector<1x128xf32> to vector<32x128xf32>
    %448 = arith.addf %445, %447 : vector<32x128xf32>
    %cst_253 = arith.constant 5.000000e-01 : f32
    %449 = vector.broadcast %cst_253 : f32 to vector<32x128xf32>
    %450 = arith.mulf %449, %448 : vector<32x128xf32>
    %cst_254 = arith.constant 4.471500e-02 : f32
    %451 = vector.broadcast %cst_254 : f32 to vector<32x128xf32>
    %452 = arith.mulf %451, %448 : vector<32x128xf32>
    %453 = arith.mulf %452, %448 : vector<32x128xf32>
    %454 = arith.mulf %453, %448 : vector<32x128xf32>
    %455 = arith.addf %448, %454 : vector<32x128xf32>
    %cst_255 = arith.constant 0.797884583 : f32
    %456 = vector.broadcast %cst_255 : f32 to vector<32x128xf32>
    %457 = arith.mulf %456, %455 : vector<32x128xf32>
    %458 = math.tanh %457 : vector<32x128xf32>
    %cst_256 = arith.constant 1.000000e+00 : f32
    %459 = vector.broadcast %cst_256 : f32 to vector<32x128xf32>
    %460 = arith.addf %459, %458 : vector<32x128xf32>
    %461 = arith.mulf %450, %460 : vector<32x128xf32>
    %c128_257 = arith.constant 128 : index
    %c0_258 = arith.constant 0 : index
    %462 = vector.load %arg6[%c128_257, %c0_258] : memref<256x32xf32, #tpu.memory_space<vmem>>, vector<128x32xf32>
    %cst_259 = arith.constant dense<0.000000e+00> : vector<32x32xf32>
    %463 = tpu.matmul %461, %462, %cst_259 {dimension_numbers = #tpu.dot_dimension_numbers<[1], [0], [0], [1], [0, 0, 1, 1], [], []>} : vector<32x128xf32>, vector<128x32xf32>, vector<32x32xf32> -> vector<32x32xf32>
    %464 = arith.addf %421, %463 : vector<32x32xf32>
    %c1_260 = arith.constant 1 : index
    %c384_261 = arith.constant 384 : index
    %465 = vector.load %arg7[%c1_260, %c384_261] : memref<2x416xf32, #tpu.memory_space<vmem>>, vector<1x32xf32>
    %466 = vector.broadcast %465 : vector<1x32xf32> to vector<32x32xf32>
    %467 = arith.addf %464, %466 : vector<32x32xf32>
    %c5_262 = arith.constant 5 : index
    %c0_263 = arith.constant 0 : index
    %468 = vector.load %arg8[%c5_262, %c0_263] : memref<9x32xf32, #tpu.memory_space<vmem>>, vector<1x32xf32>
    %c6_264 = arith.constant 6 : index
    %c0_265 = arith.constant 0 : index
    %469 = vector.load %arg8[%c6_264, %c0_265] : memref<9x32xf32, #tpu.memory_space<vmem>>, vector<1x32xf32>
    %cst_266 = arith.constant dense<0.000000e+00> : vector<32xf32>
    %470 = vector.multi_reduction <add>, %467, %cst_266 [1] : vector<32x32xf32> to vector<32xf32>
    %471 = vector.shape_cast %470 : vector<32xf32> to vector<32x1xf32>
    %cst_267 = arith.constant 3.200000e+01 : f32
    %472 = vector.broadcast %cst_267 : f32 to vector<32x1xf32>
    %473 = arith.divf %471, %472 : vector<32x1xf32>
    %474 = vector.broadcast %473 : vector<32x1xf32> to vector<32x32xf32>
    %475 = arith.subf %467, %474 : vector<32x32xf32>
    %476 = arith.mulf %475, %475 : vector<32x32xf32>
    %cst_268 = arith.constant dense<0.000000e+00> : vector<32xf32>
    %477 = vector.multi_reduction <add>, %476, %cst_268 [1] : vector<32x32xf32> to vector<32xf32>
    %478 = vector.shape_cast %477 : vector<32xf32> to vector<32x1xf32>
    %cst_269 = arith.constant 3.200000e+01 : f32
    %479 = vector.broadcast %cst_269 : f32 to vector<32x1xf32>
    %480 = arith.divf %478, %479 : vector<32x1xf32>
    %cst_270 = arith.constant 9.99999974E-6 : f32
    %481 = vector.broadcast %cst_270 : f32 to vector<32x1xf32>
    %482 = arith.addf %480, %481 : vector<32x1xf32>
    %483 = math.rsqrt %482 : vector<32x1xf32>
    %484 = vector.broadcast %483 : vector<32x1xf32> to vector<32x32xf32>
    %485 = arith.mulf %475, %484 : vector<32x32xf32>
    %486 = vector.broadcast %468 : vector<1x32xf32> to vector<32x32xf32>
    %487 = arith.mulf %485, %486 : vector<32x32xf32>
    %488 = vector.broadcast %469 : vector<1x32xf32> to vector<32x32xf32>
    %489 = arith.addf %487, %488 : vector<32x32xf32>
    %c7 = arith.constant 7 : index
    %c0_271 = arith.constant 0 : index
    %490 = vector.load %arg8[%c7, %c0_271] : memref<9x32xf32, #tpu.memory_space<vmem>>, vector<1x32xf32>
    %491 = tpu.transpose %489, [1, 0] : vector<32x32xf32> -> vector<32x32xf32>
    %cst_272 = arith.constant dense<0.000000e+00> : vector<1x32xf32>
    %492 = tpu.matmul %490, %491, %cst_272 {dimension_numbers = #tpu.dot_dimension_numbers<[1], [0], [0], [1], [0, 0, 1, 1], [], []>} : vector<1x32xf32>, vector<32x32xf32>, vector<1x32xf32> -> vector<1x32xf32>
    %c8 = arith.constant 8 : index
    %c0_273 = arith.constant 0 : index
    %493 = vector.load %arg8[%c8, %c0_273] : memref<9x32xf32, #tpu.memory_space<vmem>>, vector<1x1xf32>
    %494 = vector.broadcast %493 : vector<1x1xf32> to vector<1x32xf32>
    %495 = arith.addf %492, %494 : vector<1x32xf32>
    %c0_274 = arith.constant 0 : index
    %c0_275 = arith.constant 0 : index
    %496 = vector.load %arg9[%c0_274, %c0_275] : memref<2x32xf32, #tpu.memory_space<vmem>>, vector<1x32xf32>
    tpu.vector_store %arg9[%c0_274, %c0_275], %495 {strides = array<i32>} : memref<2x32xf32, #tpu.memory_space<vmem>>, vector<1x32xf32>,
    %497 = arith.mulf %489, %8 : vector<32x32xf32>
    %498 = arith.addf %497, %7 : vector<32x32xf32>
    %c0_276 = arith.constant 0 : index
    %c96_277 = arith.constant 96 : index
    %499 = vector.load %arg7[%c0_276, %c96_277] : memref<2x416xf32, #tpu.memory_space<vmem>>, vector<1x32xf32>
    %c0_278 = arith.constant 0 : index
    %c256_279 = arith.constant 256 : index
    %500 = vector.load %arg7[%c0_278, %c256_279] : memref<2x416xf32, #tpu.memory_space<vmem>>, vector<1x32xf32>
    %cst_280 = arith.constant dense<0.000000e+00> : vector<32xf32>
    %501 = vector.multi_reduction <add>, %498, %cst_280 [1] : vector<32x32xf32> to vector<32xf32>
    %502 = vector.shape_cast %501 : vector<32xf32> to vector<32x1xf32>
    %cst_281 = arith.constant 3.200000e+01 : f32
    %503 = vector.broadcast %cst_281 : f32 to vector<32x1xf32>
    %504 = arith.divf %502, %503 : vector<32x1xf32>
    %505 = vector.broadcast %504 : vector<32x1xf32> to vector<32x32xf32>
    %506 = arith.subf %498, %505 : vector<32x32xf32>
    %507 = arith.mulf %506, %506 : vector<32x32xf32>
    %cst_282 = arith.constant dense<0.000000e+00> : vector<32xf32>
    %508 = vector.multi_reduction <add>, %507, %cst_282 [1] : vector<32x32xf32> to vector<32xf32>
    %509 = vector.shape_cast %508 : vector<32xf32> to vector<32x1xf32>
    %cst_283 = arith.constant 3.200000e+01 : f32
    %510 = vector.broadcast %cst_283 : f32 to vector<32x1xf32>
    %511 = arith.divf %509, %510 : vector<32x1xf32>
    %cst_284 = arith.constant 9.99999974E-6 : f32
    %512 = vector.broadcast %cst_284 : f32 to vector<32x1xf32>
    %513 = arith.addf %511, %512 : vector<32x1xf32>
    %514 = math.rsqrt %513 : vector<32x1xf32>
    %515 = vector.broadcast %514 : vector<32x1xf32> to vector<32x32xf32>
    %516 = arith.mulf %506, %515 : vector<32x32xf32>
    %517 = vector.broadcast %499 : vector<1x32xf32> to vector<32x32xf32>
    %518 = arith.mulf %516, %517 : vector<32x32xf32>
    %519 = vector.broadcast %500 : vector<1x32xf32> to vector<32x32xf32>
    %520 = arith.addf %518, %519 : vector<32x32xf32>
    %c0_285 = arith.constant 0 : index
    %c0_286 = arith.constant 0 : index
    %521 = vector.load %arg5[%c0_285, %c0_286] : memref<64x256xf32, #tpu.memory_space<vmem>>, vector<32x96xf32>
    %cst_287 = arith.constant dense<0.000000e+00> : vector<32x96xf32>
    %522 = tpu.matmul %520, %521, %cst_287 {dimension_numbers = #tpu.dot_dimension_numbers<[1], [0], [0], [1], [0, 0, 1, 1], [], []>} : vector<32x32xf32>, vector<32x96xf32>, vector<32x96xf32> -> vector<32x96xf32>
    %c0_288 = arith.constant 0 : index
    %c0_289 = arith.constant 0 : index
    %523 = vector.load %arg7[%c0_288, %c0_289] : memref<2x416xf32, #tpu.memory_space<vmem>>, vector<1x96xf32>
    %524 = vector.broadcast %523 : vector<1x96xf32> to vector<32x96xf32>
    %525 = arith.addf %522, %524 : vector<32x96xf32>
    %526 = vector.extract_strided_slice %525 {offsets = [0, 0], sizes = [32, 32], strides = [1, 1]} : vector<32x96xf32> to vector<32x32xf32>
    %527 = vector.extract_strided_slice %525 {offsets = [0, 32], sizes = [32, 32], strides = [1, 1]} : vector<32x96xf32> to vector<32x32xf32>
    %528 = vector.extract_strided_slice %525 {offsets = [0, 64], sizes = [32, 32], strides = [1, 1]} : vector<32x96xf32> to vector<32x32xf32>
    %c0_290 = arith.constant 0 : index
    %c0_291 = arith.constant 0 : index
    %529 = vector.load %arg3[%c0_290, %c0_291] : memref<40x128xf32, #tpu.memory_space<vmem>>, vector<32x128xf32>
    %530 = tpu.transpose %527, [1, 0] : vector<32x32xf32> -> vector<32x32xf32>
    %c0_292 = arith.constant 0 : index
    %c0_293 = arith.constant 0 : index
    %531 = vector.load %arg2[%c0_292, %c0_293] : memref<32x320xf32, #tpu.memory_space<vmem>>, vector<32x128xf32>
    %cst_294 = arith.constant dense<0.000000e+00> : vector<32x128xf32>
    %532 = tpu.matmul %530, %531, %cst_294 {dimension_numbers = #tpu.dot_dimension_numbers<[1], [0], [0], [1], [0, 0, 1, 1], [], []>} : vector<32x32xf32>, vector<32x128xf32>, vector<32x128xf32> -> vector<32x128xf32>
    %533 = arith.mulf %529, %532 : vector<32x128xf32>
    %cst_295 = arith.constant dense<0.000000e+00> : vector<32x128xf32>
    %534 = tpu.matmul %526, %533, %cst_295 {dimension_numbers = #tpu.dot_dimension_numbers<[1], [0], [0], [1], [0, 0, 1, 1], [], []>} : vector<32x32xf32>, vector<32x128xf32>, vector<32x128xf32> -> vector<32x128xf32>
    %c0_296 = arith.constant 0 : index
    %c128_297 = arith.constant 128 : index
    %535 = vector.load %arg2[%c0_296, %c128_297] : memref<32x320xf32, #tpu.memory_space<vmem>>, vector<32x128xf32>
    %536 = arith.addf %534, %535 : vector<32x128xf32>
    %cst_298 = arith.constant dense<0xFF800000> : vector<32xf32>
    %537 = vector.multi_reduction <maximumf>, %536, %cst_298 [1] : vector<32x128xf32> to vector<32xf32>
    %538 = vector.shape_cast %537 : vector<32xf32> to vector<32x1xf32>
    %539 = vector.broadcast %538 : vector<32x1xf32> to vector<32x128xf32>
    %540 = arith.subf %536, %539 : vector<32x128xf32>
    %541 = math.exp %540 : vector<32x128xf32>
    %c0_299 = arith.constant 0 : index
    %c64_300 = arith.constant 64 : index
    %542 = vector.load %arg4[%c0_299, %c64_300] : memref<128x72xf32, #tpu.memory_space<vmem>>, vector<128x8xf32>
    %cst_301 = arith.constant dense<0.000000e+00> : vector<32x8xf32>
    %543 = tpu.matmul %541, %542, %cst_301 {dimension_numbers = #tpu.dot_dimension_numbers<[1], [0], [0], [1], [0, 0, 1, 1], [], []>} : vector<32x128xf32>, vector<128x8xf32>, vector<32x8xf32> -> vector<32x8xf32>
    %cst_302 = arith.constant 1.000000e-30 : f32
    %544 = vector.broadcast %cst_302 : f32 to vector<32x8xf32>
    %545 = arith.maximumf %543, %544 : vector<32x8xf32>
    %546 = tpu.reciprocal %545 : vector<32x8xf32> -> vector<32x8xf32>
    %c32_303 = arith.constant 32 : index
    %c0_304 = arith.constant 0 : index
    %547 = vector.load %arg3[%c32_303, %c0_304] : memref<40x128xf32, #tpu.memory_space<vmem>>, vector<8x128xf32>
    %cst_305 = arith.constant dense<0.000000e+00> : vector<32x128xf32>
    %548 = tpu.matmul %546, %547, %cst_305 {dimension_numbers = #tpu.dot_dimension_numbers<[1], [0], [0], [1], [0, 0, 1, 1], [], []>} : vector<32x8xf32>, vector<8x128xf32>, vector<32x128xf32> -> vector<32x128xf32>
    %549 = arith.mulf %541, %548 : vector<32x128xf32>
    %c0_306 = arith.constant 0 : index
    %c32_307 = arith.constant 32 : index
    %550 = vector.load %arg4[%c0_306, %c32_307] : memref<128x72xf32, #tpu.memory_space<vmem>>, vector<128x32xf32>
    %c0_308 = arith.constant 0 : index
    %c0_309 = arith.constant 0 : index
    %551 = vector.load %arg4[%c0_308, %c0_309] : memref<128x72xf32, #tpu.memory_space<vmem>>, vector<128x32xf32>
    %cst_310 = arith.constant dense<0.000000e+00> : vector<128x32xf32>
    %552 = tpu.matmul %551, %528, %cst_310 {dimension_numbers = #tpu.dot_dimension_numbers<[1], [0], [0], [1], [0, 0, 1, 1], [], []>} : vector<128x32xf32>, vector<32x32xf32>, vector<128x32xf32> -> vector<128x32xf32>
    %553 = arith.mulf %550, %552 : vector<128x32xf32>
    %cst_311 = arith.constant dense<0.000000e+00> : vector<32x32xf32>
    %554 = tpu.matmul %549, %553, %cst_311 {dimension_numbers = #tpu.dot_dimension_numbers<[1], [0], [0], [1], [0, 0, 1, 1], [], []>} : vector<32x128xf32>, vector<128x32xf32>, vector<32x32xf32> -> vector<32x32xf32>
    %c0_312 = arith.constant 0 : index
    %c96_313 = arith.constant 96 : index
    %555 = vector.load %arg5[%c0_312, %c96_313] : memref<64x256xf32, #tpu.memory_space<vmem>>, vector<32x32xf32>
    %cst_314 = arith.constant dense<0.000000e+00> : vector<32x32xf32>
    %556 = tpu.matmul %554, %555, %cst_314 {dimension_numbers = #tpu.dot_dimension_numbers<[1], [0], [0], [1], [0, 0, 1, 1], [], []>} : vector<32x32xf32>, vector<32x32xf32>, vector<32x32xf32> -> vector<32x32xf32>
    %557 = arith.addf %498, %556 : vector<32x32xf32>
    %c0_315 = arith.constant 0 : index
    %c288_316 = arith.constant 288 : index
    %558 = vector.load %arg7[%c0_315, %c288_316] : memref<2x416xf32, #tpu.memory_space<vmem>>, vector<1x32xf32>
    %559 = vector.broadcast %558 : vector<1x32xf32> to vector<32x32xf32>
    %560 = arith.addf %557, %559 : vector<32x32xf32>
    %c0_317 = arith.constant 0 : index
    %c320_318 = arith.constant 320 : index
    %561 = vector.load %arg7[%c0_317, %c320_318] : memref<2x416xf32, #tpu.memory_space<vmem>>, vector<1x32xf32>
    %c0_319 = arith.constant 0 : index
    %c352_320 = arith.constant 352 : index
    %562 = vector.load %arg7[%c0_319, %c352_320] : memref<2x416xf32, #tpu.memory_space<vmem>>, vector<1x32xf32>
    %cst_321 = arith.constant dense<0.000000e+00> : vector<32xf32>
    %563 = vector.multi_reduction <add>, %560, %cst_321 [1] : vector<32x32xf32> to vector<32xf32>
    %564 = vector.shape_cast %563 : vector<32xf32> to vector<32x1xf32>
    %cst_322 = arith.constant 3.200000e+01 : f32
    %565 = vector.broadcast %cst_322 : f32 to vector<32x1xf32>
    %566 = arith.divf %564, %565 : vector<32x1xf32>
    %567 = vector.broadcast %566 : vector<32x1xf32> to vector<32x32xf32>
    %568 = arith.subf %560, %567 : vector<32x32xf32>
    %569 = arith.mulf %568, %568 : vector<32x32xf32>
    %cst_323 = arith.constant dense<0.000000e+00> : vector<32xf32>
    %570 = vector.multi_reduction <add>, %569, %cst_323 [1] : vector<32x32xf32> to vector<32xf32>
    %571 = vector.shape_cast %570 : vector<32xf32> to vector<32x1xf32>
    %cst_324 = arith.constant 3.200000e+01 : f32
    %572 = vector.broadcast %cst_324 : f32 to vector<32x1xf32>
    %573 = arith.divf %571, %572 : vector<32x1xf32>
    %cst_325 = arith.constant 9.99999974E-6 : f32
    %574 = vector.broadcast %cst_325 : f32 to vector<32x1xf32>
    %575 = arith.addf %573, %574 : vector<32x1xf32>
    %576 = math.rsqrt %575 : vector<32x1xf32>
    %577 = vector.broadcast %576 : vector<32x1xf32> to vector<32x32xf32>
    %578 = arith.mulf %568, %577 : vector<32x32xf32>
    %579 = vector.broadcast %561 : vector<1x32xf32> to vector<32x32xf32>
    %580 = arith.mulf %578, %579 : vector<32x32xf32>
    %581 = vector.broadcast %562 : vector<1x32xf32> to vector<32x32xf32>
    %582 = arith.addf %580, %581 : vector<32x32xf32>
    %c0_326 = arith.constant 0 : index
    %c128_327 = arith.constant 128 : index
    %583 = vector.load %arg5[%c0_326, %c128_327] : memref<64x256xf32, #tpu.memory_space<vmem>>, vector<32x128xf32>
    %cst_328 = arith.constant dense<0.000000e+00> : vector<32x128xf32>
    %584 = tpu.matmul %582, %583, %cst_328 {dimension_numbers = #tpu.dot_dimension_numbers<[1], [0], [0], [1], [0, 0, 1, 1], [], []>} : vector<32x32xf32>, vector<32x128xf32>, vector<32x128xf32> -> vector<32x128xf32>
    %c0_329 = arith.constant 0 : index
    %c128_330 = arith.constant 128 : index
    %585 = vector.load %arg7[%c0_329, %c128_330] : memref<2x416xf32, #tpu.memory_space<vmem>>, vector<1x128xf32>
    %586 = vector.broadcast %585 : vector<1x128xf32> to vector<32x128xf32>
    %587 = arith.addf %584, %586 : vector<32x128xf32>
    %cst_331 = arith.constant 5.000000e-01 : f32
    %588 = vector.broadcast %cst_331 : f32 to vector<32x128xf32>
    %589 = arith.mulf %588, %587 : vector<32x128xf32>
    %cst_332 = arith.constant 4.471500e-02 : f32
    %590 = vector.broadcast %cst_332 : f32 to vector<32x128xf32>
    %591 = arith.mulf %590, %587 : vector<32x128xf32>
    %592 = arith.mulf %591, %587 : vector<32x128xf32>
    %593 = arith.mulf %592, %587 : vector<32x128xf32>
    %594 = arith.addf %587, %593 : vector<32x128xf32>
    %cst_333 = arith.constant 0.797884583 : f32
    %595 = vector.broadcast %cst_333 : f32 to vector<32x128xf32>
    %596 = arith.mulf %595, %594 : vector<32x128xf32>
    %597 = math.tanh %596 : vector<32x128xf32>
    %cst_334 = arith.constant 1.000000e+00 : f32
    %598 = vector.broadcast %cst_334 : f32 to vector<32x128xf32>
    %599 = arith.addf %598, %597 : vector<32x128xf32>
    %600 = arith.mulf %589, %599 : vector<32x128xf32>
    %c0_335 = arith.constant 0 : index
    %c0_336 = arith.constant 0 : index
    %601 = vector.load %arg6[%c0_335, %c0_336] : memref<256x32xf32, #tpu.memory_space<vmem>>, vector<128x32xf32>
    %cst_337 = arith.constant dense<0.000000e+00> : vector<32x32xf32>
    %602 = tpu.matmul %600, %601, %cst_337 {dimension_numbers = #tpu.dot_dimension_numbers<[1], [0], [0], [1], [0, 0, 1, 1], [], []>} : vector<32x128xf32>, vector<128x32xf32>, vector<32x32xf32> -> vector<32x32xf32>
    %603 = arith.addf %560, %602 : vector<32x32xf32>
    %c0_338 = arith.constant 0 : index
    %c384_339 = arith.constant 384 : index
    %604 = vector.load %arg7[%c0_338, %c384_339] : memref<2x416xf32, #tpu.memory_space<vmem>>, vector<1x32xf32>
    %605 = vector.broadcast %604 : vector<1x32xf32> to vector<32x32xf32>
    %606 = arith.addf %603, %605 : vector<32x32xf32>
    %c1_340 = arith.constant 1 : index
    %c96_341 = arith.constant 96 : index
    %607 = vector.load %arg7[%c1_340, %c96_341] : memref<2x416xf32, #tpu.memory_space<vmem>>, vector<1x32xf32>
    %c1_342 = arith.constant 1 : index
    %c256_343 = arith.constant 256 : index
    %608 = vector.load %arg7[%c1_342, %c256_343] : memref<2x416xf32, #tpu.memory_space<vmem>>, vector<1x32xf32>
    %cst_344 = arith.constant dense<0.000000e+00> : vector<32xf32>
    %609 = vector.multi_reduction <add>, %606, %cst_344 [1] : vector<32x32xf32> to vector<32xf32>
    %610 = vector.shape_cast %609 : vector<32xf32> to vector<32x1xf32>
    %cst_345 = arith.constant 3.200000e+01 : f32
    %611 = vector.broadcast %cst_345 : f32 to vector<32x1xf32>
    %612 = arith.divf %610, %611 : vector<32x1xf32>
    %613 = vector.broadcast %612 : vector<32x1xf32> to vector<32x32xf32>
    %614 = arith.subf %606, %613 : vector<32x32xf32>
    %615 = arith.mulf %614, %614 : vector<32x32xf32>
    %cst_346 = arith.constant dense<0.000000e+00> : vector<32xf32>
    %616 = vector.multi_reduction <add>, %615, %cst_346 [1] : vector<32x32xf32> to vector<32xf32>
    %617 = vector.shape_cast %616 : vector<32xf32> to vector<32x1xf32>
    %cst_347 = arith.constant 3.200000e+01 : f32
    %618 = vector.broadcast %cst_347 : f32 to vector<32x1xf32>
    %619 = arith.divf %617, %618 : vector<32x1xf32>
    %cst_348 = arith.constant 9.99999974E-6 : f32
    %620 = vector.broadcast %cst_348 : f32 to vector<32x1xf32>
    %621 = arith.addf %619, %620 : vector<32x1xf32>
    %622 = math.rsqrt %621 : vector<32x1xf32>
    %623 = vector.broadcast %622 : vector<32x1xf32> to vector<32x32xf32>
    %624 = arith.mulf %614, %623 : vector<32x32xf32>
    %625 = vector.broadcast %607 : vector<1x32xf32> to vector<32x32xf32>
    %626 = arith.mulf %624, %625 : vector<32x32xf32>
    %627 = vector.broadcast %608 : vector<1x32xf32> to vector<32x32xf32>
    %628 = arith.addf %626, %627 : vector<32x32xf32>
    %c32_349 = arith.constant 32 : index
    %c0_350 = arith.constant 0 : index
    %629 = vector.load %arg5[%c32_349, %c0_350] : memref<64x256xf32, #tpu.memory_space<vmem>>, vector<32x96xf32>
    %cst_351 = arith.constant dense<0.000000e+00> : vector<32x96xf32>
    %630 = tpu.matmul %628, %629, %cst_351 {dimension_numbers = #tpu.dot_dimension_numbers<[1], [0], [0], [1], [0, 0, 1, 1], [], []>} : vector<32x32xf32>, vector<32x96xf32>, vector<32x96xf32> -> vector<32x96xf32>
    %c1_352 = arith.constant 1 : index
    %c0_353 = arith.constant 0 : index
    %631 = vector.load %arg7[%c1_352, %c0_353] : memref<2x416xf32, #tpu.memory_space<vmem>>, vector<1x96xf32>
    %632 = vector.broadcast %631 : vector<1x96xf32> to vector<32x96xf32>
    %633 = arith.addf %630, %632 : vector<32x96xf32>
    %634 = vector.extract_strided_slice %633 {offsets = [0, 0], sizes = [32, 32], strides = [1, 1]} : vector<32x96xf32> to vector<32x32xf32>
    %635 = vector.extract_strided_slice %633 {offsets = [0, 32], sizes = [32, 32], strides = [1, 1]} : vector<32x96xf32> to vector<32x32xf32>
    %636 = vector.extract_strided_slice %633 {offsets = [0, 64], sizes = [32, 32], strides = [1, 1]} : vector<32x96xf32> to vector<32x32xf32>
    %c0_354 = arith.constant 0 : index
    %c0_355 = arith.constant 0 : index
    %637 = vector.load %arg3[%c0_354, %c0_355] : memref<40x128xf32, #tpu.memory_space<vmem>>, vector<32x128xf32>
    %638 = tpu.transpose %635, [1, 0] : vector<32x32xf32> -> vector<32x32xf32>
    %c0_356 = arith.constant 0 : index
    %c0_357 = arith.constant 0 : index
    %639 = vector.load %arg2[%c0_356, %c0_357] : memref<32x320xf32, #tpu.memory_space<vmem>>, vector<32x128xf32>
    %cst_358 = arith.constant dense<0.000000e+00> : vector<32x128xf32>
    %640 = tpu.matmul %638, %639, %cst_358 {dimension_numbers = #tpu.dot_dimension_numbers<[1], [0], [0], [1], [0, 0, 1, 1], [], []>} : vector<32x32xf32>, vector<32x128xf32>, vector<32x128xf32> -> vector<32x128xf32>
    %641 = arith.mulf %637, %640 : vector<32x128xf32>
    %cst_359 = arith.constant dense<0.000000e+00> : vector<32x128xf32>
    %642 = tpu.matmul %634, %641, %cst_359 {dimension_numbers = #tpu.dot_dimension_numbers<[1], [0], [0], [1], [0, 0, 1, 1], [], []>} : vector<32x32xf32>, vector<32x128xf32>, vector<32x128xf32> -> vector<32x128xf32>
    %c0_360 = arith.constant 0 : index
    %c128_361 = arith.constant 128 : index
    %643 = vector.load %arg2[%c0_360, %c128_361] : memref<32x320xf32, #tpu.memory_space<vmem>>, vector<32x128xf32>
    %644 = arith.addf %642, %643 : vector<32x128xf32>
    %cst_362 = arith.constant dense<0xFF800000> : vector<32xf32>
    %645 = vector.multi_reduction <maximumf>, %644, %cst_362 [1] : vector<32x128xf32> to vector<32xf32>
    %646 = vector.shape_cast %645 : vector<32xf32> to vector<32x1xf32>
    %647 = vector.broadcast %646 : vector<32x1xf32> to vector<32x128xf32>
    %648 = arith.subf %644, %647 : vector<32x128xf32>
    %649 = math.exp %648 : vector<32x128xf32>
    %c0_363 = arith.constant 0 : index
    %c64_364 = arith.constant 64 : index
    %650 = vector.load %arg4[%c0_363, %c64_364] : memref<128x72xf32, #tpu.memory_space<vmem>>, vector<128x8xf32>
    %cst_365 = arith.constant dense<0.000000e+00> : vector<32x8xf32>
    %651 = tpu.matmul %649, %650, %cst_365 {dimension_numbers = #tpu.dot_dimension_numbers<[1], [0], [0], [1], [0, 0, 1, 1], [], []>} : vector<32x128xf32>, vector<128x8xf32>, vector<32x8xf32> -> vector<32x8xf32>
    %cst_366 = arith.constant 1.000000e-30 : f32
    %652 = vector.broadcast %cst_366 : f32 to vector<32x8xf32>
    %653 = arith.maximumf %651, %652 : vector<32x8xf32>
    %654 = tpu.reciprocal %653 : vector<32x8xf32> -> vector<32x8xf32>
    %c32_367 = arith.constant 32 : index
    %c0_368 = arith.constant 0 : index
    %655 = vector.load %arg3[%c32_367, %c0_368] : memref<40x128xf32, #tpu.memory_space<vmem>>, vector<8x128xf32>
    %cst_369 = arith.constant dense<0.000000e+00> : vector<32x128xf32>
    %656 = tpu.matmul %654, %655, %cst_369 {dimension_numbers = #tpu.dot_dimension_numbers<[1], [0], [0], [1], [0, 0, 1, 1], [], []>} : vector<32x8xf32>, vector<8x128xf32>, vector<32x128xf32> -> vector<32x128xf32>
    %657 = arith.mulf %649, %656 : vector<32x128xf32>
    %c0_370 = arith.constant 0 : index
    %c32_371 = arith.constant 32 : index
    %658 = vector.load %arg4[%c0_370, %c32_371] : memref<128x72xf32, #tpu.memory_space<vmem>>, vector<128x32xf32>
    %c0_372 = arith.constant 0 : index
    %c0_373 = arith.constant 0 : index
    %659 = vector.load %arg4[%c0_372, %c0_373] : memref<128x72xf32, #tpu.memory_space<vmem>>, vector<128x32xf32>
    %cst_374 = arith.constant dense<0.000000e+00> : vector<128x32xf32>
    %660 = tpu.matmul %659, %636, %cst_374 {dimension_numbers = #tpu.dot_dimension_numbers<[1], [0], [0], [1], [0, 0, 1, 1], [], []>} : vector<128x32xf32>, vector<32x32xf32>, vector<128x32xf32> -> vector<128x32xf32>
    %661 = arith.mulf %658, %660 : vector<128x32xf32>
    %cst_375 = arith.constant dense<0.000000e+00> : vector<32x32xf32>
    %662 = tpu.matmul %657, %661, %cst_375 {dimension_numbers = #tpu.dot_dimension_numbers<[1], [0], [0], [1], [0, 0, 1, 1], [], []>} : vector<32x128xf32>, vector<128x32xf32>, vector<32x32xf32> -> vector<32x32xf32>
    %c32_376 = arith.constant 32 : index
    %c96_377 = arith.constant 96 : index
    %663 = vector.load %arg5[%c32_376, %c96_377] : memref<64x256xf32, #tpu.memory_space<vmem>>, vector<32x32xf32>
    %cst_378 = arith.constant dense<0.000000e+00> : vector<32x32xf32>
    %664 = tpu.matmul %662, %663, %cst_378 {dimension_numbers = #tpu.dot_dimension_numbers<[1], [0], [0], [1], [0, 0, 1, 1], [], []>} : vector<32x32xf32>, vector<32x32xf32>, vector<32x32xf32> -> vector<32x32xf32>
    %665 = arith.addf %606, %664 : vector<32x32xf32>
    %c1_379 = arith.constant 1 : index
    %c288_380 = arith.constant 288 : index
    %666 = vector.load %arg7[%c1_379, %c288_380] : memref<2x416xf32, #tpu.memory_space<vmem>>, vector<1x32xf32>
    %667 = vector.broadcast %666 : vector<1x32xf32> to vector<32x32xf32>
    %668 = arith.addf %665, %667 : vector<32x32xf32>
    %c1_381 = arith.constant 1 : index
    %c320_382 = arith.constant 320 : index
    %669 = vector.load %arg7[%c1_381, %c320_382] : memref<2x416xf32, #tpu.memory_space<vmem>>, vector<1x32xf32>
    %c1_383 = arith.constant 1 : index
    %c352_384 = arith.constant 352 : index
    %670 = vector.load %arg7[%c1_383, %c352_384] : memref<2x416xf32, #tpu.memory_space<vmem>>, vector<1x32xf32>
    %cst_385 = arith.constant dense<0.000000e+00> : vector<32xf32>
    %671 = vector.multi_reduction <add>, %668, %cst_385 [1] : vector<32x32xf32> to vector<32xf32>
    %672 = vector.shape_cast %671 : vector<32xf32> to vector<32x1xf32>
    %cst_386 = arith.constant 3.200000e+01 : f32
    %673 = vector.broadcast %cst_386 : f32 to vector<32x1xf32>
    %674 = arith.divf %672, %673 : vector<32x1xf32>
    %675 = vector.broadcast %674 : vector<32x1xf32> to vector<32x32xf32>
    %676 = arith.subf %668, %675 : vector<32x32xf32>
    %677 = arith.mulf %676, %676 : vector<32x32xf32>
    %cst_387 = arith.constant dense<0.000000e+00> : vector<32xf32>
    %678 = vector.multi_reduction <add>, %677, %cst_387 [1] : vector<32x32xf32> to vector<32xf32>
    %679 = vector.shape_cast %678 : vector<32xf32> to vector<32x1xf32>
    %cst_388 = arith.constant 3.200000e+01 : f32
    %680 = vector.broadcast %cst_388 : f32 to vector<32x1xf32>
    %681 = arith.divf %679, %680 : vector<32x1xf32>
    %cst_389 = arith.constant 9.99999974E-6 : f32
    %682 = vector.broadcast %cst_389 : f32 to vector<32x1xf32>
    %683 = arith.addf %681, %682 : vector<32x1xf32>
    %684 = math.rsqrt %683 : vector<32x1xf32>
    %685 = vector.broadcast %684 : vector<32x1xf32> to vector<32x32xf32>
    %686 = arith.mulf %676, %685 : vector<32x32xf32>
    %687 = vector.broadcast %669 : vector<1x32xf32> to vector<32x32xf32>
    %688 = arith.mulf %686, %687 : vector<32x32xf32>
    %689 = vector.broadcast %670 : vector<1x32xf32> to vector<32x32xf32>
    %690 = arith.addf %688, %689 : vector<32x32xf32>
    %c32_390 = arith.constant 32 : index
    %c128_391 = arith.constant 128 : index
    %691 = vector.load %arg5[%c32_390, %c128_391] : memref<64x256xf32, #tpu.memory_space<vmem>>, vector<32x128xf32>
    %cst_392 = arith.constant dense<0.000000e+00> : vector<32x128xf32>
    %692 = tpu.matmul %690, %691, %cst_392 {dimension_numbers = #tpu.dot_dimension_numbers<[1], [0], [0], [1], [0, 0, 1, 1], [], []>} : vector<32x32xf32>, vector<32x128xf32>, vector<32x128xf32> -> vector<32x128xf32>
    %c1_393 = arith.constant 1 : index
    %c128_394 = arith.constant 128 : index
    %693 = vector.load %arg7[%c1_393, %c128_394] : memref<2x416xf32, #tpu.memory_space<vmem>>, vector<1x128xf32>
    %694 = vector.broadcast %693 : vector<1x128xf32> to vector<32x128xf32>
    %695 = arith.addf %692, %694 : vector<32x128xf32>
    %cst_395 = arith.constant 5.000000e-01 : f32
    %696 = vector.broadcast %cst_395 : f32 to vector<32x128xf32>
    %697 = arith.mulf %696, %695 : vector<32x128xf32>
    %cst_396 = arith.constant 4.471500e-02 : f32
    %698 = vector.broadcast %cst_396 : f32 to vector<32x128xf32>
    %699 = arith.mulf %698, %695 : vector<32x128xf32>
    %700 = arith.mulf %699, %695 : vector<32x128xf32>
    %701 = arith.mulf %700, %695 : vector<32x128xf32>
    %702 = arith.addf %695, %701 : vector<32x128xf32>
    %cst_397 = arith.constant 0.797884583 : f32
    %703 = vector.broadcast %cst_397 : f32 to vector<32x128xf32>
    %704 = arith.mulf %703, %702 : vector<32x128xf32>
    %705 = math.tanh %704 : vector<32x128xf32>
    %cst_398 = arith.constant 1.000000e+00 : f32
    %706 = vector.broadcast %cst_398 : f32 to vector<32x128xf32>
    %707 = arith.addf %706, %705 : vector<32x128xf32>
    %708 = arith.mulf %697, %707 : vector<32x128xf32>
    %c128_399 = arith.constant 128 : index
    %c0_400 = arith.constant 0 : index
    %709 = vector.load %arg6[%c128_399, %c0_400] : memref<256x32xf32, #tpu.memory_space<vmem>>, vector<128x32xf32>
    %cst_401 = arith.constant dense<0.000000e+00> : vector<32x32xf32>
    %710 = tpu.matmul %708, %709, %cst_401 {dimension_numbers = #tpu.dot_dimension_numbers<[1], [0], [0], [1], [0, 0, 1, 1], [], []>} : vector<32x128xf32>, vector<128x32xf32>, vector<32x32xf32> -> vector<32x32xf32>
    %711 = arith.addf %668, %710 : vector<32x32xf32>
    %c1_402 = arith.constant 1 : index
    %c384_403 = arith.constant 384 : index
    %712 = vector.load %arg7[%c1_402, %c384_403] : memref<2x416xf32, #tpu.memory_space<vmem>>, vector<1x32xf32>
    %713 = vector.broadcast %712 : vector<1x32xf32> to vector<32x32xf32>
    %714 = arith.addf %711, %713 : vector<32x32xf32>
    %c5_404 = arith.constant 5 : index
    %c0_405 = arith.constant 0 : index
    %715 = vector.load %arg8[%c5_404, %c0_405] : memref<9x32xf32, #tpu.memory_space<vmem>>, vector<1x32xf32>
    %c6_406 = arith.constant 6 : index
    %c0_407 = arith.constant 0 : index
    %716 = vector.load %arg8[%c6_406, %c0_407] : memref<9x32xf32, #tpu.memory_space<vmem>>, vector<1x32xf32>
    %cst_408 = arith.constant dense<0.000000e+00> : vector<32xf32>
    %717 = vector.multi_reduction <add>, %714, %cst_408 [1] : vector<32x32xf32> to vector<32xf32>
    %718 = vector.shape_cast %717 : vector<32xf32> to vector<32x1xf32>
    %cst_409 = arith.constant 3.200000e+01 : f32
    %719 = vector.broadcast %cst_409 : f32 to vector<32x1xf32>
    %720 = arith.divf %718, %719 : vector<32x1xf32>
    %721 = vector.broadcast %720 : vector<32x1xf32> to vector<32x32xf32>
    %722 = arith.subf %714, %721 : vector<32x32xf32>
    %723 = arith.mulf %722, %722 : vector<32x32xf32>
    %cst_410 = arith.constant dense<0.000000e+00> : vector<32xf32>
    %724 = vector.multi_reduction <add>, %723, %cst_410 [1] : vector<32x32xf32> to vector<32xf32>
    %725 = vector.shape_cast %724 : vector<32xf32> to vector<32x1xf32>
    %cst_411 = arith.constant 3.200000e+01 : f32
    %726 = vector.broadcast %cst_411 : f32 to vector<32x1xf32>
    %727 = arith.divf %725, %726 : vector<32x1xf32>
    %cst_412 = arith.constant 9.99999974E-6 : f32
    %728 = vector.broadcast %cst_412 : f32 to vector<32x1xf32>
    %729 = arith.addf %727, %728 : vector<32x1xf32>
    %730 = math.rsqrt %729 : vector<32x1xf32>
    %731 = vector.broadcast %730 : vector<32x1xf32> to vector<32x32xf32>
    %732 = arith.mulf %722, %731 : vector<32x32xf32>
    %733 = vector.broadcast %715 : vector<1x32xf32> to vector<32x32xf32>
    %734 = arith.mulf %732, %733 : vector<32x32xf32>
    %735 = vector.broadcast %716 : vector<1x32xf32> to vector<32x32xf32>
    %736 = arith.addf %734, %735 : vector<32x32xf32>
    %c7_413 = arith.constant 7 : index
    %c0_414 = arith.constant 0 : index
    %737 = vector.load %arg8[%c7_413, %c0_414] : memref<9x32xf32, #tpu.memory_space<vmem>>, vector<1x32xf32>
    %738 = tpu.transpose %736, [1, 0] : vector<32x32xf32> -> vector<32x32xf32>
    %cst_415 = arith.constant dense<0.000000e+00> : vector<1x32xf32>
    %739 = tpu.matmul %737, %738, %cst_415 {dimension_numbers = #tpu.dot_dimension_numbers<[1], [0], [0], [1], [0, 0, 1, 1], [], []>} : vector<1x32xf32>, vector<32x32xf32>, vector<1x32xf32> -> vector<1x32xf32>
    %c8_416 = arith.constant 8 : index
    %c0_417 = arith.constant 0 : index
    %740 = vector.load %arg8[%c8_416, %c0_417] : memref<9x32xf32, #tpu.memory_space<vmem>>, vector<1x1xf32>
    %741 = vector.broadcast %740 : vector<1x1xf32> to vector<1x32xf32>
    %742 = arith.addf %739, %741 : vector<1x32xf32>
    %c1_418 = arith.constant 1 : index
    %c0_419 = arith.constant 0 : index
    %743 = vector.load %arg9[%c1_418, %c0_419] : memref<2x32xf32, #tpu.memory_space<vmem>>, vector<1x32xf32>
    tpu.vector_store %arg9[%c1_418, %c0_419], %742 {strides = array<i32>} : memref<2x32xf32, #tpu.memory_space<vmem>>, vector<1x32xf32>,
    return
  }
  func.func @transform_0(%arg0: i32) -> (i32, i32) {
    %c0_i32 = arith.constant 0 : i32
    %c0_i32_0 = arith.constant 0 : i32
    %c0_i32_1 = arith.constant 0 : i32
    return %c0_i32, %c0_i32_0 : i32, i32
  }
  func.func @transform_1(%arg0: i32) -> (i32, i32) {
    %c0_i32 = arith.constant 0 : i32
    %c0_i32_0 = arith.constant 0 : i32
    %c0_i32_1 = arith.constant 0 : i32
    return %c0_i32, %c0_i32_0 : i32, i32
  }
  func.func @transform_2(%arg0: i32) -> (i32, i32) {
    %c0_i32 = arith.constant 0 : i32
    %c0_i32_0 = arith.constant 0 : i32
    %c0_i32_1 = arith.constant 0 : i32
    return %c0_i32, %c0_i32_0 : i32, i32
  }
  func.func @transform_3(%arg0: i32) -> (i32, i32) {
    %c0_i32 = arith.constant 0 : i32
    %c0_i32_0 = arith.constant 0 : i32
    %c0_i32_1 = arith.constant 0 : i32
    return %c0_i32, %c0_i32_0 : i32, i32
  }
  func.func @transform_4(%arg0: i32) -> (i32, i32) {
    %c0_i32 = arith.constant 0 : i32
    %c0_i32_0 = arith.constant 0 : i32
    %c0_i32_1 = arith.constant 0 : i32
    return %c0_i32, %c0_i32_0 : i32, i32
  }
  func.func @transform_5(%arg0: i32) -> (i32, i32) {
    %c0_i32 = arith.constant 0 : i32
    %c0_i32_0 = arith.constant 0 : i32
    %c0_i32_1 = arith.constant 0 : i32
    return %c0_i32, %c0_i32_0 : i32, i32
  }
  func.func @transform_6(%arg0: i32) -> (i32, i32) {
    %c0_i32 = arith.constant 0 : i32
    %c0_i32_0 = arith.constant 0 : i32
    %c0_i32_1 = arith.constant 0 : i32
    return %c0_i32, %c0_i32_0 : i32, i32
  }
  func.func @transform_7(%arg0: i32) -> (i32, i32) {
    %c0_i32 = arith.constant 0 : i32
    %c0_i32_0 = arith.constant 0 : i32
    %c0_i32_1 = arith.constant 0 : i32
    return %c0_i32, %c0_i32_0 : i32, i32
  }
  func.func @transform_8(%arg0: i32) -> (i32, i32) {
    %c0_i32 = arith.constant 0 : i32
    %c0_i32_0 = arith.constant 0 : i32
    %c0_i32_1 = arith.constant 0 : i32
    return %c0_i32, %c0_i32_0 : i32, i32
  }
}

</mosaic_0001>

<bundles_post_ra>
// kernel: transformer_model_looped.1
= control target key start
LH: loop header
LB: loop body
LE: loop exit
PB: predicated region body
PF: predicated region fallthrough
CT: control target
= control target key end

     0   :  { %vm49_vm0 = vcmask 1043456   ;;  %vm36_vm1 = vcmask 31744   ;;  %s8567_s19 = smov 32   ;;  %s8568_s25 = smov 96   ;;  %vm132_vm2 = vcmask 261120   ;;  %v8569_v42 = vmov 32.0   ;;  %s12300_s7 = inlined_call_operand.vmem [shape: f32[9,32], index: 7, kind: input, shape index: {}]   ;;  %s12301_s0 = inlined_call_operand.vmem [shape: f32[32,4], index: 0, kind: input, shape index: {}]   ;;  %s12302_s1 = inlined_call_operand.vmem [shape: f32[32,320], index: 1, kind: input, shape index: {}]   ;;  %s12303_s6 = inlined_call_operand.vmem [shape: f32[2,416], index: 6, kind: input, shape index: {}]   ;;  %s12304_s4 = inlined_call_operand.vmem [shape: f32[64,256], index: 4, kind: input, shape index: {}]   ;;  %s12305_s3 = inlined_call_operand.vmem [shape: f32[128,72], index: 3, kind: input, shape index: {}]   ;;  %s12306_s2 = inlined_call_operand.vmem [shape: f32[40,128], index: 2, kind: input, shape index: {}]   ;;  %s12307_s5 = inlined_call_operand.vmem [shape: f32[256,32], index: 5, kind: input, shape index: {}]   ;;  %s12308_s8 = inlined_call_operand.vmem [shape: f32[2,32], index: 8, kind: output, shape index: {}]  }
   0x1   :  { %v33_v0 = vld [vmem:[%s12300_s7] sm:$0xf]  ;;  %v30_v2 = vld [vmem:[%s12301_s0 + $0x8] sm:$0xff]  ;;  %v31_v3 = vld [vmem:[%s12301_s0 + $0x10] sm:$0xff]  ;;  %8128 = vrcp.f32 %v8569_v42  ;;  %s8570_s28 = smov 64  }
   0x2   :  { %v29_v1 = vld [vmem:[%s12301_s0] sm:$0xff]  ;;  %7420 = vmatpush.msk.msra.mxu0 %vm49_vm0, %v33_v0  ;;  %v32_v4 = vld [vmem:[%s12301_s0 + $0x18] sm:$0xff]  ;;  %v82_v7 = vld [vmem:[%s12302_s1 + $0x10] sm:$0xff] }
   0x3   :  { %7421 = vmatmul.msk.f32.vlgmr.msra.gmra.mxu0 %vm36_vm1, %v29_v1  ;;  %v8107_v5 = vld [vmem:[%s12300_s7 + $0x4] ss:$0 sm:$0xff]  ;;  %v83_v11 = vld [vmem:[%s12302_s1 + $0x28] sm:$0xff]  ;;  %v85_v19 = vld [vmem:[%s12302_s1 + $0x58] sm:$0xff]  ;;  %v90_v22 = vmul.f32 0.0, %v82_v7 }
   0x4   :  { %v84_v15 = vld [vmem:[%s12302_s1 + $0x40] sm:$0xff]  ;;  %v91_v25 = vmul.f32 0.0, %v83_v11  ;;  %v93_v31 = vmul.f32 0.0, %v85_v19 }
   0x5   :  { %v92_v28 = vmul.f32 0.0, %v84_v15 }
   0x7   :  { %v8129_v43 = vpop.eup %8128 }
   0x8   :  { %v146_v44 = vmul.f32 32.0, %v8129_v43  ;;  %vm150_vm3 = vweird.f32 %v8129_v43 }
   0xa   :  { %v147_v45 = vsub.f32 1.0, %v146_v44  ;;  %v8752_v44 = vld [vmem:[%s12304_s4] sm:$0xff] }
   0xb   :  { %7422 = vmatmul.msk.f32.gmra.mxu0 %vm36_vm1, %v30_v2 }
   0xc   :  { %v148_v46 = vmul.f32 %v8129_v43, %v147_v45 }
   0xe   :  { %v149_v47 = vadd.f32 %v8129_v43, %v148_v46 }
  0x10   :  { %v8683_v48 = vsel %vm150_vm3, %v8129_v43, %v149_v47 }
  0x11   :  { %12377 = vst [vmem:[#allocation6_spill] sm:$0xff] %v8683_v48 }
  0x13   :  { %7423 = vmatmul.msk.f32.gmra.mxu0 %vm36_vm1, %v31_v3 }
  0x1b   :  { %7424 = vmatmul.msk.f32.gmra.mxu0 %vm36_vm1, %v32_v4 }
  0x80   :  { %v70_v6 = vpop.f32.mrf.mxu0 }
  0x81   :  { %v71_v8 = vadd.f32 %v8107_v5, %v70_v6 }
  0x83   :  { %v86_v9 = vadd.f32 %v82_v7, %v71_v8 }
  0x85   :  { %98 = vrot.lane.b32.xlu0 %v86_v9, %s8567_s19 }
  0x88   :  { %v73_v10 = vpop.f32.mrf.mxu0 }
  0x89   :  { %v74_v12 = vadd.f32 %v8107_v5, %v73_v10  ;;  %v8109_v10 = vld [vmem:[%s12303_s6 + $0x4] ss:$0 sm:$0xff] }
  0x8b   :  { %v87_v13 = vadd.f32 %v83_v11, %v74_v12 }
  0x8d   :  { %100 = vrot.lane.b32.xlu0 %v87_v13, %s8567_s19 }
  0x90   :  { %v76_v14 = vpop.f32.mrf.mxu0 }
  0x91   :  { %v77_v16 = vadd.f32 %v8107_v5, %v76_v14 }
  0x93   :  { %v88_v17 = vadd.f32 %v84_v15, %v77_v16 }
  0x95   :  { %102 = vrot.lane.b32.xlu1 %v88_v17, %s8567_s19 }
  0x98   :  { %v79_v18 = vpop.f32.mrf.mxu0 }
  0x99   :  { %v80_v20 = vadd.f32 %v8107_v5, %v79_v18  ;;  %v8718_v5 = vld [vmem:[%s12303_s6] ss:$0 sm:$0xff] }
  0x9b   :  { %v89_v21 = vadd.f32 %v85_v19, %v80_v20 }
  0x9d   :  { %104 = vrot.lane.b32.xlu1 %v89_v21, %s8567_s19 }
  0xf7   :  { %v8651_v23 = vpop.permute.xlu0 %98 }
  0xf8   :  { %12373 = vst [vmem:[#allocation2_spill] sm:$0xff] %v8651_v23  ;;  %v8654_v24 = vadd.f32 %v8651_v23, %v90_v22 }
  0xfa   :  { %120 = vrot.lane.b32.xlu2 %v8654_v24, %s8568_s25 }
  0xff   :  { %v8658_v26 = vpop.permute.xlu0 %100 }
 0x100   :  { %12374 = vst [vmem:[#allocation3_spill] sm:$0xff] %v8658_v26  ;;  %v8661_v27 = vadd.f32 %v8658_v26, %v91_v25 }
 0x102   :  { %122 = vrot.lane.b32.xlu2 %v8661_v27, %s8568_s25 }
 0x107   :  { %v8665_v29 = vpop.permute.xlu1 %102 }
 0x108   :  { %12375 = vst [vmem:[#allocation4_spill] sm:$0xff] %v8665_v29  ;;  %v8668_v30 = vadd.f32 %v8665_v29, %v92_v28 }
 0x10a   :  { %124 = vrot.lane.b32.xlu0 %v8668_v30, %s8568_s25 }
 0x10f   :  { %v8672_v32 = vpop.permute.xlu1 %104 }
 0x110   :  { %12376 = vst [vmem:[#allocation5_spill] sm:$0xff] %v8672_v32  ;;  %v8675_v33 = vadd.f32 %v8672_v32, %v93_v31 }
 0x112   :  { %126 = vrot.lane.b32.xlu1 %v8675_v33, %s8568_s25 }
 0x154   :  { %v121_v34 = vpop.permute.xlu2 %120 }
 0x155   :  { %v133_v35 = vsel %vm132_vm2, %v121_v34, 0.0 }
 0x156   :  { %134 = vadd.xlane.f32.xlu2 %v133_v35 }
 0x15c   :  { %v123_v36 = vpop.permute.xlu2 %122 }
 0x15d   :  { %v136_v37 = vsel %vm132_vm2, %v123_v36, 0.0 }
 0x15e   :  { %137 = vadd.xlane.f32.xlu0 %v136_v37  ;;  %v8734_v37 = vld [vmem:[%s12304_s4 + $0x30] sm:$0xff] }
 0x15f   :  { %298 = vmatpush.msra.mxu1 %v8734_v37 }
 0x17c   :  { %v125_v38 = vpop.permute.xlu0 %124 }
 0x17d   :  { %v139_v39 = vsel %vm132_vm2, %v125_v38, 0.0  ;;  %v8739_v38 = vld [vmem:[%s12304_s4 + $0x20] sm:$0xff] }
 0x17e   :  { %140 = vadd.xlane.f32.xlu1 %v139_v39  ;;  %299 = vmatpush.msra.mxu1 %v8739_v38 }
 0x184   :  { %v127_v40 = vpop.permute.xlu1 %126 }
 0x185   :  { %v142_v41 = vsel %vm132_vm2, %v127_v40, 0.0 }
 0x186   :  { %143 = vadd.xlane.f32.xlu2 %v142_v41  ;;  %v8745_v41 = vld [vmem:[%s12304_s4 + $0x10] sm:$0xff] }
 0x187   :  { %300 = vmatpush.msra.mxu1 %v8745_v41 }
 0x189   :  { %301 = vmatpush.msra.mxu1 %v8752_v44 }
 0x1c9   :  { %v135_v49 = vpop.xlane.xlu2 %134 }
 0x1ca   :  { %v152_v50 = vmul.f32 %v8683_v48, %v135_v49 }
 0x1cc   :  { %v8687_v51 = vsub.f32 %v8654_v24, %v152_v50 }
 0x1ce   :  { %v160_v52 = vmul.f32 %v8687_v51, %v8687_v51 }
 0x1d0   :  { %168 = vrot.lane.b32.xlu2 %v160_v52, %s8568_s25 }
 0x1d1   :  { %v138_v53 = vpop.xlane.xlu0 %137 }
 0x1d2   :  { %v153_v54 = vmul.f32 %v8683_v48, %v138_v53 }
 0x1d4   :  { %v8694_v55 = vsub.f32 %v8661_v27, %v153_v54 }
 0x1d6   :  { %v161_v56 = vmul.f32 %v8694_v55, %v8694_v55 }
 0x1d8   :  { %170 = vrot.lane.b32.xlu0 %v161_v56, %s8568_s25 }
 0x1f1   :  { %v141_v57 = vpop.xlane.xlu1 %140 }
 0x1f2   :  { %v154_v58 = vmul.f32 %v8683_v48, %v141_v57 }
 0x1f4   :  { %v8701_v59 = vsub.f32 %v8668_v30, %v154_v58 }
 0x1f6   :  { %v162_v60 = vmul.f32 %v8701_v59, %v8701_v59 }
 0x1f8   :  { %172 = vrot.lane.b32.xlu1 %v162_v60, %s8568_s25 }
 0x1f9   :  { %v144_v61 = vpop.xlane.xlu2 %143 }
 0x1fa   :  { %v155_v62 = vmul.f32 %v8683_v48, %v144_v61 }
 0x1fc   :  { %v8708_v63 = vsub.f32 %v8675_v33, %v155_v62 }
 0x1fe   :  { %v163_v0 = vmul.f32 %v8708_v63, %v8708_v63 }
 0x200   :  { %174 = vrot.lane.b32.xlu0 %v163_v0, %s8568_s25 }
 0x22a   :  { %v169_v1 = vpop.permute.xlu2 %168 }
 0x22b   :  { %v180_v2 = vsel %vm132_vm2, %v169_v1, 0.0 }
 0x22c   :  { %181 = vadd.xlane.f32.xlu2 %v180_v2 }
 0x24a   :  { %v171_v3 = vpop.permute.xlu0 %170 }
 0x24b   :  { %v183_v4 = vsel %vm132_vm2, %v171_v3, 0.0 }
 0x24c   :  { %184 = vadd.xlane.f32.xlu1 %v183_v4 }
 0x265   :  { %246 = vrot.lane.b32.xlu1 %v8718_v5, %s8570_s28 }
 0x26a   :  { %v173_v6 = vpop.permute.xlu1 %172 }
 0x26b   :  { %v186_v7 = vsel %vm132_vm2, %v173_v6, 0.0 }
 0x26c   :  { %187 = vadd.xlane.f32.xlu0 %v186_v7 }
 0x272   :  { %v175_v8 = vpop.permute.xlu0 %174 }
 0x273   :  { %v189_v9 = vsel %vm132_vm2, %v175_v8, 0.0 }
 0x274   :  { %190 = vadd.xlane.f32.xlu2 %v189_v9 }
 0x280   :  { %255 = vrot.lane.b32.xlu0 %v8109_v10, %s8567_s19 }
 0x29f   :  { %v182_v12 = vpop.xlane.xlu2 %181 }
 0x2a0   :  { %v192_v14 = vmul.f32 %v182_v12, %v8683_v48 }
 0x2a2   :  { %v196_v16 = vadd.f32 1e-05, %v192_v14 }
 0x2a4   :  { %vm206_vm8 = vweird.f32 %v196_v16 }
 0x2bf   :  { %v185_v11 = vpop.xlane.xlu1 %184 }
 0x2c0   :  { %v193_v13 = vmul.f32 %v185_v11, %v8683_v48 }
 0x2c2   :  { %v197_v15 = vadd.f32 1e-05, %v193_v13 }
 0x2c4   :  { %8130 = vrsqrt.f32 %v197_v15  ;;  %vm216_vm5 = vweird.f32 %v197_v15 }
 0x2c5   :  { %8132 = vrsqrt.f32 %v196_v16 }
 0x2ca   :  { %v8131_v17 = vpop.eup %8130 }
 0x2cb   :  { %v8133_v18 = vpop.eup %8132  ;;  %v211_v19 = vmul.f32 %v8131_v17, %v197_v15  ;;  %vm217_vm4 = vweird.f32 %v8131_v17 }
 0x2cc   :  { %v201_v20 = vmul.f32 %v8133_v18, %v196_v16  ;;  %vm207_vm6 = vweird.f32 %v8133_v18  ;;  %vm218_vm7 = vmor %vm216_vm5, %vm217_vm4  ;;  %vm647_vm4 = vcmask 64512  }
 0x2cd   :  { %v212_v21 = vmul.f32 %v8131_v17, %v211_v19  ;;  %vm208_vm9 = vmor %vm206_vm8, %vm207_vm6 }
 0x2ce   :  { %v202_v22 = vmul.f32 %v8133_v18, %v201_v20 }
 0x2cf   :  { %v213_v25 = vmul.f32 0.5, %v212_v21 }
 0x2d0   :  { %v203_v34 = vmul.f32 0.5, %v202_v22 }
 0x2d1   :  { %v214_v35 = vsub.f32 1.5, %v213_v25 }
 0x2d2   :  { %v204_v39 = vsub.f32 1.5, %v203_v34 }
 0x2d3   :  { %v215_v40 = vmul.f32 %v8131_v17, %v214_v35 }
 0x2d4   :  { %v205_v45 = vmul.f32 %v8133_v18, %v204_v39  ;;  %v370_v39 = vld [vmem:[%s12302_s1 + $0x48] sm:$0xff] }
 0x2d5   :  { %v219_v49 = vsel %vm218_vm7, %v8131_v17, %v215_v40  ;;  %395 = vmatpush.msra.mxu2 %v370_v39  ;;  %v368_v40 = vld [vmem:[%s12302_s1 + $0x18] sm:$0xff] }
 0x2d6   :  { %v241_v53 = vmul.f32 %v219_v49, %v8694_v55  ;;  %v209_v54 = vsel %vm208_vm9, %v8133_v18, %v205_v45 }
 0x2d7   :  { %v8757_v56 = vpop.permute.xlu1 %246  ;;  %v240_v58 = vmul.f32 %v209_v54, %v8687_v51 }
 0x2d8   :  { %12378 = vst [vmem:[#allocation7_spill] sm:$0xff] %v8757_v56  ;;  %v250_v61 = vmul.f32 %v8757_v56, %v241_v53 }
 0x2d9   :  { %v249_v1 = vmul.f32 %v8757_v56, %v240_v58 }
 0x2df   :  { %v188_v28 = vpop.xlane.xlu0 %187 }
 0x2e0   :  { %v194_v31 = vmul.f32 %v188_v28, %v8683_v48 }
 0x2e2   :  { %v198_v36 = vadd.f32 1e-05, %v194_v31 }
 0x2e4   :  { %8134 = vrsqrt.f32 %v198_v36  ;;  %vm226_vm11 = vweird.f32 %v198_v36 }
 0x2e7   :  { %v191_v42 = vpop.xlane.xlu2 %190 }
 0x2e8   :  { %v195_v43 = vmul.f32 %v191_v42, %v8683_v48  ;;  %v367_v42 = vld [vmem:[%s12302_s1] sm:$0xff] }
 0x2ea   :  { %v8135_v46 = vpop.eup %8134  ;;  %v199_v47 = vadd.f32 1e-05, %v195_v43 }
 0x2eb   :  { %v221_v50 = vmul.f32 %v8135_v46, %v198_v36  ;;  %vm227_vm10 = vweird.f32 %v8135_v46 }
 0x2ec   :  { %8136 = vrsqrt.f32 %v199_v47  ;;  %vm228_vm12 = vmor %vm226_vm11, %vm227_vm10  ;;  %vm236_vm14 = vweird.f32 %v199_v47 }
 0x2ed   :  { %v222_v52 = vmul.f32 %v8135_v46, %v221_v50 }
 0x2ef   :  { %v223_v57 = vmul.f32 0.5, %v222_v52 }
 0x2f1   :  { %v224_v60 = vsub.f32 1.5, %v223_v57 }
 0x2f2   :  { %v8137_v62 = vpop.eup %8136  ;;  %v8761_v0 = vpop.permute.xlu0 %255 }
 0x2f3   :  { %12379 = vst [vmem:[#allocation8_spill] sm:$0xff] %v8761_v0  ;;  %v225_v2 = vmul.f32 %v8135_v46, %v224_v60  ;;  %v231_v3 = vmul.f32 %v8137_v62, %v199_v47  ;;  %v259_v55 = vadd.f32 %v8761_v0, %v250_v61  ;;  %v258_v4 = vadd.f32 %v8761_v0, %v249_v1  ;;  %v8825_v1 = vld [vmem:[%s12305_s3] sm:$0xff] }
 0x2f4   :  { %vm237_vm13 = vweird.f32 %v8137_v62 }
 0x2f5   :  { %v232_v6 = vmul.f32 %v8137_v62, %v231_v3  ;;  %272 = vrot.lane.b32.xlu0 %v259_v55, %s8568_s25  ;;  %v229_v51 = vsel %vm228_vm12, %v8135_v46, %v225_v2  ;;  %270 = vrot.lane.b32.xlu2 %v258_v4, %s8568_s25  ;;  %vm238_vm15 = vmor %vm236_vm14, %vm237_vm13  ;;  %v8832_v2 = vld [vmem:[%s12305_s3 + $0x8] sm:$0xff]  ;;  %v8839_v3 = vld [vmem:[%s12305_s3 + $0x10] sm:$0xff] }
 0x2f6   :  { %v242_v7 = vmul.f32 %v229_v51, %v8701_v59  ;;  %v8846_v55 = vld [vmem:[%s12305_s3 + $0x18] sm:$0xff]  ;;  %v8853_v4 = vld [vmem:[%s12305_s3 + $0x20] sm:$0xff]  ;;  %v8867_v51 = vld [vmem:[%s12305_s3 + $0x30] sm:$0xff] }
 0x2f7   :  { %v233_v8 = vmul.f32 0.5, %v232_v6  ;;  %v8860_v6 = vld [vmem:[%s12305_s3 + $0x28] sm:$0xff] }
 0x2f8   :  { %v251_v9 = vmul.f32 %v8757_v56, %v242_v7  ;;  %v8874_v7 = vld [vmem:[%s12305_s3 + $0x38] sm:$0xff] }
 0x2f9   :  { %v234_v10 = vsub.f32 1.5, %v233_v8  ;;  %v8881_v8 = vld [vmem:[%s12305_s3 + $0x40] sm:$0xff] }
 0x2fa   :  { %v260_v11 = vadd.f32 %v8761_v0, %v251_v9  ;;  %v8888_v9 = vld [vmem:[%s12305_s3 + $0x48] sm:$0xff] }
 0x2fb   :  { %v235_v12 = vmul.f32 %v8137_v62, %v234_v10  ;;  %v8895_v10 = vld [vmem:[%s12305_s3 + $0x50] sm:$0xff] }
 0x2fc   :  { %274 = vrot.lane.b32.xlu1 %v260_v11, %s8568_s25 }
 0x2fd   :  { %v239_v13 = vsel %vm238_vm15, %v8137_v62, %v235_v12  ;;  %v8902_v12 = vld [vmem:[%s12305_s3 + $0x58] sm:$0xff] }
 0x2fe   :  { %v243_v14 = vmul.f32 %v239_v13, %v8708_v63 }
 0x300   :  { %v252_v15 = vmul.f32 %v8757_v56, %v243_v14  ;;  %v8909_v14 = vld [vmem:[%s12305_s3 + $0x60] sm:$0xff] }
 0x302   :  { %v261_v16 = vadd.f32 %v8761_v0, %v252_v15 }
 0x304   :  { %276 = vrot.lane.b32.xlu2 %v261_v16, %s8568_s25  ;;  %v8916_v16 = vld [vmem:[%s12305_s3 + $0x68] sm:$0xff] }
 0x34f   :  { %v271_v59 = vpop.permute.xlu2 %270 }
 0x350   :  { %7425 = vmatmul.msk.f32.vlgmr.msra.gmra.mxu1 %vm132_vm2, %v271_v59  ;;  %v318_v59 = vld [vmem:[%s12306_s2 + $0x18] sm:$0xff] }
 0x35e   :  { %v277_v19 = vpop.permute.xlu2 %276 }
 0x367   :  { %v273_v17 = vpop.permute.xlu0 %272 }
 0x368   :  { %7426 = vmatmul.msk.f32.gmra.mxu1 %vm132_vm2, %v273_v17 }
 0x36e   :  { %v275_v18 = vpop.permute.xlu1 %274 }
 0x370   :  { %7427 = vmatmul.msk.f32.gmra.mxu1 %vm132_vm2, %v275_v18  ;;  %v317_v18 = vld [vmem:[%s12306_s2 + $0x10] sm:$0xff] }
 0x378   :  { %7428 = vmatmul.msk.f32.gmra.mxu1 %vm132_vm2, %v277_v19 }
 0x3cd   :  { %v303_v20 = vpop.f32.mrf.mxu1 }
 0x3ce   :  { %v8781_v63 = vadd.f32 %v8718_v5, %v303_v20  ;;  %v316_v20 = vld [vmem:[%s12306_s2 + $0x8] sm:$0xff] }
 0x3d0   :  { %323 = vrot.lane.b32.xlu0 %v8781_v63, %s8568_s25 }
 0x3e5   :  { %v306_v21 = vpop.f32.mrf.mxu1 }
 0x3e6   :  { %v8786_v22 = vadd.f32 %v8718_v5, %v306_v21  ;;  %v8932_v21 = vld [vmem:[%s12305_s3 + $0x70] sm:$0xff] }
 0x3e8   :  { %325 = vrot.lane.b32.xlu1 %v8786_v22, %s8568_s25  ;;  %v7690_v36 = vpack.i.bf16 %v8781_v63, %v8786_v22 }
 0x3ed   :  { %v309_v25 = vpop.f32.mrf.mxu1 }
 0x3ee   :  { %v8791_v28 = vadd.f32 %v8718_v5, %v309_v25  ;;  %v8937_v25 = vld [vmem:[%s12305_s3 + $0x78] sm:$0xff] }
 0x3f0   :  { %327 = vrot.lane.b32.xlu2 %v8791_v28, %s8568_s25 }
 0x3f5   :  { %v312_v31 = vpop.f32.mrf.mxu1 }
 0x3f6   :  { %v8796_v34 = vadd.f32 %v8718_v5, %v312_v31  ;;  %v369_v5 = vld [vmem:[%s12302_s1 + $0x30] sm:$0xff] }
 0x3f7   :  { %396 = vmatpush.msra.mxu2 %v369_v5 }
 0x3f8   :  { %329 = vrot.lane.b32.xlu0 %v8796_v34, %s8568_s25  ;;  %v7685_v35 = vpack.i.bf16 %v8791_v28, %v8796_v34 }
 0x3f9   :  { %397 = vmatpush.msra.mxu2 %v368_v40  ;;  %v7700_v40 = vpack.i.bf16 %v8909_v14, %v8916_v16 }
 0x3fa   :  { %7686 = vrot.lane.b32.xlu2 %v7685_v35, %s8570_s28  ;;  %v7695_v35 = vpack.i.bf16 %v8932_v21, %v8937_v25 }
 0x3fb   :  { %398 = vmatpush.msra.mxu2 %v367_v42  ;;  %v7705_v42 = vpack.i.bf16 %v8895_v10, %v8902_v12 }
 0x400   :  { %7691 = vrot.lane.b32.xlu0 %v7690_v36, %s8570_s28  ;;  %v315_v36 = vld [vmem:[%s12306_s2] sm:$0xff] }
 0x402   :  { %7696 = vrot.lane.b32.xlu2 %v7695_v35, %s8570_s28  ;;  %v7730_v35 = vpack.i.bf16 %v8825_v1, %v8832_v2 }
 0x408   :  { %7701 = vrot.lane.b32.xlu0 %v7700_v40, %s8570_s28 }
 0x40a   :  { %7706 = vrot.lane.b32.xlu2 %v7705_v42, %s8570_s28 }
 0x442   :  { %v324_v43 = vpop.permute.xlu0 %323 }
 0x443   :  { %335 = vxpose.xlu1.b32.start [1/4] (short) (narrow) %v324_v43, 32  ;;  %v7710_v43 = vpack.i.bf16 %v8881_v8, %v8888_v9 }
 0x445   :  { %7711 = vrot.lane.b32.xlu0 %v7710_v43, %s8570_s28 }
 0x44a   :  { %v328_v45 = vpop.permute.xlu2 %327 }
 0x454   :  { %v7687_v46 = vpop.permute.xlu2 %7686 }
 0x455   :  { %v7688_v47 = vunpack.i.l.bf16 %v7687_v46  ;;  %v7689_v49 = vunpack.i.h.bf16 %v7687_v46  ;;  %v7720_v46 = vpack.i.bf16 %v8853_v4, %v8860_v6 }
 0x457   :  { %749 = vmatpush.msrb.mxu2 %v7688_v47 }
 0x459   :  { %750 = vmatpush.msrb.mxu2 %v7689_v49  ;;  %v7725_v49 = vpack.i.bf16 %v8839_v3, %v8846_v55 }
 0x45a   :  { %v326_v50 = vpop.permute.xlu1 %325 }
 0x45b   :  { %336 = vxpose.xlu1.b32.cont [2/4] (short) (narrow) %v326_v50, 32 }
 0x463   :  { %337 = vxpose.xlu1.b32.cont [3/4] (short) (narrow) %v328_v45, 32  ;;  %v7715_v45 = vpack.i.bf16 %v8867_v51, %v8874_v7 }
 0x465   :  { %7716 = vrot.lane.b32.xlu2 %v7715_v45, %s8570_s28 }
 0x46a   :  { %v330_v52 = vpop.permute.xlu0 %329 }
 0x46b   :  { %338 = vxpose.xlu1.b32.end [4/4] (short) (narrow) %v330_v52, 32 }
 0x46d   :  { %7721 = vrot.lane.b32.xlu2 %v7720_v46, %s8570_s28 }
 0x472   :  { %v7692_v53 = vpop.permute.xlu0 %7691 }
 0x473   :  { %v7693_v54 = vunpack.i.l.bf16 %v7692_v53  ;;  %v7694_v57 = vunpack.i.h.bf16 %v7692_v53 }
 0x475   :  { %751 = vmatpush.msrb.mxu2 %v7693_v54  ;;  %7726 = vrot.lane.b32.xlu2 %v7725_v49, %s8570_s28 }
 0x477   :  { %752 = vmatpush.msrb.mxu2 %v7694_v57 }
 0x4f7   :  { %v351_v58 = vpop.trf.xlu1 }
 0x4f8   :  { %7429 = vmatmul.msk.f32.vlgmr.msra.gmra.mxu2 %vm132_vm2, %v351_v58 }
 0x4ff   :  { %v352_v60 = vpop.trf.xlu1 }
 0x500   :  { %7430 = vmatmul.msk.f32.gmra.mxu2 %vm132_vm2, %v352_v60 }
 0x507   :  { %v353_v61 = vpop.trf.xlu1 }
 0x508   :  { %7431 = vmatmul.msk.f32.gmra.mxu2 %vm132_vm2, %v353_v61  ;;  %v416_v61 = vld [vmem:[%s12302_s1 + $0x8] sm:$0xff] }
 0x50f   :  { %v354_v62 = vpop.trf.xlu1 }
 0x510   :  { %7432 = vmatmul.msk.f32.gmra.mxu2 %vm132_vm2, %v354_v62 }
 0x518   :  { %7441 = vmatmul.msk.f32.vlgmr.msrb.gmra.mxu2 %vm132_vm2, %v8825_v1 }
 0x520   :  { %7442 = vmatmul.msk.f32.gmra.mxu2 %vm132_vm2, %v8832_v2 }
 0x528   :  { %7443 = vmatmul.msk.f32.gmra.mxu2 %vm132_vm2, %v8839_v3 }
 0x530   :  { %7444 = vmatmul.msk.f32.gmra.mxu2 %vm132_vm2, %v8846_v55 }
 0x538   :  { %7445 = vmatmul.msk.f32.gmra.mxu2 %vm132_vm2, %v8853_v4 }
 0x540   :  { %7446 = vmatmul.msk.f32.gmra.mxu2 %vm132_vm2, %v8860_v6 }
 0x548   :  { %7447 = vmatmul.msk.f32.gmra.mxu2 %vm132_vm2, %v8867_v51 }
 0x550   :  { %7448 = vmatmul.msk.f32.gmra.mxu2 %vm132_vm2, %v8874_v7 }
 0x558   :  { %7449 = vmatmul.msk.f32.gmra.mxu2 %vm132_vm2, %v8881_v8 }
 0x560   :  { %7450 = vmatmul.msk.f32.gmra.mxu2 %vm132_vm2, %v8888_v9 }
 0x568   :  { %7451 = vmatmul.msk.f32.gmra.mxu2 %vm132_vm2, %v8895_v10 }
 0x570   :  { %7452 = vmatmul.msk.f32.gmra.mxu2 %vm132_vm2, %v8902_v12 }
 0x578   :  { %7453 = vmatmul.msk.f32.gmra.mxu2 %vm132_vm2, %v8909_v14 }
 0x57b   :  { %v400_v11 = vpop.f32.mrf.mxu2 }
 0x57c   :  { %v412_v5 = vmul.f32 %v400_v11, %v315_v36 }
 0x580   :  { %7454 = vmatmul.msk.f32.gmra.mxu2 %vm132_vm2, %v8916_v16 }
 0x583   :  { %v403_v13 = vpop.f32.mrf.mxu2 }
 0x584   :  { %v413_v39 = vmul.f32 %v403_v13, %v316_v20 }
 0x588   :  { %7455 = vmatmul.msk.f32.gmra.mxu2 %vm132_vm2, %v8932_v21 }
 0x58b   :  { %v406_v15 = vpop.f32.mrf.mxu2 }
 0x58c   :  { %v414_v31 = vmul.f32 %v406_v15, %v317_v18  ;;  %v417_v15 = vld [vmem:[%s12302_s1 + $0x20] sm:$0xff] }
 0x590   :  { %7456 = vmatmul.msk.f32.gmra.mxu2 %vm132_vm2, %v8937_v25 }
 0x593   :  { %v409_v17 = vpop.f32.mrf.mxu2 }
 0x594   :  { %v415_v19 = vmul.f32 %v409_v17, %v318_v59 }
 0x596   :  { %440 = vmatpush.msra.mxu3 %v415_v19  ;;  %v418_v19 = vld [vmem:[%s12302_s1 + $0x38] sm:$0xff] }
 0x598   :  { %441 = vmatpush.msra.mxu3 %v414_v31 }
 0x59a   :  { %442 = vmatpush.msra.mxu3 %v413_v39  ;;  %v7697_v39 = vpop.permute.xlu2 %7696 }
 0x59b   :  { %v9018_v40 = vunpack.i.h.bf16 %v7697_v39  ;;  %v9020_v42 = vunpack.i.l.bf16 %v7697_v39 }
 0x59c   :  { %443 = vmatpush.msra.mxu3 %v412_v5  ;;  %v7702_v5 = vpop.permute.xlu0 %7701 }
 0x59d   :  { %7433 = vmatmul.msk.f32.vlgmr.msra.gmra.mxu3 %vm132_vm2, %v8781_v63  ;;  %v8965_v63 = vpop.f32.mrf.mxu2  ;;  %557 = vmatpush.msrb.mxu0 %v9020_v42  ;;  %v9023_v43 = vunpack.i.l.bf16 %v7702_v5  ;;  %v9025_v46 = vunpack.i.h.bf16 %v7702_v5 }
 0x59f   :  { %558 = vmatpush.msrb.mxu0 %v9018_v40 }
 0x5a1   :  { %559 = vmatpush.msrb.mxu0 %v9023_v43 }
 0x5a2   :  { %v7707_v49 = vpop.permute.xlu2 %7706 }
 0x5a3   :  { %560 = vmatpush.msrb.mxu0 %v9025_v46 }
 0x5a5   :  { %7434 = vmatmul.msk.f32.gmra.mxu3 %vm132_vm2, %v8786_v22  ;;  %v8972_v47 = vpop.f32.mrf.mxu2 }
 0x5ad   :  { %7435 = vmatmul.msk.f32.gmra.mxu3 %vm132_vm2, %v8791_v28  ;;  %v8979_v22 = vpop.f32.mrf.mxu2 }
 0x5b5   :  { %7436 = vmatmul.msk.f32.gmra.mxu3 %vm132_vm2, %v8796_v34  ;;  %v763_v50 = vpop.f32.mrf.mxu2 }
 0x5bd   :  { %v8981_v52 = vpop.f32.mrf.mxu2 }
 0x5c5   :  { %v8983_v53 = vpop.f32.mrf.mxu2 }
 0x5cd   :  { %v8985_v28 = vpop.f32.mrf.mxu2 }
 0x5d5   :  { %v8987_v54 = vpop.f32.mrf.mxu2 }
 0x5dd   :  { %v8989_v57 = vpop.f32.mrf.mxu2 }
 0x5e5   :  { %v8991_v58 = vpop.f32.mrf.mxu2 }
 0x5ed   :  { %v8993_v60 = vpop.f32.mrf.mxu2 }
 0x5f5   :  { %v8995_v34 = vpop.f32.mrf.mxu2 }
 0x5fd   :  { %v790_v13 = vpop.f32.mrf.mxu2 }
 0x605   :  { %v793_v18 = vpop.f32.mrf.mxu2 }
 0x60d   :  { %v796_v36 = vpop.f32.mrf.mxu2 }
 0x615   :  { %v799_v45 = vpop.f32.mrf.mxu2 }
 0x620   :  { %v445_v62 = vpop.f32.mrf.mxu3 }
 0x621   :  { %v9000_v11 = vadd.f32 %v445_v62, %v416_v61  ;;  %v7712_v61 = vpop.permute.xlu0 %7711  ;;  %v9030_v62 = vunpack.i.h.bf16 %v7707_v49 }
 0x623   :  { %457 = vmax.xlane.f32.xlu0 %v9000_v11 }
 0x628   :  { %v448_v59 = vpop.f32.mrf.mxu3 }
 0x629   :  { %v9006_v17 = vadd.f32 %v448_v59, %v417_v15  ;;  %v9032_v15 = vunpack.i.l.bf16 %v7707_v49  ;;  %v9036_v59 = vunpack.i.l.bf16 %v7712_v61 }
 0x62b   :  { %459 = vmax.xlane.f32.xlu2 %v9006_v17  ;;  %561 = vmatpush.msrb.mxu0 %v9032_v15 }
 0x62d   :  { %562 = vmatpush.msrb.mxu0 %v9030_v62 }
 0x62f   :  { %563 = vmatpush.msrb.mxu0 %v9036_v59 }
 0x630   :  { %v451_v20 = vpop.f32.mrf.mxu3 }
 0x631   :  { %v9012_v31 = vadd.f32 %v451_v20, %v418_v19  ;;  %v9038_v19 = vunpack.i.h.bf16 %v7712_v61  ;;  %v7717_v20 = vpop.permute.xlu2 %7716 }
 0x632   :  { %v9047_v39 = vunpack.i.l.bf16 %v7717_v20 }
 0x633   :  { %461 = vmax.xlane.f32.xlu1 %v9012_v31  ;;  %564 = vmatpush.msrb.mxu0 %v9038_v19 }
 0x635   :  { %565 = vmatpush.msrb.mxu0 %v9047_v39 }
 0x637   :  { %7731 = vrot.lane.b32.xlu0 %v7730_v35, %s8570_s28  ;;  %v9045_v35 = vunpack.i.h.bf16 %v7717_v20 }
 0x639   :  { %566 = vmatpush.msrb.mxu0 %v9045_v35  ;;  %v7722_v5 = vpop.permute.xlu2 %7721 }
 0x63a   :  { %v9054_v49 = vunpack.i.l.bf16 %v7722_v5 }
 0x63c   :  { %567 = vmatpush.msrb.mxu0 %v9054_v49 }
 0x641   :  { %v7727_v61 = vpop.permute.xlu2 %7726 }
 0x642   :  { %v9062_v20 = vunpack.i.h.bf16 %v7727_v61 }
 0x643   :  { %848 = vrot.lane.b32.xlu2 %v799_v45, %s8567_s19  ;;  %v9052_v45 = vunpack.i.h.bf16 %v7722_v5 }
 0x645   :  { %568 = vmatpush.msrb.mxu0 %v9052_v45 }
 0x64b   :  { %846 = vrot.lane.b32.xlu2 %v796_v36, %s8567_s19  ;;  %v419_v36 = vld [vmem:[%s12302_s1 + $0x50] sm:$0xff] }
 0x64c   :  { %824 = vrot.lane.b32.xlu1 %v763_v50, %s8567_s19  ;;  %v454_v50 = vpop.f32.mrf.mxu3 }
 0x64d   :  { %v455_v0 = vadd.f32 %v454_v50, %v419_v36 }
 0x653   :  { %844 = vrot.lane.b32.xlu2 %v793_v18, %s8567_s19  ;;  %v9064_v18 = vunpack.i.l.bf16 %v7727_v61 }
 0x655   :  { %569 = vmatpush.msrb.mxu0 %v9064_v18 }
 0x657   :  { %570 = vmatpush.msrb.mxu0 %v9062_v20 }
 0x65b   :  { %842 = vrot.lane.b32.xlu2 %v790_v13, %s8567_s19 }
 0x661   :  { %463 = vmax.xlane.f32.xlu0 %v455_v0 }
 0x663   :  { %838 = vrot.lane.b32.xlu2 %v8993_v60, %s8567_s19 }
 0x66b   :  { %836 = vrot.lane.b32.xlu2 %v8991_v58, %s8567_s19 }
 0x673   :  { %832 = vrot.lane.b32.xlu2 %v8987_v54, %s8567_s19 }
 0x675   :  { %840 = vrot.lane.b32.xlu0 %v8995_v34, %s8567_s19 }
 0x67b   :  { %828 = vrot.lane.b32.xlu2 %v8983_v53, %s8567_s19 }
 0x67d   :  { %834 = vrot.lane.b32.xlu0 %v8989_v57, %s8567_s19 }
 0x683   :  { %822 = vrot.lane.b32.xlu2 %v8979_v22, %s8567_s19 }
 0x685   :  { %830 = vrot.lane.b32.xlu0 %v8985_v28, %s8567_s19 }
 0x68b   :  { %818 = vrot.lane.b32.xlu2 %v8965_v63, %s8567_s19 }
 0x68d   :  { %826 = vrot.lane.b32.xlu0 %v8981_v52, %s8567_s19 }
 0x695   :  { %820 = vrot.lane.b32.xlu0 %v8972_v47, %s8567_s19 }
 0x696   :  { %v458_v54 = vpop.xlane.xlu0 %457 }
 0x697   :  { %v465_v58 = vsub.f32 %v9000_v11, %v458_v54 }
 0x699   :  { %v469_v57 = vmul.f32 1.442695, %v465_v58 }
 0x69b   :  { %8138 = vpow2.f32 %v469_v57 }
 0x69e   :  { %v460_v53 = vpop.xlane.xlu2 %459 }
 0x69f   :  { %v466_v22 = vsub.f32 %v9006_v17, %v460_v53 }
 0x6a1   :  { %v471_v13 = vmul.f32 1.442695, %v466_v22  ;;  %v9098_v5 = vpop.eup %8138 }
 0x6a3   :  { %8140 = vpow2.f32 %v471_v13 }
 0x6a6   :  { %v849_v60 = vpop.permute.xlu2 %848  ;;  %v462_v52 = vpop.xlane.xlu1 %461 }
 0x6a7   :  { %v881_v47 = vmul.f32 %v849_v60, %v8937_v25  ;;  %v467_v17 = vsub.f32 %v9012_v31, %v462_v52 }
 0x6a9   :  { %v7732_v34 = vpop.permute.xlu0 %7731  ;;  %v473_v61 = vmul.f32 1.442695, %v467_v17  ;;  %v9105_v54 = vpop.eup %8140 }
 0x6aa   :  { %v9092_v28 = vunpack.i.l.bf16 %v7732_v34  ;;  %v9094_v63 = vunpack.i.h.bf16 %v7732_v34 }
 0x6ab   :  { %8142 = vpow2.f32 %v473_v61 }
 0x6ac   :  { %571 = vmatpush.msrb.mxu0 %v9092_v28 }
 0x6ae   :  { %v847_v50 = vpop.permute.xlu2 %846  ;;  %572 = vmatpush.msrb.mxu0 %v9094_v63 }
 0x6af   :  { %v880_v11 = vmul.f32 %v847_v50, %v8932_v21  ;;  %573 = vmatmul.f32.vlgmr.msrb.gmra.mxu0 %v9098_v5 }
 0x6b1   :  { %v7740_v36 = vpack.i.bf16 %v880_v11, %v881_v47  ;;  %v9109_v58 = vpop.eup %8142 }
 0x6b3   :  { %7741 = vrot.lane.b32.xlu0 %v7740_v36, %s8568_s25 }
 0x6b6   :  { %v845_v53 = vpop.permute.xlu2 %844 }
 0x6b7   :  { %576 = vmatmul.f32.gmra.mxu0 %v9105_v54  ;;  %v879_v25 = vmul.f32 %v845_v53, %v8916_v16 }
 0x6be   :  { %v843_v21 = vpop.permute.xlu2 %842 }
 0x6bf   :  { %v878_v57 = vmul.f32 %v843_v21, %v8909_v14  ;;  %579 = vmatmul.f32.gmra.mxu0 %v9109_v58 }
 0x6c1   :  { %v7735_v31 = vpack.i.bf16 %v878_v57, %v879_v25  ;;  %v825_v57 = vpop.permute.xlu1 %824 }
 0x6c3   :  { %7736 = vrot.lane.b32.xlu2 %v7735_v31, %s8568_s25 }
 0x6c6   :  { %v839_v60 = vpop.permute.xlu2 %838 }
 0x6c7   :  { %v876_v11 = vmul.f32 %v839_v60, %v8895_v10  ;;  %v869_v10 = vmul.f32 %v825_v57, %v8846_v55 }
 0x6ce   :  { %v837_v34 = vpop.permute.xlu2 %836 }
 0x6cf   :  { %v875_v53 = vmul.f32 %v837_v34, %v8888_v9 }
 0x6d4   :  { %v464_v22 = vpop.xlane.xlu0 %463 }
 0x6d5   :  { %v468_v13 = vsub.f32 %v455_v0, %v464_v22 }
 0x6d6   :  { %v833_v50 = vpop.permute.xlu2 %832 }
 0x6d7   :  { %v475_v52 = vmul.f32 1.442695, %v468_v13 }
 0x6d9   :  { %8144 = vpow2.f32 %v475_v52 }
 0x6de   :  { %v829_v17 = vpop.permute.xlu2 %828 }
 0x6df   :  { %v9114_v47 = vpop.eup %8144  ;;  %v871_v9 = vmul.f32 %v829_v17, %v8860_v6 }
 0x6e0   :  { %582 = vmatmul.f32.gmra.mxu0 %v9114_v47 }
 0x6e6   :  { %v823_v21 = vpop.permute.xlu2 %822 }
 0x6e7   :  { %v841_v16 = vpop.permute.xlu0 %840  ;;  %v868_v31 = vmul.f32 %v823_v21, %v8839_v3 }
 0x6e8   :  { %v877_v14 = vmul.f32 %v841_v16, %v8902_v12  ;;  %v873_v12 = vmul.f32 %v833_v50, %v8874_v7 }
 0x6e9   :  { %v7765_v13 = vpack.i.bf16 %v868_v31, %v869_v10 }
 0x6ea   :  { %v7745_v36 = vpack.i.bf16 %v876_v11, %v877_v14  ;;  %v9138_v11 = vld [vmem:[%s12306_s2 + $0x20] sm:$0xff] }
 0x6eb   :  { %675 = vmatpush.msrb.mxu1 %v9138_v11 }
 0x6ec   :  { %7746 = vrot.lane.b32.xlu0 %v7745_v36, %s8568_s25 }
 0x6ee   :  { %v819_v3 = vpop.permute.xlu2 %818 }
 0x6ef   :  { %v835_v61 = vpop.permute.xlu0 %834  ;;  %v866_v7 = vmul.f32 %v819_v3, %v8825_v1 }
 0x6f0   :  { %v874_v0 = vmul.f32 %v835_v61, %v8881_v8 }
 0x6f2   :  { %v7750_v25 = vpack.i.bf16 %v874_v0, %v875_v53 }
 0x6f4   :  { %7751 = vrot.lane.b32.xlu2 %v7750_v25, %s8568_s25 }
 0x6f7   :  { %v831_v22 = vpop.permute.xlu0 %830 }
 0x6f8   :  { %v872_v60 = vmul.f32 %v831_v22, %v8867_v51 }
 0x6fa   :  { %v7755_v52 = vpack.i.bf16 %v872_v60, %v873_v12 }
 0x6fc   :  { %7766 = vrot.lane.b32.xlu2 %v7765_v13, %s8568_s25  ;;  %7756 = vrot.lane.b32.xlu1 %v7755_v52, %s8568_s25 }
 0x6ff   :  { %v827_v8 = vpop.permute.xlu0 %826 }
 0x700   :  { %v870_v34 = vmul.f32 %v827_v8, %v8853_v4 }
 0x702   :  { %v7760_v16 = vpack.i.bf16 %v870_v34, %v871_v9 }
 0x704   :  { %7761 = vrot.lane.b32.xlu0 %v7760_v16, %s8568_s25 }
 0x707   :  { %v821_v55 = vpop.permute.xlu0 %820 }
 0x708   :  { %v867_v51 = vmul.f32 %v821_v55, %v8832_v2 }
 0x70a   :  { %v7770_v50 = vpack.i.bf16 %v866_v7, %v867_v51 }
 0x70c   :  { %7771 = vrot.lane.b32.xlu1 %v7770_v50, %s8568_s25 }
 0x71d   :  { %v7737_v4 = vpop.permute.xlu2 %7736 }
 0x71e   :  { %v7738_v36 = vunpack.i.l.bf16 %v7737_v4  ;;  %v7739_v61 = vunpack.i.h.bf16 %v7737_v4 }
 0x725   :  { %v7742_v6 = vpop.permute.xlu0 %7741 }
 0x726   :  { %v7744_v14 = vunpack.i.h.bf16 %v7742_v6  ;;  %v7743_v17 = vunpack.i.l.bf16 %v7742_v6 }
 0x728   :  { %946 = vmatpush.msra.mxu2 %v7743_v17 }
 0x72a   :  { %947 = vmatpush.msra.mxu2 %v7744_v14 }
 0x72c   :  { %v574_v1 = vpop.f32.mrf.mxu0  ;;  %948 = vmatpush.msra.mxu2 %v7738_v36 }
 0x72d   :  { %v586_v2 = vmax.f32 %v574_v1, 1e-30 }
 0x72e   :  { %949 = vmatpush.msra.mxu2 %v7739_v61 }
 0x72f   :  { %8146 = vrcp.f32 %v586_v2  ;;  %v601_v31 = vand.u32 2147483648, %v586_v2  ;;  %v599_v10 = vand.u32 2147483647, %v586_v2  ;;  %vm595_vm1 = vweird.f32 %v586_v2 }
 0x731   :  { %v602_v8 = vor.u32 1.1754944e-38, %v601_v31  ;;  %vm600_vm5 = vcmp.eq.f32.partialorder %v599_v10, 8.507059e+37 }
 0x734   :  { %v577_v53 = vpop.f32.mrf.mxu0 }
 0x735   :  { %v8147_v0 = vpop.eup %8146  ;;  %v587_v25 = vmax.f32 %v577_v53, 1e-30 }
 0x736   :  { %v591_v21 = vmul.f32 %v8147_v0, %v586_v2  ;;  %vm596_vm0 = vweird.f32 %v8147_v0 }
 0x737   :  { %8148 = vrcp.f32 %v587_v25  ;;  %vm597_vm3 = vmor %vm595_vm1, %vm596_vm0  ;;  %v615_v55 = vand.u32 2147483648, %v587_v25  ;;  %v613_v51 = vand.u32 2147483647, %v587_v25  ;;  %vm609_vm7 = vweird.f32 %v587_v25 }
 0x738   :  { %v592_v57 = vsub.f32 1.0, %v591_v21 }
 0x739   :  { %v616_v6 = vor.u32 1.1754944e-38, %v615_v55  ;;  %vm614_vm9 = vcmp.eq.f32.partialorder %v613_v51, 8.507059e+37 }
 0x73a   :  { %v593_v22 = vmul.f32 %v8147_v0, %v592_v57 }
 0x73c   :  { %v580_v12 = vpop.f32.mrf.mxu0  ;;  %v594_v60 = vadd.f32 %v8147_v0, %v593_v22 }
 0x73d   :  { %v8149_v13 = vpop.eup %8148  ;;  %v588_v52 = vmax.f32 %v580_v12, 1e-30 }
 0x73e   :  { %v598_v9 = vsel %vm597_vm3, %v8147_v0, %v594_v60  ;;  %v605_v34 = vmul.f32 %v8149_v13, %v587_v25  ;;  %vm610_vm6 = vweird.f32 %v8149_v13 }
 0x73f   :  { %8150 = vrcp.f32 %v588_v52  ;;  %v603_v16 = vsel %vm600_vm5, %v602_v8, %v598_v9  ;;  %vm611_vm8 = vmor %vm609_vm7, %vm610_vm6  ;;  %v629_v1 = vand.u32 2147483648, %v588_v52  ;;  %v627_v53 = vand.u32 2147483647, %v588_v52 }
 0x740   :  { %7437 = vmatmul.msk.f32.vlgmr.msrb.gmra.mxu1 %vm647_vm4, %v603_v16  ;;  %v606_v3 = vsub.f32 1.0, %v605_v34  ;;  %vm623_vm11 = vweird.f32 %v588_v52 }
 0x741   :  { %v630_v21 = vor.u32 1.1754944e-38, %v629_v1  ;;  %vm628_vm13 = vcmp.eq.f32.partialorder %v627_v53, 8.507059e+37 }
 0x742   :  { %v607_v7 = vmul.f32 %v8149_v13, %v606_v3 }
 0x744   :  { %v608_v50 = vadd.f32 %v8149_v13, %v607_v7 }
 0x745   :  { %v8151_v4 = vpop.eup %8150 }
 0x746   :  { %v612_v14 = vsel %vm611_vm8, %v8149_v13, %v608_v50  ;;  %v619_v17 = vmul.f32 %v8151_v4, %v588_v52  ;;  %vm624_vm10 = vweird.f32 %v8151_v4 }
 0x747   :  { %v617_v36 = vsel %vm614_vm9, %v616_v6, %v612_v14  ;;  %vm625_vm12 = vmor %vm623_vm11, %vm624_vm10 }
 0x748   :  { %7438 = vmatmul.msk.f32.gmra.mxu1 %vm647_vm4, %v617_v36  ;;  %v620_v61 = vsub.f32 1.0, %v619_v17 }
 0x74a   :  { %v621_v2 = vmul.f32 %v8151_v4, %v620_v61 }
 0x74c   :  { %v622_v0 = vadd.f32 %v8151_v4, %v621_v2 }
 0x74e   :  { %v626_v57 = vsel %vm625_vm12, %v8151_v4, %v622_v0  ;;  %v7752_v60 = vpop.permute.xlu2 %7751 }
 0x74f   :  { %v631_v25 = vsel %vm628_vm13, %v630_v21, %v626_v57  ;;  %v7753_v8 = vunpack.i.l.bf16 %v7752_v60  ;;  %v7754_v9 = vunpack.i.h.bf16 %v7752_v60 }
 0x750   :  { %7439 = vmatmul.msk.f32.gmra.mxu1 %vm647_vm4, %v631_v25 }
 0x756   :  { %v7767_v2 = vpop.permute.xlu2 %7766 }
 0x757   :  { %v7768_v0 = vunpack.i.l.bf16 %v7767_v2  ;;  %v7769_v21 = vunpack.i.h.bf16 %v7767_v2  ;;  %v8394_v2 = vld [vmem:[%s12303_s6 + $0x4] ss:$0 sm:$0xff] }
 0x75d   :  { %v583_v31 = vpop.f32.mrf.mxu0 }
 0x75e   :  { %v589_v22 = vmax.f32 %v583_v31, 1e-30  ;;  %v7747_v10 = vpop.permute.xlu0 %7746 }
 0x75f   :  { %v7748_v12 = vunpack.i.l.bf16 %v7747_v10  ;;  %v7749_v13 = vunpack.i.h.bf16 %v7747_v10  ;;  %v7780_v10 = vpack.i.bf16 %v8752_v44, %v8745_v41 }
 0x760   :  { %8152 = vrcp.f32 %v589_v22  ;;  %v643_v3 = vand.u32 2147483648, %v589_v22  ;;  %v641_v7 = vand.u32 2147483647, %v589_v22  ;;  %vm637_vm15 = vweird.f32 %v589_v22 }
 0x761   :  { %950 = vmatpush.msra.mxu2 %v7748_v12  ;;  %7781 = vrot.lane.b32.xlu2 %v7780_v10, %s8567_s19 }
 0x762   :  { %v644_v4 = vor.u32 1.1754944e-38, %v643_v3  ;;  %vm642_vm1 = vcmp.eq.f32.partialorder %v641_v7, 8.507059e+37  ;;  %v1497_v3 = vld [vmem:[%s12304_s4 + $0x50] sm:$0xff] }
 0x763   :  { %951 = vmatpush.msra.mxu2 %v7749_v13 }
 0x765   :  { %952 = vmatpush.msra.mxu2 %v7753_v8 }
 0x766   :  { %v8153_v52 = vpop.eup %8152 }
 0x767   :  { %953 = vmatpush.msra.mxu2 %v7754_v9  ;;  %v633_v34 = vmul.f32 %v8153_v52, %v589_v22  ;;  %vm638_vm14 = vweird.f32 %v8153_v52  ;;  %v7775_v22 = vpack.i.bf16 %v8739_v38, %v8734_v37 }
 0x768   :  { %vm639_vm0 = vmor %vm637_vm15, %vm638_vm14 }
 0x769   :  { %v634_v16 = vsub.f32 1.0, %v633_v34  ;;  %7776 = vrot.lane.b32.xlu0 %v7775_v22, %s8567_s19 }
 0x76b   :  { %v635_v55 = vmul.f32 %v8153_v52, %v634_v16  ;;  %v1498_v16 = vld [vmem:[%s12304_s4 + $0x60] sm:$0xff] }
 0x76d   :  { %v636_v51 = vadd.f32 %v8153_v52, %v635_v55  ;;  %v1496_v55 = vld [vmem:[%s12304_s4 + $0x40] sm:$0xff] }
 0x76e   :  { %v7757_v50 = vpop.permute.xlu1 %7756 }
 0x76f   :  { %v7758_v6 = vunpack.i.l.bf16 %v7757_v50  ;;  %v640_v14 = vsel %vm639_vm0, %v8153_v52, %v636_v51  ;;  %v7759_v36 = vunpack.i.h.bf16 %v7757_v50 }
 0x770   :  { %v645_v17 = vsel %vm642_vm1, %v644_v4, %v640_v14 }
 0x771   :  { %7440 = vmatmul.msk.f32.gmra.mxu1 %vm647_vm4, %v645_v17  ;;  %954 = vmatpush.msra.mxu2 %v7758_v6 }
 0x773   :  { %955 = vmatpush.msra.mxu2 %v7759_v36 }
 0x776   :  { %v7762_v61 = vpop.permute.xlu0 %7761 }
 0x777   :  { %v7763_v1 = vunpack.i.l.bf16 %v7762_v61  ;;  %v7764_v53 = vunpack.i.h.bf16 %v7762_v61 }
 0x779   :  { %956 = vmatpush.msra.mxu2 %v7763_v1 }
 0x77b   :  { %957 = vmatpush.msra.mxu2 %v7764_v53 }
 0x77d   :  { %958 = vmatpush.msra.mxu2 %v7768_v0 }
 0x77e   :  { %v7772_v57 = vpop.permute.xlu1 %7771 }
 0x77f   :  { %v7773_v25 = vunpack.i.l.bf16 %v7772_v57  ;;  %959 = vmatpush.msra.mxu2 %v7769_v21  ;;  %v7774_v31 = vunpack.i.h.bf16 %v7772_v57 }
 0x781   :  { %960 = vmatpush.msra.mxu2 %v7773_v25 }
 0x783   :  { %961 = vmatpush.msra.mxu2 %v7774_v31 }
 0x7bb   :  { %v9157_v41 = vpop.permute.xlu2 %7781 }
 0x7bc   :  { %12381 = vst [vmem:[#allocation10_spill] sm:$0xff] %v9157_v41 }
 0x7bd   :  { %v677_v12 = vpop.f32.mrf.mxu1 }
 0x7be   :  { %v689_v60 = vmul.f32 %v9098_v5, %v677_v12 }
 0x7c0   :  { %962 = vmatmul.f32.vlgmr.msra.gmra.mxu2 %v689_v60 }
 0x7c5   :  { %v680_v13 = vpop.f32.mrf.mxu1 }
 0x7c6   :  { %v690_v8 = vmul.f32 %v9105_v54, %v680_v13  ;;  %v12312_v54 = vunpack.i.l.bf16 %v9157_v41 }
 0x7c8   :  { %965 = vmatmul.f32.gmra.mxu2 %v690_v8 }
 0x7cd   :  { %v683_v9 = vpop.f32.mrf.mxu1 }
 0x7ce   :  { %v691_v52 = vmul.f32 %v9109_v58, %v683_v9  ;;  %v12311_v58 = vunpack.i.h.bf16 %v9157_v41 }
 0x7d0   :  { %968 = vmatmul.f32.gmra.mxu2 %v691_v52 }
 0x7db   :  { %v9155_v34 = vpop.permute.xlu0 %7776 }
 0x7dc   :  { %12380 = vst [vmem:[#allocation9_spill] sm:$0xff] %v9155_v34  ;;  %v12313_v44 = vunpack.i.h.bf16 %v9155_v34  ;;  %v12314_v5 = vunpack.i.l.bf16 %v9155_v34 }
 0x7de   :  { %1015 = vmatpush.msra.mxu0 %v12314_v5 }
 0x7e0   :  { %1016 = vmatpush.msra.mxu0 %v12313_v44 }
 0x7e2   :  { %1017 = vmatpush.msra.mxu0 %v12312_v54 }
 0x7e4   :  { %1018 = vmatpush.msra.mxu0 %v12311_v58 }
 0x7ee   :  { %v686_v37 = vpop.f32.mrf.mxu1 }
 0x7ef   :  { %v692_v38 = vmul.f32 %v9114_v47, %v686_v37  ;;  %v1499_v47 = vld [vmem:[%s12304_s4 + $0x70] sm:$0xff] }
 0x7f0   :  { %1532 = vmatpush.msrb.mxu0 %v1499_v47 }
 0x7f1   :  { %971 = vmatmul.f32.gmra.mxu2 %v692_v38 }
 0x7f2   :  { %1533 = vmatpush.msrb.mxu0 %v1498_v16 }
 0x7f4   :  { %1534 = vmatpush.msrb.mxu0 %v1497_v3 }
 0x7f6   :  { %1535 = vmatpush.msrb.mxu0 %v1496_v55 }
 0x843   :  { %v963_v7 = vpop.f32.mrf.mxu2 }
 0x844   :  { %7457 = vmatmul.msk.f32.vlgmr.msra.gmra.mxu0 %vm132_vm2, %v963_v7 }
 0x845   :  { %1699 = vmatpush.msra.mxu0 %v9020_v42 }
 0x847   :  { %1700 = vmatpush.msra.mxu0 %v9018_v40 }
 0x849   :  { %1701 = vmatpush.msra.mxu0 %v9023_v43 }
 0x84b   :  { %1702 = vmatpush.msra.mxu0 %v9025_v46  ;;  %v966_v51 = vpop.f32.mrf.mxu2 }
 0x84c   :  { %7458 = vmatmul.msk.f32.gmra.mxu0 %vm132_vm2, %v966_v51 }
 0x84d   :  { %1703 = vmatpush.msra.mxu0 %v9032_v15 }
 0x84f   :  { %1704 = vmatpush.msra.mxu0 %v9030_v62 }
 0x851   :  { %1705 = vmatpush.msra.mxu0 %v9036_v59 }
 0x853   :  { %1706 = vmatpush.msra.mxu0 %v9038_v19  ;;  %v969_v50 = vpop.f32.mrf.mxu2 }
 0x854   :  { %7459 = vmatmul.msk.f32.gmra.mxu0 %vm132_vm2, %v969_v50 }
 0x855   :  { %1707 = vmatpush.msra.mxu0 %v9047_v39 }
 0x857   :  { %1708 = vmatpush.msra.mxu0 %v9045_v35 }
 0x859   :  { %1709 = vmatpush.msra.mxu0 %v9054_v49 }
 0x85b   :  { %1710 = vmatpush.msra.mxu0 %v9052_v45 }
 0x85d   :  { %1711 = vmatpush.msra.mxu0 %v9064_v18 }
 0x85f   :  { %1712 = vmatpush.msra.mxu0 %v9062_v20 }
 0x861   :  { %1713 = vmatpush.msra.mxu0 %v9092_v28 }
 0x863   :  { %1714 = vmatpush.msra.mxu0 %v9094_v63 }
 0x874   :  { %v972_v4 = vpop.f32.mrf.mxu2 }
 0x875   :  { %7460 = vmatmul.msk.f32.gmra.mxu0 %vm132_vm2, %v972_v4 }
 0x8c1   :  { %v1020_v6 = vpop.f32.mrf.mxu0 }
 0x8c2   :  { %1036 = vrot.lane.b32.xlu1 %v1020_v6, %s8567_s19 }
 0x8c9   :  { %v1023_v14 = vpop.f32.mrf.mxu0 }
 0x8ca   :  { %1038 = vrot.lane.b32.xlu0 %v1023_v14, %s8567_s19 }
 0x8d1   :  { %v1026_v17 = vpop.f32.mrf.mxu0 }
 0x8d2   :  { %1040 = vrot.lane.b32.xlu2 %v1026_v17, %s8567_s19 }
 0x8f2   :  { %v1029_v36 = vpop.f32.mrf.mxu0 }
 0x8f3   :  { %1042 = vrot.lane.b32.xlu1 %v1029_v36, %s8567_s19 }
 0x92c   :  { %v1041_v61 = vpop.permute.xlu2 %1040 }
 0x92d   :  { %v1050_v1 = vadd.f32 %v1041_v61, %v8668_v30 }
 0x92f   :  { %v9211_v53 = vadd.f32 %v8394_v2, %v1050_v1 }
 0x931   :  { %1064 = vrot.lane.b32.xlu1 %v9211_v53, %s8568_s25 }
 0x934   :  { %v1037_v0 = vpop.permute.xlu1 %1036 }
 0x935   :  { %v1048_v21 = vadd.f32 %v1037_v0, %v8654_v24 }
 0x937   :  { %v9216_v57 = vadd.f32 %v8394_v2, %v1048_v21 }
 0x939   :  { %1060 = vrot.lane.b32.xlu0 %v9216_v57, %s8568_s25 }
 0x93c   :  { %v1039_v25 = vpop.permute.xlu0 %1038 }
 0x93d   :  { %v1049_v30 = vadd.f32 %v1039_v25, %v8661_v27 }
 0x93f   :  { %v9221_v31 = vadd.f32 %v8394_v2, %v1049_v30 }
 0x941   :  { %1062 = vrot.lane.b32.xlu2 %v9221_v31, %s8568_s25 }
 0x965   :  { %v1043_v22 = vpop.permute.xlu1 %1042 }
 0x966   :  { %v1051_v10 = vadd.f32 %v1043_v22, %v8675_v33 }
 0x968   :  { %v9226_v12 = vadd.f32 %v8394_v2, %v1051_v10 }
 0x96a   :  { %1066 = vrot.lane.b32.xlu0 %v9226_v12, %s8568_s25 }
 0x99b   :  { %v1063_v24 = vpop.permute.xlu2 %1062 }
 0x99c   :  { %v1075_v60 = vsel %vm132_vm2, %v1063_v24, 0.0 }
 0x99d   :  { %1076 = vadd.xlane.f32.xlu1 %v1075_v60 }
 0x9a3   :  { %v1065_v13 = vpop.permute.xlu1 %1064 }
 0x9a4   :  { %v1078_v27 = vsel %vm132_vm2, %v1065_v13, 0.0 }
 0x9a5   :  { %1079 = vadd.xlane.f32.xlu0 %v1078_v27 }
 0x9ab   :  { %v1061_v8 = vpop.permute.xlu0 %1060 }
 0x9ac   :  { %v1072_v9 = vsel %vm132_vm2, %v1061_v8, 0.0 }
 0x9ad   :  { %1073 = vadd.xlane.f32.xlu2 %v1072_v9 }
 0x9dc   :  { %v1067_v52 = vpop.permute.xlu0 %1066 }
 0x9dd   :  { %v1081_v33 = vsel %vm132_vm2, %v1067_v52, 0.0 }
 0x9de   :  { %1082 = vadd.xlane.f32.xlu2 %v1081_v33 }
 0xa10   :  { %v1077_v37 = vpop.xlane.xlu1 %1076 }
 0xa11   :  { %v1085_v38 = vmul.f32 %v1077_v37, %v8683_v48 }
 0xa13   :  { %v9236_v47 = vsub.f32 %v9221_v31, %v1085_v38 }
 0xa15   :  { %v1093_v16 = vmul.f32 %v9236_v47, %v9236_v47 }
 0xa17   :  { %1102 = vrot.lane.b32.xlu0 %v1093_v16, %s8568_s25 }
 0xa18   :  { %v1080_v3 = vpop.xlane.xlu0 %1079 }
 0xa19   :  { %v1086_v55 = vmul.f32 %v1080_v3, %v8683_v48 }
 0xa1b   :  { %v1090_v7 = vsub.f32 %v9211_v53, %v1086_v55 }
 0xa1d   :  { %v1094_v51 = vmul.f32 %v1090_v7, %v1090_v7 }
 0xa1f   :  { %1104 = vrot.lane.b32.xlu2 %v1094_v51, %s8568_s25 }
 0xa20   :  { %v1074_v50 = vpop.xlane.xlu2 %1073 }
 0xa21   :  { %v1084_v4 = vmul.f32 %v1074_v50, %v8683_v48 }
 0xa23   :  { %v9246_v6 = vsub.f32 %v9216_v57, %v1084_v4 }
 0xa25   :  { %v1092_v14 = vmul.f32 %v9246_v6, %v9246_v6 }
 0xa27   :  { %1100 = vrot.lane.b32.xlu1 %v1092_v14, %s8568_s25 }
 0xa51   :  { %v1083_v17 = vpop.xlane.xlu2 %1082 }
 0xa52   :  { %v1087_v36 = vmul.f32 %v1083_v17, %v8683_v48 }
 0xa54   :  { %v9253_v61 = vsub.f32 %v9226_v12, %v1087_v36 }
 0xa56   :  { %v1095_v1 = vmul.f32 %v9253_v61, %v9253_v61 }
 0xa58   :  { %1106 = vrot.lane.b32.xlu0 %v1095_v1, %s8568_s25 }
 0xa79   :  { %v1105_v0 = vpop.permute.xlu2 %1104 }
 0xa7a   :  { %v1118_v21 = vsel %vm132_vm2, %v1105_v0, 0.0 }
 0xa82   :  { %1119 = vadd.xlane.f32.xlu0 %v1118_v21 }
 0xa89   :  { %v1103_v25 = vpop.permute.xlu0 %1102 }
 0xa8a   :  { %v1115_v30 = vsel %vm132_vm2, %v1103_v25, 0.0 }
 0xa8b   :  { %1116 = vadd.xlane.f32.xlu2 %v1115_v30 }
 0xa96   :  { %1183 = vrot.lane.b32.xlu0 %v8394_v2, %s8570_s28 }
 0xa99   :  { %v1101_v22 = vpop.permute.xlu1 %1100 }
 0xa9a   :  { %v1112_v10 = vsel %vm132_vm2, %v1101_v22, 0.0 }
 0xa9b   :  { %1113 = vadd.xlane.f32.xlu1 %v1112_v10 }
 0xaa3   :  { %1176 = vrot.lane.b32.xlu2 %v8394_v2, %s8568_s25 }
 0xaca   :  { %v1107_v24 = vpop.permute.xlu0 %1106 }
 0xacb   :  { %v1121_v60 = vsel %vm132_vm2, %v1107_v24, 0.0 }
 0xacc   :  { %1122 = vadd.xlane.f32.xlu1 %v1121_v60 }
 0xaf5   :  { %v1120_v13 = vpop.xlane.xlu0 %1119 }
 0xaf6   :  { %v1126_v27 = vmul.f32 %v1120_v13, %v8683_v48 }
 0xaf8   :  { %v1130_v8 = vadd.f32 1e-05, %v1126_v27 }
 0xafa   :  { %8154 = vrsqrt.f32 %v1130_v8  ;;  %vm1158_vm5 = vweird.f32 %v1130_v8 }
 0xafe   :  { %v1117_v9 = vpop.xlane.xlu2 %1116 }
 0xaff   :  { %v1125_v52 = vmul.f32 %v1117_v9, %v8683_v48 }
 0xb00   :  { %v8155_v33 = vpop.eup %8154 }
 0xb01   :  { %v1153_v37 = vmul.f32 %v8155_v33, %v1130_v8  ;;  %v1129_v38 = vadd.f32 1e-05, %v1125_v52  ;;  %vm1159_vm3 = vweird.f32 %v8155_v33 }
 0xb02   :  { %vm1160_vm6 = vmor %vm1158_vm5, %vm1159_vm3 }
 0xb03   :  { %v1154_v16 = vmul.f32 %v8155_v33, %v1153_v37  ;;  %8156 = vrsqrt.f32 %v1129_v38  ;;  %vm1148_vm8 = vweird.f32 %v1129_v38 }
 0xb05   :  { %v1155_v3 = vmul.f32 0.5, %v1154_v16 }
 0xb06   :  { %v9266_v4 = vpop.permute.xlu2 %1176 }
 0xb07   :  { %v1156_v55 = vsub.f32 1.5, %v1155_v3  ;;  %12382 = vst [vmem:[#allocation11_spill] sm:$0xff] %v9266_v4 }
 0xb08   :  { %v9268_v1 = vpop.permute.xlu0 %1183 }
 0xb09   :  { %v8157_v2 = vpop.eup %8156  ;;  %v1157_v51 = vmul.f32 %v8155_v33, %v1156_v55  ;;  %12383 = vst [vmem:[#allocation12_spill] sm:$0xff] %v9268_v1 }
 0xb0a   :  { %v1143_v50 = vmul.f32 %v8157_v2, %v1129_v38  ;;  %vm1149_vm7 = vweird.f32 %v8157_v2 }
 0xb0b   :  { %v1161_v14 = vsel %vm1160_vm6, %v8155_v33, %v1157_v51  ;;  %vm1150_vm9 = vmor %vm1148_vm8, %vm1149_vm7 }
 0xb0c   :  { %v1144_v17 = vmul.f32 %v8157_v2, %v1143_v50  ;;  %v1174_v36 = vmul.f32 %v1161_v14, %v1090_v7 }
 0xb0e   :  { %v1145_v0 = vmul.f32 0.5, %v1144_v17  ;;  %v1114_v21 = vpop.xlane.xlu1 %1113  ;;  %v1181_v25 = vmul.f32 %v9266_v4, %v1174_v36 }
 0xb0f   :  { %v1124_v30 = vmul.f32 %v1114_v21, %v8683_v48 }
 0xb10   :  { %v1146_v22 = vsub.f32 1.5, %v1145_v0  ;;  %v1188_v10 = vadd.f32 %v9268_v1, %v1181_v25 }
 0xb11   :  { %v1128_v24 = vadd.f32 1e-05, %v1124_v30 }
 0xb12   :  { %v1147_v60 = vmul.f32 %v8157_v2, %v1146_v22  ;;  %1204 = vrot.lane.b32.xlu2 %v1188_v10, %s8568_s25 }
 0xb13   :  { %8158 = vrsqrt.f32 %v1128_v24  ;;  %vm1138_vm11 = vweird.f32 %v1128_v24 }
 0xb14   :  { %v1151_v7 = vsel %vm1150_vm9, %v8157_v2, %v1147_v60  ;;  %v9290_v60 = vld [vmem:[%s12304_s4 + $0x38] sm:$0xff] }
 0xb15   :  { %v1173_v13 = vmul.f32 %v1151_v7, %v9236_v47  ;;  %v9295_v7 = vld [vmem:[%s12304_s4 + $0x28] sm:$0xff]  ;;  %1228 = vmatpush.msra.mxu1 %v9290_v60 }
 0xb17   :  { %v1180_v27 = vmul.f32 %v9266_v4, %v1173_v13  ;;  %1229 = vmatpush.msra.mxu1 %v9295_v7  ;;  %v9307_v13 = vld [vmem:[%s12304_s4 + $0x8] sm:$0xff] }
 0xb19   :  { %v8159_v8 = vpop.eup %8158  ;;  %v1187_v9 = vadd.f32 %v9268_v1, %v1180_v27  ;;  %v9314_v27 = vld [vmem:[%s12302_s1 + $0x48] sm:$0xff] }
 0xb1a   :  { %v1133_v52 = vmul.f32 %v8159_v8, %v1128_v24  ;;  %vm1139_vm10 = vweird.f32 %v8159_v8 }
 0xb1b   :  { %1202 = vrot.lane.b32.xlu0 %v1187_v9, %s8568_s25  ;;  %vm1140_vm12 = vmor %vm1138_vm11, %vm1139_vm10  ;;  %v9326_v9 = vld [vmem:[%s12302_s1 + $0x18] sm:$0xff] }
 0xb1c   :  { %v1134_v33 = vmul.f32 %v8159_v8, %v1133_v52  ;;  %v9332_v52 = vld [vmem:[%s12302_s1] sm:$0xff] }
 0xb1e   :  { %v1135_v37 = vmul.f32 0.5, %v1134_v33 }
 0xb20   :  { %v1136_v16 = vsub.f32 1.5, %v1135_v37 }
 0xb22   :  { %v1137_v38 = vmul.f32 %v8159_v8, %v1136_v16 }
 0xb24   :  { %v1141_v3 = vsel %vm1140_vm12, %v8159_v8, %v1137_v38  ;;  %v9320_v8 = vld [vmem:[%s12302_s1 + $0x30] sm:$0xff]  ;;  %v1296_v38 = vld [vmem:[%s12307_s5 + $0x78] sm:$0xff] }
 0xb25   :  { %v1172_v55 = vmul.f32 %v1141_v3, %v9246_v6  ;;  %v1295_v3 = vld [vmem:[%s12307_s5 + $0x70] sm:$0xff]  ;;  %1297 = vmatpush.msrb.mxu3 %v1296_v38 }
 0xb27   :  { %v1179_v47 = vmul.f32 %v9266_v4, %v1172_v55  ;;  %v1294_v55 = vld [vmem:[%s12307_s5 + $0x68] sm:$0xff]  ;;  %1298 = vmatpush.msrb.mxu3 %v1295_v3 }
 0xb29   :  { %v1186_v2 = vadd.f32 %v9268_v1, %v1179_v47  ;;  %1299 = vmatpush.msrb.mxu3 %v1294_v55 }
 0xb2b   :  { %1200 = vrot.lane.b32.xlu1 %v1186_v2, %s8568_s25  ;;  %v1292_v2 = vld [vmem:[%s12307_s5 + $0x58] sm:$0xff] }
 0xb3f   :  { %v1123_v51 = vpop.xlane.xlu1 %1122 }
 0xb40   :  { %v1127_v50 = vmul.f32 %v1123_v51, %v8683_v48  ;;  %v1291_v51 = vld [vmem:[%s12307_s5 + $0x50] sm:$0xff] }
 0xb42   :  { %v1131_v14 = vadd.f32 1e-05, %v1127_v50  ;;  %v1290_v50 = vld [vmem:[%s12307_s5 + $0x48] sm:$0xff] }
 0xb44   :  { %8160 = vrsqrt.f32 %v1131_v14  ;;  %vm1168_vm14 = vweird.f32 %v1131_v14 }
 0xb4a   :  { %v8161_v17 = vpop.eup %8160 }
 0xb4b   :  { %v1163_v36 = vmul.f32 %v8161_v17, %v1131_v14  ;;  %vm1169_vm13 = vweird.f32 %v8161_v17  ;;  %v1289_v14 = vld [vmem:[%s12307_s5 + $0x40] sm:$0xff] }
 0xb4c   :  { %vm1170_vm15 = vmor %vm1168_vm14, %vm1169_vm13 }
 0xb4d   :  { %v1164_v0 = vmul.f32 %v8161_v17, %v1163_v36  ;;  %v1287_v36 = vld [vmem:[%s12307_s5 + $0x30] sm:$0xff] }
 0xb4f   :  { %v1165_v21 = vmul.f32 0.5, %v1164_v0  ;;  %v1286_v0 = vld [vmem:[%s12307_s5 + $0x28] sm:$0xff] }
 0xb51   :  { %v1166_v25 = vsub.f32 1.5, %v1165_v21  ;;  %v1285_v21 = vld [vmem:[%s12307_s5 + $0x20] sm:$0xff] }
 0xb53   :  { %v1167_v30 = vmul.f32 %v8161_v17, %v1166_v25  ;;  %v1284_v25 = vld [vmem:[%s12307_s5 + $0x18] sm:$0xff] }
 0xb55   :  { %v1171_v6 = vsel %vm1170_vm15, %v8161_v17, %v1167_v30  ;;  %v1288_v17 = vld [vmem:[%s12307_s5 + $0x38] sm:$0xff]  ;;  %v1283_v30 = vld [vmem:[%s12307_s5 + $0x10] sm:$0xff] }
 0xb56   :  { %v1175_v22 = vmul.f32 %v1171_v6, %v9253_v61  ;;  %v9301_v61 = vld [vmem:[%s12304_s4 + $0x18] sm:$0xff]  ;;  %v1282_v6 = vld [vmem:[%s12307_s5 + $0x8] sm:$0xff] }
 0xb57   :  { %1230 = vmatpush.msra.mxu1 %v9301_v61 }
 0xb58   :  { %v1182_v10 = vmul.f32 %v9266_v4, %v1175_v22  ;;  %v1281_v22 = vld [vmem:[%s12307_s5] sm:$0xff] }
 0xb59   :  { %1231 = vmatpush.msra.mxu1 %v9307_v13 }
 0xb5a   :  { %v1189_v24 = vadd.f32 %v9268_v1, %v1182_v10  ;;  %v8110_v10 = vld [vmem:[%s12303_s6 + $0x2] ss:$0 sm:$0xff] }
 0xb5b   :  { %1621 = vmatpush.msrb.mxu1 %v9314_v27 }
 0xb5c   :  { %1206 = vrot.lane.b32.xlu1 %v1189_v24, %s8568_s25 }
 0xb5d   :  { %1622 = vmatpush.msrb.mxu1 %v9320_v8 }
 0xb5f   :  { %1623 = vmatpush.msrb.mxu1 %v9326_v9 }
 0xb61   :  { %1624 = vmatpush.msrb.mxu1 %v9332_v52 }
 0xb6c   :  { %v1205_v16 = vpop.permute.xlu2 %1204 }
 0xb8d   :  { %v1203_v37 = vpop.permute.xlu0 %1202 }
 0xb9d   :  { %v1201_v33 = vpop.permute.xlu1 %1200 }
 0xb9e   :  { %7461 = vmatmul.msk.f32.vlgmr.msra.gmra.mxu1 %vm132_vm2, %v1201_v33 }
 0xb9f   :  { %1815 = vmatpush.msra.mxu1 %v9138_v11  ;;  %v1293_v11 = vld [vmem:[%s12307_s5 + $0x60] sm:$0xff] }
 0xba0   :  { %1300 = vmatpush.msrb.mxu3 %v1293_v11 }
 0xba2   :  { %1301 = vmatpush.msrb.mxu3 %v1292_v2 }
 0xba4   :  { %1302 = vmatpush.msrb.mxu3 %v1291_v51 }
 0xba6   :  { %7462 = vmatmul.msk.f32.gmra.mxu1 %vm132_vm2, %v1203_v37  ;;  %1303 = vmatpush.msrb.mxu3 %v1290_v50 }
 0xba8   :  { %1304 = vmatpush.msrb.mxu3 %v1289_v14 }
 0xbaa   :  { %1305 = vmatpush.msrb.mxu3 %v1288_v17 }
 0xbac   :  { %1306 = vmatpush.msrb.mxu3 %v1287_v36 }
 0xbae   :  { %7463 = vmatmul.msk.f32.gmra.mxu1 %vm132_vm2, %v1205_v16  ;;  %1307 = vmatpush.msrb.mxu3 %v1286_v0 }
 0xbb0   :  { %1308 = vmatpush.msrb.mxu3 %v1285_v21 }
 0xbb2   :  { %1309 = vmatpush.msrb.mxu3 %v1284_v25 }
 0xbb4   :  { %1310 = vmatpush.msrb.mxu3 %v1283_v30 }
 0xbb6   :  { %1311 = vmatpush.msrb.mxu3 %v1282_v6 }
 0xbb8   :  { %1312 = vmatpush.msrb.mxu3 %v1281_v22 }
 0xbce   :  { %v1207_v47 = vpop.permute.xlu1 %1206 }
 0xbcf   :  { %7464 = vmatmul.msk.f32.gmra.mxu1 %vm132_vm2, %v1207_v47 }
 0xc1b   :  { %v1233_v24 = vpop.f32.mrf.mxu1 }
 0xc1c   :  { %v1234_v33 = vadd.f32 %v8110_v10, %v1233_v24 }
 0xc1e   :  { %v1249_v37 = vmul.f32 0.044715, %v1234_v33  ;;  %v1245_v30 = vmul.f32 0.5, %v1234_v33 }
 0xc20   :  { %v1253_v16 = vmul.f32 %v1249_v37, %v1234_v33 }
 0xc22   :  { %v1257_v38 = vmul.f32 %v1253_v16, %v1234_v33 }
 0xc23   :  { %v1236_v3 = vpop.f32.mrf.mxu1 }
 0xc24   :  { %v1237_v55 = vadd.f32 %v8110_v10, %v1236_v3  ;;  %v1261_v11 = vadd.f32 %v1257_v38, %v1234_v33 }
 0xc26   :  { %v1265_v47 = vmul.f32 0.7978846, %v1261_v11  ;;  %v1250_v2 = vmul.f32 0.044715, %v1237_v55  ;;  %v1246_v11 = vmul.f32 0.5, %v1237_v55 }
 0xc28   :  { %8162 = vtanh.f32 %v1265_v47  ;;  %v1254_v51 = vmul.f32 %v1250_v2, %v1237_v55 }
 0xc2a   :  { %v1258_v50 = vmul.f32 %v1254_v51, %v1237_v55 }
 0xc2b   :  { %v1239_v14 = vpop.f32.mrf.mxu1 }
 0xc2c   :  { %v1240_v17 = vadd.f32 %v8110_v10, %v1239_v14  ;;  %v1262_v36 = vadd.f32 %v1258_v50, %v1237_v55 }
 0xc2e   :  { %v8163_v0 = vpop.eup %8162  ;;  %v1266_v21 = vmul.f32 0.7978846, %v1262_v36  ;;  %v1251_v25 = vmul.f32 0.044715, %v1240_v17  ;;  %v1247_v50 = vmul.f32 0.5, %v1240_v17 }
 0xc2f   :  { %v1273_v6 = vadd.f32 1.0, %v8163_v0 }
 0xc30   :  { %8164 = vtanh.f32 %v1266_v21  ;;  %v1255_v22 = vmul.f32 %v1251_v25, %v1240_v17 }
 0xc31   :  { %v1277_v24 = vmul.f32 %v1273_v6, %v1245_v30 }
 0xc32   :  { %v1259_v37 = vmul.f32 %v1255_v22, %v1240_v17 }
 0xc33   :  { %1313 = vmatmul.f32.vlgmr.msrb.gmra.mxu3 %v1277_v24 }
 0xc34   :  { %v1263_v16 = vadd.f32 %v1259_v37, %v1240_v17  ;;  %v8111_v17 = vld [vmem:[%s12303_s6 + $0x6] ss:$0 sm:$0xff] }
 0xc35   :  { %1349 = vrot.lane.b32.xlu2 %v8111_v17, %s8567_s19 }
 0xc36   :  { %v8165_v38 = vpop.eup %8164  ;;  %v1267_v3 = vmul.f32 0.7978846, %v1263_v16 }
 0xc37   :  { %v1274_v47 = vadd.f32 1.0, %v8165_v38 }
 0xc38   :  { %8166 = vtanh.f32 %v1267_v3 }
 0xc39   :  { %v1278_v2 = vmul.f32 %v1274_v47, %v1246_v11 }
 0xc3b   :  { %1316 = vmatmul.f32.gmra.mxu3 %v1278_v2 }
 0xc3e   :  { %v8167_v51 = vpop.eup %8166 }
 0xc3f   :  { %v1275_v14 = vadd.f32 1.0, %v8167_v51 }
 0xc41   :  { %v1279_v36 = vmul.f32 %v1275_v14, %v1247_v50 }
 0xc43   :  { %1319 = vmatmul.f32.gmra.mxu3 %v1279_v36 }
 0xc4c   :  { %v1242_v33 = vpop.f32.mrf.mxu1 }
 0xc4d   :  { %v1243_v0 = vadd.f32 %v8110_v10, %v1242_v33 }
 0xc4f   :  { %v1252_v21 = vmul.f32 0.044715, %v1243_v0  ;;  %v1248_v37 = vmul.f32 0.5, %v1243_v0 }
 0xc51   :  { %v1256_v25 = vmul.f32 %v1252_v21, %v1243_v0 }
 0xc53   :  { %v1260_v30 = vmul.f32 %v1256_v25, %v1243_v0 }
 0xc55   :  { %v1264_v6 = vadd.f32 %v1260_v30, %v1243_v0 }
 0xc57   :  { %v1268_v22 = vmul.f32 0.7978846, %v1264_v6 }
 0xc59   :  { %8168 = vtanh.f32 %v1268_v22 }
 0xc5f   :  { %v8169_v24 = vpop.eup %8168 }
 0xc60   :  { %v1276_v55 = vadd.f32 1.0, %v8169_v24 }
 0xc62   :  { %v1280_v16 = vmul.f32 %v1276_v55, %v1248_v37 }
 0xc64   :  { %1322 = vmatmul.f32.gmra.mxu3 %v1280_v16 }
 0xc8f   :  { %v9399_v2 = vpop.permute.xlu2 %1349 }
 0xc90   :  { %12384 = vst [vmem:[#allocation13_spill] sm:$0xff] %v9399_v2 }
 0xcb6   :  { %v1314_v38 = vpop.f32.mrf.mxu3 }
 0xcb7   :  { %1330 = vrot.lane.b32.xlu0 %v1314_v38, %s8567_s19 }
 0xcbe   :  { %v1317_v10 = vpop.f32.mrf.mxu3 }
 0xcbf   :  { %1332 = vrot.lane.b32.xlu1 %v1317_v10, %s8567_s19 }
 0xcc6   :  { %v1320_v3 = vpop.f32.mrf.mxu3 }
 0xcc7   :  { %1334 = vrot.lane.b32.xlu0 %v1320_v3, %s8567_s19 }
 0xce7   :  { %v1323_v11 = vpop.f32.mrf.mxu3 }
 0xce8   :  { %1336 = vrot.lane.b32.xlu2 %v1323_v11, %s8567_s19 }
 0xd29   :  { %v1331_v47 = vpop.permute.xlu0 %1330 }
 0xd2a   :  { %v1342_v51 = vadd.f32 %v1331_v47, %v9216_v57 }
 0xd2c   :  { %v9403_v50 = vadd.f32 %v9399_v2, %v1342_v51 }
 0xd2e   :  { %1362 = vrot.lane.b32.xlu1 %v9403_v50, %s8568_s25 }
 0xd31   :  { %v1333_v14 = vpop.permute.xlu1 %1332 }
 0xd32   :  { %v1343_v36 = vadd.f32 %v1333_v14, %v9221_v31 }
 0xd34   :  { %v9409_v33 = vadd.f32 %v9399_v2, %v1343_v36 }
 0xd36   :  { %12385 = vst [vmem:[#allocation14_spill] sm:$0xff] %v9409_v33  ;;  %1364 = vrot.lane.b32.xlu0 %v9409_v33, %s8568_s25 }
 0xd39   :  { %v1335_v0 = vpop.permute.xlu0 %1334 }
 0xd3a   :  { %v1344_v21 = vadd.f32 %v1335_v0, %v9211_v53 }
 0xd3c   :  { %v9415_v57 = vadd.f32 %v9399_v2, %v1344_v21 }
 0xd3e   :  { %1366 = vrot.lane.b32.xlu2 %v9415_v57, %s8568_s25 }
 0xd42   :  { %v1337_v25 = vpop.permute.xlu2 %1336 }
 0xd43   :  { %v1345_v30 = vadd.f32 %v1337_v25, %v9226_v12 }
 0xd45   :  { %v9421_v31 = vadd.f32 %v9399_v2, %v1345_v30 }
 0xd47   :  { %12386 = vst [vmem:[#allocation15_spill] sm:$0xff] %v9421_v31  ;;  %1368 = vrot.lane.b32.xlu1 %v9421_v31, %s8568_s25 }
 0xd98   :  { %v1367_v6 = vpop.permute.xlu2 %1366 }
 0xd99   :  { %v1380_v22 = vsel %vm132_vm2, %v1367_v6, 0.0 }
 0xd9a   :  { %1381 = vadd.xlane.f32.xlu1 %v1380_v22 }
 0xda0   :  { %v1363_v53 = vpop.permute.xlu1 %1362 }
 0xda1   :  { %v1374_v24 = vsel %vm132_vm2, %v1363_v53, 0.0 }
 0xda2   :  { %1375 = vadd.xlane.f32.xlu0 %v1374_v24 }
 0xda8   :  { %v1365_v37 = vpop.permute.xlu0 %1364 }
 0xda9   :  { %v1377_v55 = vsel %vm132_vm2, %v1365_v37, 0.0 }
 0xdaa   :  { %1378 = vadd.xlane.f32.xlu2 %v1377_v55 }
 0xdb9   :  { %v1369_v16 = vpop.permute.xlu1 %1368 }
 0xdba   :  { %v1383_v12 = vsel %vm132_vm2, %v1369_v16, 0.0 }
 0xdbb   :  { %1384 = vadd.xlane.f32.xlu0 %v1383_v12 }
 0xe0d   :  { %v1382_v17 = vpop.xlane.xlu1 %1381 }
 0xe0e   :  { %v1388_v38 = vmul.f32 %v1382_v17, %v8683_v48 }
 0xe10   :  { %v9431_v10 = vsub.f32 %v9415_v57, %v1388_v38 }
 0xe12   :  { %v1396_v3 = vmul.f32 %v9431_v10, %v9431_v10 }
 0xe14   :  { %1406 = vrot.lane.b32.xlu0 %v1396_v3, %s8568_s25 }
 0xe15   :  { %v1376_v11 = vpop.xlane.xlu0 %1375 }
 0xe16   :  { %v1386_v47 = vmul.f32 %v1376_v11, %v8683_v48  ;;  %v9464_v11 = vld [vmem:[%s12303_s6 + $0x5] ss:$0 sm:$0xff] }
 0xe18   :  { %v9438_v51 = vsub.f32 %v9403_v50, %v1386_v47  ;;  %v9471_v47 = vld [vmem:[%s12303_s6 + $0x1] ss:$0 sm:$0xff] }
 0xe1a   :  { %v1394_v14 = vmul.f32 %v9438_v51, %v9438_v51 }
 0xe1c   :  { %1402 = vrot.lane.b32.xlu2 %v1394_v14, %s8568_s25 }
 0xe1d   :  { %v1379_v36 = vpop.xlane.xlu2 %1378 }
 0xe1e   :  { %v1387_v0 = vmul.f32 %v1379_v36, %v8683_v48 }
 0xe20   :  { %v9445_v21 = vsub.f32 %v9409_v33, %v1387_v0 }
 0xe22   :  { %v1395_v25 = vmul.f32 %v9445_v21, %v9445_v21 }
 0xe24   :  { %1404 = vrot.lane.b32.xlu1 %v1395_v25, %s8568_s25 }
 0xe2e   :  { %v1385_v30 = vpop.xlane.xlu0 %1384 }
 0xe2f   :  { %v1389_v6 = vmul.f32 %v1385_v30, %v8683_v48 }
 0xe31   :  { %v9452_v22 = vsub.f32 %v9421_v31, %v1389_v6 }
 0xe33   :  { %v1397_v53 = vmul.f32 %v9452_v22, %v9452_v22 }
 0xe35   :  { %1408 = vrot.lane.b32.xlu2 %v1397_v53, %s8568_s25 }
 0xe76   :  { %v1403_v24 = vpop.permute.xlu2 %1402 }
 0xe77   :  { %v1414_v37 = vsel %vm132_vm2, %v1403_v24, 0.0 }
 0xe78   :  { %1415 = vadd.xlane.f32.xlu0 %v1414_v37 }
 0xe86   :  { %v1407_v55 = vpop.permute.xlu0 %1406 }
 0xe87   :  { %v1420_v16 = vsel %vm132_vm2, %v1407_v55, 0.0 }
 0xe88   :  { %1421 = vadd.xlane.f32.xlu2 %v1420_v16 }
 0xe8f   :  { %v1409_v12 = vpop.permute.xlu2 %1408 }
 0xe90   :  { %v1423_v17 = vsel %vm132_vm2, %v1409_v12, 0.0 }
 0xe91   :  { %1424 = vadd.xlane.f32.xlu0 %v1423_v17 }
 0xe96   :  { %v1405_v38 = vpop.permute.xlu1 %1404 }
 0xe97   :  { %v1417_v3 = vsel %vm132_vm2, %v1405_v38, 0.0 }
 0xe98   :  { %1418 = vadd.xlane.f32.xlu1 %v1417_v3 }
 0xea0   :  { %1489 = vrot.lane.b32.xlu2 %v9464_v11, %s8567_s19 }
 0xeb1   :  { %1480 = vrot.lane.b32.xlu1 %v9471_v47, %s8570_s28 }
 0xeeb   :  { %v1416_v14 = vpop.xlane.xlu0 %1415 }
 0xeec   :  { %v1426_v36 = vmul.f32 %v1416_v14, %v8683_v48 }
 0xeee   :  { %v1430_v0 = vadd.f32 1e-05, %v1426_v36 }
 0xef0   :  { %8170 = vrsqrt.f32 %v1430_v0  ;;  %vm1440_vm3 = vweird.f32 %v1430_v0 }
 0xef6   :  { %v8171_v37 = vpop.eup %8170 }
 0xef7   :  { %v1435_v16 = vmul.f32 %v8171_v37, %v1430_v0  ;;  %vm1441_vm0 = vweird.f32 %v8171_v37 }
 0xef8   :  { %vm1442_vm5 = vmor %vm1440_vm3, %vm1441_vm0 }
 0xef9   :  { %v1436_v3 = vmul.f32 %v8171_v37, %v1435_v16 }
 0xefb   :  { %v1422_v25 = vpop.xlane.xlu2 %1421 }
 0xefc   :  { %v1428_v30 = vmul.f32 %v1422_v25, %v8683_v48  ;;  %v1437_v25 = vmul.f32 0.5, %v1436_v3 }
 0xefe   :  { %v1432_v6 = vadd.f32 1e-05, %v1428_v30 }
 0xf00   :  { %8172 = vrsqrt.f32 %v1432_v6  ;;  %vm1460_vm12 = vweird.f32 %v1432_v6 }
 0xf04   :  { %v1425_v53 = vpop.xlane.xlu0 %1424 }
 0xf05   :  { %v1429_v24 = vmul.f32 %v1425_v53, %v8683_v48  ;;  %v1438_v53 = vsub.f32 1.5, %v1437_v25 }
 0xf06   :  { %v8173_v38 = vpop.eup %8172 }
 0xf07   :  { %v1433_v55 = vadd.f32 1e-05, %v1429_v24  ;;  %v1455_v54 = vmul.f32 %v8173_v38, %v1432_v6  ;;  %v1439_v41 = vmul.f32 %v8171_v37, %v1438_v53  ;;  %vm1461_vm11 = vweird.f32 %v8173_v38 }
 0xf08   :  { %vm1462_vm13 = vmor %vm1460_vm12, %vm1461_vm11 }
 0xf09   :  { %8174 = vrsqrt.f32 %v1433_v55  ;;  %v1456_v2 = vmul.f32 %v8173_v38, %v1455_v54  ;;  %vm1470_vm6 = vweird.f32 %v1433_v55 }
 0xf0b   :  { %v1419_v12 = vpop.xlane.xlu1 %1418  ;;  %v1457_v34 = vmul.f32 0.5, %v1456_v2 }
 0xf0c   :  { %v1427_v17 = vmul.f32 %v1419_v12, %v8683_v48 }
 0xf0d   :  { %v1458_v3 = vsub.f32 1.5, %v1457_v34 }
 0xf0e   :  { %v1431_v14 = vadd.f32 1e-05, %v1427_v17 }
 0xf0f   :  { %v8175_v36 = vpop.eup %8174  ;;  %v1459_v25 = vmul.f32 %v8173_v38, %v1458_v3 }
 0xf10   :  { %v1465_v58 = vmul.f32 %v8175_v36, %v1433_v55  ;;  %8176 = vrsqrt.f32 %v1431_v14  ;;  %vm1471_vm1 = vweird.f32 %v8175_v36  ;;  %vm1450_vm9 = vweird.f32 %v1431_v14  ;;  %v9484_v55 = vpop.permute.xlu2 %1489 }
 0xf11   :  { %vm1472_vm8 = vmor %vm1470_vm6, %vm1471_vm1  ;;  %12388 = vst [vmem:[#allocation17_spill] sm:$0xff] %v9484_v55 }
 0xf12   :  { %v1466_v30 = vmul.f32 %v8175_v36, %v1465_v58  ;;  %v1443_v58 = vsel %vm1442_vm5, %v8171_v37, %v1439_v41 }
 0xf14   :  { %v1467_v44 = vmul.f32 0.5, %v1466_v30 }
 0xf16   :  { %v8177_v5 = vpop.eup %8176  ;;  %v1468_v24 = vsub.f32 1.5, %v1467_v44 }
 0xf17   :  { %v1445_v1 = vmul.f32 %v8177_v5, %v1431_v14  ;;  %vm1451_vm7 = vweird.f32 %v8177_v5  ;;  %v1463_v14 = vsel %vm1462_vm13, %v8173_v38, %v1459_v25 }
 0xf18   :  { %v1469_v12 = vmul.f32 %v8175_v36, %v1468_v24  ;;  %vm1452_vm10 = vmor %vm1450_vm9, %vm1451_vm7 }
 0xf19   :  { %v1446_v4 = vmul.f32 %v8177_v5, %v1445_v1  ;;  %v1474_v1 = vmul.f32 %v1443_v58, %v9438_v51 }
 0xf1a   :  { %v1473_v54 = vsel %vm1472_vm8, %v8175_v36, %v1469_v12 }
 0xf1b   :  { %v1447_v16 = vmul.f32 0.5, %v1446_v4  ;;  %v1477_v2 = vmul.f32 %v1473_v54, %v9452_v22 }
 0xf1d   :  { %v1448_v17 = vsub.f32 1.5, %v1447_v16 }
 0xf1f   :  { %v1449_v30 = vmul.f32 %v8177_v5, %v1448_v17 }
 0xf21   :  { %v1453_v44 = vsel %vm1452_vm10, %v8177_v5, %v1449_v30 }
 0xf22   :  { %v1475_v4 = vmul.f32 %v1453_v44, %v9445_v21  ;;  %v1476_v21 = vmul.f32 %v1463_v14, %v9431_v10 }
 0xf23   :  { %v9482_v0 = vpop.permute.xlu1 %1480 }
 0xf24   :  { %12387 = vst [vmem:[#allocation16_spill] sm:$0xff] %v9482_v0  ;;  %v1486_v34 = vmul.f32 %v9482_v0, %v1477_v2  ;;  %v1484_v41 = vmul.f32 %v9482_v0, %v1475_v4  ;;  %v1483_v37 = vmul.f32 %v9482_v0, %v1474_v1  ;;  %v1485_v6 = vmul.f32 %v9482_v0, %v1476_v21 }
 0xf26   :  { %v1495_v5 = vadd.f32 %v9484_v55, %v1486_v34  ;;  %v1493_v51 = vadd.f32 %v9484_v55, %v1484_v41  ;;  %v1492_v22 = vadd.f32 %v9484_v55, %v1483_v37  ;;  %v1494_v36 = vadd.f32 %v9484_v55, %v1485_v6 }
 0xf28   :  { %1510 = vrot.lane.b32.xlu1 %v1495_v5, %s8568_s25  ;;  %1506 = vrot.lane.b32.xlu2 %v1493_v51, %s8568_s25 }
 0xf29   :  { %1504 = vrot.lane.b32.xlu0 %v1492_v22, %s8568_s25 }
 0xf31   :  { %1508 = vrot.lane.b32.xlu0 %v1494_v36, %s8568_s25  ;;  %v8399_v36 = vld [vmem:[%s12306_s2 + $0x18] sm:$0xff] }
 0xf82   :  { %v1507_v24 = vpop.permute.xlu2 %1506 }
 0xf9a   :  { %v1511_v12 = vpop.permute.xlu1 %1510 }
 0xf9b   :  { %v1505_v53 = vpop.permute.xlu0 %1504 }
 0xf9c   :  { %7465 = vmatmul.msk.f32.vlgmr.msrb.gmra.mxu0 %vm132_vm2, %v1505_v53 }
 0xfa3   :  { %v1509_v38 = vpop.permute.xlu0 %1508 }
 0xfa4   :  { %7466 = vmatmul.msk.f32.gmra.mxu0 %vm132_vm2, %v1507_v24  ;;  %v8400_v24 = vld [vmem:[%s12306_s2 + $0x10] sm:$0xff] }
 0xfac   :  { %7467 = vmatmul.msk.f32.gmra.mxu0 %vm132_vm2, %v1509_v38 }
 0xfb4   :  { %7468 = vmatmul.msk.f32.gmra.mxu0 %vm132_vm2, %v1511_v12  ;;  %v8401_v12 = vld [vmem:[%s12306_s2 + $0x8] sm:$0xff] }
0x1019   :  { %v1537_v16 = vpop.f32.mrf.mxu0 }
0x101a   :  { %v1538_v10 = vadd.f32 %v9471_v47, %v1537_v16 }
0x101c   :  { %1553 = vrot.lane.b32.xlu2 %v1538_v10, %s8568_s25 }
0x1021   :  { %v1540_v17 = vpop.f32.mrf.mxu0 }
0x1022   :  { %v1541_v3 = vadd.f32 %v9471_v47, %v1540_v17 }
0x1024   :  { %1555 = vrot.lane.b32.xlu0 %v1541_v3, %s8568_s25  ;;  %v7790_v25 = vpack.i.bf16 %v1538_v10, %v1541_v3 }
0x1029   :  { %v1543_v58 = vpop.f32.mrf.mxu0 }
0x102a   :  { %v1544_v30 = vadd.f32 %v9471_v47, %v1543_v58  ;;  %v8402_v58 = vld [vmem:[%s12306_s2] sm:$0xff] }
0x102c   :  { %1557 = vrot.lane.b32.xlu1 %v1544_v30, %s8568_s25 }
0x1031   :  { %v1546_v54 = vpop.f32.mrf.mxu0 }
0x1032   :  { %v1547_v44 = vadd.f32 %v9471_v47, %v1546_v54 }
0x1034   :  { %1559 = vrot.lane.b32.xlu2 %v1547_v44, %s8568_s25  ;;  %v7785_v1 = vpack.i.bf16 %v1544_v30, %v1547_v44 }
0x1036   :  { %7786 = vrot.lane.b32.xlu1 %v7785_v1, %s8570_s28 }
0x103c   :  { %7791 = vrot.lane.b32.xlu2 %v7790_v25, %s8570_s28 }
0x1076   :  { %v1554_v2 = vpop.permute.xlu2 %1553 }
0x1077   :  { %1565 = vxpose.xlu0.b32.start [1/4] (short) (narrow) %v1554_v2, 32 }
0x108e   :  { %v1560_v41 = vpop.permute.xlu2 %1559 }
0x1096   :  { %v1556_v4 = vpop.permute.xlu0 %1555  ;;  %v7792_v25 = vpop.permute.xlu2 %7791 }
0x1097   :  { %1566 = vxpose.xlu0.b32.cont [2/4] (short) (narrow) %v1556_v4, 32  ;;  %v7793_v4 = vunpack.i.l.bf16 %v7792_v25 }
0x109e   :  { %v1558_v34 = vpop.permute.xlu1 %1557 }
0x109f   :  { %1567 = vxpose.xlu0.b32.cont [3/4] (short) (narrow) %v1558_v34, 32  ;;  %v7794_v34 = vunpack.i.h.bf16 %v7792_v25 }
0x10a7   :  { %1568 = vxpose.xlu0.b32.end [4/4] (short) (narrow) %v1560_v41, 32  ;;  %v9628_v41 = vld [vmem:[%s12305_s3 + $0x60] sm:$0xff] }
0x10a8   :  { %v7787_v17 = vpop.permute.xlu1 %7786 }
0x10a9   :  { %v7788_v1 = vunpack.i.l.bf16 %v7787_v17  ;;  %v7789_v2 = vunpack.i.h.bf16 %v7787_v17 }
0x1133   :  { %v1581_v37 = vpop.trf.xlu0 }
0x1134   :  { %7469 = vmatmul.msk.f32.vlgmr.msrb.gmra.mxu1 %vm132_vm2, %v1581_v37 }
0x113b   :  { %v1582_v47 = vpop.trf.xlu0 }
0x113c   :  { %7470 = vmatmul.msk.f32.gmra.mxu1 %vm132_vm2, %v1582_v47  ;;  %v8416_v47 = vld [vmem:[%s12302_s1 + $0x8] sm:$0xff] }
0x1143   :  { %v1583_v5 = vpop.trf.xlu0 }
0x1144   :  { %7471 = vmatmul.msk.f32.gmra.mxu1 %vm132_vm2, %v1583_v5 }
0x114b   :  { %v1584_v51 = vpop.trf.xlu0 }
0x114c   :  { %7472 = vmatmul.msk.f32.gmra.mxu1 %vm132_vm2, %v1584_v51  ;;  %v9638_v51 = vld [vmem:[%s12305_s3 + $0x68] sm:$0xff] }
0x11b1   :  { %v1626_v22 = vpop.f32.mrf.mxu1 }
0x11b2   :  { %v1638_v54 = vmul.f32 %v8402_v58, %v1626_v22 }
0x11b9   :  { %v1629_v14 = vpop.f32.mrf.mxu1 }
0x11ba   :  { %v1639_v16 = vmul.f32 %v8401_v12, %v1629_v14  ;;  %v8418_v14 = vld [vmem:[%s12302_s1 + $0x20] sm:$0xff] }
0x11c1   :  { %v1632_v21 = vpop.f32.mrf.mxu1 }
0x11c2   :  { %v1640_v38 = vmul.f32 %v8400_v24, %v1632_v21 }
0x11c9   :  { %v1635_v6 = vpop.f32.mrf.mxu1 }
0x11ca   :  { %v1641_v53 = vmul.f32 %v8399_v36, %v1635_v6  ;;  %v9648_v6 = vld [vmem:[%s12305_s3 + $0x70] sm:$0xff] }
0x11cc   :  { %1662 = vmatpush.msra.mxu3 %v1641_v53  ;;  %v8420_v53 = vld [vmem:[%s12302_s1 + $0x38] sm:$0xff] }
0x11ce   :  { %1663 = vmatpush.msra.mxu3 %v1640_v38  ;;  %v9658_v38 = vld [vmem:[%s12305_s3 + $0x78] sm:$0xff] }
0x11d0   :  { %1664 = vmatpush.msra.mxu3 %v1639_v16  ;;  %v8422_v16 = vld [vmem:[%s12302_s1 + $0x50] sm:$0xff] }
0x11d2   :  { %1665 = vmatpush.msra.mxu3 %v1638_v54 }
0x11d3   :  { %7473 = vmatmul.msk.f32.vlgmr.msra.gmra.mxu3 %vm132_vm2, %v1538_v10  ;;  %v9540_v10 = vld [vmem:[%s12305_s3] sm:$0xff] }
0x11d4   :  { %1857 = vmatpush.msrb.mxu3 %v7788_v1 }
0x11d6   :  { %1858 = vmatpush.msrb.mxu3 %v7789_v2 }
0x11d8   :  { %1859 = vmatpush.msrb.mxu3 %v7793_v4 }
0x11da   :  { %1860 = vmatpush.msrb.mxu3 %v7794_v34 }
0x11db   :  { %7474 = vmatmul.msk.f32.gmra.mxu3 %vm132_vm2, %v1541_v3  ;;  %v9607_v3 = vld [vmem:[%s12305_s3 + $0x48] sm:$0xff] }
0x11dc   :  { %3548 = vmatpush.msra.mxu3 %v9290_v60  ;;  %v9551_v60 = vld [vmem:[%s12305_s3 + $0x8] sm:$0xff] }
0x11de   :  { %3549 = vmatpush.msra.mxu3 %v9295_v7  ;;  %v9558_v7 = vld [vmem:[%s12305_s3 + $0x10] sm:$0xff] }
0x11e0   :  { %3550 = vmatpush.msra.mxu3 %v9301_v61  ;;  %v9565_v61 = vld [vmem:[%s12305_s3 + $0x18] sm:$0xff] }
0x11e2   :  { %3551 = vmatpush.msra.mxu3 %v9307_v13  ;;  %v9572_v13 = vld [vmem:[%s12305_s3 + $0x20] sm:$0xff] }
0x11e3   :  { %7475 = vmatmul.msk.f32.gmra.mxu3 %vm132_vm2, %v1544_v30  ;;  %v9614_v30 = vld [vmem:[%s12305_s3 + $0x50] sm:$0xff] }
0x11eb   :  { %7476 = vmatmul.msk.f32.gmra.mxu3 %vm132_vm2, %v1547_v44  ;;  %v9621_v44 = vld [vmem:[%s12305_s3 + $0x58] sm:$0xff] }
0x11f3   :  { %7481 = vmatmul.msk.f32.vlgmr.msrb.gmra.mxu3 %vm132_vm2, %v9540_v10 }
0x11f4   :  { %3903 = vmatpush.msrb.mxu3 %v9314_v27  ;;  %v9579_v27 = vld [vmem:[%s12305_s3 + $0x28] sm:$0xff] }
0x11f6   :  { %3904 = vmatpush.msrb.mxu3 %v9320_v8  ;;  %v9586_v8 = vld [vmem:[%s12305_s3 + $0x30] sm:$0xff] }
0x11f8   :  { %3905 = vmatpush.msrb.mxu3 %v9326_v9  ;;  %v9593_v9 = vld [vmem:[%s12305_s3 + $0x38] sm:$0xff] }
0x11fa   :  { %3906 = vmatpush.msrb.mxu3 %v9332_v52  ;;  %v9600_v52 = vld [vmem:[%s12305_s3 + $0x40] sm:$0xff] }
0x11fb   :  { %7482 = vmatmul.msk.f32.gmra.mxu3 %vm132_vm2, %v9551_v60 }
0x1203   :  { %7483 = vmatmul.msk.f32.gmra.mxu3 %vm132_vm2, %v9558_v7 }
0x120b   :  { %7484 = vmatmul.msk.f32.gmra.mxu3 %vm132_vm2, %v9565_v61 }
0x1213   :  { %7485 = vmatmul.msk.f32.gmra.mxu3 %vm132_vm2, %v9572_v13 }
0x121b   :  { %7486 = vmatmul.msk.f32.gmra.mxu3 %vm132_vm2, %v9579_v27 }
0x1223   :  { %7487 = vmatmul.msk.f32.gmra.mxu3 %vm132_vm2, %v9586_v8 }
0x122b   :  { %7488 = vmatmul.msk.f32.gmra.mxu3 %vm132_vm2, %v9593_v9 }
0x1233   :  { %7489 = vmatmul.msk.f32.gmra.mxu3 %vm132_vm2, %v9600_v52 }
0x123b   :  { %7490 = vmatmul.msk.f32.gmra.mxu3 %vm132_vm2, %v9607_v3 }
0x1243   :  { %7491 = vmatmul.msk.f32.gmra.mxu3 %vm132_vm2, %v9614_v30 }
0x124b   :  { %7492 = vmatmul.msk.f32.gmra.mxu3 %vm132_vm2, %v9621_v44 }
0x1253   :  { %7493 = vmatmul.msk.f32.gmra.mxu3 %vm132_vm2, %v9628_v41 }
0x1256   :  { %v1667_v37 = vpop.f32.mrf.mxu3 }
0x1257   :  { %v1668_v5 = vadd.f32 %v8416_v47, %v1667_v37 }
0x1259   :  { %1679 = vmax.xlane.f32.xlu1 %v1668_v5 }
0x125b   :  { %7494 = vmatmul.msk.f32.gmra.mxu3 %vm132_vm2, %v9638_v51 }
0x125e   :  { %v1670_v22 = vpop.f32.mrf.mxu3 }
0x125f   :  { %v1671_v21 = vadd.f32 %v8418_v14, %v1670_v22 }
0x1261   :  { %1681 = vmax.xlane.f32.xlu2 %v1671_v21 }
0x1263   :  { %7495 = vmatmul.msk.f32.gmra.mxu3 %vm132_vm2, %v9648_v6 }
0x1266   :  { %v1673_v36 = vpop.f32.mrf.mxu3 }
0x1267   :  { %v1674_v24 = vadd.f32 %v8420_v53, %v1673_v36 }
0x1269   :  { %1683 = vmax.xlane.f32.xlu1 %v1674_v24 }
0x126b   :  { %7496 = vmatmul.msk.f32.gmra.mxu3 %vm132_vm2, %v9658_v38 }
0x126e   :  { %v1676_v12 = vpop.f32.mrf.mxu3 }
0x126f   :  { %v1677_v17 = vadd.f32 %v8422_v16, %v1676_v12 }
0x1271   :  { %1685 = vmax.xlane.f32.xlu2 %v1677_v17 }
0x1276   :  { %v1862_v58 = vpop.f32.mrf.mxu3 }
0x127e   :  { %v1865_v54 = vpop.f32.mrf.mxu3 }
0x1286   :  { %v1868_v1 = vpop.f32.mrf.mxu3 }
0x128e   :  { %v1871_v25 = vpop.f32.mrf.mxu3 }
0x1296   :  { %v1874_v2 = vpop.f32.mrf.mxu3 }
0x129e   :  { %v1877_v4 = vpop.f32.mrf.mxu3 }
0x12a6   :  { %v1880_v34 = vpop.f32.mrf.mxu3 }
0x12ae   :  { %v1883_v37 = vpop.f32.mrf.mxu3 }
0x12b6   :  { %v1886_v47 = vpop.f32.mrf.mxu3 }
0x12be   :  { %v1889_v22 = vpop.f32.mrf.mxu3 }
0x12c6   :  { %v1892_v14 = vpop.f32.mrf.mxu3 }
0x12cc   :  { %v1680_v36 = vpop.xlane.xlu1 %1679 }
0x12cd   :  { %v1687_v53 = vsub.f32 %v1668_v5, %v1680_v36 }
0x12ce   :  { %v1895_v55 = vpop.f32.mrf.mxu3 }
0x12cf   :  { %v1691_v0 = vmul.f32 1.442695, %v1687_v53 }
0x12d1   :  { %8178 = vpow2.f32 %v1691_v0 }
0x12d4   :  { %v1682_v56 = vpop.xlane.xlu2 %1681 }
0x12d5   :  { %v1688_v32 = vsub.f32 %v1671_v21, %v1682_v56 }
0x12d6   :  { %v1898_v12 = vpop.f32.mrf.mxu3 }
0x12d7   :  { %v9665_v16 = vpop.eup %8178  ;;  %v1693_v26 = vmul.f32 1.442695, %v1688_v32 }
0x12d8   :  { %1715 = vmatmul.f32.vlgmr.msra.gmra.mxu0 %v9665_v16 }
0x12d9   :  { %8180 = vpow2.f32 %v1693_v26 }
0x12dc   :  { %v1684_v23 = vpop.xlane.xlu1 %1683 }
0x12dd   :  { %v1689_v29 = vsub.f32 %v1674_v24, %v1684_v23 }
0x12de   :  { %v1901_v48 = vpop.f32.mrf.mxu3 }
0x12df   :  { %v9668_v31 = vpop.eup %8180  ;;  %v1695_v33 = vmul.f32 1.442695, %v1689_v29  ;;  %1952 = vrot.lane.b32.xlu2 %v1901_v48, %s8567_s19  ;;  %v8423_v29 = vld [vmem:[%s12304_s4 + $0x70] sm:$0xff]  ;;  %v8424_v48 = vld [vmem:[%s12304_s4 + $0x60] sm:$0xff] }
0x12e0   :  { %1718 = vmatmul.f32.gmra.mxu0 %v9668_v31 }
0x12e1   :  { %8182 = vpow2.f32 %v1695_v33  ;;  %v7835_v33 = vpack.i.bf16 %v8424_v48, %v8423_v29 }
0x12e4   :  { %v1686_v0 = vpop.xlane.xlu2 %1685 }
0x12e5   :  { %v1690_v56 = vsub.f32 %v1677_v17, %v1686_v0 }
0x12e6   :  { %v1904_v5 = vpop.f32.mrf.mxu3 }
0x12e7   :  { %v9672_v21 = vpop.eup %8182  ;;  %v1697_v32 = vmul.f32 1.442695, %v1690_v56  ;;  %1948 = vrot.lane.b32.xlu2 %v1895_v55, %s8567_s19  ;;  %1954 = vrot.lane.b32.xlu1 %v1904_v5, %s8567_s19 }
0x12e8   :  { %1721 = vmatmul.f32.gmra.mxu0 %v9672_v21 }
0x12e9   :  { %8184 = vpow2.f32 %v1697_v32 }
0x12ee   :  { %v1907_v23 = vpop.f32.mrf.mxu3 }
0x12ef   :  { %v9677_v26 = vpop.eup %8184  ;;  %1956 = vrot.lane.b32.xlu0 %v1907_v23, %s8567_s19  ;;  %1944 = vrot.lane.b32.xlu2 %v1889_v22, %s8567_s19 }
0x12f0   :  { %1950 = vrot.lane.b32.xlu1 %v1898_v12, %s8567_s19  ;;  %1724 = vmatmul.f32.gmra.mxu0 %v9677_v26 }
0x12f7   :  { %1940 = vrot.lane.b32.xlu2 %v1883_v37, %s8567_s19  ;;  %7836 = vrot.lane.b32.xlu0 %v7835_v33, %s8567_s19 }
0x12f8   :  { %1946 = vrot.lane.b32.xlu1 %v1892_v14, %s8567_s19 }
0x12ff   :  { %1936 = vrot.lane.b32.xlu2 %v1877_v4, %s8567_s19 }
0x1300   :  { %1942 = vrot.lane.b32.xlu1 %v1886_v47, %s8567_s19 }
0x1307   :  { %1932 = vrot.lane.b32.xlu2 %v1871_v25, %s8567_s19 }
0x1308   :  { %1938 = vrot.lane.b32.xlu1 %v1880_v34, %s8567_s19 }
0x130f   :  { %1928 = vrot.lane.b32.xlu2 %v1865_v54, %s8567_s19 }
0x1310   :  { %1934 = vrot.lane.b32.xlu1 %v1874_v2, %s8567_s19 }
0x1318   :  { %1930 = vrot.lane.b32.xlu1 %v1868_v1, %s8567_s19 }
0x1320   :  { %1926 = vrot.lane.b32.xlu1 %v1862_v58, %s8567_s19 }
0x1339   :  { %v1953_v55 = vpop.permute.xlu2 %1952 }
0x133a   :  { %v1987_v54 = vmul.f32 %v9638_v51, %v1953_v55 }
0x1341   :  { %v1949_v47 = vpop.permute.xlu2 %1948 }
0x1355   :  { %v1716_v24 = vpop.f32.mrf.mxu0 }
0x1356   :  { %v1728_v17 = vmax.f32 %v1716_v24, 1e-30 }
0x1358   :  { %8186 = vrcp.f32 %v1728_v17  ;;  %v1743_v53 = vand.u32 2147483648, %v1728_v17  ;;  %v1741_v56 = vand.u32 2147483647, %v1728_v17  ;;  %vm1737_vm15 = vweird.f32 %v1728_v17 }
0x1359   :  { %v1955_v37 = vpop.permute.xlu1 %1954 }
0x135a   :  { %v1988_v2 = vmul.f32 %v9648_v6, %v1955_v37  ;;  %v1744_v51 = vor.u32 1.1754944e-38, %v1743_v53  ;;  %vm1742_vm1 = vcmp.eq.f32.partialorder %v1741_v56, 8.507059e+37  ;;  %v1985_v37 = vmul.f32 %v9621_v44, %v1949_v47 }
0x135d   :  { %v1719_v4 = vpop.f32.mrf.mxu0 }
0x135e   :  { %v8187_v22 = vpop.eup %8186  ;;  %v1729_v14 = vmax.f32 %v1719_v4, 1e-30 }
0x135f   :  { %v1733_v25 = vmul.f32 %v8187_v22, %v1728_v17  ;;  %vm1738_vm14 = vweird.f32 %v8187_v22 }
0x1360   :  { %8188 = vrcp.f32 %v1729_v14  ;;  %vm1739_vm0 = vmor %vm1737_vm15, %vm1738_vm14  ;;  %v1757_v4 = vand.u32 2147483648, %v1729_v14  ;;  %vm1751_vm5 = vweird.f32 %v1729_v14 }
0x1361   :  { %v1734_v34 = vsub.f32 1.0, %v1733_v25  ;;  %v1957_v36 = vpop.permute.xlu0 %1956 }
0x1362   :  { %v1989_v1 = vmul.f32 %v9658_v38, %v1957_v36  ;;  %v1951_v58 = vpop.permute.xlu1 %1950  ;;  %v1755_v36 = vand.u32 2147483647, %v1729_v14  ;;  %v1758_v53 = vor.u32 1.1754944e-38, %v1757_v4 }
0x1363   :  { %v1986_v12 = vmul.f32 %v9628_v41, %v1951_v58  ;;  %v1735_v0 = vmul.f32 %v8187_v22, %v1734_v34  ;;  %v1945_v41 = vpop.permute.xlu2 %1944 }
0x1364   :  { %v7800_v5 = vpack.i.bf16 %v1988_v2, %v1989_v1  ;;  %vm1756_vm7 = vcmp.eq.f32.partialorder %v1755_v36, 8.507059e+37 }
0x1365   :  { %v7795_v32 = vpack.i.bf16 %v1986_v12, %v1987_v54  ;;  %v1722_v23 = vpop.f32.mrf.mxu0  ;;  %v1736_v29 = vadd.f32 %v8187_v22, %v1735_v0  ;;  %v1983_v0 = vmul.f32 %v9607_v3, %v1945_v41 }
0x1366   :  { %v8189_v48 = vpop.eup %8188  ;;  %v1730_v33 = vmax.f32 %v1722_v23, 1e-30  ;;  %7801 = vrot.lane.b32.xlu2 %v7800_v5, %s8568_s25 }
0x1367   :  { %7796 = vrot.lane.b32.xlu1 %v7795_v32, %s8568_s25  ;;  %v1740_v6 = vsel %vm1739_vm0, %v8187_v22, %v1736_v29  ;;  %v1747_v38 = vmul.f32 %v8189_v48, %v1729_v14  ;;  %vm1752_vm3 = vweird.f32 %v8189_v48 }
0x1368   :  { %8190 = vrcp.f32 %v1730_v33  ;;  %v1745_v55 = vsel %vm1742_vm1, %v1744_v51, %v1740_v6  ;;  %vm1753_vm6 = vmor %vm1751_vm5, %vm1752_vm3  ;;  %v1771_v32 = vand.u32 2147483648, %v1730_v33  ;;  %v1769_v29 = vand.u32 2147483647, %v1730_v33 }
0x1369   :  { %7477 = vmatmul.msk.f32.vlgmr.msra.gmra.mxu1 %vm647_vm4, %v1745_v55  ;;  %v1748_v24 = vsub.f32 1.0, %v1747_v38  ;;  %vm1765_vm9 = vweird.f32 %v1730_v33 }
0x136a   :  { %v1947_v17 = vpop.permute.xlu1 %1946  ;;  %v1772_v38 = vor.u32 1.1754944e-38, %v1771_v32  ;;  %vm1770_vm11 = vcmp.eq.f32.partialorder %v1769_v29, 8.507059e+37 }
0x136b   :  { %v1984_v25 = vmul.f32 %v9614_v30, %v1947_v17  ;;  %v1749_v34 = vmul.f32 %v8189_v48, %v1748_v24  ;;  %v1941_v56 = vpop.permute.xlu2 %1940 }
0x136d   :  { %v7805_v54 = vpack.i.bf16 %v1984_v25, %v1985_v37  ;;  %v1725_v2 = vpop.f32.mrf.mxu0  ;;  %v1750_v22 = vadd.f32 %v8189_v48, %v1749_v34 }
0x136e   :  { %v8191_v1 = vpop.eup %8190  ;;  %v1731_v58 = vmax.f32 %v1725_v2, 1e-30 }
0x136f   :  { %7806 = vrot.lane.b32.xlu2 %v7805_v54, %s8568_s25  ;;  %v1754_v12 = vsel %vm1753_vm6, %v8189_v48, %v1750_v22  ;;  %v1761_v44 = vmul.f32 %v8191_v1, %v1730_v33  ;;  %vm1766_vm8 = vweird.f32 %v8191_v1 }
0x1370   :  { %8192 = vrcp.f32 %v1731_v58  ;;  %v1759_v47 = vsel %vm1756_vm7, %v1758_v53, %v1754_v12  ;;  %vm1767_vm10 = vmor %vm1765_vm9, %vm1766_vm8  ;;  %v1785_v17 = vand.u32 2147483648, %v1731_v58  ;;  %v1783_v33 = vand.u32 2147483647, %v1731_v58 }
0x1371   :  { %7478 = vmatmul.msk.f32.gmra.mxu1 %vm647_vm4, %v1759_v47  ;;  %v1762_v30 = vsub.f32 1.0, %v1761_v44  ;;  %vm1779_vm13 = vweird.f32 %v1731_v58 }
0x1372   :  { %v1943_v5 = vpop.permute.xlu1 %1942  ;;  %v1786_v2 = vor.u32 1.1754944e-38, %v1785_v17  ;;  %vm1784_vm15 = vcmp.eq.f32.partialorder %v1783_v33, 8.507059e+37 }
0x1373   :  { %v1982_v14 = vmul.f32 %v9600_v52, %v1943_v5  ;;  %v1763_v23 = vmul.f32 %v8191_v1, %v1762_v30  ;;  %v1981_v52 = vmul.f32 %v9593_v9, %v1941_v56  ;;  %v1937_v34 = vpop.permute.xlu2 %1936 }
0x1374   :  { %v1979_v53 = vmul.f32 %v9579_v27, %v1937_v34  ;;  %v8425_v27 = vld [vmem:[%s12304_s4 + $0x50] sm:$0xff] }
0x1375   :  { %v7810_v51 = vpack.i.bf16 %v1982_v14, %v1983_v0  ;;  %v1764_v6 = vadd.f32 %v8191_v1, %v1763_v23 }
0x1376   :  { %v8193_v48 = vpop.eup %8192 }
0x1377   :  { %7811 = vrot.lane.b32.xlu1 %v7810_v51, %s8568_s25  ;;  %v1768_v55 = vsel %vm1767_vm10, %v8191_v1, %v1764_v6  ;;  %v1775_v24 = vmul.f32 %v8193_v48, %v1731_v58  ;;  %vm1780_vm12 = vweird.f32 %v8193_v48 }
0x1378   :  { %v1773_v3 = vsel %vm1770_vm11, %v1772_v38, %v1768_v55  ;;  %vm1781_vm14 = vmor %vm1779_vm13, %vm1780_vm12 }
0x1379   :  { %7479 = vmatmul.msk.f32.gmra.mxu1 %vm647_vm4, %v1773_v3  ;;  %v1776_v41 = vsub.f32 1.0, %v1775_v24 }
0x137a   :  { %v1939_v37 = vpop.permute.xlu1 %1938 }
0x137b   :  { %v1980_v4 = vmul.f32 %v9586_v8, %v1939_v37  ;;  %v1777_v25 = vmul.f32 %v8193_v48, %v1776_v41  ;;  %v1933_v44 = vpop.permute.xlu2 %1932 }
0x137c   :  { %v1977_v58 = vmul.f32 %v9565_v61, %v1933_v44 }
0x137d   :  { %v7815_v36 = vpack.i.bf16 %v1980_v4, %v1981_v52  ;;  %v1778_v54 = vadd.f32 %v8193_v48, %v1777_v25 }
0x137f   :  { %7816 = vrot.lane.b32.xlu2 %v7815_v36, %s8568_s25  ;;  %v1782_v22 = vsel %vm1781_vm14, %v8193_v48, %v1778_v54 }
0x1380   :  { %v1787_v1 = vsel %vm1784_vm15, %v1786_v2, %v1782_v22  ;;  %v7837_v22 = vpop.permute.xlu0 %7836 }
0x1381   :  { %7480 = vmatmul.msk.f32.gmra.mxu1 %vm647_vm4, %v1787_v1 }
0x1382   :  { %v1935_v9 = vpop.permute.xlu1 %1934 }
0x1383   :  { %v1978_v8 = vmul.f32 %v9572_v13, %v1935_v9  ;;  %v1929_v56 = vpop.permute.xlu2 %1928  ;;  %v8426_v13 = vld [vmem:[%s12304_s4 + $0x40] sm:$0xff]  ;;  %v9735_v9 = vunpack.i.h.bf16 %v7837_v22 }
0x1384   :  { %v7840_v32 = vpack.i.bf16 %v8426_v13, %v8425_v27  ;;  %v1975_v14 = vmul.f32 %v9551_v60, %v1929_v56  ;;  %v8427_v56 = vld [vmem:[%s12304_s4 + $0x30] sm:$0xff]  ;;  %v8430_v13 = vld [vmem:[%s12304_s4] sm:$0xff] }
0x1385   :  { %v7820_v12 = vpack.i.bf16 %v1978_v8, %v1979_v53  ;;  %12389 = vst [vmem:[#allocation18_spill] sm:$0xff] %v9735_v9  ;;  %v9737_v53 = vunpack.i.l.bf16 %v7837_v22 }
0x1387   :  { %7821 = vrot.lane.b32.xlu1 %v7820_v12, %s8568_s25  ;;  %12390 = vst [vmem:[#allocation19_spill] sm:$0xff] %v9737_v53  ;;  %2123 = vmatpush.msrb.mxu1 %v9737_v53 }
0x1389   :  { %2124 = vmatpush.msrb.mxu1 %v9735_v9 }
0x138a   :  { %v1931_v47 = vpop.permute.xlu1 %1930 }
0x138b   :  { %v1976_v30 = vmul.f32 %v9558_v7, %v1931_v47 }
0x138d   :  { %v7825_v0 = vpack.i.bf16 %v1976_v30, %v1977_v58 }
0x138f   :  { %7826 = vrot.lane.b32.xlu2 %v7825_v0, %s8568_s25 }
0x1392   :  { %v1927_v5 = vpop.permute.xlu1 %1926 }
0x1393   :  { %v1974_v61 = vmul.f32 %v9540_v10, %v1927_v5  ;;  %v8428_v5 = vld [vmem:[%s12304_s4 + $0x20] sm:$0xff] }
0x1395   :  { %v7830_v23 = vpack.i.bf16 %v1974_v61, %v1975_v14 }
0x1397   :  { %7831 = vrot.lane.b32.xlu1 %v7830_v23, %s8568_s25  ;;  %7841 = vrot.lane.b32.xlu2 %v7840_v32, %s8567_s19 }
0x13c0   :  { %v7802_v7 = vpop.permute.xlu2 %7801 }
0x13c1   :  { %v7803_v29 = vunpack.i.l.bf16 %v7802_v7  ;;  %v7804_v51 = vunpack.i.h.bf16 %v7802_v7 }
0x13c3   :  { %2054 = vmatpush.msrb.mxu0 %v7803_v29 }
0x13c5   :  { %2055 = vmatpush.msrb.mxu0 %v7804_v51 }
0x13c9   :  { %v7807_v38 = vpop.permute.xlu2 %7806 }
0x13ca   :  { %v7808_v24 = vunpack.i.l.bf16 %v7807_v38  ;;  %v7809_v60 = vunpack.i.h.bf16 %v7807_v38 }
0x13d9   :  { %v7797_v6 = vpop.permute.xlu1 %7796  ;;  %v7817_v41 = vpop.permute.xlu2 %7816 }
0x13da   :  { %v7798_v48 = vunpack.i.l.bf16 %v7797_v6  ;;  %v7799_v55 = vunpack.i.h.bf16 %v7797_v6  ;;  %v7818_v37 = vunpack.i.l.bf16 %v7817_v41  ;;  %v7819_v17 = vunpack.i.h.bf16 %v7817_v41 }
0x13dc   :  { %2056 = vmatpush.msrb.mxu0 %v7798_v48 }
0x13de   :  { %2057 = vmatpush.msrb.mxu0 %v7799_v55 }
0x13e0   :  { %2058 = vmatpush.msrb.mxu0 %v7808_v24 }
0x13e2   :  { %2059 = vmatpush.msrb.mxu0 %v7809_v60 }
0x13e6   :  { %v1817_v2 = vpop.f32.mrf.mxu1 }
0x13e7   :  { %v1829_v30 = vmul.f32 %v9665_v16, %v1817_v2  ;;  %v8429_v16 = vld [vmem:[%s12304_s4 + $0x10] sm:$0xff] }
0x13e9   :  { %v7812_v10 = vpop.permute.xlu1 %7811  ;;  %v7827_v33 = vpop.permute.xlu2 %7826 }
0x13ea   :  { %v7813_v3 = vunpack.i.l.bf16 %v7812_v10  ;;  %v7814_v52 = vunpack.i.h.bf16 %v7812_v10  ;;  %v7828_v36 = vunpack.i.l.bf16 %v7827_v33  ;;  %v7829_v54 = vunpack.i.h.bf16 %v7827_v33 }
0x13ec   :  { %2060 = vmatpush.msrb.mxu0 %v7813_v3 }
0x13ee   :  { %2061 = vmatpush.msrb.mxu0 %v7814_v52  ;;  %v1820_v0 = vpop.f32.mrf.mxu1  ;;  %v12393_v52 = vld [vmem:[#allocation14_spill] sm:$0xff] }
0x13ef   :  { %v1830_v27 = vmul.f32 %v9668_v31, %v1820_v0 }
0x13f0   :  { %2062 = vmatpush.msrb.mxu0 %v7818_v37 }
0x13f1   :  { %v7842_v1 = vpop.permute.xlu2 %7841 }
0x13f2   :  { %2063 = vmatpush.msrb.mxu0 %v7819_v17  ;;  %v9740_v44 = vunpack.i.l.bf16 %v7842_v1  ;;  %v9742_v58 = vunpack.i.h.bf16 %v7842_v1 }
0x13f4   :  { %12391 = vst [vmem:[#allocation20_spill] sm:$0xff] %v9740_v44  ;;  %2125 = vmatpush.msrb.mxu1 %v9740_v44 }
0x13f5   :  { %12392 = vst [vmem:[#allocation21_spill] sm:$0xff] %v9742_v58 }
0x13f6   :  { %2126 = vmatpush.msrb.mxu1 %v9742_v58  ;;  %v1823_v32 = vpop.f32.mrf.mxu1 }
0x13f7   :  { %v1831_v14 = vmul.f32 %v9672_v21, %v1823_v32 }
0x13f8   :  { %2772 = vmatpush.msra.mxu1 %v8427_v56 }
0x13f9   :  { %v7822_v4 = vpop.permute.xlu1 %7821 }
0x13fa   :  { %v7823_v25 = vunpack.i.l.bf16 %v7822_v4  ;;  %v7824_v34 = vunpack.i.h.bf16 %v7822_v4  ;;  %2773 = vmatpush.msra.mxu1 %v8428_v5  ;;  %v12394_v4 = vld [vmem:[#allocation15_spill] sm:$0xff] }
0x13fc   :  { %2064 = vmatpush.msrb.mxu0 %v7823_v25  ;;  %2774 = vmatpush.msra.mxu1 %v8429_v16 }
0x13fe   :  { %2065 = vmatpush.msrb.mxu0 %v7824_v34  ;;  %2775 = vmatpush.msra.mxu1 %v8430_v13  ;;  %v1826_v61 = vpop.f32.mrf.mxu1 }
0x13ff   :  { %v1832_v23 = vmul.f32 %v9677_v26, %v1826_v61 }
0x1400   :  { %2066 = vmatpush.msrb.mxu0 %v7828_v36 }
0x1402   :  { %2067 = vmatpush.msrb.mxu0 %v7829_v54 }
0x1409   :  { %v7832_v8 = vpop.permute.xlu1 %7831 }
0x140a   :  { %v7833_v12 = vunpack.i.l.bf16 %v7832_v8  ;;  %v7834_v47 = vunpack.i.h.bf16 %v7832_v8 }
0x140c   :  { %2068 = vmatpush.msrb.mxu0 %v7833_v12 }
0x140e   :  { %2069 = vmatpush.msrb.mxu0 %v7834_v47  ;;  %v12395_v47 = vld [vmem:[#allocation6_spill] sm:$0xff] }
0x140f   :  { %2070 = vmatmul.f32.vlgmr.msrb.gmra.mxu0 %v1829_v30 }
0x1417   :  { %2073 = vmatmul.f32.gmra.mxu0 %v1830_v27 }
0x141f   :  { %2076 = vmatmul.f32.gmra.mxu0 %v1831_v14 }
0x1427   :  { %2079 = vmatmul.f32.gmra.mxu0 %v1832_v23 }
0x148c   :  { %v2071_v31 = vpop.f32.mrf.mxu0 }
0x148d   :  { %7497 = vmatmul.msk.f32.vlgmr.msrb.gmra.mxu1 %vm132_vm2, %v2071_v31 }
0x148e   :  { %2939 = vmatpush.msrb.mxu1 %v9020_v42 }
0x1490   :  { %2940 = vmatpush.msrb.mxu1 %v9018_v40 }
0x1492   :  { %2941 = vmatpush.msrb.mxu1 %v9023_v43 }
0x1494   :  { %2942 = vmatpush.msrb.mxu1 %v9025_v46  ;;  %v2074_v7 = vpop.f32.mrf.mxu0 }
0x1495   :  { %7498 = vmatmul.msk.f32.gmra.mxu1 %vm132_vm2, %v2074_v7 }
0x1496   :  { %2943 = vmatpush.msrb.mxu1 %v9032_v15 }
0x1498   :  { %2944 = vmatpush.msrb.mxu1 %v9030_v62 }
0x149a   :  { %2945 = vmatpush.msrb.mxu1 %v9036_v59 }
0x149c   :  { %2946 = vmatpush.msrb.mxu1 %v9038_v19  ;;  %v2077_v21 = vpop.f32.mrf.mxu0 }
0x149d   :  { %7499 = vmatmul.msk.f32.gmra.mxu1 %vm132_vm2, %v2077_v21 }
0x149e   :  { %2947 = vmatpush.msrb.mxu1 %v9047_v39 }
0x14a0   :  { %2948 = vmatpush.msrb.mxu1 %v9045_v35 }
0x14a2   :  { %2949 = vmatpush.msrb.mxu1 %v9054_v49 }
0x14a4   :  { %2950 = vmatpush.msrb.mxu1 %v9052_v45  ;;  %v2080_v26 = vpop.f32.mrf.mxu0 }
0x14a5   :  { %7500 = vmatmul.msk.f32.gmra.mxu1 %vm132_vm2, %v2080_v26 }
0x14a6   :  { %2951 = vmatpush.msrb.mxu1 %v9064_v18 }
0x14a8   :  { %2952 = vmatpush.msrb.mxu1 %v9062_v20 }
0x14aa   :  { %2953 = vmatpush.msrb.mxu1 %v9092_v28 }
0x14ac   :  { %2954 = vmatpush.msrb.mxu1 %v9094_v63 }
0x150a   :  { %v2128_v29 = vpop.f32.mrf.mxu1 }
0x150b   :  { %2144 = vrot.lane.b32.xlu1 %v2128_v29, %s8567_s19 }
0x1512   :  { %v2131_v51 = vpop.f32.mrf.mxu1 }
0x1513   :  { %2146 = vrot.lane.b32.xlu0 %v2131_v51, %s8567_s19 }
0x151a   :  { %v2134_v6 = vpop.f32.mrf.mxu1 }
0x151b   :  { %2148 = vrot.lane.b32.xlu2 %v2134_v6, %s8567_s19 }
0x1522   :  { %v2137_v48 = vpop.f32.mrf.mxu1 }
0x1523   :  { %2150 = vrot.lane.b32.xlu1 %v2137_v48, %s8567_s19 }
0x1575   :  { %v2149_v38 = vpop.permute.xlu2 %2148 }
0x1576   :  { %v2158_v55 = vadd.f32 %v2149_v38, %v9415_v57 }
0x1578   :  { %v9789_v24 = vadd.f32 %v9464_v11, %v2158_v55 }
0x157a   :  { %2172 = vrot.lane.b32.xlu1 %v9789_v24, %s8568_s25 }
0x157d   :  { %v2145_v60 = vpop.permute.xlu1 %2144 }
0x157e   :  { %v2156_v10 = vadd.f32 %v2145_v60, %v9403_v50  ;;  %v8431_v60 = vld [vmem:[%s12303_s6 + $0x5] ss:$0 sm:$0xff] }
0x1580   :  { %v9795_v3 = vadd.f32 %v9464_v11, %v2156_v10 }
0x1582   :  { %2168 = vrot.lane.b32.xlu0 %v9795_v3, %s8568_s25 }
0x1585   :  { %v2147_v41 = vpop.permute.xlu0 %2146 }
0x1586   :  { %v2157_v37 = vadd.f32 %v2147_v41, %v12393_v52 }
0x1588   :  { %v9801_v57 = vadd.f32 %v9464_v11, %v2157_v37 }
0x158a   :  { %2170 = vrot.lane.b32.xlu2 %v9801_v57, %s8568_s25 }
0x1595   :  { %v2151_v17 = vpop.permute.xlu1 %2150 }
0x1596   :  { %v2159_v25 = vadd.f32 %v2151_v17, %v12394_v4 }
0x1598   :  { %v9807_v50 = vadd.f32 %v9464_v11, %v2159_v25 }
0x159a   :  { %2174 = vrot.lane.b32.xlu0 %v9807_v50, %s8568_s25 }
0x15e4   :  { %v2171_v33 = vpop.permute.xlu2 %2170 }
0x15e5   :  { %v2183_v34 = vsel %vm132_vm2, %v2171_v33, 0.0 }
0x15e6   :  { %2184 = vadd.xlane.f32.xlu1 %v2183_v34 }
0x15ec   :  { %v2173_v36 = vpop.permute.xlu1 %2172 }
0x15ed   :  { %v2186_v54 = vsel %vm132_vm2, %v2173_v36, 0.0 }
0x15ee   :  { %2187 = vadd.xlane.f32.xlu0 %v2186_v54 }
0x15f4   :  { %v2169_v2 = vpop.permute.xlu0 %2168 }
0x15f5   :  { %v2180_v22 = vsel %vm132_vm2, %v2169_v2, 0.0 }
0x15f6   :  { %2181 = vadd.xlane.f32.xlu2 %v2180_v22 }
0x160c   :  { %v2175_v1 = vpop.permute.xlu0 %2174 }
0x160d   :  { %v2189_v8 = vsel %vm132_vm2, %v2175_v1, 0.0 }
0x160e   :  { %2190 = vadd.xlane.f32.xlu2 %v2189_v8 }
0x1659   :  { %v2185_v12 = vpop.xlane.xlu1 %2184 }
0x165a   :  { %v2193_v30 = vmul.f32 %v2185_v12, %v12395_v47 }
0x165c   :  { %v2197_v0 = vsub.f32 %v9801_v57, %v2193_v30 }
0x165e   :  { %v2201_v56 = vmul.f32 %v2197_v0, %v2197_v0 }
0x1660   :  { %2210 = vrot.lane.b32.xlu2 %v2201_v56, %s8568_s25 }
0x1661   :  { %v2188_v5 = vpop.xlane.xlu0 %2187 }
0x1662   :  { %v2194_v27 = vmul.f32 %v2188_v5, %v12395_v47 }
0x1664   :  { %v9820_v16 = vsub.f32 %v9789_v24, %v2194_v27 }
0x1666   :  { %v2202_v13 = vmul.f32 %v9820_v16, %v9820_v16 }
0x1668   :  { %2212 = vrot.lane.b32.xlu0 %v2202_v13, %s8568_s25 }
0x1669   :  { %v2182_v32 = vpop.xlane.xlu2 %2181 }
0x166a   :  { %v2192_v14 = vmul.f32 %v2182_v32, %v12395_v47 }
0x166c   :  { %v9827_v61 = vsub.f32 %v9795_v3, %v2192_v14 }
0x166e   :  { %v2200_v23 = vmul.f32 %v9827_v61, %v9827_v61 }
0x1670   :  { %2208 = vrot.lane.b32.xlu1 %v2200_v23, %s8568_s25 }
0x1681   :  { %v2191_v31 = vpop.xlane.xlu2 %2190 }
0x1682   :  { %v2195_v7 = vmul.f32 %v2191_v31, %v12395_v47 }
0x1684   :  { %v9834_v21 = vsub.f32 %v9807_v50, %v2195_v7 }
0x1686   :  { %v2203_v26 = vmul.f32 %v9834_v21, %v9834_v21 }
0x1688   :  { %2214 = vrot.lane.b32.xlu0 %v2203_v26, %s8568_s25 }
0x16ba   :  { %v2211_v29 = vpop.permute.xlu2 %2210 }
0x16bb   :  { %v2223_v51 = vsel %vm132_vm2, %v2211_v29, 0.0 }
0x16bc   :  { %2224 = vadd.xlane.f32.xlu2 %v2223_v51 }
0x16d4   :  { %2284 = vrot.lane.b32.xlu2 %v9464_v11, %s8568_s25 }
0x16da   :  { %v2213_v6 = vpop.permute.xlu0 %2212 }
0x16db   :  { %v2226_v48 = vsel %vm132_vm2, %v2213_v6, 0.0 }
0x16dc   :  { %2227 = vadd.xlane.f32.xlu0 %v2226_v48 }
0x16e2   :  { %v2209_v38 = vpop.permute.xlu1 %2208 }
0x16e3   :  { %v2220_v55 = vsel %vm132_vm2, %v2209_v38, 0.0 }
0x16e4   :  { %2221 = vadd.xlane.f32.xlu1 %v2220_v55 }
0x16f0   :  { %2291 = vrot.lane.b32.xlu0 %v8431_v60, %s8570_s28 }
0x16fa   :  { %v2215_v10 = vpop.permute.xlu0 %2214 }
0x16fb   :  { %v2229_v41 = vsel %vm132_vm2, %v2215_v10, 0.0 }
0x16fc   :  { %2230 = vadd.xlane.f32.xlu1 %v2229_v41 }
0x172f   :  { %v2225_v52 = vpop.xlane.xlu2 %2224 }
0x1730   :  { %v2233_v11 = vmul.f32 %v2225_v52, %v12395_v47 }
0x1732   :  { %v2237_v37 = vadd.f32 1e-05, %v2233_v11 }
0x1734   :  { %8194 = vrsqrt.f32 %v2237_v37  ;;  %vm2256_vm1 = vweird.f32 %v2237_v37 }
0x1737   :  { %v9852_v32 = vpop.permute.xlu2 %2284 }
0x1738   :  { %12396 = vst [vmem:[#allocation14_spill] sm:$0xff] %v9852_v32 }
0x173a   :  { %v8195_v17 = vpop.eup %8194 }
0x173b   :  { %v2251_v4 = vmul.f32 %v8195_v17, %v2237_v37  ;;  %vm2257_vm0 = vweird.f32 %v8195_v17 }
0x173c   :  { %vm2258_vm3 = vmor %vm2256_vm1, %vm2257_vm0 }
0x173d   :  { %v2252_v25 = vmul.f32 %v8195_v17, %v2251_v4 }
0x173f   :  { %v2253_v33 = vmul.f32 0.5, %v2252_v25 }
0x1741   :  { %v2254_v54 = vsub.f32 1.5, %v2253_v33 }
0x1743   :  { %v2255_v22 = vmul.f32 %v8195_v17, %v2254_v54 }
0x1745   :  { %v2259_v30 = vsel %vm2258_vm3, %v8195_v17, %v2255_v22 }
0x1746   :  { %v2281_v27 = vmul.f32 %v2259_v30, %v2197_v0 }
0x1748   :  { %v2288_v31 = vmul.f32 %v9852_v32, %v2281_v27  ;;  %v9892_v27 = vld [vmem:[%s12304_s4 + $0x48] sm:$0xff] }
0x174f   :  { %v2228_v34 = vpop.xlane.xlu0 %2227 }
0x1750   :  { %v2234_v36 = vmul.f32 %v2228_v34, %v12395_v47 }
0x1752   :  { %v2238_v2 = vadd.f32 1e-05, %v2234_v36 }
0x1754   :  { %8196 = vrsqrt.f32 %v2238_v2  ;;  %vm2266_vm6 = vweird.f32 %v2238_v2 }
0x1757   :  { %v2222_v1 = vpop.xlane.xlu1 %2221 }
0x1758   :  { %v2232_v8 = vmul.f32 %v2222_v1, %v12395_v47 }
0x175a   :  { %v8197_v12 = vpop.eup %8196  ;;  %v2236_v56 = vadd.f32 1e-05, %v2232_v8 }
0x175b   :  { %v2261_v5 = vmul.f32 %v8197_v12, %v2238_v2  ;;  %vm2267_vm5 = vweird.f32 %v8197_v12 }
0x175c   :  { %8198 = vrsqrt.f32 %v2236_v56  ;;  %vm2268_vm7 = vmor %vm2266_vm6, %vm2267_vm5  ;;  %vm2246_vm9 = vweird.f32 %v2236_v56 }
0x175d   :  { %v2262_v13 = vmul.f32 %v8197_v12, %v2261_v5  ;;  %v9880_v5 = vld [vmem:[%s12304_s4 + $0x68] sm:$0xff] }
0x175f   :  { %v2263_v14 = vmul.f32 0.5, %v2262_v13  ;;  %v8432_v13 = vld [vmem:[%s12302_s1 + $0x48] sm:$0xff] }
0x1761   :  { %v2264_v23 = vsub.f32 1.5, %v2263_v14  ;;  %v8433_v14 = vld [vmem:[%s12302_s1 + $0x30] sm:$0xff] }
0x1762   :  { %v8199_v7 = vpop.eup %8198  ;;  %v9855_v26 = vpop.permute.xlu0 %2291 }
0x1763   :  { %12397 = vst [vmem:[#allocation15_spill] sm:$0xff] %v9855_v26  ;;  %v2265_v29 = vmul.f32 %v8197_v12, %v2264_v23  ;;  %v2241_v51 = vmul.f32 %v8199_v7, %v2236_v56  ;;  %v2295_v6 = vadd.f32 %v9855_v26, %v2288_v31  ;;  %vm2247_vm8 = vweird.f32 %v8199_v7  ;;  %v9875_v56 = vld [vmem:[%s12304_s4 + $0x78] sm:$0xff]  ;;  %v8435_v31 = vld [vmem:[%s12302_s1] sm:$0xff] }
0x1764   :  { %vm2248_vm10 = vmor %vm2246_vm9, %vm2247_vm8  ;;  %2336 = vmatpush.msrb.mxu2 %v9875_v56  ;;  %v8434_v23 = vld [vmem:[%s12302_s1 + $0x18] sm:$0xff] }
0x1765   :  { %v2269_v48 = vsel %vm2268_vm7, %v8197_v12, %v2265_v29  ;;  %v2242_v38 = vmul.f32 %v8199_v7, %v2241_v51  ;;  %2310 = vrot.lane.b32.xlu2 %v2295_v6, %s8568_s25  ;;  %v2403_v29 = vld [vmem:[%s12307_s5 + $0xf0] sm:$0xff]  ;;  %v2402_v51 = vld [vmem:[%s12307_s5 + $0xe8] sm:$0xff]  ;;  %v2401_v6 = vld [vmem:[%s12307_s5 + $0xe0] sm:$0xff] }
0x1766   :  { %v2282_v0 = vmul.f32 %v2269_v48, %v9820_v16  ;;  %2337 = vmatpush.msrb.mxu2 %v9880_v5 }
0x1767   :  { %v2243_v55 = vmul.f32 0.5, %v2242_v38  ;;  %v8436_v38 = vld [vmem:[%s12306_s2 + $0x20] sm:$0xff] }
0x1768   :  { %v2289_v60 = vmul.f32 %v9852_v32, %v2282_v0 }
0x1769   :  { %v2244_v10 = vsub.f32 1.5, %v2243_v55 }
0x176a   :  { %v2296_v41 = vadd.f32 %v9855_v26, %v2289_v60 }
0x176b   :  { %v2245_v52 = vmul.f32 %v8199_v7, %v2244_v10  ;;  %v2400_v10 = vld [vmem:[%s12307_s5 + $0xd8] sm:$0xff] }
0x176c   :  { %2312 = vrot.lane.b32.xlu0 %v2296_v41, %s8568_s25  ;;  %v2399_v41 = vld [vmem:[%s12307_s5 + $0xd0] sm:$0xff] }
0x176d   :  { %v2249_v11 = vsel %vm2248_vm10, %v8199_v7, %v2245_v52  ;;  %v2404_v7 = vld [vmem:[%s12307_s5 + $0xf8] sm:$0xff]  ;;  %v2398_v52 = vld [vmem:[%s12307_s5 + $0xc8] sm:$0xff] }
0x176e   :  { %v2280_v37 = vmul.f32 %v2249_v11, %v9827_v61  ;;  %2405 = vmatpush.msra.mxu0 %v2404_v7  ;;  %v2397_v11 = vld [vmem:[%s12307_s5 + $0xc0] sm:$0xff] }
0x176f   :  { %v2231_v17 = vpop.xlane.xlu1 %2230 }
0x1770   :  { %v2235_v4 = vmul.f32 %v2231_v17, %v12395_v47  ;;  %v2287_v16 = vmul.f32 %v9852_v32, %v2280_v37  ;;  %2406 = vmatpush.msra.mxu0 %v2403_v29  ;;  %v2396_v37 = vld [vmem:[%s12307_s5 + $0xb8] sm:$0xff]  ;;  %v2395_v17 = vld [vmem:[%s12307_s5 + $0xb0] sm:$0xff] }
0x1772   :  { %v2239_v25 = vadd.f32 1e-05, %v2235_v4  ;;  %v2294_v33 = vadd.f32 %v9855_v26, %v2287_v16  ;;  %2407 = vmatpush.msra.mxu0 %v2402_v51  ;;  %v2394_v4 = vld [vmem:[%s12307_s5 + $0xa8] sm:$0xff]  ;;  %v2393_v16 = vld [vmem:[%s12307_s5 + $0xa0] sm:$0xff] }
0x1773   :  { %v8115_v51 = vld [vmem:[%s12303_s6 + $0x7] ss:$0 sm:$0xff] }
0x1774   :  { %8200 = vrsqrt.f32 %v2239_v25  ;;  %2308 = vrot.lane.b32.xlu1 %v2294_v33, %s8568_s25  ;;  %vm2276_vm12 = vweird.f32 %v2239_v25  ;;  %2408 = vmatpush.msra.mxu0 %v2401_v6  ;;  %v2391_v33 = vld [vmem:[%s12307_s5 + $0x90] sm:$0xff] }
0x1775   :  { %2457 = vrot.lane.b32.xlu0 %v8115_v51, %s8567_s19 }
0x1776   :  { %2409 = vmatpush.msra.mxu0 %v2400_v10 }
0x1778   :  { %2410 = vmatpush.msra.mxu0 %v2399_v41 }
0x177a   :  { %v8201_v34 = vpop.eup %8200  ;;  %2411 = vmatpush.msra.mxu0 %v2398_v52 }
0x177b   :  { %v2271_v36 = vmul.f32 %v8201_v34, %v2239_v25  ;;  %vm2277_vm11 = vweird.f32 %v8201_v34  ;;  %v2392_v25 = vld [vmem:[%s12307_s5 + $0x98] sm:$0xff] }
0x177c   :  { %vm2278_vm13 = vmor %vm2276_vm12, %vm2277_vm11  ;;  %2412 = vmatpush.msra.mxu0 %v2397_v11 }
0x177d   :  { %v2272_v54 = vmul.f32 %v8201_v34, %v2271_v36  ;;  %v2389_v36 = vld [vmem:[%s12307_s5 + $0x80] sm:$0xff] }
0x177e   :  { %2413 = vmatpush.msra.mxu0 %v2396_v37 }
0x177f   :  { %v2273_v2 = vmul.f32 0.5, %v2272_v54  ;;  %v8114_v54 = vld [vmem:[%s12303_s6 + $0x3] ss:$0 sm:$0xff] }
0x1780   :  { %2414 = vmatpush.msra.mxu0 %v2395_v17 }
0x1781   :  { %v2274_v22 = vsub.f32 1.5, %v2273_v2 }
0x1782   :  { %2415 = vmatpush.msra.mxu0 %v2394_v4 }
0x1783   :  { %v2275_v1 = vmul.f32 %v8201_v34, %v2274_v22 }
0x1784   :  { %2416 = vmatpush.msra.mxu0 %v2393_v16 }
0x1785   :  { %v2279_v61 = vsel %vm2278_vm13, %v8201_v34, %v2275_v1  ;;  %v2390_v34 = vld [vmem:[%s12307_s5 + $0x88] sm:$0xff] }
0x1786   :  { %v2283_v8 = vmul.f32 %v2279_v61, %v9834_v21  ;;  %v9886_v21 = vld [vmem:[%s12304_s4 + $0x58] sm:$0xff]  ;;  %2417 = vmatpush.msra.mxu0 %v2392_v25 }
0x1787   :  { %2338 = vmatpush.msrb.mxu2 %v9886_v21 }
0x1788   :  { %v2290_v12 = vmul.f32 %v9852_v32, %v2283_v8  ;;  %2418 = vmatpush.msra.mxu0 %v2391_v33 }
0x1789   :  { %2339 = vmatpush.msrb.mxu2 %v9892_v27 }
0x178a   :  { %v2297_v30 = vadd.f32 %v9855_v26, %v2290_v12  ;;  %2419 = vmatpush.msra.mxu0 %v2390_v34 }
0x178b   :  { %2861 = vmatpush.msra.mxu2 %v8432_v13 }
0x178c   :  { %2314 = vrot.lane.b32.xlu1 %v2297_v30, %s8568_s25  ;;  %2420 = vmatpush.msra.mxu0 %v2389_v36 }
0x178d   :  { %2862 = vmatpush.msra.mxu2 %v8433_v14 }
0x178f   :  { %2863 = vmatpush.msra.mxu2 %v8434_v23 }
0x1791   :  { %2864 = vmatpush.msra.mxu2 %v8435_v31 }
0x17bf   :  { %v2311_v0 = vpop.permute.xlu2 %2310 }
0x17de   :  { %v2313_v55 = vpop.permute.xlu0 %2312 }
0x17e6   :  { %v2309_v48 = vpop.permute.xlu1 %2308 }
0x17e7   :  { %7501 = vmatmul.msk.f32.vlgmr.msrb.gmra.mxu2 %vm132_vm2, %v2309_v48 }
0x17e8   :  { %3055 = vmatpush.msrb.mxu2 %v8436_v38 }
0x17ef   :  { %7502 = vmatmul.msk.f32.gmra.mxu2 %vm132_vm2, %v2311_v0 }
0x17f7   :  { %7503 = vmatmul.msk.f32.gmra.mxu2 %vm132_vm2, %v2313_v55 }
0x17fe   :  { %v2315_v60 = vpop.permute.xlu1 %2314 }
0x17ff   :  { %7504 = vmatmul.msk.f32.gmra.mxu2 %vm132_vm2, %v2315_v60 }
0x186a   :  { %v2341_v2 = vpop.f32.mrf.mxu2 }
0x186b   :  { %v2342_v22 = vadd.f32 %v8114_v54, %v2341_v2 }
0x186d   :  { %v2357_v1 = vmul.f32 0.044715, %v2342_v22  ;;  %v2353_v60 = vmul.f32 0.5, %v2342_v22 }
0x186f   :  { %v2361_v61 = vmul.f32 %v2357_v1, %v2342_v22 }
0x1871   :  { %v2365_v8 = vmul.f32 %v2361_v61, %v2342_v22 }
0x1872   :  { %v2344_v12 = vpop.f32.mrf.mxu2 }
0x1873   :  { %v2369_v30 = vadd.f32 %v2365_v8, %v2342_v22  ;;  %v2345_v13 = vadd.f32 %v8114_v54, %v2344_v12 }
0x1875   :  { %v2373_v14 = vmul.f32 0.7978846, %v2369_v30  ;;  %v2358_v23 = vmul.f32 0.044715, %v2345_v13  ;;  %v2354_v34 = vmul.f32 0.5, %v2345_v13 }
0x1877   :  { %8202 = vtanh.f32 %v2373_v14  ;;  %v2362_v31 = vmul.f32 %v2358_v23, %v2345_v13 }
0x1879   :  { %v2366_v7 = vmul.f32 %v2362_v31, %v2345_v13 }
0x187a   :  { %v2347_v29 = vpop.f32.mrf.mxu2 }
0x187b   :  { %v2348_v6 = vadd.f32 %v8114_v54, %v2347_v29  ;;  %v2370_v48 = vadd.f32 %v2366_v7, %v2345_v13 }
0x187d   :  { %v8203_v38 = vpop.eup %8202  ;;  %v2359_v0 = vmul.f32 0.044715, %v2348_v6  ;;  %v2374_v55 = vmul.f32 0.7978846, %v2370_v48  ;;  %v2355_v30 = vmul.f32 0.5, %v2348_v6 }
0x187e   :  { %v2381_v10 = vadd.f32 1.0, %v8203_v38 }
0x187f   :  { %8204 = vtanh.f32 %v2374_v55  ;;  %v2363_v41 = vmul.f32 %v2359_v0, %v2348_v6  ;;  %v9974_v0 = vpop.permute.xlu0 %2457 }
0x1880   :  { %v2385_v52 = vmul.f32 %v2381_v10, %v2353_v60  ;;  %12398 = vst [vmem:[#allocation22_spill] sm:$0xff] %v9974_v0 }
0x1881   :  { %v2367_v11 = vmul.f32 %v2363_v41, %v2348_v6 }
0x1882   :  { %v2350_v37 = vpop.f32.mrf.mxu2  ;;  %2421 = vmatmul.f32.vlgmr.msra.gmra.mxu0 %v2385_v52 }
0x1883   :  { %v2351_v17 = vadd.f32 %v8114_v54, %v2350_v37  ;;  %v2371_v4 = vadd.f32 %v2367_v11, %v2348_v6 }
0x1885   :  { %v8205_v16 = vpop.eup %8204  ;;  %v2360_v25 = vmul.f32 0.044715, %v2351_v17  ;;  %v2375_v33 = vmul.f32 0.7978846, %v2371_v4  ;;  %v2356_v31 = vmul.f32 0.5, %v2351_v17 }
0x1886   :  { %v2382_v36 = vadd.f32 1.0, %v8205_v16 }
0x1887   :  { %8206 = vtanh.f32 %v2375_v33  ;;  %v2364_v2 = vmul.f32 %v2360_v25, %v2351_v17 }
0x1888   :  { %v2386_v1 = vmul.f32 %v2382_v36, %v2354_v34 }
0x1889   :  { %v2368_v61 = vmul.f32 %v2364_v2, %v2351_v17 }
0x188a   :  { %2424 = vmatmul.f32.gmra.mxu0 %v2386_v1 }
0x188b   :  { %v2372_v22 = vadd.f32 %v2368_v61, %v2351_v17 }
0x188d   :  { %v8207_v8 = vpop.eup %8206  ;;  %v2376_v12 = vmul.f32 0.7978846, %v2372_v22 }
0x188e   :  { %v2383_v14 = vadd.f32 1.0, %v8207_v8 }
0x188f   :  { %8208 = vtanh.f32 %v2376_v12 }
0x1890   :  { %v2387_v23 = vmul.f32 %v2383_v14, %v2355_v30 }
0x1892   :  { %2427 = vmatmul.f32.gmra.mxu0 %v2387_v23 }
0x1895   :  { %v8209_v54 = vpop.eup %8208 }
0x1896   :  { %v2384_v7 = vadd.f32 1.0, %v8209_v54 }
0x1898   :  { %v2388_v29 = vmul.f32 %v2384_v7, %v2356_v31 }
0x189a   :  { %2430 = vmatmul.f32.gmra.mxu0 %v2388_v29 }
0x18ff   :  { %v2422_v13 = vpop.f32.mrf.mxu0 }
0x1900   :  { %2438 = vrot.lane.b32.xlu2 %v2422_v13, %s8567_s19 }
0x1907   :  { %v2425_v51 = vpop.f32.mrf.mxu0 }
0x1908   :  { %2440 = vrot.lane.b32.xlu1 %v2425_v51, %s8567_s19 }
0x190f   :  { %v2428_v48 = vpop.f32.mrf.mxu0 }
0x1910   :  { %2442 = vrot.lane.b32.xlu2 %v2428_v48, %s8567_s19 }
0x1917   :  { %v2431_v38 = vpop.f32.mrf.mxu0 }
0x1918   :  { %2444 = vrot.lane.b32.xlu0 %v2431_v38, %s8567_s19 }
0x195a   :  { %v2439_v6 = vpop.permute.xlu2 %2438 }
0x195b   :  { %v2450_v55 = vadd.f32 %v2439_v6, %v9795_v3 }
0x195d   :  { %v2460_v60 = vadd.f32 %v9974_v0, %v2450_v55 }
0x195f   :  { %2470 = vrot.lane.b32.xlu1 %v2460_v60, %s8568_s25 }
0x196a   :  { %v2443_v10 = vpop.permute.xlu2 %2442 }
0x196b   :  { %v2452_v41 = vadd.f32 %v2443_v10, %v9789_v24 }
0x196d   :  { %v2462_v52 = vadd.f32 %v9974_v0, %v2452_v41 }
0x196f   :  { %2474 = vrot.lane.b32.xlu0 %v2462_v52, %s8568_s25 }
0x197a   :  { %v2441_v11 = vpop.permute.xlu1 %2440 }
0x197b   :  { %v2451_v37 = vadd.f32 %v2441_v11, %v9801_v57  ;;  %v8116_v11 = vld [vmem:[%s12300_s7 + $0x6] ss:$0 sm:$0xff] }
0x197d   :  { %v2461_v17 = vadd.f32 %v9974_v0, %v2451_v37  ;;  %v8117_v37 = vld [vmem:[%s12300_s7 + $0x5] ss:$0 sm:$0xff] }
0x197f   :  { %2472 = vrot.lane.b32.xlu2 %v2461_v17, %s8568_s25 }
0x198a   :  { %v2445_v4 = vpop.permute.xlu0 %2444 }
0x198b   :  { %v2453_v3 = vadd.f32 %v2445_v4, %v9807_v50 }
0x198d   :  { %v2463_v16 = vadd.f32 %v9974_v0, %v2453_v3 }
0x198f   :  { %2476 = vrot.lane.b32.xlu1 %v2463_v16, %s8568_s25 }
0x19d1   :  { %v2471_v25 = vpop.permute.xlu1 %2470 }
0x19d2   :  { %v2482_v24 = vsel %vm132_vm2, %v2471_v25, 0.0 }
0x19d3   :  { %2483 = vadd.xlane.f32.xlu2 %v2482_v24 }
0x19d9   :  { %v2473_v33 = vpop.permute.xlu2 %2472 }
0x19da   :  { %v2485_v34 = vsel %vm132_vm2, %v2473_v33, 0.0 }
0x19db   :  { %2486 = vadd.xlane.f32.xlu0 %v2485_v34 }
0x19e1   :  { %v2475_v57 = vpop.permute.xlu0 %2474 }
0x19e2   :  { %v2488_v36 = vsel %vm132_vm2, %v2475_v57, 0.0 }
0x19e3   :  { %2489 = vadd.xlane.f32.xlu1 %v2488_v36 }
0x1a01   :  { %v2477_v2 = vpop.permute.xlu1 %2476 }
0x1a02   :  { %v2491_v1 = vsel %vm132_vm2, %v2477_v2, 0.0 }
0x1a03   :  { %2492 = vadd.xlane.f32.xlu2 %v2491_v1 }
0x1a46   :  { %v2484_v50 = vpop.xlane.xlu2 %2483 }
0x1a47   :  { %v2494_v61 = vmul.f32 %v2484_v50, %v12395_v47 }
0x1a49   :  { %v9993_v22 = vsub.f32 %v2460_v60, %v2494_v61 }
0x1a4b   :  { %v2502_v8 = vmul.f32 %v9993_v22, %v9993_v22 }
0x1a4d   :  { %2510 = vrot.lane.b32.xlu0 %v2502_v8, %s8568_s25 }
0x1a4e   :  { %v2487_v12 = vpop.xlane.xlu0 %2486 }
0x1a4f   :  { %v2495_v30 = vmul.f32 %v2487_v12, %v12395_v47 }
0x1a51   :  { %v9999_v14 = vsub.f32 %v2461_v17, %v2495_v30 }
0x1a53   :  { %v2503_v23 = vmul.f32 %v9999_v14, %v9999_v14 }
0x1a55   :  { %2512 = vrot.lane.b32.xlu1 %v2503_v23, %s8568_s25 }
0x1a56   :  { %v2490_v54 = vpop.xlane.xlu1 %2489 }
0x1a57   :  { %v2496_v31 = vmul.f32 %v2490_v54, %v12395_v47 }
0x1a59   :  { %v2500_v7 = vsub.f32 %v2462_v52, %v2496_v31 }
0x1a5b   :  { %v2504_v29 = vmul.f32 %v2500_v7, %v2500_v7 }
0x1a5d   :  { %2514 = vrot.lane.b32.xlu2 %v2504_v29, %s8568_s25 }
0x1a76   :  { %v2493_v13 = vpop.xlane.xlu2 %2492 }
0x1a77   :  { %v2497_v51 = vmul.f32 %v2493_v13, %v12395_v47 }
0x1a79   :  { %v10007_v48 = vsub.f32 %v2463_v16, %v2497_v51 }
0x1a7b   :  { %v2505_v38 = vmul.f32 %v10007_v48, %v10007_v48 }
0x1a7d   :  { %2516 = vrot.lane.b32.xlu0 %v2505_v38, %s8568_s25 }
0x1ab7   :  { %v2515_v6 = vpop.permute.xlu2 %2514 }
0x1ab8   :  { %v2528_v55 = vsel %vm132_vm2, %v2515_v6, 0.0 }
0x1ab9   :  { %2529 = vadd.xlane.f32.xlu1 %v2528_v55 }
0x1abf   :  { %v2511_v60 = vpop.permute.xlu0 %2510 }
0x1ac0   :  { %v2522_v10 = vsel %vm132_vm2, %v2511_v60, 0.0 }
0x1ac1   :  { %2523 = vadd.xlane.f32.xlu0 %v2522_v10 }
0x1ac7   :  { %v2513_v41 = vpop.permute.xlu1 %2512 }
0x1ac8   :  { %v2525_v52 = vsel %vm132_vm2, %v2513_v41, 0.0 }
0x1ac9   :  { %2526 = vadd.xlane.f32.xlu2 %v2525_v52 }
0x1ad2   :  { %2597 = vrot.lane.b32.xlu1 %v8116_v11, %s8567_s19 }
0x1ae1   :  { %2588 = vrot.lane.b32.xlu2 %v8117_v37, %s8567_s19 }
0x1aef   :  { %v2517_v17 = vpop.permute.xlu0 %2516 }
0x1af0   :  { %v2531_v4 = vsel %vm132_vm2, %v2517_v17, 0.0 }
0x1af1   :  { %2532 = vadd.xlane.f32.xlu0 %v2531_v4 }
0x1b2c   :  { %v2530_v3 = vpop.xlane.xlu1 %2529 }
0x1b2d   :  { %v2536_v16 = vmul.f32 %v2530_v3, %v12395_v47 }
0x1b2f   :  { %v2540_v25 = vadd.f32 1e-05, %v2536_v16  ;;  %v12401_v16 = vld [vmem:[#allocation4_spill] sm:$0xff] }
0x1b31   :  { %8210 = vrsqrt.f32 %v2540_v25  ;;  %vm2568_vm15 = vweird.f32 %v2540_v25 }
0x1b34   :  { %v2524_v24 = vpop.xlane.xlu0 %2523 }
0x1b35   :  { %v2534_v33 = vmul.f32 %v2524_v24, %v12395_v47 }
0x1b37   :  { %v8211_v34 = vpop.eup %8210  ;;  %v2538_v57 = vadd.f32 1e-05, %v2534_v33 }
0x1b38   :  { %v2563_v36 = vmul.f32 %v8211_v34, %v2540_v25  ;;  %vm2569_vm14 = vweird.f32 %v8211_v34 }
0x1b39   :  { %8212 = vrsqrt.f32 %v2538_v57  ;;  %vm2570_vm0 = vmor %vm2568_vm15, %vm2569_vm14  ;;  %vm2548_vm3 = vweird.f32 %v2538_v57 }
0x1b3a   :  { %v2564_v2 = vmul.f32 %v8211_v34, %v2563_v36 }
0x1b3c   :  { %v2565_v1 = vmul.f32 0.5, %v2564_v2  ;;  %v2527_v50 = vpop.xlane.xlu2 %2526 }
0x1b3d   :  { %v2535_v61 = vmul.f32 %v2527_v50, %v12395_v47 }
0x1b3e   :  { %v2566_v8 = vsub.f32 1.5, %v2565_v1 }
0x1b3f   :  { %v8213_v12 = vpop.eup %8212  ;;  %v2539_v30 = vadd.f32 1e-05, %v2535_v61  ;;  %v12402_v61 = vld [vmem:[#allocation2_spill] sm:$0xff] }
0x1b40   :  { %v2567_v23 = vmul.f32 %v8211_v34, %v2566_v8  ;;  %v2543_v54 = vmul.f32 %v8213_v12, %v2538_v57  ;;  %vm2549_vm1 = vweird.f32 %v8213_v12 }
0x1b41   :  { %8214 = vrsqrt.f32 %v2539_v30  ;;  %vm2550_vm5 = vmor %vm2548_vm3, %vm2549_vm1  ;;  %vm2558_vm7 = vweird.f32 %v2539_v30 }
0x1b42   :  { %v2571_v31 = vsel %vm2570_vm0, %v8211_v34, %v2567_v23  ;;  %v2544_v29 = vmul.f32 %v8213_v12, %v2543_v54 }
0x1b43   :  { %v2584_v13 = vmul.f32 %v2571_v31, %v2500_v7  ;;  %v8437_v7 = vld [vmem:[%s12302_s1 + $0x40] sm:$0xff]  ;;  %v12403_v31 = vld [vmem:[#allocation3_spill] sm:$0xff] }
0x1b44   :  { %v2545_v51 = vmul.f32 0.5, %v2544_v29  ;;  %v10027_v38 = vpop.permute.xlu2 %2588  ;;  %v10029_v6 = vpop.permute.xlu1 %2597 }
0x1b45   :  { %12399 = vst [vmem:[#allocation23_spill] sm:$0xff] %v10027_v38  ;;  %v2593_v55 = vmul.f32 %v10027_v38, %v2584_v13 }
0x1b46   :  { %12400 = vst [vmem:[#allocation24_spill] sm:$0xff] %v10029_v6  ;;  %v2546_v60 = vsub.f32 1.5, %v2545_v51 }
0x1b47   :  { %v8215_v10 = vpop.eup %8214  ;;  %v2602_v41 = vadd.f32 %v10029_v6, %v2593_v55 }
0x1b48   :  { %v2547_v52 = vmul.f32 %v8213_v12, %v2546_v60  ;;  %v2553_v11 = vmul.f32 %v8215_v10, %v2539_v30  ;;  %vm2559_vm6 = vweird.f32 %v8215_v10  ;;  %v8439_v30 = vld [vmem:[%s12302_s1 + $0x28] sm:$0xff] }
0x1b49   :  { %v2606_v37 = vmul.f32 %v8437_v7, %v2602_v41  ;;  %vm2560_vm8 = vmor %vm2558_vm7, %vm2559_vm6 }
0x1b4a   :  { %v2551_v17 = vsel %vm2550_vm5, %v8213_v12, %v2547_v52  ;;  %v2554_v4 = vmul.f32 %v8215_v10, %v2553_v11 }
0x1b4b   :  { %v2582_v3 = vmul.f32 %v2551_v17, %v9993_v22  ;;  %v10038_v25 = vadd.f32 %v2606_v37, %v12401_v16  ;;  %v8438_v22 = vld [vmem:[%s12302_s1 + $0x10] sm:$0xff] }
0x1b4c   :  { %v2555_v24 = vmul.f32 0.5, %v2554_v4 }
0x1b4d   :  { %2620 = vrot.lane.b32.xlu1 %v10038_v25, %s8568_s25  ;;  %v2591_v33 = vmul.f32 %v10027_v38, %v2582_v3  ;;  %v8440_v3 = vld [vmem:[%s12302_s1 + $0x58] sm:$0xff] }
0x1b4e   :  { %v2556_v34 = vsub.f32 1.5, %v2555_v24 }
0x1b4f   :  { %v2600_v57 = vadd.f32 %v10029_v6, %v2591_v33  ;;  %v12404_v33 = vld [vmem:[#allocation5_spill] sm:$0xff] }
0x1b50   :  { %v2557_v36 = vmul.f32 %v8215_v10, %v2556_v34 }
0x1b51   :  { %v2604_v2 = vmul.f32 %v8438_v22, %v2600_v57 }
0x1b52   :  { %v2561_v1 = vsel %vm2560_vm8, %v8215_v10, %v2557_v36 }
0x1b53   :  { %v2583_v50 = vmul.f32 %v2561_v1, %v9999_v14  ;;  %v10049_v8 = vadd.f32 %v2604_v2, %v12402_v61 }
0x1b55   :  { %2616 = vrot.lane.b32.xlu0 %v10049_v8, %s8568_s25  ;;  %v2592_v12 = vmul.f32 %v10027_v38, %v2583_v50 }
0x1b57   :  { %v2601_v23 = vadd.f32 %v10029_v6, %v2592_v12 }
0x1b59   :  { %v2605_v54 = vmul.f32 %v8439_v30, %v2601_v23 }
0x1b5b   :  { %v10059_v29 = vadd.f32 %v2605_v54, %v12403_v31 }
0x1b5d   :  { %2618 = vrot.lane.b32.xlu2 %v10059_v29, %s8568_s25 }
0x1b64   :  { %v2533_v14 = vpop.xlane.xlu0 %2532 }
0x1b65   :  { %v2537_v13 = vmul.f32 %v2533_v14, %v12395_v47 }
0x1b67   :  { %v2541_v51 = vadd.f32 1e-05, %v2537_v13 }
0x1b69   :  { %8216 = vrsqrt.f32 %v2541_v51  ;;  %vm2578_vm10 = vweird.f32 %v2541_v51 }
0x1b6f   :  { %v8217_v55 = vpop.eup %8216 }
0x1b70   :  { %v2573_v60 = vmul.f32 %v8217_v55, %v2541_v51  ;;  %vm2579_vm9 = vweird.f32 %v8217_v55 }
0x1b71   :  { %vm2580_vm11 = vmor %vm2578_vm10, %vm2579_vm9 }
0x1b72   :  { %v2574_v10 = vmul.f32 %v8217_v55, %v2573_v60 }
0x1b74   :  { %v2575_v41 = vmul.f32 0.5, %v2574_v10 }
0x1b76   :  { %v2576_v52 = vsub.f32 1.5, %v2575_v41 }
0x1b78   :  { %v2577_v11 = vmul.f32 %v8217_v55, %v2576_v52 }
0x1b7a   :  { %v2581_v7 = vsel %vm2580_vm11, %v8217_v55, %v2577_v11 }
0x1b7b   :  { %v2585_v37 = vmul.f32 %v2581_v7, %v10007_v48 }
0x1b7d   :  { %v2594_v17 = vmul.f32 %v10027_v38, %v2585_v37 }
0x1b7f   :  { %v2603_v4 = vadd.f32 %v10029_v6, %v2594_v17 }
0x1b81   :  { %v2607_v24 = vmul.f32 %v8440_v3, %v2603_v4 }
0x1b83   :  { %v10071_v34 = vadd.f32 %v2607_v24, %v12404_v33 }
0x1b85   :  { %12405 = vst [vmem:[#allocation25_spill] sm:$0xff] %v10071_v34  ;;  %2622 = vrot.lane.b32.xlu0 %v10071_v34, %s8568_s25 }
0x1bb7   :  { %v2619_v57 = vpop.permute.xlu2 %2618 }
0x1bb8   :  { %v2631_v36 = vsel %vm132_vm2, %v2619_v57, 0.0 }
0x1bb9   :  { %2632 = vadd.xlane.f32.xlu1 %v2631_v36 }
0x1bbf   :  { %v2621_v48 = vpop.permute.xlu1 %2620 }
0x1bc0   :  { %v2634_v22 = vsel %vm132_vm2, %v2621_v48, 0.0 }
0x1bc1   :  { %2635 = vadd.xlane.f32.xlu0 %v2634_v22 }
0x1bc7   :  { %v2617_v2 = vpop.permute.xlu0 %2616 }
0x1bc8   :  { %v2628_v1 = vsel %vm132_vm2, %v2617_v2, 0.0 }
0x1bc9   :  { %2629 = vadd.xlane.f32.xlu2 %v2628_v1 }
0x1bf7   :  { %v2623_v50 = vpop.permute.xlu0 %2622 }
0x1bf8   :  { %v2637_v12 = vsel %vm132_vm2, %v2623_v50, 0.0 }
0x1bf9   :  { %2638 = vadd.xlane.f32.xlu2 %v2637_v12 }
0x1c2c   :  { %v2633_v23 = vpop.xlane.xlu1 %2632 }
0x1c2d   :  { %v2641_v30 = vmul.f32 %v2633_v23, %v12395_v47 }
0x1c2f   :  { %v10081_v54 = vsub.f32 %v10059_v29, %v2641_v30 }
0x1c31   :  { %v2649_v14 = vmul.f32 %v10081_v54, %v10081_v54 }
0x1c33   :  { %2658 = vrot.lane.b32.xlu0 %v2649_v14, %s8568_s25 }
0x1c34   :  { %v2636_v13 = vpop.xlane.xlu0 %2635 }
0x1c35   :  { %v2642_v51 = vmul.f32 %v2636_v13, %v12395_v47 }
0x1c37   :  { %v2646_v55 = vsub.f32 %v10038_v25, %v2642_v51 }
0x1c39   :  { %v2650_v60 = vmul.f32 %v2646_v55, %v2646_v55 }
0x1c3b   :  { %2660 = vrot.lane.b32.xlu2 %v2650_v60, %s8568_s25 }
0x1c3c   :  { %v2630_v10 = vpop.xlane.xlu2 %2629 }
0x1c3d   :  { %v2640_v41 = vmul.f32 %v2630_v10, %v12395_v47 }
0x1c3f   :  { %v10091_v52 = vsub.f32 %v10049_v8, %v2640_v41 }
0x1c41   :  { %v2648_v11 = vmul.f32 %v10091_v52, %v10091_v52 }
0x1c43   :  { %2656 = vrot.lane.b32.xlu1 %v2648_v11, %s8568_s25 }
0x1c6c   :  { %v2639_v7 = vpop.xlane.xlu2 %2638 }
0x1c6d   :  { %v2643_v37 = vmul.f32 %v2639_v7, %v12395_v47 }
0x1c6f   :  { %v10098_v17 = vsub.f32 %v10071_v34, %v2643_v37 }
0x1c71   :  { %v2651_v4 = vmul.f32 %v10098_v17, %v10098_v17 }
0x1c73   :  { %2662 = vrot.lane.b32.xlu0 %v2651_v4, %s8568_s25 }
0x1c95   :  { %v2661_v3 = vpop.permute.xlu2 %2660 }
0x1c96   :  { %v2674_v24 = vsel %vm132_vm2, %v2661_v3, 0.0 }
0x1c9d   :  { %2675 = vadd.xlane.f32.xlu0 %v2674_v24 }
0x1ca5   :  { %v2659_v57 = vpop.permute.xlu0 %2658 }
0x1ca6   :  { %v2671_v36 = vsel %vm132_vm2, %v2659_v57, 0.0 }
0x1ca7   :  { %2672 = vadd.xlane.f32.xlu2 %v2671_v36  ;;  %v12406_v36 = vld [vmem:[#allocation7_spill] sm:$0xff] }
0x1cb5   :  { %v2657_v48 = vpop.permute.xlu1 %2656 }
0x1cb6   :  { %v2668_v22 = vsel %vm132_vm2, %v2657_v48, 0.0 }
0x1cb7   :  { %2669 = vadd.xlane.f32.xlu1 %v2668_v22 }
0x1ce5   :  { %v2663_v2 = vpop.permute.xlu0 %2662 }
0x1ce6   :  { %v2677_v1 = vsel %vm132_vm2, %v2663_v2, 0.0 }
0x1ce7   :  { %2678 = vadd.xlane.f32.xlu1 %v2677_v1 }
0x1d10   :  { %v2676_v50 = vpop.xlane.xlu0 %2675 }
0x1d11   :  { %v2682_v12 = vmul.f32 %v2676_v50, %v12395_v47  ;;  %v12407_v50 = vld [vmem:[#allocation8_spill] sm:$0xff] }
0x1d13   :  { %v2686_v23 = vadd.f32 1e-05, %v2682_v12 }
0x1d15   :  { %8218 = vrsqrt.f32 %v2686_v23  ;;  %vm2714_vm13 = vweird.f32 %v2686_v23 }
0x1d1a   :  { %v2673_v30 = vpop.xlane.xlu2 %2672 }
0x1d1b   :  { %v8219_v14 = vpop.eup %8218  ;;  %v2681_v13 = vmul.f32 %v2673_v30, %v12395_v47 }
0x1d1c   :  { %v2709_v51 = vmul.f32 %v8219_v14, %v2686_v23  ;;  %vm2715_vm12 = vweird.f32 %v8219_v14 }
0x1d1d   :  { %v2685_v60 = vadd.f32 1e-05, %v2681_v13  ;;  %vm2716_vm14 = vmor %vm2714_vm13, %vm2715_vm12 }
0x1d1e   :  { %v2710_v10 = vmul.f32 %v8219_v14, %v2709_v51 }
0x1d1f   :  { %8220 = vrsqrt.f32 %v2685_v60  ;;  %vm2704_vm0 = vweird.f32 %v2685_v60 }
0x1d20   :  { %v2711_v41 = vmul.f32 0.5, %v2710_v10 }
0x1d22   :  { %v2712_v11 = vsub.f32 1.5, %v2711_v41 }
0x1d24   :  { %v2713_v7 = vmul.f32 %v8219_v14, %v2712_v11 }
0x1d25   :  { %v8221_v37 = vpop.eup %8220 }
0x1d26   :  { %v2717_v4 = vsel %vm2716_vm14, %v8219_v14, %v2713_v7  ;;  %v2699_v3 = vmul.f32 %v8221_v37, %v2685_v60  ;;  %vm2705_vm15 = vweird.f32 %v8221_v37 }
0x1d27   :  { %v2730_v24 = vmul.f32 %v2717_v4, %v2646_v55  ;;  %vm2706_vm1 = vmor %vm2704_vm0, %vm2705_vm15 }
0x1d28   :  { %v2700_v57 = vmul.f32 %v8221_v37, %v2699_v3 }
0x1d29   :  { %v2734_v48 = vmul.f32 %v2730_v24, %v12406_v36 }
0x1d2a   :  { %v2701_v22 = vmul.f32 0.5, %v2700_v57  ;;  %v2670_v2 = vpop.xlane.xlu1 %2669 }
0x1d2b   :  { %v2680_v1 = vmul.f32 %v2670_v2, %v12395_v47  ;;  %v2738_v12 = vadd.f32 %v2734_v48, %v12407_v50 }
0x1d2c   :  { %v2702_v30 = vsub.f32 1.5, %v2701_v22 }
0x1d2d   :  { %v2684_v13 = vadd.f32 1e-05, %v2680_v1  ;;  %2748 = vrot.lane.b32.xlu1 %v2738_v12, %s8568_s25 }
0x1d2e   :  { %v2703_v23 = vmul.f32 %v8221_v37, %v2702_v30 }
0x1d2f   :  { %8222 = vrsqrt.f32 %v2684_v13  ;;  %vm2694_vm5 = vweird.f32 %v2684_v13 }
0x1d30   :  { %v2707_v14 = vsel %vm2706_vm1, %v8221_v37, %v2703_v23 }
0x1d31   :  { %v2729_v55 = vmul.f32 %v2707_v14, %v10081_v54 }
0x1d33   :  { %v2733_v51 = vmul.f32 %v2729_v55, %v12406_v36 }
0x1d35   :  { %v8223_v10 = vpop.eup %8222  ;;  %v2737_v41 = vadd.f32 %v2733_v51, %v12407_v50 }
0x1d36   :  { %v2689_v11 = vmul.f32 %v8223_v10, %v2684_v13  ;;  %vm2695_vm3 = vweird.f32 %v8223_v10 }
0x1d37   :  { %2746 = vrot.lane.b32.xlu0 %v2737_v41, %s8568_s25  ;;  %vm2696_vm6 = vmor %vm2694_vm5, %vm2695_vm3 }
0x1d38   :  { %v2690_v7 = vmul.f32 %v8223_v10, %v2689_v11 }
0x1d3a   :  { %v2691_v4 = vmul.f32 0.5, %v2690_v7 }
0x1d3c   :  { %v2692_v3 = vsub.f32 1.5, %v2691_v4 }
0x1d3e   :  { %v2693_v24 = vmul.f32 %v8223_v10, %v2692_v3 }
0x1d40   :  { %v2697_v60 = vsel %vm2696_vm6, %v8223_v10, %v2693_v24 }
0x1d41   :  { %v2728_v37 = vmul.f32 %v2697_v60, %v10091_v52 }
0x1d43   :  { %v2732_v54 = vmul.f32 %v2728_v37, %v12406_v36 }
0x1d45   :  { %v2736_v57 = vadd.f32 %v2732_v54, %v12407_v50 }
0x1d47   :  { %2744 = vrot.lane.b32.xlu2 %v2736_v57, %s8568_s25 }
0x1d5a   :  { %v2679_v48 = vpop.xlane.xlu1 %2678 }
0x1d5b   :  { %v2683_v22 = vmul.f32 %v2679_v48, %v12395_v47 }
0x1d5d   :  { %v2687_v2 = vadd.f32 1e-05, %v2683_v22 }
0x1d5f   :  { %8224 = vrsqrt.f32 %v2687_v2  ;;  %vm2724_vm8 = vweird.f32 %v2687_v2 }
0x1d65   :  { %v8225_v1 = vpop.eup %8224 }
0x1d66   :  { %v2719_v12 = vmul.f32 %v8225_v1, %v2687_v2  ;;  %vm2725_vm7 = vweird.f32 %v8225_v1 }
0x1d67   :  { %vm2726_vm9 = vmor %vm2724_vm8, %vm2725_vm7 }
0x1d68   :  { %v2720_v30 = vmul.f32 %v8225_v1, %v2719_v12 }
0x1d6a   :  { %v2721_v23 = vmul.f32 0.5, %v2720_v30 }
0x1d6c   :  { %v2722_v13 = vsub.f32 1.5, %v2721_v23 }
0x1d6e   :  { %v2723_v14 = vmul.f32 %v8225_v1, %v2722_v13  ;;  %v12408_v13 = vld [vmem:[#allocation9_spill] sm:$0xff] }
0x1d70   :  { %v2727_v52 = vsel %vm2726_vm9, %v8225_v1, %v2723_v14  ;;  %v12409_v14 = vunpack.i.l.bf16 %v12408_v13 }
0x1d71   :  { %v2731_v55 = vmul.f32 %v2727_v52, %v10098_v17  ;;  %v8441_v17 = vld [vmem:[%s12303_s6] ss:$0 sm:$0xff]  ;;  %v12410_v52 = vunpack.i.h.bf16 %v12408_v13 }
0x1d73   :  { %v2735_v51 = vmul.f32 %v2731_v55, %v12406_v36  ;;  %v12411_v55 = vld [vmem:[#allocation10_spill] sm:$0xff] }
0x1d75   :  { %v2739_v10 = vadd.f32 %v2735_v51, %v12407_v50  ;;  %v12412_v51 = vunpack.i.l.bf16 %v12411_v55 }
0x1d77   :  { %2750 = vrot.lane.b32.xlu0 %v2739_v10, %s8568_s25  ;;  %v12413_v10 = vunpack.i.h.bf16 %v12411_v55 }
0x1d9f   :  { %v2749_v7 = vpop.permute.xlu1 %2748 }
0x1da1   :  { %v2745_v41 = vpop.permute.xlu2 %2744 }
0x1da2   :  { %7505 = vmatmul.msk.f32.vlgmr.msra.gmra.mxu1 %vm132_vm2, %v2745_v41 }
0x1da9   :  { %v2747_v11 = vpop.permute.xlu0 %2746 }
0x1daa   :  { %7506 = vmatmul.msk.f32.gmra.mxu1 %vm132_vm2, %v2747_v11 }
0x1db2   :  { %7507 = vmatmul.msk.f32.gmra.mxu1 %vm132_vm2, %v2749_v7 }
0x1de9   :  { %v2751_v4 = vpop.permute.xlu0 %2750 }
0x1dea   :  { %7508 = vmatmul.msk.f32.gmra.mxu1 %vm132_vm2, %v2751_v4 }
0x1e1f   :  { %v2777_v3 = vpop.f32.mrf.mxu1 }
0x1e20   :  { %v2778_v36 = vadd.f32 %v8441_v17, %v2777_v3 }
0x1e22   :  { %2793 = vrot.lane.b32.xlu2 %v2778_v36, %s8568_s25 }
0x1e27   :  { %v2780_v50 = vpop.f32.mrf.mxu1 }
0x1e28   :  { %v2781_v24 = vadd.f32 %v8441_v17, %v2780_v50 }
0x1e2a   :  { %2795 = vrot.lane.b32.xlu0 %v2781_v24, %s8568_s25  ;;  %v7850_v22 = vpack.i.bf16 %v2778_v36, %v2781_v24 }
0x1e2f   :  { %v2783_v60 = vpop.f32.mrf.mxu1 }
0x1e30   :  { %v2784_v37 = vadd.f32 %v8441_v17, %v2783_v60  ;;  %v8442_v60 = vld [vmem:[%s12306_s2 + $0x18] sm:$0xff] }
0x1e32   :  { %2797 = vrot.lane.b32.xlu1 %v2784_v37, %s8568_s25 }
0x1e67   :  { %v2786_v54 = vpop.f32.mrf.mxu1 }
0x1e68   :  { %v2787_v57 = vadd.f32 %v8441_v17, %v2786_v54 }
0x1e6a   :  { %v7845_v48 = vpack.i.bf16 %v2784_v37, %v2787_v57  ;;  %2799 = vrot.lane.b32.xlu2 %v2787_v57, %s8568_s25 }
0x1e6c   :  { %7846 = vrot.lane.b32.xlu1 %v7845_v48, %s8570_s28  ;;  %v8443_v48 = vld [vmem:[%s12306_s2 + $0x10] sm:$0xff] }
0x1e72   :  { %7851 = vrot.lane.b32.xlu2 %v7850_v22, %s8570_s28 }
0x1e7c   :  { %v2794_v2 = vpop.permute.xlu2 %2793 }
0x1e7d   :  { %2805 = vxpose.xlu0.b32.start [1/4] (short) (narrow) %v2794_v2, 32  ;;  %v8444_v2 = vld [vmem:[%s12306_s2 + $0x8] sm:$0xff] }
0x1e9c   :  { %v2796_v1 = vpop.permute.xlu0 %2795 }
0x1e9d   :  { %2806 = vxpose.xlu0.b32.cont [2/4] (short) (narrow) %v2796_v1, 32 }
0x1ea4   :  { %v2798_v12 = vpop.permute.xlu1 %2797 }
0x1ea5   :  { %2807 = vxpose.xlu0.b32.cont [3/4] (short) (narrow) %v2798_v12, 32 }
0x1ec4   :  { %v2800_v30 = vpop.permute.xlu2 %2799 }
0x1ec5   :  { %2808 = vxpose.xlu0.b32.end [4/4] (short) (narrow) %v2800_v30, 32  ;;  %v8445_v30 = vld [vmem:[%s12306_s2] sm:$0xff] }
0x1ede   :  { %v7847_v12 = vpop.permute.xlu1 %7846 }
0x1edf   :  { %v7848_v13 = vunpack.i.l.bf16 %v7847_v12 }
0x1f51   :  { %v2821_v23 = vpop.trf.xlu0 }
0x1f52   :  { %7509 = vmatmul.msk.f32.vlgmr.msra.gmra.mxu2 %vm132_vm2, %v2821_v23 }
0x1f53   :  { %3347 = vmatpush.msra.mxu2 %v12409_v14  ;;  %v7852_v14 = vpop.permute.xlu2 %7851 }
0x1f54   :  { %v7853_v55 = vunpack.i.l.bf16 %v7852_v14 }
0x1f55   :  { %3348 = vmatpush.msra.mxu2 %v12410_v52  ;;  %v7849_v52 = vunpack.i.h.bf16 %v7847_v12 }
0x1f57   :  { %3349 = vmatpush.msra.mxu2 %v12412_v51  ;;  %v7854_v51 = vunpack.i.h.bf16 %v7852_v14 }
0x1f59   :  { %3350 = vmatpush.msra.mxu2 %v12413_v10  ;;  %v2822_v41 = vpop.trf.xlu0  ;;  %v10230_v10 = vld [vmem:[%s12305_s3 + $0x40] sm:$0xff] }
0x1f5a   :  { %7510 = vmatmul.msk.f32.gmra.mxu2 %vm132_vm2, %v2822_v41  ;;  %v10237_v41 = vld [vmem:[%s12305_s3 + $0x48] sm:$0xff] }
0x1f61   :  { %v2823_v11 = vpop.trf.xlu0 }
0x1f62   :  { %7511 = vmatmul.msk.f32.gmra.mxu2 %vm132_vm2, %v2823_v11  ;;  %v10244_v11 = vld [vmem:[%s12305_s3 + $0x50] sm:$0xff] }
0x1f69   :  { %v2824_v7 = vpop.trf.xlu0 }
0x1f6a   :  { %7512 = vmatmul.msk.f32.gmra.mxu2 %vm132_vm2, %v2824_v7  ;;  %v10251_v7 = vld [vmem:[%s12305_s3 + $0x58] sm:$0xff] }
0x1fd5   :  { %v2866_v4 = vpop.f32.mrf.mxu2 }
0x1fd6   :  { %v2878_v23 = vmul.f32 %v8445_v30, %v2866_v4  ;;  %v10281_v30 = vld [vmem:[%s12305_s3 + $0x70] sm:$0xff] }
0x1fdd   :  { %v2869_v3 = vpop.f32.mrf.mxu2 }
0x1fde   :  { %v2879_v1 = vmul.f32 %v8444_v2, %v2869_v3  ;;  %v8458_v3 = vld [vmem:[%s12302_s1 + $0x8] sm:$0xff] }
0x1fe5   :  { %v2872_v17 = vpop.f32.mrf.mxu2 }
0x1fe6   :  { %v2880_v22 = vmul.f32 %v8443_v48, %v2872_v17 }
0x1fed   :  { %v2875_v50 = vpop.f32.mrf.mxu2 }
0x1fee   :  { %v2881_v54 = vmul.f32 %v8442_v60, %v2875_v50  ;;  %v10261_v50 = vld [vmem:[%s12305_s3 + $0x60] sm:$0xff] }
0x1ff0   :  { %2902 = vmatpush.msrb.mxu0 %v2881_v54  ;;  %v8460_v54 = vld [vmem:[%s12302_s1 + $0x20] sm:$0xff] }
0x1ff2   :  { %2903 = vmatpush.msrb.mxu0 %v2880_v22  ;;  %v10271_v22 = vld [vmem:[%s12305_s3 + $0x68] sm:$0xff] }
0x1ff4   :  { %2904 = vmatpush.msrb.mxu0 %v2879_v1  ;;  %v8462_v1 = vld [vmem:[%s12302_s1 + $0x38] sm:$0xff] }
0x1ff6   :  { %2905 = vmatpush.msrb.mxu0 %v2878_v23 }
0x1ff7   :  { %7513 = vmatmul.msk.f32.vlgmr.msrb.gmra.mxu0 %vm132_vm2, %v2778_v36  ;;  %v10174_v36 = vld [vmem:[%s12305_s3] sm:$0xff] }
0x1ff8   :  { %3097 = vmatpush.msra.mxu0 %v7848_v13  ;;  %v8464_v13 = vld [vmem:[%s12302_s1 + $0x50] sm:$0xff] }
0x1ffa   :  { %3098 = vmatpush.msra.mxu0 %v7849_v52  ;;  %v10291_v52 = vld [vmem:[%s12305_s3 + $0x78] sm:$0xff] }
0x1ffc   :  { %3099 = vmatpush.msra.mxu0 %v7853_v55 }
0x1ffe   :  { %3100 = vmatpush.msra.mxu0 %v7854_v51 }
0x1fff   :  { %7514 = vmatmul.msk.f32.gmra.mxu0 %vm132_vm2, %v2781_v24  ;;  %v10209_v24 = vld [vmem:[%s12305_s3 + $0x28] sm:$0xff] }
0x2000   :  { %4590 = vmatpush.msrb.mxu0 %v9875_v56  ;;  %v10181_v56 = vld [vmem:[%s12305_s3 + $0x8] sm:$0xff] }
0x2002   :  { %4591 = vmatpush.msrb.mxu0 %v9880_v5  ;;  %v10188_v5 = vld [vmem:[%s12305_s3 + $0x10] sm:$0xff] }
0x2004   :  { %4592 = vmatpush.msrb.mxu0 %v9886_v21  ;;  %v10195_v21 = vld [vmem:[%s12305_s3 + $0x18] sm:$0xff] }
0x2006   :  { %4593 = vmatpush.msrb.mxu0 %v9892_v27  ;;  %v10202_v27 = vld [vmem:[%s12305_s3 + $0x20] sm:$0xff] }
0x2007   :  { %7515 = vmatmul.msk.f32.gmra.mxu0 %vm132_vm2, %v2784_v37  ;;  %v10216_v37 = vld [vmem:[%s12305_s3 + $0x30] sm:$0xff] }
0x200f   :  { %7516 = vmatmul.msk.f32.gmra.mxu0 %vm132_vm2, %v2787_v57  ;;  %v10223_v57 = vld [vmem:[%s12305_s3 + $0x38] sm:$0xff] }
0x2017   :  { %7521 = vmatmul.msk.f32.vlgmr.msra.gmra.mxu0 %vm132_vm2, %v10174_v36 }
0x201f   :  { %7522 = vmatmul.msk.f32.gmra.mxu0 %vm132_vm2, %v10181_v56 }
0x2027   :  { %7523 = vmatmul.msk.f32.gmra.mxu0 %vm132_vm2, %v10188_v5 }
0x202f   :  { %7524 = vmatmul.msk.f32.gmra.mxu0 %vm132_vm2, %v10195_v21 }
0x2037   :  { %7525 = vmatmul.msk.f32.gmra.mxu0 %vm132_vm2, %v10202_v27 }
0x203f   :  { %7526 = vmatmul.msk.f32.gmra.mxu0 %vm132_vm2, %v10209_v24 }
0x2047   :  { %7527 = vmatmul.msk.f32.gmra.mxu0 %vm132_vm2, %v10216_v37 }
0x204f   :  { %7528 = vmatmul.msk.f32.gmra.mxu0 %vm132_vm2, %v10223_v57 }
0x2057   :  { %7529 = vmatmul.msk.f32.gmra.mxu0 %vm132_vm2, %v10230_v10 }
0x205f   :  { %7530 = vmatmul.msk.f32.gmra.mxu0 %vm132_vm2, %v10237_v41 }
0x2067   :  { %7531 = vmatmul.msk.f32.gmra.mxu0 %vm132_vm2, %v10244_v11 }
0x206f   :  { %7532 = vmatmul.msk.f32.gmra.mxu0 %vm132_vm2, %v10251_v7 }
0x2074   :  { %v2907_v4 = vpop.f32.mrf.mxu0 }
0x2075   :  { %v2908_v17 = vadd.f32 %v8458_v3, %v2907_v4 }
0x2077   :  { %7533 = vmatmul.msk.f32.gmra.mxu0 %vm132_vm2, %v10261_v50  ;;  %2919 = vmax.xlane.f32.xlu1 %v2908_v17 }
0x207c   :  { %v2910_v60 = vpop.f32.mrf.mxu0 }
0x207d   :  { %v2911_v48 = vadd.f32 %v8460_v54, %v2910_v60 }
0x207f   :  { %7534 = vmatmul.msk.f32.gmra.mxu0 %vm132_vm2, %v10271_v22  ;;  %2921 = vmax.xlane.f32.xlu2 %v2911_v48 }
0x2084   :  { %v2913_v2 = vpop.f32.mrf.mxu0 }
0x2085   :  { %v2914_v12 = vadd.f32 %v8462_v1, %v2913_v2 }
0x2087   :  { %7535 = vmatmul.msk.f32.gmra.mxu0 %vm132_vm2, %v10281_v30  ;;  %2923 = vmax.xlane.f32.xlu1 %v2914_v12 }
0x208c   :  { %v2916_v23 = vpop.f32.mrf.mxu0 }
0x208d   :  { %v2917_v14 = vadd.f32 %v8464_v13, %v2916_v23 }
0x208f   :  { %7536 = vmatmul.msk.f32.gmra.mxu0 %vm132_vm2, %v10291_v52  ;;  %2925 = vmax.xlane.f32.xlu2 %v2917_v14 }
0x2094   :  { %v3102_v55 = vpop.f32.mrf.mxu0 }
0x209c   :  { %v3105_v51 = vpop.f32.mrf.mxu0 }
0x20a4   :  { %v3108_v4 = vpop.f32.mrf.mxu0 }
0x20ac   :  { %v3111_v3 = vpop.f32.mrf.mxu0 }
0x20b4   :  { %v3114_v60 = vpop.f32.mrf.mxu0 }
0x20bc   :  { %v3117_v54 = vpop.f32.mrf.mxu0 }
0x20c4   :  { %v3120_v2 = vpop.f32.mrf.mxu0 }
0x20cc   :  { %v3123_v1 = vpop.f32.mrf.mxu0 }
0x20d4   :  { %v3126_v16 = vpop.f32.mrf.mxu0 }
0x20dc   :  { %v3129_v33 = vpop.f32.mrf.mxu0 }
0x20e4   :  { %v3132_v23 = vpop.f32.mrf.mxu0 }
0x20ea   :  { %v2920_v13 = vpop.xlane.xlu1 %2919 }
0x20eb   :  { %v2927_v31 = vsub.f32 %v2908_v17, %v2920_v13 }
0x20ec   :  { %v3135_v61 = vpop.f32.mrf.mxu0 }
0x20ed   :  { %v2931_v6 = vmul.f32 1.442695, %v2927_v31 }
0x20ef   :  { %8226 = vpow2.f32 %v2931_v6 }
0x20f2   :  { %v2922_v38 = vpop.xlane.xlu2 %2921 }
0x20f3   :  { %v2928_v0 = vsub.f32 %v2911_v48, %v2922_v38 }
0x20f4   :  { %v3138_v26 = vpop.f32.mrf.mxu0 }
0x20f5   :  { %v10295_v32 = vpop.eup %8226  ;;  %v2933_v58 = vmul.f32 1.442695, %v2928_v0 }
0x20f6   :  { %2955 = vmatmul.f32.vlgmr.msrb.gmra.mxu1 %v10295_v32 }
0x20f7   :  { %8228 = vpow2.f32 %v2933_v58 }
0x20fa   :  { %v2924_v44 = vpop.xlane.xlu1 %2923 }
0x20fb   :  { %v2929_v9 = vsub.f32 %v2914_v12, %v2924_v44 }
0x20fc   :  { %v3141_v53 = vpop.f32.mrf.mxu0 }
0x20fd   :  { %v10298_v47 = vpop.eup %8228  ;;  %v2935_v34 = vmul.f32 1.442695, %v2929_v9  ;;  %3192 = vrot.lane.b32.xlu2 %v3141_v53, %s8567_s19 }
0x20fe   :  { %2958 = vmatmul.f32.gmra.mxu1 %v10298_v47 }
0x20ff   :  { %8230 = vpow2.f32 %v2935_v34 }
0x2102   :  { %v2926_v6 = vpop.xlane.xlu2 %2925 }
0x2103   :  { %v2930_v38 = vsub.f32 %v2917_v14, %v2926_v6 }
0x2104   :  { %v3144_v31 = vpop.f32.mrf.mxu0 }
0x2105   :  { %v10302_v17 = vpop.eup %8230  ;;  %v2937_v0 = vmul.f32 1.442695, %v2930_v38  ;;  %3190 = vrot.lane.b32.xlu2 %v3138_v26, %s8567_s19  ;;  %3194 = vrot.lane.b32.xlu1 %v3144_v31, %s8567_s19 }
0x2106   :  { %2961 = vmatmul.f32.gmra.mxu1 %v10302_v17 }
0x2107   :  { %8232 = vpow2.f32 %v2937_v0 }
0x210c   :  { %v3147_v44 = vpop.f32.mrf.mxu0 }
0x210d   :  { %v10307_v9 = vpop.eup %8232  ;;  %3196 = vrot.lane.b32.xlu0 %v3147_v44, %s8567_s19  ;;  %3186 = vrot.lane.b32.xlu2 %v3132_v23, %s8567_s19 }
0x210e   :  { %3188 = vrot.lane.b32.xlu1 %v3135_v61, %s8567_s19  ;;  %2964 = vmatmul.f32.gmra.mxu1 %v10307_v9 }
0x2115   :  { %3182 = vrot.lane.b32.xlu2 %v3126_v16, %s8567_s19 }
0x2116   :  { %3184 = vrot.lane.b32.xlu1 %v3129_v33, %s8567_s19 }
0x211d   :  { %3178 = vrot.lane.b32.xlu2 %v3120_v2, %s8567_s19 }
0x211e   :  { %3180 = vrot.lane.b32.xlu1 %v3123_v1, %s8567_s19 }
0x2125   :  { %3174 = vrot.lane.b32.xlu2 %v3114_v60, %s8567_s19 }
0x2126   :  { %3176 = vrot.lane.b32.xlu1 %v3117_v54, %s8567_s19 }
0x212d   :  { %3170 = vrot.lane.b32.xlu2 %v3108_v4, %s8567_s19 }
0x212e   :  { %3172 = vrot.lane.b32.xlu1 %v3111_v3, %s8567_s19 }
0x2135   :  { %3166 = vrot.lane.b32.xlu2 %v3102_v55, %s8567_s19 }
0x2136   :  { %3168 = vrot.lane.b32.xlu1 %v3105_v51, %s8567_s19 }
0x2157   :  { %v3193_v53 = vpop.permute.xlu2 %3192 }
0x2158   :  { %v3227_v26 = vmul.f32 %v10271_v22, %v3193_v53 }
0x215f   :  { %v3191_v58 = vpop.permute.xlu2 %3190 }
0x2160   :  { %v3226_v16 = vmul.f32 %v10261_v50, %v3191_v58 }
0x2162   :  { %v7855_v61 = vpack.i.bf16 %v3226_v16, %v3227_v26 }
0x2164   :  { %7856 = vrot.lane.b32.xlu2 %v7855_v61, %s8568_s25 }
0x2167   :  { %v3187_v34 = vpop.permute.xlu2 %3186 }
0x2168   :  { %v3224_v61 = vmul.f32 %v10244_v11, %v3187_v34  ;;  %v8467_v11 = vld [vmem:[%s12304_s4 + $0x60] sm:$0xff] }
0x216f   :  { %v3183_v60 = vpop.permute.xlu2 %3182 }
0x2173   :  { %v2956_v33 = vpop.f32.mrf.mxu1 }
0x2174   :  { %v2968_v48 = vmax.f32 %v2956_v33, 1e-30  ;;  %v3222_v33 = vmul.f32 %v10230_v10, %v3183_v60 }
0x2176   :  { %8234 = vrcp.f32 %v2968_v48  ;;  %v2983_v1 = vand.u32 2147483648, %v2968_v48  ;;  %v2981_v13 = vand.u32 2147483647, %v2968_v48  ;;  %vm2977_vm11 = vweird.f32 %v2968_v48 }
0x2177   :  { %v3195_v12 = vpop.permute.xlu1 %3194 }
0x2178   :  { %v3228_v22 = vmul.f32 %v10281_v30, %v3195_v12  ;;  %v2984_v53 = vor.u32 1.1754944e-38, %v2983_v1  ;;  %vm2982_vm13 = vcmp.eq.f32.partialorder %v2981_v13, 8.507059e+37 }
0x217b   :  { %v2959_v14 = vpop.f32.mrf.mxu1 }
0x217c   :  { %v8235_v4 = vpop.eup %8234  ;;  %v2969_v3 = vmax.f32 %v2959_v14, 1e-30 }
0x217d   :  { %v2973_v55 = vmul.f32 %v8235_v4, %v2968_v48  ;;  %vm2978_vm10 = vweird.f32 %v8235_v4  ;;  %v3179_v48 = vpop.permute.xlu2 %3178 }
0x217e   :  { %8236 = vrcp.f32 %v2969_v3  ;;  %vm2979_vm12 = vmor %vm2977_vm11, %vm2978_vm10  ;;  %v2997_v14 = vand.u32 2147483648, %v2969_v3  ;;  %vm2991_vm15 = vweird.f32 %v2969_v3 }
0x217f   :  { %v2974_v51 = vsub.f32 1.0, %v2973_v55  ;;  %v3197_v54 = vpop.permute.xlu0 %3196 }
0x2180   :  { %v3229_v50 = vmul.f32 %v10291_v52, %v3197_v54  ;;  %v3189_v2 = vpop.permute.xlu1 %3188 }
0x2181   :  { %v2975_v23 = vmul.f32 %v8235_v4, %v2974_v51  ;;  %v3225_v52 = vmul.f32 %v10251_v7, %v3189_v2  ;;  %v2995_v51 = vand.u32 2147483647, %v2969_v3  ;;  %v2998_v2 = vor.u32 1.1754944e-38, %v2997_v14 }
0x2182   :  { %v7860_v6 = vpack.i.bf16 %v3228_v22, %v3229_v50 }
0x2183   :  { %v2962_v38 = vpop.f32.mrf.mxu1  ;;  %v2976_v31 = vadd.f32 %v8235_v4, %v2975_v23  ;;  %v7865_v54 = vpack.i.bf16 %v3224_v61, %v3225_v52  ;;  %vm2996_vm1 = vcmp.eq.f32.partialorder %v2995_v51, 8.507059e+37 }
0x2184   :  { %v8237_v0 = vpop.eup %8236  ;;  %v10328_v44 = vmax.f32 %v2962_v38, 1e-30  ;;  %7861 = vrot.lane.b32.xlu1 %v7860_v6, %s8568_s25  ;;  %v3220_v38 = vmul.f32 %v10216_v37, %v3179_v48 }
0x2185   :  { %v2987_v58 = vmul.f32 %v8237_v0, %v2969_v3  ;;  %v2980_v30 = vsel %vm2979_vm12, %v8235_v4, %v2976_v31  ;;  %v8466_v4 = vld [vmem:[%s12304_s4 + $0x70] sm:$0xff]  ;;  %vm2992_vm14 = vweird.f32 %v8237_v0  ;;  %v8469_v3 = vld [vmem:[%s12304_s4 + $0x40] sm:$0xff]  ;;  %v3175_v52 = vpop.permute.xlu2 %3174 }
0x2186   :  { %8238 = vrcp.f32 %v10328_v44  ;;  %v2985_v26 = vsel %vm2982_vm13, %v2984_v53, %v2980_v30  ;;  %vm2993_vm0 = vmor %vm2991_vm15, %vm2992_vm14  ;;  %v3011_v53 = vand.u32 2147483648, %v10328_v44  ;;  %vm3005_vm5 = vweird.f32 %v10328_v44 }
0x2187   :  { %7517 = vmatmul.msk.f32.vlgmr.msrb.gmra.mxu2 %vm647_vm4, %v2985_v26  ;;  %v2988_v16 = vsub.f32 1.0, %v2987_v58  ;;  %v3218_v14 = vmul.f32 %v10202_v27, %v3175_v52 }
0x2188   :  { %v3185_v12 = vpop.permute.xlu1 %3184  ;;  %3814 = vmatpush.msrb.mxu2 %v8466_v4 }
0x2189   :  { %v3223_v7 = vmul.f32 %v10237_v41, %v3185_v12  ;;  %v2989_v55 = vmul.f32 %v8237_v0, %v2988_v16  ;;  %v8468_v41 = vld [vmem:[%s12304_s4 + $0x50] sm:$0xff] }
0x218a   :  { %3815 = vmatpush.msrb.mxu2 %v8467_v11 }
0x218b   :  { %v7870_v10 = vpack.i.bf16 %v3222_v33, %v3223_v7  ;;  %v2965_v34 = vpop.f32.mrf.mxu1  ;;  %v2990_v60 = vadd.f32 %v8237_v0, %v2989_v55  ;;  %v3012_v33 = vor.u32 1.1754944e-38, %v3011_v53 }
0x218c   :  { %v8239_v22 = vpop.eup %8238  ;;  %v2971_v50 = vmax.f32 %v2965_v34, 1e-30  ;;  %7866 = vrot.lane.b32.xlu1 %v7865_v54, %s8568_s25  ;;  %3816 = vmatpush.msrb.mxu2 %v8468_v41 }
0x218d   :  { %v3001_v1 = vmul.f32 %v8239_v22, %v10328_v44  ;;  %7871 = vrot.lane.b32.xlu2 %v7870_v10, %s8568_s25  ;;  %v2994_v23 = vsel %vm2993_vm0, %v8237_v0, %v2990_v60  ;;  %vm3006_vm3 = vweird.f32 %v8239_v22  ;;  %v3009_v0 = vand.u32 2147483647, %v10328_v44  ;;  %v3171_v10 = vpop.permute.xlu2 %3170 }
0x218e   :  { %8240 = vrcp.f32 %v2971_v50  ;;  %v2999_v13 = vsel %vm2996_vm1, %v2998_v2, %v2994_v23  ;;  %3817 = vmatpush.msrb.mxu2 %v8469_v3  ;;  %vm3007_vm6 = vmor %vm3005_vm5, %vm3006_vm3  ;;  %v3025_v7 = vand.u32 2147483648, %v2971_v50  ;;  %v3023_v44 = vand.u32 2147483647, %v2971_v50 }
0x218f   :  { %7518 = vmatmul.msk.f32.gmra.mxu2 %vm647_vm4, %v2999_v13  ;;  %v3002_v6 = vsub.f32 1.0, %v3001_v1  ;;  %vm3010_vm7 = vcmp.eq.f32.partialorder %v3009_v0, 8.507059e+37  ;;  %vm3019_vm9 = vweird.f32 %v2971_v50  ;;  %v3216_v2 = vmul.f32 %v10188_v5, %v3171_v10  ;;  %v8471_v10 = vld [vmem:[%s12307_s5 + $0x70] sm:$0xff] }
0x2190   :  { %v3181_v31 = vpop.permute.xlu1 %3180  ;;  %v3026_v34 = vor.u32 1.1754944e-38, %v3025_v7  ;;  %vm3024_vm11 = vcmp.eq.f32.partialorder %v3023_v44, 8.507059e+37 }
0x2191   :  { %v3221_v58 = vmul.f32 %v10223_v57, %v3181_v31  ;;  %v3003_v30 = vmul.f32 %v8239_v22, %v3002_v6 }
0x2193   :  { %v7875_v26 = vpack.i.bf16 %v3220_v38, %v3221_v58  ;;  %v3004_v16 = vadd.f32 %v8239_v22, %v3003_v30 }
0x2194   :  { %v8241_v61 = vpop.eup %8240 }
0x2195   :  { %v3015_v12 = vmul.f32 %v8241_v61, %v2971_v50  ;;  %7876 = vrot.lane.b32.xlu1 %v7875_v26, %s8568_s25  ;;  %v3008_v37 = vsel %vm3007_vm6, %v8239_v22, %v3004_v16  ;;  %vm3020_vm8 = vweird.f32 %v8241_v61  ;;  %v3167_v1 = vpop.permute.xlu2 %3166 }
0x2196   :  { %v3013_v48 = vsel %vm3010_vm7, %v3012_v33, %v3008_v37  ;;  %vm3021_vm10 = vmor %vm3019_vm9, %vm3020_vm8  ;;  %v3214_v23 = vmul.f32 %v10174_v36, %v3167_v1  ;;  %v8478_v1 = vld [vmem:[%s12307_s5 + $0x38] sm:$0xff] }
0x2197   :  { %7519 = vmatmul.msk.f32.gmra.mxu2 %vm647_vm4, %v3013_v48  ;;  %v3016_v57 = vsub.f32 1.0, %v3015_v12 }
0x2198   :  { %v3177_v4 = vpop.permute.xlu1 %3176 }
0x2199   :  { %v3219_v55 = vmul.f32 %v10209_v24, %v3177_v4  ;;  %v3017_v51 = vmul.f32 %v8241_v61, %v3016_v57 }
0x219b   :  { %v7880_v54 = vpack.i.bf16 %v3218_v14, %v3219_v55  ;;  %v3018_v11 = vadd.f32 %v8241_v61, %v3017_v51 }
0x219d   :  { %7881 = vrot.lane.b32.xlu2 %v7880_v54, %s8568_s25  ;;  %v3022_v60 = vsel %vm3021_vm10, %v8241_v61, %v3018_v11  ;;  %v8470_v11 = vld [vmem:[%s12307_s5 + $0x78] sm:$0xff] }
0x219e   :  { %v3027_v22 = vsel %vm3024_vm11, %v3026_v34, %v3022_v60  ;;  %v8472_v34 = vld [vmem:[%s12307_s5 + $0x68] sm:$0xff]  ;;  %v8473_v60 = vld [vmem:[%s12307_s5 + $0x60] sm:$0xff] }
0x219f   :  { %7520 = vmatmul.msk.f32.gmra.mxu2 %vm647_vm4, %v3027_v22 }
0x21a0   :  { %v3173_v27 = vpop.permute.xlu1 %3172 }
0x21a1   :  { %v3217_v24 = vmul.f32 %v10195_v21, %v3173_v27  ;;  %v8474_v27 = vld [vmem:[%s12307_s5 + $0x58] sm:$0xff] }
0x21a3   :  { %v7885_v41 = vpack.i.bf16 %v3216_v2, %v3217_v24  ;;  %v8475_v2 = vld [vmem:[%s12307_s5 + $0x50] sm:$0xff] }
0x21a5   :  { %7886 = vrot.lane.b32.xlu1 %v7885_v41, %s8568_s25  ;;  %v8477_v41 = vld [vmem:[%s12307_s5 + $0x40] sm:$0xff] }
0x21a8   :  { %v3169_v50 = vpop.permute.xlu1 %3168 }
0x21a9   :  { %v3215_v13 = vmul.f32 %v10181_v56, %v3169_v50 }
0x21ab   :  { %v7890_v3 = vpack.i.bf16 %v3214_v23, %v3215_v13  ;;  %v8479_v23 = vld [vmem:[%s12307_s5 + $0x30] sm:$0xff] }
0x21ad   :  { %7891 = vrot.lane.b32.xlu2 %v7890_v3, %s8568_s25  ;;  %v8481_v3 = vld [vmem:[%s12307_s5 + $0x20] sm:$0xff] }
0x21be   :  { %v7857_v31 = vpop.permute.xlu2 %7856 }
0x21bf   :  { %v7858_v5 = vunpack.i.l.bf16 %v7857_v31  ;;  %v7859_v21 = vunpack.i.h.bf16 %v7857_v31  ;;  %v8485_v31 = vld [vmem:[%s12307_s5] sm:$0xff] }
0x21e7   :  { %v7872_v0 = vpop.permute.xlu2 %7871 }
0x21e8   :  { %v7873_v36 = vunpack.i.l.bf16 %v7872_v0  ;;  %v7874_v56 = vunpack.i.h.bf16 %v7872_v0 }
0x21f6   :  { %v7862_v6 = vpop.permute.xlu1 %7861 }
0x21f7   :  { %v7863_v38 = vunpack.i.l.bf16 %v7862_v6  ;;  %v7864_v53 = vunpack.i.h.bf16 %v7862_v6  ;;  %v7882_v61 = vpop.permute.xlu2 %7881  ;;  %v8482_v6 = vld [vmem:[%s12307_s5 + $0x18] sm:$0xff] }
0x21f8   :  { %v7883_v12 = vunpack.i.l.bf16 %v7882_v61  ;;  %v7884_v37 = vunpack.i.h.bf16 %v7882_v61 }
0x21f9   :  { %3294 = vmatpush.msra.mxu1 %v7863_v38  ;;  %v8483_v38 = vld [vmem:[%s12307_s5 + $0x10] sm:$0xff] }
0x21fb   :  { %3295 = vmatpush.msra.mxu1 %v7864_v53 }
0x21fd   :  { %3296 = vmatpush.msra.mxu1 %v7858_v5 }
0x21fe   :  { %v7867_v58 = vpop.permute.xlu1 %7866 }
0x21ff   :  { %v7868_v30 = vunpack.i.l.bf16 %v7867_v58  ;;  %3297 = vmatpush.msra.mxu1 %v7859_v21  ;;  %v7869_v52 = vunpack.i.h.bf16 %v7867_v58 }
0x2201   :  { %3298 = vmatpush.msra.mxu1 %v7868_v30 }
0x2203   :  { %3299 = vmatpush.msra.mxu1 %v7869_v52 }
0x2205   :  { %3300 = vmatpush.msra.mxu1 %v7873_v36 }
0x2207   :  { %v7877_v26 = vpop.permute.xlu1 %7876  ;;  %3301 = vmatpush.msra.mxu1 %v7874_v56  ;;  %v7892_v4 = vpop.permute.xlu2 %7891 }
0x2208   :  { %v7878_v16 = vunpack.i.l.bf16 %v7877_v26  ;;  %v7879_v33 = vunpack.i.h.bf16 %v7877_v26  ;;  %v7893_v55 = vunpack.i.l.bf16 %v7892_v4  ;;  %v7894_v51 = vunpack.i.h.bf16 %v7892_v4 }
0x220a   :  { %3302 = vmatpush.msra.mxu1 %v7878_v16  ;;  %v3057_v48 = vpop.f32.mrf.mxu2 }
0x220b   :  { %v3069_v44 = vmul.f32 %v10295_v32, %v3057_v48 }
0x220c   :  { %3303 = vmatpush.msra.mxu1 %v7879_v33  ;;  %v12415_v33 = vld [vmem:[#allocation6_spill] sm:$0xff] }
0x220e   :  { %3304 = vmatpush.msra.mxu1 %v7883_v12 }
0x2210   :  { %3305 = vmatpush.msra.mxu1 %v7884_v37 }
0x2212   :  { %v3060_v54 = vpop.f32.mrf.mxu2 }
0x2213   :  { %v3070_v32 = vmul.f32 %v10298_v47, %v3060_v54  ;;  %v8476_v47 = vld [vmem:[%s12307_s5 + $0x48] sm:$0xff] }
0x2217   :  { %v7887_v57 = vpop.permute.xlu1 %7886 }
0x2218   :  { %v7888_v14 = vunpack.i.l.bf16 %v7887_v57  ;;  %v7889_v7 = vunpack.i.h.bf16 %v7887_v57 }
0x221a   :  { %3306 = vmatpush.msra.mxu1 %v7888_v14  ;;  %v3063_v22 = vpop.f32.mrf.mxu2 }
0x221b   :  { %v3071_v24 = vmul.f32 %v10302_v17, %v3063_v22  ;;  %v8480_v17 = vld [vmem:[%s12307_s5 + $0x28] sm:$0xff] }
0x221c   :  { %3307 = vmatpush.msra.mxu1 %v7889_v7 }
0x221e   :  { %3308 = vmatpush.msra.mxu1 %v7893_v55 }
0x2220   :  { %3309 = vmatpush.msra.mxu1 %v7894_v51 }
0x2221   :  { %3310 = vmatmul.f32.vlgmr.msra.gmra.mxu1 %v3069_v44 }
0x2222   :  { %3601 = vmatpush.msrb.mxu1 %v8470_v11  ;;  %v3066_v50 = vpop.f32.mrf.mxu2 }
0x2223   :  { %v3072_v13 = vmul.f32 %v10307_v9, %v3066_v50  ;;  %v8484_v9 = vld [vmem:[%s12307_s5 + $0x8] sm:$0xff] }
0x2224   :  { %3602 = vmatpush.msrb.mxu1 %v8471_v10 }
0x2226   :  { %3603 = vmatpush.msrb.mxu1 %v8472_v34 }
0x2228   :  { %3604 = vmatpush.msrb.mxu1 %v8473_v60 }
0x2229   :  { %3313 = vmatmul.f32.gmra.mxu1 %v3070_v32 }
0x222a   :  { %3605 = vmatpush.msrb.mxu1 %v8474_v27 }
0x222c   :  { %3606 = vmatpush.msrb.mxu1 %v8475_v2 }
0x222e   :  { %3607 = vmatpush.msrb.mxu1 %v8476_v47 }
0x2230   :  { %3608 = vmatpush.msrb.mxu1 %v8477_v41 }
0x2231   :  { %3316 = vmatmul.f32.gmra.mxu1 %v3071_v24 }
0x2232   :  { %3609 = vmatpush.msrb.mxu1 %v8478_v1 }
0x2234   :  { %3610 = vmatpush.msrb.mxu1 %v8479_v23 }
0x2236   :  { %3611 = vmatpush.msrb.mxu1 %v8480_v17 }
0x2238   :  { %3612 = vmatpush.msrb.mxu1 %v8481_v3 }
0x2239   :  { %3319 = vmatmul.f32.gmra.mxu1 %v3072_v13 }
0x223a   :  { %3613 = vmatpush.msrb.mxu1 %v8482_v6 }
0x223c   :  { %3614 = vmatpush.msrb.mxu1 %v8483_v38 }
0x223e   :  { %3615 = vmatpush.msrb.mxu1 %v8484_v9 }
0x2240   :  { %3616 = vmatpush.msrb.mxu1 %v8485_v31 }
0x229e   :  { %v3311_v53 = vpop.f32.mrf.mxu1 }
0x229f   :  { %7537 = vmatmul.msk.f32.vlgmr.msra.gmra.mxu2 %vm132_vm2, %v3311_v53 }
0x22a0   :  { %3981 = vmatpush.msra.mxu2 %v9020_v42 }
0x22a2   :  { %3982 = vmatpush.msra.mxu2 %v9018_v40 }
0x22a4   :  { %3983 = vmatpush.msra.mxu2 %v9023_v43 }
0x22a6   :  { %3984 = vmatpush.msra.mxu2 %v9025_v46  ;;  %v3314_v5 = vpop.f32.mrf.mxu1 }
0x22a7   :  { %7538 = vmatmul.msk.f32.gmra.mxu2 %vm132_vm2, %v3314_v5 }
0x22a8   :  { %3985 = vmatpush.msra.mxu2 %v9032_v15 }
0x22aa   :  { %3986 = vmatpush.msra.mxu2 %v9030_v62 }
0x22ac   :  { %3987 = vmatpush.msra.mxu2 %v9036_v59 }
0x22ae   :  { %3988 = vmatpush.msra.mxu2 %v9038_v19  ;;  %v3317_v21 = vpop.f32.mrf.mxu1  ;;  %v8486_v19 = vld [vmem:[%s12303_s6 + $0x4] ss:$0 sm:$0xff] }
0x22af   :  { %7539 = vmatmul.msk.f32.gmra.mxu2 %vm132_vm2, %v3317_v21 }
0x22b0   :  { %3989 = vmatpush.msra.mxu2 %v9047_v39 }
0x22b2   :  { %3990 = vmatpush.msra.mxu2 %v9045_v35 }
0x22b4   :  { %3991 = vmatpush.msra.mxu2 %v9054_v49 }
0x22b6   :  { %3992 = vmatpush.msra.mxu2 %v9052_v45  ;;  %v3320_v40 = vpop.f32.mrf.mxu1 }
0x22b7   :  { %7540 = vmatmul.msk.f32.gmra.mxu2 %vm132_vm2, %v3320_v40 }
0x22b8   :  { %3993 = vmatpush.msra.mxu2 %v9064_v18 }
0x22ba   :  { %3994 = vmatpush.msra.mxu2 %v9062_v20 }
0x22bc   :  { %3995 = vmatpush.msra.mxu2 %v9092_v28 }
0x22be   :  { %3996 = vmatpush.msra.mxu2 %v9094_v63 }
0x2322   :  { %v3352_v42 = vpop.f32.mrf.mxu2 }
0x2323   :  { %3368 = vrot.lane.b32.xlu1 %v3352_v42, %s8567_s19 }
0x232a   :  { %v3355_v43 = vpop.f32.mrf.mxu2 }
0x232b   :  { %3370 = vrot.lane.b32.xlu0 %v3355_v43, %s8567_s19  ;;  %v12416_v43 = vld [vmem:[#allocation11_spill] sm:$0xff] }
0x2332   :  { %v3358_v46 = vpop.f32.mrf.mxu2 }
0x2333   :  { %3372 = vrot.lane.b32.xlu2 %v3358_v46, %s8567_s19 }
0x233a   :  { %v3361_v62 = vpop.f32.mrf.mxu2 }
0x233b   :  { %3374 = vrot.lane.b32.xlu1 %v3361_v62, %s8567_s19 }
0x238d   :  { %v3373_v15 = vpop.permute.xlu2 %3372 }
0x238e   :  { %v3382_v59 = vadd.f32 %v3373_v15, %v10038_v25  ;;  %v12414_v25 = vld [vmem:[#allocation25_spill] sm:$0xff]  ;;  %v12417_v15 = vld [vmem:[#allocation12_spill] sm:$0xff] }
0x2390   :  { %v10450_v35 = vadd.f32 %v8486_v19, %v3382_v59 }
0x2392   :  { %3396 = vrot.lane.b32.xlu1 %v10450_v35, %s8568_s25 }
0x2395   :  { %v3369_v39 = vpop.permute.xlu1 %3368 }
0x2396   :  { %v3380_v45 = vadd.f32 %v3369_v39, %v10049_v8 }
0x2398   :  { %v10455_v49 = vadd.f32 %v8486_v19, %v3380_v45 }
0x239a   :  { %3392 = vrot.lane.b32.xlu0 %v10455_v49, %s8568_s25 }
0x239d   :  { %v3371_v20 = vpop.permute.xlu0 %3370 }
0x239e   :  { %v3381_v18 = vadd.f32 %v3371_v20, %v10059_v29 }
0x23a0   :  { %v10460_v28 = vadd.f32 %v8486_v19, %v3381_v18 }
0x23a2   :  { %3394 = vrot.lane.b32.xlu2 %v10460_v28, %s8568_s25 }
0x23ad   :  { %v3375_v63 = vpop.permute.xlu1 %3374 }
0x23ae   :  { %v3383_v58 = vadd.f32 %v3375_v63, %v12414_v25 }
0x23b0   :  { %v10465_v30 = vadd.f32 %v8486_v19, %v3383_v58 }
0x23b2   :  { %3398 = vrot.lane.b32.xlu0 %v10465_v30, %s8568_s25 }
0x23fc   :  { %v3395_v8 = vpop.permute.xlu2 %3394 }
0x23fd   :  { %v3407_v0 = vsel %vm132_vm2, %v3395_v8, 0.0 }
0x23fe   :  { %3408 = vadd.xlane.f32.xlu1 %v3407_v0 }
0x2404   :  { %v3397_v52 = vpop.permute.xlu1 %3396 }
0x2405   :  { %v3410_v29 = vsel %vm132_vm2, %v3397_v52, 0.0 }
0x2406   :  { %3411 = vadd.xlane.f32.xlu0 %v3410_v29 }
0x240c   :  { %v3393_v36 = vpop.permute.xlu0 %3392 }
0x240d   :  { %v3404_v56 = vsel %vm132_vm2, %v3393_v36, 0.0 }
0x240e   :  { %3405 = vadd.xlane.f32.xlu2 %v3404_v56 }
0x2424   :  { %v3399_v26 = vpop.permute.xlu0 %3398 }
0x2425   :  { %v3413_v16 = vsel %vm132_vm2, %v3399_v26, 0.0 }
0x2426   :  { %3414 = vadd.xlane.f32.xlu2 %v3413_v16 }
0x2471   :  { %v3409_v61 = vpop.xlane.xlu1 %3408 }
0x2472   :  { %v3417_v12 = vmul.f32 %v3409_v61, %v12415_v33 }
0x2474   :  { %v10475_v37 = vsub.f32 %v10460_v28, %v3417_v12 }
0x2476   :  { %v3425_v48 = vmul.f32 %v10475_v37, %v10475_v37 }
0x2478   :  { %3434 = vrot.lane.b32.xlu0 %v3425_v48, %s8568_s25 }
0x2479   :  { %v3412_v57 = vpop.xlane.xlu0 %3411 }
0x247a   :  { %v3418_v14 = vmul.f32 %v3412_v57, %v12415_v33 }
0x247c   :  { %v3422_v4 = vsub.f32 %v10450_v35, %v3418_v14 }
0x247e   :  { %v3426_v7 = vmul.f32 %v3422_v4, %v3422_v4 }
0x2480   :  { %3436 = vrot.lane.b32.xlu2 %v3426_v7, %s8568_s25 }
0x2481   :  { %v3406_v55 = vpop.xlane.xlu2 %3405 }
0x2482   :  { %v3416_v51 = vmul.f32 %v3406_v55, %v12415_v33 }
0x2484   :  { %v10485_v44 = vsub.f32 %v10455_v49, %v3416_v51 }
0x2486   :  { %v3424_v54 = vmul.f32 %v10485_v44, %v10485_v44 }
0x2488   :  { %3432 = vrot.lane.b32.xlu1 %v3424_v54, %s8568_s25 }
0x2499   :  { %v3415_v11 = vpop.xlane.xlu2 %3414 }
0x249a   :  { %v3419_v10 = vmul.f32 %v3415_v11, %v12415_v33 }
0x249c   :  { %v10492_v34 = vsub.f32 %v10465_v30, %v3419_v10 }
0x249e   :  { %v3427_v32 = vmul.f32 %v10492_v34, %v10492_v34 }
0x24a0   :  { %3438 = vrot.lane.b32.xlu0 %v3427_v32, %s8568_s25 }
0x24da   :  { %v3437_v60 = vpop.permute.xlu2 %3436 }
0x24db   :  { %v3450_v22 = vsel %vm132_vm2, %v3437_v60, 0.0 }
0x24dc   :  { %3451 = vadd.xlane.f32.xlu0 %v3450_v22 }
0x24ea   :  { %v3435_v27 = vpop.permute.xlu0 %3434 }
0x24eb   :  { %v3447_v2 = vsel %vm132_vm2, %v3435_v27, 0.0 }
0x24ec   :  { %3448 = vadd.xlane.f32.xlu2 %v3447_v2 }
0x24fa   :  { %v3433_v47 = vpop.permute.xlu1 %3432 }
0x24fb   :  { %v3444_v24 = vsel %vm132_vm2, %v3433_v47, 0.0 }
0x24fc   :  { %3445 = vadd.xlane.f32.xlu1 %v3444_v24  ;;  %v8487_v24 = vld [vmem:[%s12306_s2 + $0x20] sm:$0xff] }
0x2512   :  { %v3439_v41 = vpop.permute.xlu0 %3438 }
0x2513   :  { %v3453_v1 = vsel %vm132_vm2, %v3439_v41, 0.0 }
0x2514   :  { %3454 = vadd.xlane.f32.xlu1 %v3453_v1 }
0x254f   :  { %v3452_v50 = vpop.xlane.xlu0 %3451 }
0x2550   :  { %v3458_v23 = vmul.f32 %v3452_v50, %v12415_v33 }
0x2552   :  { %v3462_v17 = vadd.f32 1e-05, %v3458_v23  ;;  %v8488_v23 = vld [vmem:[%s12303_s6 + $0x2] ss:$0 sm:$0xff] }
0x2554   :  { %8242 = vrsqrt.f32 %v3462_v17  ;;  %vm3490_vm13 = vweird.f32 %v3462_v17 }
0x255a   :  { %v8243_v13 = vpop.eup %8242 }
0x255b   :  { %v3485_v3 = vmul.f32 %v8243_v13, %v3462_v17  ;;  %vm3491_vm12 = vweird.f32 %v8243_v13 }
0x255c   :  { %vm3492_vm14 = vmor %vm3490_vm13, %vm3491_vm12 }
0x255d   :  { %v3486_v6 = vmul.f32 %v8243_v13, %v3485_v3 }
0x255f   :  { %v3487_v38 = vmul.f32 0.5, %v3486_v6  ;;  %v3449_v9 = vpop.xlane.xlu2 %3448 }
0x2560   :  { %v3457_v31 = vmul.f32 %v3449_v9, %v12415_v33 }
0x2561   :  { %v3488_v53 = vsub.f32 1.5, %v3487_v38 }
0x2562   :  { %v3461_v5 = vadd.f32 1e-05, %v3457_v31 }
0x2563   :  { %v3489_v21 = vmul.f32 %v8243_v13, %v3488_v53 }
0x2564   :  { %8244 = vrsqrt.f32 %v3461_v5  ;;  %vm3480_vm0 = vweird.f32 %v3461_v5 }
0x2565   :  { %v3493_v40 = vsel %vm3492_vm14, %v8243_v13, %v3489_v21 }
0x2566   :  { %v3506_v42 = vmul.f32 %v3493_v40, %v3422_v4 }
0x2568   :  { %v3510_v46 = vmul.f32 %v3506_v42, %v12416_v43 }
0x256a   :  { %v8245_v62 = vpop.eup %8244  ;;  %v3514_v59 = vadd.f32 %v3510_v46, %v12417_v15 }
0x256b   :  { %v3475_v19 = vmul.f32 %v8245_v62, %v3461_v5  ;;  %vm3481_vm15 = vweird.f32 %v8245_v62 }
0x256c   :  { %3524 = vrot.lane.b32.xlu1 %v3514_v59, %s8568_s25  ;;  %vm3482_vm1 = vmor %vm3480_vm0, %vm3481_vm15 }
0x256d   :  { %v3476_v39 = vmul.f32 %v8245_v62, %v3475_v19 }
0x256f   :  { %v3477_v45 = vmul.f32 0.5, %v3476_v39  ;;  %v3446_v20 = vpop.xlane.xlu1 %3445 }
0x2570   :  { %v3456_v18 = vmul.f32 %v3446_v20, %v12415_v33 }
0x2571   :  { %v3478_v63 = vsub.f32 1.5, %v3477_v45 }
0x2572   :  { %v3460_v25 = vadd.f32 1e-05, %v3456_v18 }
0x2573   :  { %v3479_v58 = vmul.f32 %v8245_v62, %v3478_v63 }
0x2574   :  { %8246 = vrsqrt.f32 %v3460_v25  ;;  %vm3470_vm5 = vweird.f32 %v3460_v25 }
0x2575   :  { %v3483_v8 = vsel %vm3482_vm1, %v8245_v62, %v3479_v58 }
0x2576   :  { %v3505_v0 = vmul.f32 %v3483_v8, %v10475_v37 }
0x2578   :  { %v3509_v52 = vmul.f32 %v3505_v0, %v12416_v43 }
0x257a   :  { %v8247_v29 = vpop.eup %8246  ;;  %v3513_v36 = vadd.f32 %v3509_v52, %v12417_v15 }
0x257b   :  { %v3465_v56 = vmul.f32 %v8247_v29, %v3460_v25  ;;  %vm3471_vm3 = vweird.f32 %v8247_v29 }
0x257c   :  { %3522 = vrot.lane.b32.xlu0 %v3513_v36, %s8568_s25  ;;  %vm3472_vm6 = vmor %vm3470_vm5, %vm3471_vm3 }
0x257d   :  { %v3466_v26 = vmul.f32 %v8247_v29, %v3465_v56 }
0x257f   :  { %v3467_v16 = vmul.f32 0.5, %v3466_v26 }
0x2581   :  { %v3468_v61 = vsub.f32 1.5, %v3467_v16 }
0x2583   :  { %v3469_v12 = vmul.f32 %v8247_v29, %v3468_v61 }
0x2585   :  { %v3473_v48 = vsel %vm3472_vm6, %v8247_v29, %v3469_v12 }
0x2586   :  { %v3504_v57 = vmul.f32 %v3473_v48, %v10485_v44 }
0x2587   :  { %v3455_v14 = vpop.xlane.xlu1 %3454 }
0x2588   :  { %v3459_v37 = vmul.f32 %v3455_v14, %v12415_v33  ;;  %v3508_v4 = vmul.f32 %v3504_v57, %v12416_v43 }
0x258a   :  { %v3463_v7 = vadd.f32 1e-05, %v3459_v37  ;;  %v3512_v55 = vadd.f32 %v3508_v4, %v12417_v15 }
0x258c   :  { %8248 = vrsqrt.f32 %v3463_v7  ;;  %3520 = vrot.lane.b32.xlu2 %v3512_v55, %s8568_s25  ;;  %vm3500_vm8 = vweird.f32 %v3463_v7 }
0x2592   :  { %v8249_v51 = vpop.eup %8248 }
0x2593   :  { %v3495_v54 = vmul.f32 %v8249_v51, %v3463_v7  ;;  %vm3501_vm7 = vweird.f32 %v8249_v51 }
0x2594   :  { %vm3502_vm9 = vmor %vm3500_vm8, %vm3501_vm7 }
0x2595   :  { %v3496_v11 = vmul.f32 %v8249_v51, %v3495_v54 }
0x2597   :  { %v3497_v10 = vmul.f32 0.5, %v3496_v11 }
0x2599   :  { %v3498_v32 = vsub.f32 1.5, %v3497_v10 }
0x259b   :  { %v3499_v60 = vmul.f32 %v8249_v51, %v3498_v32 }
0x259d   :  { %v3503_v44 = vsel %vm3502_vm9, %v8249_v51, %v3499_v60 }
0x259e   :  { %v3507_v22 = vmul.f32 %v3503_v44, %v10492_v34 }
0x25a0   :  { %v3511_v27 = vmul.f32 %v3507_v22, %v12416_v43  ;;  %v12418_v22 = vld [vmem:[#allocation13_spill] sm:$0xff] }
0x25a2   :  { %v3515_v2 = vadd.f32 %v3511_v27, %v12417_v15 }
0x25a4   :  { %3526 = vrot.lane.b32.xlu0 %v3515_v2, %s8568_s25 }
0x25de   :  { %v3525_v1 = vpop.permute.xlu1 %3524 }
0x25e6   :  { %v3521_v47 = vpop.permute.xlu2 %3520 }
0x25e7   :  { %7541 = vmatmul.msk.f32.vlgmr.msra.gmra.mxu3 %vm132_vm2, %v3521_v47 }
0x25e8   :  { %4097 = vmatpush.msra.mxu3 %v8487_v24 }
0x25ee   :  { %v3523_v41 = vpop.permute.xlu0 %3522 }
0x25ef   :  { %7542 = vmatmul.msk.f32.gmra.mxu3 %vm132_vm2, %v3523_v41 }
0x25f7   :  { %7543 = vmatmul.msk.f32.gmra.mxu3 %vm132_vm2, %v3525_v1 }
0x2616   :  { %v3527_v34 = vpop.permute.xlu0 %3526 }
0x2617   :  { %7544 = vmatmul.msk.f32.gmra.mxu3 %vm132_vm2, %v3527_v34 }
0x266a   :  { %v3553_v50 = vpop.f32.mrf.mxu3 }
0x266b   :  { %v3554_v17 = vadd.f32 %v8488_v23, %v3553_v50 }
0x266d   :  { %v3569_v13 = vmul.f32 0.044715, %v3554_v17  ;;  %v3565_v19 = vmul.f32 0.5, %v3554_v17 }
0x266f   :  { %v3573_v3 = vmul.f32 %v3569_v13, %v3554_v17 }
0x2671   :  { %v3577_v6 = vmul.f32 %v3573_v3, %v3554_v17 }
0x2672   :  { %v3556_v38 = vpop.f32.mrf.mxu3 }
0x2673   :  { %v3581_v9 = vadd.f32 %v3577_v6, %v3554_v17  ;;  %v3557_v31 = vadd.f32 %v8488_v23, %v3556_v38 }
0x2675   :  { %v3585_v53 = vmul.f32 0.7978846, %v3581_v9  ;;  %v3570_v5 = vmul.f32 0.044715, %v3557_v31  ;;  %v3566_v8 = vmul.f32 0.5, %v3557_v31 }
0x2677   :  { %8250 = vtanh.f32 %v3585_v53  ;;  %v3574_v21 = vmul.f32 %v3570_v5, %v3557_v31 }
0x2679   :  { %v3578_v40 = vmul.f32 %v3574_v21, %v3557_v31 }
0x267a   :  { %v3559_v42 = vpop.f32.mrf.mxu3 }
0x267b   :  { %v3560_v43 = vadd.f32 %v8488_v23, %v3559_v42  ;;  %v3582_v46 = vadd.f32 %v3578_v40, %v3557_v31 }
0x267d   :  { %v8251_v62 = vpop.eup %8250  ;;  %v3571_v15 = vmul.f32 0.044715, %v3560_v43  ;;  %v3586_v59 = vmul.f32 0.7978846, %v3582_v46  ;;  %v3567_v36 = vmul.f32 0.5, %v3560_v43 }
0x267e   :  { %v3593_v39 = vadd.f32 1.0, %v8251_v62 }
0x267f   :  { %8252 = vtanh.f32 %v3586_v59  ;;  %v3575_v45 = vmul.f32 %v3571_v15, %v3560_v43 }
0x2680   :  { %v3597_v20 = vmul.f32 %v3593_v39, %v3565_v19 }
0x2681   :  { %v3579_v18 = vmul.f32 %v3575_v45, %v3560_v43 }
0x2682   :  { %3617 = vmatmul.f32.vlgmr.msrb.gmra.mxu1 %v3597_v20 }
0x2683   :  { %v3583_v63 = vadd.f32 %v3579_v18, %v3560_v43 }
0x2685   :  { %v8253_v25 = vpop.eup %8252  ;;  %v3587_v58 = vmul.f32 0.7978846, %v3583_v63 }
0x2686   :  { %v3594_v0 = vadd.f32 1.0, %v8253_v25 }
0x2687   :  { %8254 = vtanh.f32 %v3587_v58 }
0x2688   :  { %v3598_v52 = vmul.f32 %v3594_v0, %v3566_v8 }
0x268a   :  { %3620 = vmatmul.f32.gmra.mxu1 %v3598_v52 }
0x268d   :  { %v8255_v29 = vpop.eup %8254 }
0x268e   :  { %v3595_v56 = vadd.f32 1.0, %v8255_v29 }
0x2690   :  { %v3599_v26 = vmul.f32 %v3595_v56, %v3567_v36 }
0x2692   :  { %3623 = vmatmul.f32.gmra.mxu1 %v3599_v26 }
0x269a   :  { %v3562_v16 = vpop.f32.mrf.mxu3 }
0x269b   :  { %v3563_v61 = vadd.f32 %v8488_v23, %v3562_v16 }
0x269d   :  { %v3572_v12 = vmul.f32 0.044715, %v3563_v61  ;;  %v3568_v7 = vmul.f32 0.5, %v3563_v61 }
0x269f   :  { %v3576_v48 = vmul.f32 %v3572_v12, %v3563_v61 }
0x26a1   :  { %v3580_v57 = vmul.f32 %v3576_v48, %v3563_v61 }
0x26a3   :  { %v3584_v14 = vadd.f32 %v3580_v57, %v3563_v61 }
0x26a5   :  { %v3588_v37 = vmul.f32 0.7978846, %v3584_v14 }
0x26a7   :  { %8256 = vtanh.f32 %v3588_v37 }
0x26ad   :  { %v8257_v4 = vpop.eup %8256 }
0x26ae   :  { %v3596_v55 = vadd.f32 1.0, %v8257_v4 }
0x26b0   :  { %v3600_v51 = vmul.f32 %v3596_v55, %v3568_v7  ;;  %v12419_v7 = vld [vmem:[#allocation16_spill] sm:$0xff] }
0x26b2   :  { %3626 = vmatmul.f32.gmra.mxu1 %v3600_v51  ;;  %v12420_v51 = vld [vmem:[#allocation17_spill] sm:$0xff] }
0x26ff   :  { %v3618_v54 = vpop.f32.mrf.mxu1 }
0x2700   :  { %3634 = vrot.lane.b32.xlu2 %v3618_v54, %s8567_s19 }
0x2707   :  { %v3621_v11 = vpop.f32.mrf.mxu1 }
0x2708   :  { %3636 = vrot.lane.b32.xlu1 %v3621_v11, %s8567_s19 }
0x270f   :  { %v3624_v10 = vpop.f32.mrf.mxu1 }
0x2710   :  { %3638 = vrot.lane.b32.xlu0 %v3624_v10, %s8567_s19 }
0x272f   :  { %v3627_v32 = vpop.f32.mrf.mxu1 }
0x2730   :  { %3640 = vrot.lane.b32.xlu2 %v3627_v32, %s8567_s19 }
0x275a   :  { %v3635_v60 = vpop.permute.xlu2 %3634 }
0x275b   :  { %v3646_v44 = vadd.f32 %v3635_v60, %v10455_v49 }
0x275d   :  { %v10536_v27 = vadd.f32 %v3646_v44, %v12418_v22 }
0x275f   :  { %3658 = vrot.lane.b32.xlu1 %v10536_v27, %s8568_s25 }
0x277a   :  { %v3637_v2 = vpop.permute.xlu1 %3636 }
0x277b   :  { %v3647_v47 = vadd.f32 %v3637_v2, %v10460_v28 }
0x277d   :  { %v10542_v24 = vadd.f32 %v3647_v47, %v12418_v22 }
0x277f   :  { %3660 = vrot.lane.b32.xlu0 %v10542_v24, %s8568_s25 }
0x2782   :  { %v3639_v41 = vpop.permute.xlu0 %3638 }
0x2783   :  { %v3648_v1 = vadd.f32 %v3639_v41, %v10450_v35 }
0x2785   :  { %v10548_v49 = vadd.f32 %v3648_v1, %v12418_v22 }
0x2787   :  { %3662 = vrot.lane.b32.xlu2 %v10548_v49, %s8568_s25 }
0x278a   :  { %v3641_v34 = vpop.permute.xlu2 %3640 }
0x278b   :  { %v3649_v50 = vadd.f32 %v3641_v34, %v10465_v30 }
0x278d   :  { %v10554_v28 = vadd.f32 %v3649_v50, %v12418_v22 }
0x278f   :  { %3664 = vrot.lane.b32.xlu1 %v10554_v28, %s8568_s25 }
0x27d1   :  { %v3659_v23 = vpop.permute.xlu1 %3658 }
0x27d2   :  { %v3670_v17 = vsel %vm132_vm2, %v3659_v23, 0.0 }
0x27d3   :  { %3671 = vadd.xlane.f32.xlu0 %v3670_v17 }
0x27e1   :  { %v3663_v35 = vpop.permute.xlu2 %3662 }
0x27e2   :  { %v3676_v13 = vsel %vm132_vm2, %v3663_v35, 0.0 }
0x27e3   :  { %3677 = vadd.xlane.f32.xlu1 %v3676_v13 }
0x27f1   :  { %v3661_v3 = vpop.permute.xlu0 %3660 }
0x27f2   :  { %v3673_v6 = vsel %vm132_vm2, %v3661_v3, 0.0 }
0x27f3   :  { %3674 = vadd.xlane.f32.xlu2 %v3673_v6 }
0x2801   :  { %v3665_v38 = vpop.permute.xlu1 %3664 }
0x2802   :  { %v3679_v30 = vsel %vm132_vm2, %v3665_v38, 0.0 }
0x2803   :  { %3680 = vadd.xlane.f32.xlu0 %v3679_v30 }
0x2846   :  { %v3672_v9 = vpop.xlane.xlu0 %3671 }
0x2847   :  { %v3682_v31 = vmul.f32 %v3672_v9, %v12415_v33 }
0x2849   :  { %v3686_v53 = vsub.f32 %v10536_v27, %v3682_v31 }
0x284b   :  { %v3690_v5 = vmul.f32 %v3686_v53, %v3686_v53 }
0x284d   :  { %3698 = vrot.lane.b32.xlu2 %v3690_v5, %s8568_s25 }
0x2856   :  { %v3678_v21 = vpop.xlane.xlu1 %3677 }
0x2857   :  { %v3684_v40 = vmul.f32 %v3678_v21, %v12415_v33 }
0x2859   :  { %v10567_v42 = vsub.f32 %v10548_v49, %v3684_v40 }
0x285b   :  { %v3692_v43 = vmul.f32 %v10567_v42, %v10567_v42 }
0x285d   :  { %3702 = vrot.lane.b32.xlu0 %v3692_v43, %s8568_s25 }
0x2866   :  { %v3675_v46 = vpop.xlane.xlu2 %3674 }
0x2867   :  { %v3683_v62 = vmul.f32 %v3675_v46, %v12415_v33 }
0x2869   :  { %v10574_v15 = vsub.f32 %v10542_v24, %v3683_v62 }
0x286b   :  { %v3691_v59 = vmul.f32 %v10574_v15, %v10574_v15 }
0x286d   :  { %3700 = vrot.lane.b32.xlu1 %v3691_v59, %s8568_s25 }
0x2876   :  { %v3681_v19 = vpop.xlane.xlu0 %3680 }
0x2877   :  { %v3685_v39 = vmul.f32 %v3681_v19, %v12415_v33 }
0x2879   :  { %v10581_v45 = vsub.f32 %v10554_v28, %v3685_v39 }
0x287b   :  { %v3693_v20 = vmul.f32 %v10581_v45, %v10581_v45 }
0x287d   :  { %3704 = vrot.lane.b32.xlu2 %v3693_v20, %s8568_s25 }
0x28a7   :  { %v3699_v18 = vpop.permute.xlu2 %3698 }
0x28a8   :  { %v3710_v63 = vsel %vm132_vm2, %v3699_v18, 0.0 }
0x28a9   :  { %3711 = vadd.xlane.f32.xlu0 %v3710_v63 }
0x28cf   :  { %v3703_v25 = vpop.permute.xlu0 %3702 }
0x28d0   :  { %v3716_v58 = vsel %vm132_vm2, %v3703_v25, 0.0 }
0x28d1   :  { %3717 = vadd.xlane.f32.xlu2 %v3716_v58 }
0x28d7   :  { %v3705_v8 = vpop.permute.xlu2 %3704 }
0x28d8   :  { %v3719_v0 = vsel %vm132_vm2, %v3705_v8, 0.0 }
0x28d9   :  { %3720 = vadd.xlane.f32.xlu0 %v3719_v0 }
0x28df   :  { %v3701_v52 = vpop.permute.xlu1 %3700 }
0x28e0   :  { %v3713_v29 = vsel %vm132_vm2, %v3701_v52, 0.0 }
0x28e1   :  { %3714 = vadd.xlane.f32.xlu1 %v3713_v29 }
0x291c   :  { %v3712_v36 = vpop.xlane.xlu0 %3711 }
0x291d   :  { %v3722_v56 = vmul.f32 %v3712_v36, %v12415_v33  ;;  %v8489_v36 = vld [vmem:[%s12303_s6 + $0x1] ss:$0 sm:$0xff] }
0x291f   :  { %v3726_v26 = vadd.f32 1e-05, %v3722_v56 }
0x2921   :  { %8258 = vrsqrt.f32 %v3726_v26  ;;  %vm3736_vm11 = vweird.f32 %v3726_v26 }
0x2927   :  { %v8259_v16 = vpop.eup %8258 }
0x2928   :  { %v3731_v61 = vmul.f32 %v8259_v16, %v3726_v26  ;;  %vm3737_vm10 = vweird.f32 %v8259_v16 }
0x2929   :  { %vm3738_vm12 = vmor %vm3736_vm11, %vm3737_vm10 }
0x292a   :  { %v3732_v12 = vmul.f32 %v8259_v16, %v3731_v61 }
0x292c   :  { %v3733_v48 = vmul.f32 0.5, %v3732_v12 }
0x292e   :  { %v3734_v57 = vsub.f32 1.5, %v3733_v48 }
0x2930   :  { %v3735_v14 = vmul.f32 %v8259_v16, %v3734_v57 }
0x2932   :  { %v3739_v37 = vsel %vm3738_vm12, %v8259_v16, %v3735_v14 }
0x2933   :  { %v3770_v4 = vmul.f32 %v3739_v37, %v3686_v53 }
0x2935   :  { %v3774_v55 = vmul.f32 %v3770_v4, %v12419_v7 }
0x2937   :  { %v3778_v54 = vadd.f32 %v3774_v55, %v12420_v51 }
0x2939   :  { %3786 = vrot.lane.b32.xlu1 %v3778_v54, %s8568_s25 }
0x2944   :  { %v3718_v11 = vpop.xlane.xlu2 %3717 }
0x2945   :  { %v3724_v10 = vmul.f32 %v3718_v11, %v12415_v33  ;;  %v12421_v11 = vld [vmem:[#allocation19_spill] sm:$0xff] }
0x2947   :  { %v3728_v32 = vadd.f32 1e-05, %v3724_v10  ;;  %v12422_v10 = vld [vmem:[#allocation18_spill] sm:$0xff] }
0x2949   :  { %8260 = vrsqrt.f32 %v3728_v32  ;;  %vm3756_vm14 = vweird.f32 %v3728_v32 }
0x294c   :  { %v3721_v60 = vpop.xlane.xlu0 %3720 }
0x294d   :  { %v3725_v44 = vmul.f32 %v3721_v60, %v12415_v33  ;;  %v12424_v60 = vld [vmem:[#allocation21_spill] sm:$0xff] }
0x294f   :  { %v8261_v22 = vpop.eup %8260  ;;  %v3729_v2 = vadd.f32 1e-05, %v3725_v44 }
0x2950   :  { %v3751_v47 = vmul.f32 %v8261_v22, %v3728_v32  ;;  %vm3757_vm13 = vweird.f32 %v8261_v22  ;;  %v12423_v32 = vld [vmem:[#allocation20_spill] sm:$0xff] }
0x2951   :  { %8262 = vrsqrt.f32 %v3729_v2  ;;  %vm3758_vm15 = vmor %vm3756_vm14, %vm3757_vm13  ;;  %vm3766_vm6 = vweird.f32 %v3729_v2 }
0x2952   :  { %v3752_v41 = vmul.f32 %v8261_v22, %v3751_v47 }
0x2954   :  { %v3753_v1 = vmul.f32 0.5, %v3752_v41  ;;  %v3715_v34 = vpop.xlane.xlu1 %3714 }
0x2955   :  { %v3723_v50 = vmul.f32 %v3715_v34, %v12415_v33 }
0x2956   :  { %v3754_v23 = vsub.f32 1.5, %v3753_v1 }
0x2957   :  { %v8263_v17 = vpop.eup %8262  ;;  %v3727_v35 = vadd.f32 1e-05, %v3723_v50  ;;  %v8490_v50 = vld [vmem:[%s12306_s2 + $0x18] sm:$0xff] }
0x2958   :  { %v3755_v13 = vmul.f32 %v8261_v22, %v3754_v23  ;;  %v3761_v3 = vmul.f32 %v8263_v17, %v3729_v2  ;;  %vm3767_vm1 = vweird.f32 %v8263_v17 }
0x2959   :  { %8264 = vrsqrt.f32 %v3727_v35  ;;  %vm3746_vm3 = vweird.f32 %v3727_v35  ;;  %vm3768_vm7 = vmor %vm3766_vm6, %vm3767_vm1 }
0x295a   :  { %v3759_v6 = vsel %vm3758_vm15, %v8261_v22, %v3755_v13  ;;  %v3762_v30 = vmul.f32 %v8263_v17, %v3761_v3  ;;  %v8492_v13 = vld [vmem:[%s12306_s2 + $0x8] sm:$0xff] }
0x295b   :  { %v3772_v38 = vmul.f32 %v3759_v6, %v10567_v42 }
0x295c   :  { %v3763_v5 = vmul.f32 0.5, %v3762_v30 }
0x295d   :  { %v3776_v9 = vmul.f32 %v3772_v38, %v12419_v7  ;;  %v8493_v38 = vld [vmem:[%s12306_s2] sm:$0xff] }
0x295e   :  { %v3764_v43 = vsub.f32 1.5, %v3763_v5 }
0x295f   :  { %v8265_v31 = vpop.eup %8264  ;;  %v3780_v53 = vadd.f32 %v3776_v9, %v12420_v51 }
0x2960   :  { %v3741_v21 = vmul.f32 %v8265_v31, %v3727_v35  ;;  %vm3747_vm0 = vweird.f32 %v8265_v31  ;;  %v3765_v59 = vmul.f32 %v8263_v17, %v3764_v43  ;;  %v10660_v43 = vld [vmem:[%s12305_s3 + $0x8] sm:$0xff] }
0x2961   :  { %3790 = vrot.lane.b32.xlu0 %v3780_v53, %s8568_s25  ;;  %vm3748_vm5 = vmor %vm3746_vm3, %vm3747_vm0 }
0x2962   :  { %v3742_v40 = vmul.f32 %v8265_v31, %v3741_v21  ;;  %v3769_v20 = vsel %vm3768_vm7, %v8263_v17, %v3765_v59  ;;  %v8491_v17 = vld [vmem:[%s12306_s2 + $0x10] sm:$0xff]  ;;  %v10681_v59 = vld [vmem:[%s12305_s3 + $0x20] sm:$0xff] }
0x2963   :  { %v3773_v63 = vmul.f32 %v3769_v20, %v10581_v45  ;;  %v10709_v20 = vld [vmem:[%s12305_s3 + $0x40] sm:$0xff] }
0x2964   :  { %v3743_v46 = vmul.f32 0.5, %v3742_v40  ;;  %v10653_v40 = vld [vmem:[%s12305_s3] sm:$0xff] }
0x2965   :  { %v3777_v58 = vmul.f32 %v3773_v63, %v12419_v7  ;;  %v10723_v63 = vld [vmem:[%s12305_s3 + $0x50] sm:$0xff] }
0x2966   :  { %v3744_v62 = vsub.f32 1.5, %v3743_v46  ;;  %v10667_v46 = vld [vmem:[%s12305_s3 + $0x10] sm:$0xff] }
0x2967   :  { %v3781_v8 = vadd.f32 %v3777_v58, %v12420_v51 }
0x2968   :  { %v3745_v19 = vmul.f32 %v8265_v31, %v3744_v62  ;;  %v10674_v62 = vld [vmem:[%s12305_s3 + $0x18] sm:$0xff] }
0x296a   :  { %v3749_v42 = vsel %vm3748_vm5, %v8265_v31, %v3745_v19  ;;  %v10688_v19 = vld [vmem:[%s12305_s3 + $0x28] sm:$0xff] }
0x296b   :  { %v3771_v39 = vmul.f32 %v3749_v42, %v10574_v15  ;;  %v10695_v42 = vld [vmem:[%s12305_s3 + $0x30] sm:$0xff] }
0x296d   :  { %v3775_v18 = vmul.f32 %v3771_v39, %v12419_v7  ;;  %v10702_v39 = vld [vmem:[%s12305_s3 + $0x38] sm:$0xff] }
0x296f   :  { %v3779_v25 = vadd.f32 %v3775_v18, %v12420_v51  ;;  %v10716_v18 = vld [vmem:[%s12305_s3 + $0x48] sm:$0xff] }
0x2971   :  { %3788 = vrot.lane.b32.xlu2 %v3779_v25, %s8568_s25  ;;  %v10730_v25 = vld [vmem:[%s12305_s3 + $0x58] sm:$0xff] }
0x2979   :  { %3792 = vrot.lane.b32.xlu2 %v3781_v8, %s8568_s25  ;;  %v8506_v8 = vld [vmem:[%s12302_s1 + $0x8] sm:$0xff] }
0x29ab   :  { %v3787_v0 = vpop.permute.xlu1 %3786 }
0x29ac   :  { %7545 = vmatmul.msk.f32.vlgmr.msrb.gmra.mxu2 %vm132_vm2, %v3787_v0 }
0x29cb   :  { %v3789_v52 = vpop.permute.xlu2 %3788 }
0x29cc   :  { %7546 = vmatmul.msk.f32.gmra.mxu2 %vm132_vm2, %v3789_v52  ;;  %v10740_v52 = vld [vmem:[%s12305_s3 + $0x60] sm:$0xff] }
0x29d3   :  { %v3791_v15 = vpop.permute.xlu0 %3790  ;;  %v3793_v45 = vpop.permute.xlu2 %3792 }
0x29d4   :  { %7547 = vmatmul.msk.f32.gmra.mxu2 %vm132_vm2, %v3791_v15 }
0x29dc   :  { %7548 = vmatmul.msk.f32.gmra.mxu2 %vm132_vm2, %v3793_v45  ;;  %v8508_v45 = vld [vmem:[%s12302_s1 + $0x20] sm:$0xff] }
0x2a2f   :  { %v3819_v29 = vpop.f32.mrf.mxu2 }
0x2a30   :  { %v3820_v56 = vadd.f32 %v8489_v36, %v3819_v29 }
0x2a32   :  { %3835 = vrot.lane.b32.xlu0 %v3820_v56, %s8568_s25 }
0x2a4f   :  { %v3822_v26 = vpop.f32.mrf.mxu2 }
0x2a50   :  { %v3823_v16 = vadd.f32 %v8489_v36, %v3822_v26  ;;  %v8510_v26 = vld [vmem:[%s12302_s1 + $0x38] sm:$0xff] }
0x2a52   :  { %3837 = vrot.lane.b32.xlu1 %v3823_v16, %s8568_s25  ;;  %v7900_v37 = vpack.i.bf16 %v3820_v56, %v3823_v16 }
0x2a57   :  { %v3825_v61 = vpop.f32.mrf.mxu2 }
0x2a58   :  { %v3826_v12 = vadd.f32 %v8489_v36, %v3825_v61  ;;  %v10760_v61 = vld [vmem:[%s12305_s3 + $0x70] sm:$0xff] }
0x2a5a   :  { %3839 = vrot.lane.b32.xlu2 %v3826_v12, %s8568_s25 }
0x2a5f   :  { %v3828_v48 = vpop.f32.mrf.mxu2 }
0x2a60   :  { %v3829_v57 = vadd.f32 %v8489_v36, %v3828_v48  ;;  %v10750_v36 = vld [vmem:[%s12305_s3 + $0x68] sm:$0xff]  ;;  %v8512_v48 = vld [vmem:[%s12302_s1 + $0x50] sm:$0xff] }
0x2a62   :  { %v7895_v14 = vpack.i.bf16 %v3826_v12, %v3829_v57  ;;  %3841 = vrot.lane.b32.xlu0 %v3829_v57, %s8568_s25 }
0x2a64   :  { %7896 = vrot.lane.b32.xlu2 %v7895_v14, %s8570_s28  ;;  %v10770_v14 = vld [vmem:[%s12305_s3 + $0x78] sm:$0xff] }
0x2a6a   :  { %7901 = vrot.lane.b32.xlu0 %v7900_v37, %s8570_s28 }
0x2aa4   :  { %v3836_v4 = vpop.permute.xlu0 %3835 }
0x2aa5   :  { %3847 = vxpose.xlu1.b32.start [1/4] (short) (narrow) %v3836_v4, 32 }
0x2ab4   :  { %v3840_v55 = vpop.permute.xlu2 %3839 }
0x2abe   :  { %v7897_v6 = vpop.permute.xlu2 %7896 }
0x2abf   :  { %v7898_v9 = vunpack.i.l.bf16 %v7897_v6  ;;  %v7899_v53 = vunpack.i.h.bf16 %v7897_v6 }
0x2ac4   :  { %v3838_v7 = vpop.permute.xlu1 %3837 }
0x2ac5   :  { %3848 = vxpose.xlu1.b32.cont [2/4] (short) (narrow) %v3838_v7, 32 }
0x2acd   :  { %3849 = vxpose.xlu1.b32.cont [3/4] (short) (narrow) %v3840_v55, 32 }
0x2ad4   :  { %v3842_v51 = vpop.permute.xlu0 %3841 }
0x2ad5   :  { %3850 = vxpose.xlu1.b32.end [4/4] (short) (narrow) %v3842_v51, 32 }
0x2adc   :  { %v7902_v31 = vpop.permute.xlu0 %7901 }
0x2add   :  { %v7903_v5 = vunpack.i.l.bf16 %v7902_v31  ;;  %v7904_v21 = vunpack.i.h.bf16 %v7902_v31 }
0x2b61   :  { %v3863_v54 = vpop.trf.xlu1 }
0x2b62   :  { %7549 = vmatmul.msk.f32.vlgmr.msrb.gmra.mxu3 %vm132_vm2, %v3863_v54 }
0x2b63   :  { %7675 = vmatpush.msrb.mxu3 %v12421_v11 }
0x2b65   :  { %7676 = vmatpush.msrb.mxu3 %v12422_v10 }
0x2b67   :  { %7677 = vmatpush.msrb.mxu3 %v12423_v32 }
0x2b69   :  { %7678 = vmatpush.msrb.mxu3 %v12424_v60  ;;  %v3864_v44 = vpop.trf.xlu1 }
0x2b6a   :  { %7550 = vmatmul.msk.f32.gmra.mxu3 %vm132_vm2, %v3864_v44 }
0x2b71   :  { %v3865_v22 = vpop.trf.xlu1 }
0x2b72   :  { %7551 = vmatmul.msk.f32.gmra.mxu3 %vm132_vm2, %v3865_v22 }
0x2b79   :  { %v3866_v2 = vpop.trf.xlu1 }
0x2b7a   :  { %7552 = vmatmul.msk.f32.gmra.mxu3 %vm132_vm2, %v3866_v2 }
0x2be5   :  { %v3908_v47 = vpop.f32.mrf.mxu3 }
0x2be6   :  { %v3920_v30 = vmul.f32 %v8493_v38, %v3908_v47 }
0x2bed   :  { %v3911_v41 = vpop.f32.mrf.mxu3 }
0x2bee   :  { %v3921_v3 = vmul.f32 %v8492_v13, %v3911_v41 }
0x2bf5   :  { %v3914_v1 = vpop.f32.mrf.mxu3 }
0x2bf6   :  { %v3922_v35 = vmul.f32 %v8491_v17, %v3914_v1 }
0x2bfd   :  { %v3917_v34 = vpop.f32.mrf.mxu3 }
0x2bfe   :  { %v3923_v23 = vmul.f32 %v8490_v50, %v3917_v34 }
0x2c00   :  { %3944 = vmatpush.msra.mxu1 %v3923_v23 }
0x2c02   :  { %3945 = vmatpush.msra.mxu1 %v3922_v35 }
0x2c04   :  { %3946 = vmatpush.msra.mxu1 %v3921_v3 }
0x2c06   :  { %3947 = vmatpush.msra.mxu1 %v3920_v30 }
0x2c07   :  { %7553 = vmatmul.msk.f32.vlgmr.msra.gmra.mxu1 %vm132_vm2, %v3820_v56 }
0x2c08   :  { %4139 = vmatpush.msrb.mxu1 %v7898_v9 }
0x2c0a   :  { %4140 = vmatpush.msrb.mxu1 %v7899_v53 }
0x2c0c   :  { %4141 = vmatpush.msrb.mxu1 %v7903_v5 }
0x2c0e   :  { %4142 = vmatpush.msrb.mxu1 %v7904_v21 }
0x2c0f   :  { %7554 = vmatmul.msk.f32.gmra.mxu1 %vm132_vm2, %v3823_v16 }
0x2c10   :  { %4389 = vmatpush.msra.mxu1 %v12421_v11 }
0x2c12   :  { %4390 = vmatpush.msra.mxu1 %v12422_v10 }
0x2c14   :  { %4391 = vmatpush.msra.mxu1 %v12423_v32 }
0x2c16   :  { %4392 = vmatpush.msra.mxu1 %v12424_v60 }
0x2c17   :  { %7555 = vmatmul.msk.f32.gmra.mxu1 %vm132_vm2, %v3826_v12 }
0x2c1f   :  { %7556 = vmatmul.msk.f32.gmra.mxu1 %vm132_vm2, %v3829_v57 }
0x2c27   :  { %7561 = vmatmul.msk.f32.vlgmr.msrb.gmra.mxu1 %vm132_vm2, %v10653_v40 }
0x2c2f   :  { %7562 = vmatmul.msk.f32.gmra.mxu1 %vm132_vm2, %v10660_v43 }
0x2c37   :  { %7563 = vmatmul.msk.f32.gmra.mxu1 %vm132_vm2, %v10667_v46 }
0x2c3f   :  { %7564 = vmatmul.msk.f32.gmra.mxu1 %vm132_vm2, %v10674_v62 }
0x2c47   :  { %7565 = vmatmul.msk.f32.gmra.mxu1 %vm132_vm2, %v10681_v59 }
0x2c4f   :  { %7566 = vmatmul.msk.f32.gmra.mxu1 %vm132_vm2, %v10688_v19 }
0x2c57   :  { %7567 = vmatmul.msk.f32.gmra.mxu1 %vm132_vm2, %v10695_v42 }
0x2c5f   :  { %7568 = vmatmul.msk.f32.gmra.mxu1 %vm132_vm2, %v10702_v39 }
0x2c67   :  { %7569 = vmatmul.msk.f32.gmra.mxu1 %vm132_vm2, %v10709_v20 }
0x2c6f   :  { %7570 = vmatmul.msk.f32.gmra.mxu1 %vm132_vm2, %v10716_v18 }
0x2c77   :  { %7571 = vmatmul.msk.f32.gmra.mxu1 %vm132_vm2, %v10723_v63 }
0x2c7f   :  { %7572 = vmatmul.msk.f32.gmra.mxu1 %vm132_vm2, %v10730_v25 }
0x2c84   :  { %v3949_v58 = vpop.f32.mrf.mxu1 }
0x2c85   :  { %v3950_v0 = vadd.f32 %v8506_v8, %v3949_v58 }
0x2c87   :  { %3961 = vmax.xlane.f32.xlu2 %v3950_v0  ;;  %7573 = vmatmul.msk.f32.gmra.mxu1 %vm132_vm2, %v10740_v52 }
0x2c8c   :  { %v3952_v15 = vpop.f32.mrf.mxu1 }
0x2c8d   :  { %v3953_v29 = vadd.f32 %v8508_v45, %v3952_v15 }
0x2c8f   :  { %7574 = vmatmul.msk.f32.gmra.mxu1 %vm132_vm2, %v10750_v36  ;;  %3963 = vmax.xlane.f32.xlu0 %v3953_v29 }
0x2c94   :  { %v3955_v56 = vpop.f32.mrf.mxu1 }
0x2c95   :  { %v3956_v16 = vadd.f32 %v8510_v26, %v3955_v56 }
0x2c97   :  { %7575 = vmatmul.msk.f32.gmra.mxu1 %vm132_vm2, %v10760_v61  ;;  %3965 = vmax.xlane.f32.xlu2 %v3956_v16 }
0x2c9c   :  { %v3958_v12 = vpop.f32.mrf.mxu1 }
0x2c9d   :  { %v3959_v57 = vadd.f32 %v8512_v48, %v3958_v12 }
0x2c9f   :  { %7576 = vmatmul.msk.f32.gmra.mxu1 %vm132_vm2, %v10770_v14  ;;  %3967 = vmax.xlane.f32.xlu0 %v3959_v57 }
0x2ca4   :  { %v4144_v37 = vpop.f32.mrf.mxu1 }
0x2cac   :  { %v4147_v4 = vpop.f32.mrf.mxu1 }
0x2cb4   :  { %v4150_v7 = vpop.f32.mrf.mxu1 }
0x2cbc   :  { %v4153_v55 = vpop.f32.mrf.mxu1 }
0x2cc4   :  { %v4156_v51 = vpop.f32.mrf.mxu1 }
0x2ccc   :  { %v4159_v54 = vpop.f32.mrf.mxu1 }
0x2cd4   :  { %v4162_v11 = vpop.f32.mrf.mxu1 }
0x2cdc   :  { %v4165_v10 = vpop.f32.mrf.mxu1 }
0x2ce4   :  { %v4168_v32 = vpop.f32.mrf.mxu1 }
0x2cec   :  { %v4171_v60 = vpop.f32.mrf.mxu1 }
0x2cf4   :  { %v4174_v44 = vpop.f32.mrf.mxu1 }
0x2cfa   :  { %v3962_v22 = vpop.xlane.xlu2 %3961 }
0x2cfb   :  { %v3969_v2 = vsub.f32 %v3950_v0, %v3962_v22 }
0x2cfc   :  { %v4177_v41 = vpop.f32.mrf.mxu1 }
0x2cfd   :  { %v3973_v47 = vmul.f32 1.442695, %v3969_v2  ;;  %4230 = vrot.lane.b32.xlu2 %v4177_v41, %s8567_s19 }
0x2cff   :  { %8266 = vpow2.f32 %v3973_v47 }
0x2d02   :  { %v3964_v1 = vpop.xlane.xlu0 %3963 }
0x2d03   :  { %v3970_v34 = vsub.f32 %v3953_v29, %v3964_v1 }
0x2d04   :  { %v4180_v23 = vpop.f32.mrf.mxu1 }
0x2d05   :  { %v10775_v50 = vpop.eup %8266  ;;  %v3975_v17 = vmul.f32 1.442695, %v3970_v34  ;;  %4232 = vrot.lane.b32.xlu0 %v4180_v23, %s8567_s19  ;;  %4226 = vrot.lane.b32.xlu2 %v4171_v60, %s8567_s19 }
0x2d06   :  { %3997 = vmatmul.f32.vlgmr.msra.gmra.mxu2 %v10775_v50 }
0x2d07   :  { %8268 = vpow2.f32 %v3975_v17 }
0x2d0a   :  { %v3966_v35 = vpop.xlane.xlu2 %3965 }
0x2d0b   :  { %v3971_v13 = vsub.f32 %v3956_v16, %v3966_v35 }
0x2d0c   :  { %v4183_v3 = vpop.f32.mrf.mxu1 }
0x2d0d   :  { %v10780_v6 = vpop.eup %8268  ;;  %v3977_v38 = vmul.f32 1.442695, %v3971_v13  ;;  %4234 = vrot.lane.b32.xlu1 %v4183_v3, %s8567_s19  ;;  %4228 = vrot.lane.b32.xlu0 %v4174_v44, %s8567_s19 }
0x2d0e   :  { %4000 = vmatmul.f32.gmra.mxu2 %v10780_v6 }
0x2d0f   :  { %8270 = vpow2.f32 %v3977_v38 }
0x2d12   :  { %v3968_v30 = vpop.xlane.xlu0 %3967 }
0x2d13   :  { %v3972_v9 = vsub.f32 %v3959_v57, %v3968_v30 }
0x2d14   :  { %v4186_v31 = vpop.f32.mrf.mxu1 }
0x2d15   :  { %v10785_v53 = vpop.eup %8270  ;;  %v3979_v5 = vmul.f32 1.442695, %v3972_v9  ;;  %4224 = vrot.lane.b32.xlu0 %v4168_v32, %s8567_s19 }
0x2d16   :  { %4003 = vmatmul.f32.gmra.mxu2 %v10785_v53 }
0x2d17   :  { %8272 = vpow2.f32 %v3979_v5 }
0x2d1c   :  { %v4189_v21 = vpop.f32.mrf.mxu1 }
0x2d1d   :  { %v10789_v58 = vpop.eup %8272  ;;  %4236 = vrot.lane.b32.xlu0 %v4186_v31, %s8567_s19  ;;  %4238 = vrot.lane.b32.xlu2 %v4189_v21, %s8567_s19 }
0x2d1e   :  { %4006 = vmatmul.f32.gmra.mxu2 %v10789_v58 }
0x2d25   :  { %4220 = vrot.lane.b32.xlu0 %v4162_v11, %s8567_s19  ;;  %4222 = vrot.lane.b32.xlu2 %v4165_v10, %s8567_s19 }
0x2d2d   :  { %4216 = vrot.lane.b32.xlu0 %v4156_v51, %s8567_s19  ;;  %4218 = vrot.lane.b32.xlu2 %v4159_v54, %s8567_s19 }
0x2d35   :  { %4212 = vrot.lane.b32.xlu0 %v4150_v7, %s8567_s19  ;;  %4214 = vrot.lane.b32.xlu2 %v4153_v55, %s8567_s19 }
0x2d3d   :  { %4208 = vrot.lane.b32.xlu0 %v4144_v37, %s8567_s19  ;;  %4210 = vrot.lane.b32.xlu2 %v4147_v4, %s8567_s19 }
0x2d57   :  { %v4231_v8 = vpop.permute.xlu2 %4230 }
0x2d58   :  { %v4267_v41 = vmul.f32 %v10730_v25, %v4231_v8 }
0x2d5f   :  { %v4227_v15 = vpop.permute.xlu2 %4226 }
0x2d60   :  { %v4265_v57 = vmul.f32 %v10716_v18, %v4227_v15 }
0x2d77   :  { %v4233_v0 = vpop.permute.xlu0 %4232  ;;  %v4239_v12 = vpop.permute.xlu2 %4238 }
0x2d78   :  { %v4268_v56 = vmul.f32 %v10740_v52, %v4233_v0  ;;  %v4271_v51 = vmul.f32 %v10770_v14, %v4239_v12 }
0x2d7f   :  { %v4235_v45 = vpop.permute.xlu1 %4234  ;;  %v4229_v29 = vpop.permute.xlu0 %4228 }
0x2d80   :  { %v4269_v26 = vmul.f32 %v10750_v36, %v4235_v45  ;;  %v4223_v52 = vpop.permute.xlu2 %4222  ;;  %v4266_v18 = vmul.f32 %v10723_v63, %v4229_v29 }
0x2d81   :  { %v4263_v8 = vmul.f32 %v10702_v39, %v4223_v52 }
0x2d82   :  { %v7905_v16 = vpack.i.bf16 %v4268_v56, %v4269_v26  ;;  %v7915_v17 = vpack.i.bf16 %v4266_v18, %v4267_v41 }
0x2d84   :  { %7906 = vrot.lane.b32.xlu0 %v7905_v16, %s8568_s25 }
0x2d87   :  { %v4225_v48 = vpop.permute.xlu0 %4224 }
0x2d88   :  { %v4264_v37 = vmul.f32 %v10709_v20, %v4225_v48  ;;  %v4219_v1 = vpop.permute.xlu2 %4218 }
0x2d89   :  { %v3998_v7 = vpop.f32.mrf.mxu2  ;;  %v4261_v0 = vmul.f32 %v10688_v19, %v4219_v1 }
0x2d8a   :  { %v7920_v4 = vpack.i.bf16 %v4264_v37, %v4265_v57  ;;  %v4010_v55 = vmax.f32 %v3998_v7, 1e-30 }
0x2d8c   :  { %8274 = vrcp.f32 %v4010_v55  ;;  %7921 = vrot.lane.b32.xlu0 %v7920_v4, %s8568_s25  ;;  %v4025_v22 = vand.u32 2147483648, %v4010_v55  ;;  %v4023_v14 = vand.u32 2147483647, %v4010_v55  ;;  %vm4019_vm9 = vweird.f32 %v4010_v55 }
0x2d8e   :  { %v4026_v13 = vor.u32 1.1754944e-38, %v4025_v22  ;;  %vm4024_vm11 = vcmp.eq.f32.partialorder %v4023_v14, 8.507059e+37 }
0x2d8f   :  { %v4237_v54 = vpop.permute.xlu0 %4236 }
0x2d90   :  { %v4270_v36 = vmul.f32 %v10760_v61, %v4237_v54  ;;  %v4215_v48 = vpop.permute.xlu2 %4214 }
0x2d91   :  { %v4001_v11 = vpop.f32.mrf.mxu2 }
0x2d92   :  { %v8275_v10 = vpop.eup %8274  ;;  %v7910_v32 = vpack.i.bf16 %v4270_v36, %v4271_v51  ;;  %v4011_v60 = vmax.f32 %v4001_v11, 1e-30  ;;  %v4259_v51 = vmul.f32 %v10674_v62, %v4215_v48 }
0x2d93   :  { %v4015_v44 = vmul.f32 %v8275_v10, %v4010_v55  ;;  %vm4020_vm8 = vweird.f32 %v8275_v10 }
0x2d94   :  { %8276 = vrcp.f32 %v4011_v60  ;;  %7911 = vrot.lane.b32.xlu2 %v7910_v32, %s8568_s25  ;;  %vm4021_vm10 = vmor %vm4019_vm9, %vm4020_vm8  ;;  %v4039_v9 = vand.u32 2147483648, %v4011_v60  ;;  %v4037_v21 = vand.u32 2147483647, %v4011_v60  ;;  %vm4033_vm13 = vweird.f32 %v4011_v60 }
0x2d95   :  { %v4016_v20 = vsub.f32 1.0, %v4015_v44 }
0x2d96   :  { %vm4038_vm15 = vcmp.eq.f32.partialorder %v4037_v21, 8.507059e+37 }
0x2d97   :  { %v4017_v2 = vmul.f32 %v8275_v10, %v4016_v20  ;;  %v4221_v47 = vpop.permute.xlu0 %4220 }
0x2d98   :  { %v4262_v25 = vmul.f32 %v10695_v42, %v4221_v47  ;;  %v4040_v42 = vor.u32 1.1754944e-38, %v4039_v9  ;;  %v4211_v20 = vpop.permute.xlu2 %4210 }
0x2d99   :  { %v4004_v61 = vpop.f32.mrf.mxu2  ;;  %v4018_v34 = vadd.f32 %v8275_v10, %v4017_v2  ;;  %v4257_v47 = vmul.f32 %v10660_v43, %v4211_v20  ;;  %v8527_v20 = vld [vmem:[%s12307_s5 + $0x90] sm:$0xff] }
0x2d9a   :  { %v8277_v23 = vpop.eup %8276  ;;  %v4012_v35 = vmax.f32 %v4004_v61, 1e-30  ;;  %v7925_v26 = vpack.i.bf16 %v4262_v25, %v4263_v8 }
0x2d9b   :  { %v4029_v3 = vmul.f32 %v8277_v23, %v4011_v60  ;;  %v4022_v38 = vsel %vm4021_vm10, %v8275_v10, %v4018_v34  ;;  %vm4034_vm12 = vweird.f32 %v8277_v23 }
0x2d9c   :  { %8278 = vrcp.f32 %v4012_v35  ;;  %7916 = vrot.lane.b32.xlu2 %v7915_v17, %s8568_s25  ;;  %v4027_v63 = vsel %vm4024_vm11, %v4026_v13, %v4022_v38  ;;  %vm4035_vm14 = vmor %vm4033_vm13, %vm4034_vm12  ;;  %v4053_v39 = vand.u32 2147483648, %v4012_v35  ;;  %v4051_v55 = vand.u32 2147483647, %v4012_v35 }
0x2d9d   :  { %7557 = vmatmul.msk.f32.vlgmr.msra.gmra.mxu3 %vm647_vm4, %v4027_v63  ;;  %v4030_v30 = vsub.f32 1.0, %v4029_v3  ;;  %vm4047_vm1 = vweird.f32 %v4012_v35 }
0x2d9e   :  { %v4054_v10 = vor.u32 1.1754944e-38, %v4053_v39  ;;  %vm4052_vm5 = vcmp.eq.f32.partialorder %v4051_v55, 8.507059e+37  ;;  %v8516_v39 = vld [vmem:[%s12307_s5 + $0xe8] sm:$0xff]  ;;  %v8518_v55 = vld [vmem:[%s12307_s5 + $0xd8] sm:$0xff] }
0x2d9f   :  { %v4217_v31 = vpop.permute.xlu0 %4216  ;;  %v4031_v5 = vmul.f32 %v8277_v23, %v4030_v30 }
0x2da0   :  { %v4260_v15 = vmul.f32 %v10681_v59, %v4217_v31 }
0x2da1   :  { %v4007_v45 = vpop.f32.mrf.mxu2  ;;  %v4032_v29 = vadd.f32 %v8277_v23, %v4031_v5 }
0x2da2   :  { %v8279_v56 = vpop.eup %8278  ;;  %v7930_v16 = vpack.i.bf16 %v4260_v15, %v4261_v0  ;;  %v4013_v12 = vmax.f32 %v4007_v45, 1e-30 }
0x2da3   :  { %v4043_v57 = vmul.f32 %v8279_v56, %v4012_v35  ;;  %v4036_v37 = vsel %vm4035_vm14, %v8277_v23, %v4032_v29  ;;  %vm4048_vm0 = vweird.f32 %v8279_v56 }
0x2da4   :  { %8280 = vrcp.f32 %v4013_v12  ;;  %7926 = vrot.lane.b32.xlu2 %v7925_v26, %s8568_s25  ;;  %7931 = vrot.lane.b32.xlu0 %v7930_v16, %s8568_s25  ;;  %v4041_v19 = vsel %vm4038_vm15, %v4040_v42, %v4036_v37  ;;  %vm4049_vm3 = vmor %vm4047_vm1, %vm4048_vm0  ;;  %v4067_v22 = vand.u32 2147483648, %v4013_v12  ;;  %vm4061_vm7 = vweird.f32 %v4013_v12 }
0x2da5   :  { %7558 = vmatmul.msk.f32.gmra.mxu3 %vm647_vm4, %v4041_v19  ;;  %v4044_v59 = vsub.f32 1.0, %v4043_v57  ;;  %v8514_v19 = vld [vmem:[%s12307_s5 + $0xf8] sm:$0xff] }
0x2da6   :  { %v4068_v61 = vor.u32 1.1754944e-38, %v4067_v22 }
0x2da7   :  { %v4213_v7 = vpop.permute.xlu0 %4212  ;;  %v4045_v4 = vmul.f32 %v8279_v56, %v4044_v59  ;;  %v8515_v59 = vld [vmem:[%s12307_s5 + $0xf0] sm:$0xff] }
0x2da8   :  { %v4258_v52 = vmul.f32 %v10667_v46, %v4213_v7  ;;  %v4065_v46 = vand.u32 2147483647, %v4013_v12  ;;  %v8517_v7 = vld [vmem:[%s12307_s5 + $0xe0] sm:$0xff] }
0x2da9   :  { %v4046_v54 = vadd.f32 %v8279_v56, %v4045_v4 }
0x2daa   :  { %v8281_v36 = vpop.eup %8280  ;;  %v7935_v11 = vpack.i.bf16 %v4258_v52, %v4259_v51  ;;  %vm4066_vm9 = vcmp.eq.f32.partialorder %v4065_v46, 8.507059e+37  ;;  %v8519_v51 = vld [vmem:[%s12307_s5 + $0xd0] sm:$0xff] }
0x2dab   :  { %v4057_v32 = vmul.f32 %v8281_v36, %v4013_v12  ;;  %v4050_v60 = vsel %vm4049_vm3, %v8279_v56, %v4046_v54  ;;  %vm4062_vm6 = vweird.f32 %v8281_v36  ;;  %v8521_v54 = vld [vmem:[%s12307_s5 + $0xc0] sm:$0xff] }
0x2dac   :  { %7936 = vrot.lane.b32.xlu2 %v7935_v11, %s8568_s25  ;;  %v4055_v44 = vsel %vm4052_vm5, %v4054_v10, %v4050_v60  ;;  %vm4063_vm8 = vmor %vm4061_vm7, %vm4062_vm6  ;;  %v8523_v10 = vld [vmem:[%s12307_s5 + $0xb0] sm:$0xff]  ;;  %v8525_v60 = vld [vmem:[%s12307_s5 + $0xa0] sm:$0xff] }
0x2dad   :  { %7559 = vmatmul.msk.f32.gmra.mxu3 %vm647_vm4, %v4055_v44  ;;  %v4058_v18 = vsub.f32 1.0, %v4057_v32  ;;  %v8526_v44 = vld [vmem:[%s12307_s5 + $0x98] sm:$0xff] }
0x2daf   :  { %v4209_v62 = vpop.permute.xlu0 %4208  ;;  %v4059_v2 = vmul.f32 %v8281_v36, %v4058_v18  ;;  %v8529_v18 = vld [vmem:[%s12307_s5 + $0x80] sm:$0xff] }
0x2db0   :  { %v4256_v14 = vmul.f32 %v10653_v40, %v4209_v62 }
0x2db1   :  { %v4060_v41 = vadd.f32 %v8281_v36, %v4059_v2 }
0x2db2   :  { %v7940_v1 = vpack.i.bf16 %v4256_v14, %v4257_v47 }
0x2db3   :  { %v4064_v34 = vsel %vm4063_vm8, %v8281_v36, %v4060_v41  ;;  %v8522_v36 = vld [vmem:[%s12307_s5 + $0xb8] sm:$0xff] }
0x2db4   :  { %7941 = vrot.lane.b32.xlu0 %v7940_v1, %s8568_s25  ;;  %v4069_v23 = vsel %vm4066_vm9, %v4068_v61, %v4064_v34 }
0x2db5   :  { %7560 = vmatmul.msk.f32.gmra.mxu3 %vm647_vm4, %v4069_v23  ;;  %v8530_v23 = vld [vmem:[%s12303_s6 + $0x5] ss:$0 sm:$0xff] }
0x2dee   :  { %v7912_v17 = vpop.permute.xlu2 %7911 }
0x2def   :  { %v7913_v35 = vunpack.i.l.bf16 %v7912_v17  ;;  %v7914_v13 = vunpack.i.h.bf16 %v7912_v17 }
0x2df1   :  { %4336 = vmatpush.msrb.mxu2 %v7913_v35 }
0x2df3   :  { %4337 = vmatpush.msrb.mxu2 %v7914_v13 }
0x2df6   :  { %v7907_v43 = vpop.permute.xlu0 %7906  ;;  %v7917_v3 = vpop.permute.xlu2 %7916 }
0x2df7   :  { %v7908_v40 = vunpack.i.l.bf16 %v7907_v43  ;;  %v7909_v38 = vunpack.i.h.bf16 %v7907_v43  ;;  %v7918_v63 = vunpack.i.l.bf16 %v7917_v3  ;;  %v7919_v30 = vunpack.i.h.bf16 %v7917_v3 }
0x2df9   :  { %4338 = vmatpush.msrb.mxu2 %v7908_v40 }
0x2dfb   :  { %4339 = vmatpush.msrb.mxu2 %v7909_v38 }
0x2dfd   :  { %4340 = vmatpush.msrb.mxu2 %v7918_v63 }
0x2dfe   :  { %v7922_v25 = vpop.permute.xlu0 %7921  ;;  %v7927_v31 = vpop.permute.xlu2 %7926 }
0x2dff   :  { %v7923_v9 = vunpack.i.l.bf16 %v7922_v25  ;;  %4341 = vmatpush.msrb.mxu2 %v7919_v30  ;;  %v7924_v5 = vunpack.i.h.bf16 %v7922_v25  ;;  %v7928_v21 = vunpack.i.l.bf16 %v7927_v31  ;;  %v7929_v8 = vunpack.i.h.bf16 %v7927_v31 }
0x2e01   :  { %4342 = vmatpush.msrb.mxu2 %v7923_v9 }
0x2e03   :  { %4343 = vmatpush.msrb.mxu2 %v7924_v5 }
0x2e05   :  { %4344 = vmatpush.msrb.mxu2 %v7928_v21 }
0x2e06   :  { %v7937_v45 = vpop.permute.xlu2 %7936 }
0x2e07   :  { %4345 = vmatpush.msrb.mxu2 %v7929_v8  ;;  %v7938_v56 = vunpack.i.l.bf16 %v7937_v45  ;;  %v7939_v26 = vunpack.i.h.bf16 %v7937_v45 }
0x2e16   :  { %v7932_v0 = vpop.permute.xlu0 %7931 }
0x2e17   :  { %v7933_v15 = vunpack.i.l.bf16 %v7932_v0  ;;  %v7934_v29 = vunpack.i.h.bf16 %v7932_v0 }
0x2e19   :  { %4346 = vmatpush.msrb.mxu2 %v7933_v15 }
0x2e1b   :  { %4347 = vmatpush.msrb.mxu2 %v7934_v29 }
0x2e1d   :  { %4348 = vmatpush.msrb.mxu2 %v7938_v56 }
0x2e1f   :  { %4349 = vmatpush.msrb.mxu2 %v7939_v26 }
0x2e20   :  { %v4099_v16 = vpop.f32.mrf.mxu3 }
0x2e21   :  { %v4111_v57 = vmul.f32 %v10775_v50, %v4099_v16 }
0x2e26   :  { %v7942_v12 = vpop.permute.xlu0 %7941 }
0x2e27   :  { %v7943_v42 = vunpack.i.l.bf16 %v7942_v12  ;;  %v7944_v48 = vunpack.i.h.bf16 %v7942_v12 }
0x2e28   :  { %v4102_v37 = vpop.f32.mrf.mxu3 }
0x2e29   :  { %4350 = vmatpush.msrb.mxu2 %v7943_v42  ;;  %v4112_v50 = vmul.f32 %v10780_v6, %v4102_v37  ;;  %v8520_v6 = vld [vmem:[%s12307_s5 + $0xc8] sm:$0xff] }
0x2e2b   :  { %4351 = vmatpush.msrb.mxu2 %v7944_v48 }
0x2e2c   :  { %4352 = vmatmul.f32.vlgmr.msrb.gmra.mxu2 %v4111_v57 }
0x2e2d   :  { %4643 = vmatpush.msra.mxu2 %v8514_v19 }
0x2e2f   :  { %4644 = vmatpush.msra.mxu2 %v8515_v59 }
0x2e30   :  { %v4105_v4 = vpop.f32.mrf.mxu3 }
0x2e31   :  { %4645 = vmatpush.msra.mxu2 %v8516_v39  ;;  %v4113_v52 = vmul.f32 %v10785_v53, %v4105_v4  ;;  %v8524_v53 = vld [vmem:[%s12307_s5 + $0xa8] sm:$0xff] }
0x2e33   :  { %4646 = vmatpush.msra.mxu2 %v8517_v7 }
0x2e34   :  { %4355 = vmatmul.f32.gmra.mxu2 %v4112_v50 }
0x2e35   :  { %4647 = vmatpush.msra.mxu2 %v8518_v55 }
0x2e37   :  { %4648 = vmatpush.msra.mxu2 %v8519_v51 }
0x2e38   :  { %v4108_v11 = vpop.f32.mrf.mxu3 }
0x2e39   :  { %4649 = vmatpush.msra.mxu2 %v8520_v6  ;;  %v4114_v32 = vmul.f32 %v10789_v58, %v4108_v11  ;;  %v8528_v58 = vld [vmem:[%s12307_s5 + $0x88] sm:$0xff] }
0x2e3b   :  { %4650 = vmatpush.msra.mxu2 %v8521_v54 }
0x2e3c   :  { %4358 = vmatmul.f32.gmra.mxu2 %v4113_v52 }
0x2e3d   :  { %4651 = vmatpush.msra.mxu2 %v8522_v36 }
0x2e3f   :  { %4652 = vmatpush.msra.mxu2 %v8523_v10 }
0x2e41   :  { %4653 = vmatpush.msra.mxu2 %v8524_v53 }
0x2e43   :  { %4654 = vmatpush.msra.mxu2 %v8525_v60 }
0x2e44   :  { %4361 = vmatmul.f32.gmra.mxu2 %v4114_v32 }
0x2e45   :  { %4655 = vmatpush.msra.mxu2 %v8526_v44 }
0x2e47   :  { %4656 = vmatpush.msra.mxu2 %v8527_v20 }
0x2e49   :  { %4657 = vmatpush.msra.mxu2 %v8528_v58 }
0x2e4b   :  { %4658 = vmatpush.msra.mxu2 %v8529_v18 }
0x2eaf   :  { %v4353_v22 = vpop.f32.mrf.mxu2 }
0x2eb0   :  { %7577 = vmatmul.msk.f32.vlgmr.msra.gmra.mxu1 %vm132_vm2, %v4353_v22 }
0x2eb7   :  { %v4356_v62 = vpop.f32.mrf.mxu2 }
0x2eb8   :  { %7578 = vmatmul.msk.f32.gmra.mxu1 %vm132_vm2, %v4356_v62 }
0x2ebf   :  { %v4359_v2 = vpop.f32.mrf.mxu2 }
0x2ec0   :  { %7579 = vmatmul.msk.f32.vlgmr.msrb.gmra.mxu3 %vm132_vm2, %v4359_v2 }
0x2ec7   :  { %v4362_v46 = vpop.f32.mrf.mxu2 }
0x2ec8   :  { %7580 = vmatmul.msk.f32.gmra.mxu3 %vm132_vm2, %v4362_v46 }
0x2f2d   :  { %v4394_v47 = vpop.f32.mrf.mxu1 }
0x2f2e   :  { %4410 = vrot.lane.b32.xlu1 %v4394_v47, %s8567_s19 }
0x2f35   :  { %v4397_v14 = vpop.f32.mrf.mxu1 }
0x2f36   :  { %4412 = vrot.lane.b32.xlu2 %v4397_v14, %s8567_s19 }
0x2f43   :  { %v4400_v41 = vpop.f32.mrf.mxu3 }
0x2f44   :  { %4414 = vrot.lane.b32.xlu0 %v4400_v41, %s8567_s19  ;;  %v12425_v41 = vld [vmem:[#allocation14_spill] sm:$0xff] }
0x2f4b   :  { %v4403_v1 = vpop.f32.mrf.mxu3 }
0x2f4c   :  { %4416 = vrot.lane.b32.xlu1 %v4403_v1, %s8567_s19 }
0x2f90   :  { %v4413_v61 = vpop.permute.xlu2 %4412 }
0x2f91   :  { %v4423_v34 = vadd.f32 %v4413_v61, %v10542_v24 }
0x2f93   :  { %v10894_v17 = vadd.f32 %v8530_v23, %v4423_v34 }
0x2f95   :  { %4436 = vrot.lane.b32.xlu0 %v10894_v17, %s8568_s25 }
0x2fa0   :  { %v4411_v35 = vpop.permute.xlu1 %4410 }
0x2fa1   :  { %v4422_v13 = vadd.f32 %v4411_v35, %v10536_v27 }
0x2fa3   :  { %v10899_v43 = vadd.f32 %v8530_v23, %v4422_v13 }
0x2fa5   :  { %4434 = vrot.lane.b32.xlu2 %v10899_v43, %s8568_s25 }
0x2fb6   :  { %v4415_v3 = vpop.permute.xlu0 %4414 }
0x2fb7   :  { %v4424_v24 = vadd.f32 %v4415_v3, %v10548_v49 }
0x2fb9   :  { %v10904_v40 = vadd.f32 %v8530_v23, %v4424_v24 }
0x2fbb   :  { %4438 = vrot.lane.b32.xlu1 %v10904_v40, %s8568_s25 }
0x2fbe   :  { %v4417_v38 = vpop.permute.xlu1 %4416 }
0x2fbf   :  { %v4425_v63 = vadd.f32 %v4417_v38, %v10554_v28 }
0x2fc1   :  { %v10909_v30 = vadd.f32 %v8530_v23, %v4425_v63  ;;  %v12426_v23 = vld [vmem:[#allocation15_spill] sm:$0xff] }
0x2fc3   :  { %4440 = vrot.lane.b32.xlu2 %v10909_v30, %s8568_s25 }
0x2fff   :  { %v4435_v27 = vpop.permute.xlu2 %4434 }
0x3000   :  { %v4446_v25 = vsel %vm132_vm2, %v4435_v27, 0.0 }
0x3001   :  { %4447 = vadd.xlane.f32.xlu0 %v4446_v25 }
0x3007   :  { %v4437_v9 = vpop.permute.xlu0 %4436 }
0x3008   :  { %v4449_v49 = vsel %vm132_vm2, %v4437_v9, 0.0 }
0x3009   :  { %4450 = vadd.xlane.f32.xlu1 %v4449_v49 }
0x301d   :  { %v4441_v31 = vpop.permute.xlu2 %4440 }
0x301e   :  { %v4455_v5 = vsel %vm132_vm2, %v4441_v31, 0.0 }
0x301f   :  { %4456 = vadd.xlane.f32.xlu0 %v4455_v5 }
0x302d   :  { %v4439_v21 = vpop.permute.xlu1 %4438 }
0x302e   :  { %v4452_v28 = vsel %vm132_vm2, %v4439_v21, 0.0 }
0x302f   :  { %4453 = vadd.xlane.f32.xlu2 %v4452_v28 }
0x3074   :  { %v4448_v8 = vpop.xlane.xlu0 %4447 }
0x3075   :  { %v4458_v0 = vmul.f32 %v4448_v8, %v12415_v33 }
0x3077   :  { %v10919_v15 = vsub.f32 %v10899_v43, %v4458_v0 }
0x3079   :  { %v4466_v45 = vmul.f32 %v10919_v15, %v10919_v15 }
0x307b   :  { %4474 = vrot.lane.b32.xlu1 %v4466_v45, %s8568_s25 }
0x307c   :  { %v4451_v29 = vpop.xlane.xlu1 %4450 }
0x307d   :  { %v4459_v56 = vmul.f32 %v4451_v29, %v12415_v33 }
0x307f   :  { %v4463_v26 = vsub.f32 %v10894_v17, %v4459_v56 }
0x3081   :  { %v4467_v16 = vmul.f32 %v4463_v26, %v4463_v26 }
0x3083   :  { %4476 = vrot.lane.b32.xlu2 %v4467_v16, %s8568_s25 }
0x3092   :  { %v4457_v12 = vpop.xlane.xlu0 %4456 }
0x3093   :  { %v4461_v42 = vmul.f32 %v4457_v12, %v12415_v33 }
0x3095   :  { %v10929_v48 = vsub.f32 %v10909_v30, %v4461_v42 }
0x3097   :  { %v4469_v57 = vmul.f32 %v10929_v48, %v10929_v48 }
0x3099   :  { %4480 = vrot.lane.b32.xlu2 %v4469_v57, %s8568_s25 }
0x30a2   :  { %v4454_v37 = vpop.xlane.xlu2 %4453 }
0x30a3   :  { %v4460_v19 = vmul.f32 %v4454_v37, %v12415_v33 }
0x30a5   :  { %v10936_v59 = vsub.f32 %v10904_v40, %v4460_v19 }
0x30a7   :  { %v4468_v39 = vmul.f32 %v10936_v59, %v10936_v59 }
0x30a9   :  { %4478 = vrot.lane.b32.xlu0 %v4468_v39, %s8568_s25 }
0x30dd   :  { %v4477_v50 = vpop.permute.xlu2 %4476 }
0x30de   :  { %v4489_v7 = vsel %vm132_vm2, %v4477_v50, 0.0 }
0x30df   :  { %4490 = vadd.xlane.f32.xlu0 %v4489_v7 }
0x30ed   :  { %v4475_v4 = vpop.permute.xlu1 %4474 }
0x30ee   :  { %v4486_v55 = vsel %vm132_vm2, %v4475_v4, 0.0 }
0x30ef   :  { %4487 = vadd.xlane.f32.xlu1 %v4486_v55 }
0x30f3   :  { %v4481_v51 = vpop.permute.xlu2 %4480 }
0x30f4   :  { %v4495_v6 = vsel %vm132_vm2, %v4481_v51, 0.0 }
0x30f7   :  { %4496 = vadd.xlane.f32.xlu1 %v4495_v6 }
0x311b   :  { %v4479_v52 = vpop.permute.xlu0 %4478 }
0x311c   :  { %v4492_v54 = vsel %vm132_vm2, %v4479_v52, 0.0 }
0x311d   :  { %4493 = vadd.xlane.f32.xlu2 %v4492_v54 }
0x3152   :  { %v4491_v36 = vpop.xlane.xlu0 %4490 }
0x3153   :  { %v4499_v11 = vmul.f32 %v4491_v36, %v12415_v33 }
0x3155   :  { %v4503_v10 = vadd.f32 1e-05, %v4499_v11 }
0x3157   :  { %8282 = vrsqrt.f32 %v4503_v10  ;;  %vm4522_vm11 = vweird.f32 %v4503_v10 }
0x315d   :  { %v8283_v53 = vpop.eup %8282 }
0x315e   :  { %v4517_v32 = vmul.f32 %v8283_v53, %v4503_v10  ;;  %vm4523_vm10 = vweird.f32 %v8283_v53 }
0x315f   :  { %vm4524_vm12 = vmor %vm4522_vm11, %vm4523_vm10 }
0x3160   :  { %v4518_v60 = vmul.f32 %v8283_v53, %v4517_v32 }
0x3162   :  { %v4519_v44 = vmul.f32 0.5, %v4518_v60  ;;  %v4488_v20 = vpop.xlane.xlu1 %4487 }
0x3163   :  { %v4498_v58 = vmul.f32 %v4488_v20, %v12415_v33 }
0x3164   :  { %v4520_v18 = vsub.f32 1.5, %v4519_v44 }
0x3165   :  { %v4502_v22 = vadd.f32 1e-05, %v4498_v58 }
0x3166   :  { %v4521_v62 = vmul.f32 %v8283_v53, %v4520_v18 }
0x3167   :  { %8284 = vrsqrt.f32 %v4502_v22  ;;  %vm4512_vm14 = vweird.f32 %v4502_v22 }
0x3168   :  { %v4525_v2 = vsel %vm4524_vm12, %v8283_v53, %v4521_v62 }
0x3169   :  { %v4547_v46 = vmul.f32 %v4525_v2, %v4463_v26 }
0x316a   :  { %v4497_v47 = vpop.xlane.xlu1 %4496 }
0x316b   :  { %v4501_v14 = vmul.f32 %v4497_v47, %v12415_v33  ;;  %v4551_v1 = vmul.f32 %v4547_v46, %v12425_v41 }
0x316d   :  { %v8285_v61 = vpop.eup %8284  ;;  %v4505_v34 = vadd.f32 1e-05, %v4501_v14  ;;  %v4555_v35 = vadd.f32 %v4551_v1, %v12426_v23 }
0x316e   :  { %v4507_v13 = vmul.f32 %v8285_v61, %v4502_v22  ;;  %vm4513_vm13 = vweird.f32 %v8285_v61 }
0x316f   :  { %8286 = vrsqrt.f32 %v4505_v34  ;;  %4564 = vrot.lane.b32.xlu2 %v4555_v35, %s8568_s25  ;;  %vm4514_vm15 = vmor %vm4512_vm14, %vm4513_vm13  ;;  %vm4542_vm1 = vweird.f32 %v4505_v34 }
0x3170   :  { %v4508_v3 = vmul.f32 %v8285_v61, %v4507_v13 }
0x3172   :  { %v4509_v24 = vmul.f32 0.5, %v4508_v3 }
0x3174   :  { %v4510_v38 = vsub.f32 1.5, %v4509_v24 }
0x3175   :  { %v8287_v63 = vpop.eup %8286 }
0x3176   :  { %v4511_v27 = vmul.f32 %v8285_v61, %v4510_v38  ;;  %v4537_v25 = vmul.f32 %v8287_v63, %v4505_v34  ;;  %vm4543_vm0 = vweird.f32 %v8287_v63 }
0x3177   :  { %vm4544_vm3 = vmor %vm4542_vm1, %vm4543_vm0 }
0x3178   :  { %v4515_v9 = vsel %vm4514_vm15, %v8285_v61, %v4511_v27  ;;  %v4538_v49 = vmul.f32 %v8287_v63, %v4537_v25 }
0x3179   :  { %v4546_v31 = vmul.f32 %v4515_v9, %v10919_v15 }
0x317a   :  { %v4539_v5 = vmul.f32 0.5, %v4538_v49 }
0x317b   :  { %v4550_v21 = vmul.f32 %v4546_v31, %v12425_v41 }
0x317c   :  { %v4540_v28 = vsub.f32 1.5, %v4539_v5 }
0x317d   :  { %v4554_v8 = vadd.f32 %v4550_v21, %v12426_v23 }
0x317e   :  { %v4541_v0 = vmul.f32 %v8287_v63, %v4540_v28 }
0x317f   :  { %4562 = vrot.lane.b32.xlu0 %v4554_v8, %s8568_s25 }
0x3180   :  { %v4545_v45 = vsel %vm4544_vm3, %v8287_v63, %v4541_v0 }
0x3181   :  { %v4549_v29 = vmul.f32 %v4545_v45, %v10929_v48 }
0x3183   :  { %v4553_v56 = vmul.f32 %v4549_v29, %v12425_v41 }
0x3185   :  { %v4557_v26 = vadd.f32 %v4553_v56, %v12426_v23 }
0x3187   :  { %4568 = vrot.lane.b32.xlu0 %v4557_v26, %s8568_s25 }
0x3190   :  { %v4494_v15 = vpop.xlane.xlu2 %4493 }
0x3191   :  { %v4500_v16 = vmul.f32 %v4494_v15, %v12415_v33 }
0x3193   :  { %v4504_v12 = vadd.f32 1e-05, %v4500_v16 }
0x3195   :  { %8288 = vrsqrt.f32 %v4504_v12  ;;  %vm4532_vm6 = vweird.f32 %v4504_v12 }
0x319b   :  { %v8289_v42 = vpop.eup %8288 }
0x319c   :  { %v4527_v57 = vmul.f32 %v8289_v42, %v4504_v12  ;;  %vm4533_vm5 = vweird.f32 %v8289_v42 }
0x319d   :  { %vm4534_vm7 = vmor %vm4532_vm6, %vm4533_vm5 }
0x319e   :  { %v4528_v37 = vmul.f32 %v8289_v42, %v4527_v57 }
0x31a0   :  { %v4529_v19 = vmul.f32 0.5, %v4528_v37 }
0x31a2   :  { %v4530_v39 = vsub.f32 1.5, %v4529_v19 }
0x31a4   :  { %v4531_v50 = vmul.f32 %v8289_v42, %v4530_v39 }
0x31a6   :  { %v4535_v48 = vsel %vm4534_vm7, %v8289_v42, %v4531_v50 }
0x31a7   :  { %v4548_v7 = vmul.f32 %v4535_v48, %v10936_v59  ;;  %v8531_v59 = vld [vmem:[%s12303_s6 + $0x3] ss:$0 sm:$0xff] }
0x31a8   :  { %v12427_v48 = vld [vmem:[#allocation22_spill] sm:$0xff] }
0x31a9   :  { %v4552_v4 = vmul.f32 %v4548_v7, %v12425_v41 }
0x31ab   :  { %v4556_v55 = vadd.f32 %v4552_v4, %v12426_v23 }
0x31ad   :  { %4566 = vrot.lane.b32.xlu1 %v4556_v55, %s8568_s25 }
0x31c9   :  { %v4565_v6 = vpop.permute.xlu2 %4564 }
0x31f1   :  { %v4563_v51 = vpop.permute.xlu0 %4562 }
0x31f2   :  { %7581 = vmatmul.msk.f32.vlgmr.msrb.gmra.mxu0 %vm132_vm2, %v4563_v51 }
0x31f9   :  { %v4569_v54 = vpop.permute.xlu0 %4568 }
0x31fa   :  { %7582 = vmatmul.msk.f32.gmra.mxu0 %vm132_vm2, %v4565_v6 }
0x321f   :  { %v4567_v52 = vpop.permute.xlu1 %4566 }
0x3220   :  { %7583 = vmatmul.msk.f32.gmra.mxu0 %vm132_vm2, %v4567_v52 }
0x3228   :  { %7584 = vmatmul.msk.f32.gmra.mxu0 %vm132_vm2, %v4569_v54 }
0x326f   :  { %v4595_v36 = vpop.f32.mrf.mxu0 }
0x3270   :  { %v4596_v11 = vadd.f32 %v8531_v59, %v4595_v36 }
0x3272   :  { %v4611_v10 = vmul.f32 0.044715, %v4596_v11  ;;  %v4607_v14 = vmul.f32 0.5, %v4596_v11 }
0x3274   :  { %v4615_v53 = vmul.f32 %v4611_v10, %v4596_v11 }
0x3276   :  { %v4619_v32 = vmul.f32 %v4615_v53, %v4596_v11 }
0x3277   :  { %v4598_v60 = vpop.f32.mrf.mxu0 }
0x3278   :  { %v4623_v44 = vadd.f32 %v4619_v32, %v4596_v11  ;;  %v4599_v20 = vadd.f32 %v8531_v59, %v4598_v60 }
0x327a   :  { %v4627_v58 = vmul.f32 0.7978846, %v4623_v44  ;;  %v4612_v18 = vmul.f32 0.044715, %v4599_v20  ;;  %v4608_v34 = vmul.f32 0.5, %v4599_v20 }
0x327c   :  { %8290 = vtanh.f32 %v4627_v58  ;;  %v4616_v22 = vmul.f32 %v4612_v18, %v4599_v20 }
0x327e   :  { %v4620_v62 = vmul.f32 %v4616_v22, %v4599_v20 }
0x3280   :  { %v4624_v2 = vadd.f32 %v4620_v62, %v4599_v20 }
0x3282   :  { %v8291_v46 = vpop.eup %8290  ;;  %v4628_v47 = vmul.f32 0.7978846, %v4624_v2 }
0x3283   :  { %v4635_v41 = vadd.f32 1.0, %v8291_v46 }
0x3284   :  { %8292 = vtanh.f32 %v4628_v47 }
0x3285   :  { %v4639_v1 = vmul.f32 %v4635_v41, %v4607_v14 }
0x3287   :  { %4659 = vmatmul.f32.vlgmr.msra.gmra.mxu2 %v4639_v1 }
0x328a   :  { %v8293_v61 = vpop.eup %8292 }
0x328b   :  { %v4636_v23 = vadd.f32 1.0, %v8293_v61 }
0x328d   :  { %v4640_v35 = vmul.f32 %v4636_v23, %v4608_v34 }
0x328f   :  { %4662 = vmatmul.f32.gmra.mxu2 %v4640_v35 }
0x329d   :  { %v4601_v13 = vpop.f32.mrf.mxu0 }
0x329e   :  { %v4602_v3 = vadd.f32 %v8531_v59, %v4601_v13 }
0x32a0   :  { %v4613_v24 = vmul.f32 0.044715, %v4602_v3  ;;  %v4609_v45 = vmul.f32 0.5, %v4602_v3 }
0x32a2   :  { %v4617_v38 = vmul.f32 %v4613_v24, %v4602_v3 }
0x32a4   :  { %v4621_v63 = vmul.f32 %v4617_v38, %v4602_v3 }
0x32a5   :  { %v4604_v27 = vpop.f32.mrf.mxu0 }
0x32a6   :  { %v4605_v25 = vadd.f32 %v8531_v59, %v4604_v27  ;;  %v4625_v9 = vadd.f32 %v4621_v63, %v4602_v3 }
0x32a8   :  { %v4614_v49 = vmul.f32 0.044715, %v4605_v25  ;;  %v4629_v31 = vmul.f32 0.7978846, %v4625_v9  ;;  %v4610_v15 = vmul.f32 0.5, %v4605_v25 }
0x32aa   :  { %8294 = vtanh.f32 %v4629_v31  ;;  %v4618_v5 = vmul.f32 %v4614_v49, %v4605_v25 }
0x32ac   :  { %v4622_v21 = vmul.f32 %v4618_v5, %v4605_v25 }
0x32ae   :  { %v4626_v28 = vadd.f32 %v4622_v21, %v4605_v25 }
0x32b0   :  { %v8295_v8 = vpop.eup %8294  ;;  %v4630_v0 = vmul.f32 0.7978846, %v4626_v28 }
0x32b1   :  { %v4637_v29 = vadd.f32 1.0, %v8295_v8 }
0x32b2   :  { %8296 = vtanh.f32 %v4630_v0 }
0x32b3   :  { %v4641_v56 = vmul.f32 %v4637_v29, %v4609_v45 }
0x32b5   :  { %4665 = vmatmul.f32.gmra.mxu2 %v4641_v56 }
0x32b8   :  { %v8297_v26 = vpop.eup %8296 }
0x32b9   :  { %v4638_v16 = vadd.f32 1.0, %v8297_v26 }
0x32bb   :  { %v4642_v12 = vmul.f32 %v4638_v16, %v4610_v15  ;;  %v12428_v15 = vld [vmem:[#allocation23_spill] sm:$0xff] }
0x32bd   :  { %4668 = vmatmul.f32.gmra.mxu2 %v4642_v12  ;;  %v12429_v12 = vld [vmem:[#allocation24_spill] sm:$0xff] }
0x330a   :  { %v4660_v42 = vpop.f32.mrf.mxu2 }
0x330b   :  { %4676 = vrot.lane.b32.xlu0 %v4660_v42, %s8567_s19 }
0x3312   :  { %v4663_v57 = vpop.f32.mrf.mxu2 }
0x3313   :  { %4678 = vrot.lane.b32.xlu2 %v4663_v57, %s8567_s19  ;;  %v8532_v57 = vld [vmem:[%s12302_s1 + $0x10] sm:$0xff] }
0x3338   :  { %v4666_v37 = vpop.f32.mrf.mxu2 }
0x3339   :  { %4680 = vrot.lane.b32.xlu1 %v4666_v37, %s8567_s19 }
0x3340   :  { %v4669_v19 = vpop.f32.mrf.mxu2 }
0x3341   :  { %4682 = vrot.lane.b32.xlu0 %v4669_v19, %s8567_s19  ;;  %v12430_v19 = vld [vmem:[#allocation2_spill] sm:$0xff] }
0x336d   :  { %v4679_v39 = vpop.permute.xlu2 %4678 }
0x336e   :  { %v4689_v50 = vadd.f32 %v4679_v39, %v10894_v17 }
0x3370   :  { %v4693_v7 = vadd.f32 %v4689_v50, %v12427_v48 }
0x3372   :  { %4702 = vrot.lane.b32.xlu1 %v4693_v7, %s8568_s25 }
0x337d   :  { %v4677_v4 = vpop.permute.xlu0 %4676 }
0x337e   :  { %v4688_v55 = vadd.f32 %v4677_v4, %v10899_v43 }
0x3380   :  { %v4692_v51 = vadd.f32 %v4688_v55, %v12427_v48 }
0x3382   :  { %4700 = vrot.lane.b32.xlu2 %v4692_v51, %s8568_s25 }
0x33ab   :  { %v4681_v6 = vpop.permute.xlu1 %4680 }
0x33ac   :  { %v4690_v52 = vadd.f32 %v4681_v6, %v10904_v40 }
0x33ae   :  { %v4694_v54 = vadd.f32 %v4690_v52, %v12427_v48 }
0x33b0   :  { %4704 = vrot.lane.b32.xlu0 %v4694_v54, %s8568_s25 }
0x33b3   :  { %v4683_v36 = vpop.permute.xlu0 %4682 }
0x33b4   :  { %v4691_v17 = vadd.f32 %v4683_v36, %v10909_v30 }
0x33b6   :  { %v4695_v59 = vadd.f32 %v4691_v17, %v12427_v48 }
0x33b8   :  { %4706 = vrot.lane.b32.xlu2 %v4695_v59, %s8568_s25 }
0x33dc   :  { %v4701_v11 = vpop.permute.xlu2 %4700 }
0x33dd   :  { %v4712_v43 = vsel %vm132_vm2, %v4701_v11, 0.0 }
0x33de   :  { %4713 = vadd.xlane.f32.xlu1 %v4712_v43  ;;  %v8533_v43 = vld [vmem:[%s12302_s1 + $0x28] sm:$0xff] }
0x33e4   :  { %v4703_v10 = vpop.permute.xlu1 %4702 }
0x33e5   :  { %v4715_v53 = vsel %vm132_vm2, %v4703_v10, 0.0 }
0x33e6   :  { %4716 = vadd.xlane.f32.xlu0 %v4715_v53  ;;  %v12431_v53 = vld [vmem:[#allocation3_spill] sm:$0xff] }
0x3412   :  { %v4707_v40 = vpop.permute.xlu2 %4706 }
0x3413   :  { %v4721_v32 = vsel %vm132_vm2, %v4707_v40, 0.0 }
0x3414   :  { %4722 = vadd.xlane.f32.xlu1 %v4721_v32 }
0x3422   :  { %v4705_v60 = vpop.permute.xlu0 %4704 }
0x3423   :  { %v4718_v44 = vsel %vm132_vm2, %v4705_v60, 0.0 }
0x3424   :  { %4719 = vadd.xlane.f32.xlu2 %v4718_v44 }
0x3451   :  { %v4714_v30 = vpop.xlane.xlu1 %4713 }
0x3452   :  { %v4724_v20 = vmul.f32 %v4714_v30, %v12415_v33 }
0x3454   :  { %v4728_v58 = vsub.f32 %v4692_v51, %v4724_v20 }
0x3456   :  { %v4732_v18 = vmul.f32 %v4728_v58, %v4728_v58 }
0x3458   :  { %4740 = vrot.lane.b32.xlu2 %v4732_v18, %s8568_s25 }
0x3459   :  { %v4717_v22 = vpop.xlane.xlu0 %4716 }
0x345a   :  { %v4725_v62 = vmul.f32 %v4717_v22, %v12415_v33 }
0x345c   :  { %v4729_v2 = vsub.f32 %v4693_v7, %v4725_v62 }
0x345e   :  { %v4733_v46 = vmul.f32 %v4729_v2, %v4729_v2 }
0x3460   :  { %4742 = vrot.lane.b32.xlu0 %v4733_v46, %s8568_s25 }
0x3487   :  { %v4723_v47 = vpop.xlane.xlu1 %4722 }
0x3488   :  { %v4727_v14 = vmul.f32 %v4723_v47, %v12415_v33 }
0x348a   :  { %v10996_v41 = vsub.f32 %v4695_v59, %v4727_v14 }
0x348c   :  { %v4735_v1 = vmul.f32 %v10996_v41, %v10996_v41 }
0x348e   :  { %4746 = vrot.lane.b32.xlu0 %v4735_v1, %s8568_s25 }
0x3497   :  { %v4720_v61 = vpop.xlane.xlu2 %4719 }
0x3498   :  { %v4726_v34 = vmul.f32 %v4720_v61, %v12415_v33 }
0x349a   :  { %v11002_v23 = vsub.f32 %v4694_v54, %v4726_v34 }
0x349c   :  { %v4734_v35 = vmul.f32 %v11002_v23, %v11002_v23 }
0x349e   :  { %4744 = vrot.lane.b32.xlu1 %v4734_v35, %s8568_s25 }
0x34b2   :  { %v4741_v13 = vpop.permute.xlu2 %4740 }
0x34b3   :  { %v4752_v3 = vsel %vm132_vm2, %v4741_v13, 0.0 }
0x34b4   :  { %4753 = vadd.xlane.f32.xlu2 %v4752_v3  ;;  %v8534_v3 = vld [vmem:[%s12302_s1 + $0x58] sm:$0xff] }
0x34d2   :  { %v4743_v24 = vpop.permute.xlu0 %4742 }
0x34d3   :  { %v4755_v38 = vsel %vm132_vm2, %v4743_v24, 0.0 }
0x34d4   :  { %4756 = vadd.xlane.f32.xlu0 %v4755_v38 }
0x3500   :  { %v4747_v63 = vpop.permute.xlu0 %4746 }
0x3501   :  { %v4761_v27 = vsel %vm132_vm2, %v4747_v63, 0.0  ;;  %v12432_v63 = vld [vmem:[#allocation5_spill] sm:$0xff] }
0x3502   :  { %4762 = vadd.xlane.f32.xlu2 %v4761_v27 }
0x3510   :  { %v4745_v25 = vpop.permute.xlu1 %4744 }
0x3511   :  { %v4758_v9 = vsel %vm132_vm2, %v4745_v25, 0.0 }
0x3512   :  { %4759 = vadd.xlane.f32.xlu1 %v4758_v9 }
0x3527   :  { %v4754_v49 = vpop.xlane.xlu2 %4753 }
0x3528   :  { %v4764_v31 = vmul.f32 %v4754_v49, %v12415_v33 }
0x352a   :  { %v4768_v5 = vadd.f32 1e-05, %v4764_v31 }
0x352c   :  { %8298 = vrsqrt.f32 %v4768_v5  ;;  %vm4778_vm9 = vweird.f32 %v4768_v5 }
0x3532   :  { %v8299_v21 = vpop.eup %8298 }
0x3533   :  { %v4773_v28 = vmul.f32 %v8299_v21, %v4768_v5  ;;  %vm4779_vm8 = vweird.f32 %v8299_v21 }
0x3534   :  { %vm4780_vm10 = vmor %vm4778_vm9, %vm4779_vm8 }
0x3535   :  { %v4774_v8 = vmul.f32 %v8299_v21, %v4773_v28  ;;  %v8535_v28 = vld [vmem:[%s12302_s1 + $0x40] sm:$0xff] }
0x3537   :  { %v4775_v0 = vmul.f32 0.5, %v4774_v8 }
0x3539   :  { %v4776_v45 = vsub.f32 1.5, %v4775_v0  ;;  %v12433_v0 = vld [vmem:[#allocation4_spill] sm:$0xff] }
0x353b   :  { %v4777_v29 = vmul.f32 %v8299_v21, %v4776_v45 }
0x353d   :  { %v4781_v56 = vsel %vm4780_vm10, %v8299_v21, %v4777_v29 }
0x353e   :  { %v4812_v26 = vmul.f32 %v4781_v56, %v4728_v58 }
0x3540   :  { %v4816_v16 = vmul.f32 %v4812_v26, %v12428_v15 }
0x3542   :  { %v11014_v42 = vadd.f32 %v4816_v16, %v12429_v12 }
0x3544   :  { %v4876_v37 = vmul.f32 %v8532_v57, %v11014_v42 }
0x3546   :  { %v11021_v39 = vadd.f32 %v4876_v37, %v12430_v19 }
0x3547   :  { %v4757_v50 = vpop.xlane.xlu0 %4756 }
0x3548   :  { %v4765_v48 = vmul.f32 %v4757_v50, %v12415_v33  ;;  %4890 = vrot.lane.b32.xlu0 %v11021_v39, %s8568_s25 }
0x354a   :  { %v4769_v7 = vadd.f32 1e-05, %v4765_v48 }
0x354c   :  { %8300 = vrsqrt.f32 %v4769_v7  ;;  %vm4788_vm12 = vweird.f32 %v4769_v7 }
0x3552   :  { %v8301_v4 = vpop.eup %8300 }
0x3553   :  { %v4783_v55 = vmul.f32 %v8301_v4, %v4769_v7  ;;  %vm4789_vm11 = vweird.f32 %v8301_v4 }
0x3554   :  { %vm4790_vm13 = vmor %vm4788_vm12, %vm4789_vm11 }
0x3555   :  { %v4784_v51 = vmul.f32 %v8301_v4, %v4783_v55 }
0x3557   :  { %v4785_v6 = vmul.f32 0.5, %v4784_v51 }
0x3559   :  { %v4786_v52 = vsub.f32 1.5, %v4785_v6 }
0x355b   :  { %v4787_v54 = vmul.f32 %v8301_v4, %v4786_v52 }
0x355d   :  { %v4791_v36 = vsel %vm4790_vm13, %v8301_v4, %v4787_v54 }
0x355e   :  { %v4813_v17 = vmul.f32 %v4791_v36, %v4729_v2 }
0x3560   :  { %v4817_v59 = vmul.f32 %v4813_v17, %v12428_v15 }
0x3562   :  { %v11028_v11 = vadd.f32 %v4817_v59, %v12429_v12 }
0x3564   :  { %v4877_v10 = vmul.f32 %v8533_v43, %v11028_v11 }
0x3566   :  { %v11035_v40 = vadd.f32 %v4877_v10, %v12431_v53  ;;  %v11095_v53 = vld [vmem:[%s12303_s6] ss:$0 sm:$0xff] }
0x3568   :  { %4892 = vrot.lane.b32.xlu1 %v11035_v40, %s8568_s25 }
0x3575   :  { %v4763_v32 = vpop.xlane.xlu2 %4762 }
0x3576   :  { %v4767_v60 = vmul.f32 %v4763_v32, %v12415_v33 }
0x3578   :  { %v4771_v44 = vadd.f32 1e-05, %v4767_v60 }
0x357a   :  { %8302 = vrsqrt.f32 %v4771_v44  ;;  %vm4808_vm15 = vweird.f32 %v4771_v44 }
0x3580   :  { %v8303_v30 = vpop.eup %8302 }
0x3581   :  { %v4803_v20 = vmul.f32 %v8303_v30, %v4771_v44  ;;  %vm4809_vm14 = vweird.f32 %v8303_v30  ;;  %v8119_v44 = vld [vmem:[%s12303_s6 + $0x4] ss:$0 sm:$0xff] }
0x3582   :  { %vm4810_vm0 = vmor %vm4808_vm15, %vm4809_vm14 }
0x3583   :  { %v4804_v58 = vmul.f32 %v8303_v30, %v4803_v20 }
0x3585   :  { %v4805_v18 = vmul.f32 0.5, %v4804_v58  ;;  %v4760_v22 = vpop.xlane.xlu1 %4759 }
0x3586   :  { %v4766_v62 = vmul.f32 %v4760_v22, %v12415_v33 }
0x3587   :  { %v4806_v2 = vsub.f32 1.5, %v4805_v18 }
0x3588   :  { %v4770_v46 = vadd.f32 1e-05, %v4766_v62 }
0x3589   :  { %v4807_v47 = vmul.f32 %v8303_v30, %v4806_v2 }
0x358a   :  { %8304 = vrsqrt.f32 %v4770_v46  ;;  %vm4798_vm3 = vweird.f32 %v4770_v46 }
0x358b   :  { %v4811_v14 = vsel %vm4810_vm0, %v8303_v30, %v4807_v47 }
0x358c   :  { %v4815_v1 = vmul.f32 %v4811_v14, %v10996_v41 }
0x358e   :  { %v4819_v61 = vmul.f32 %v4815_v1, %v12428_v15 }
0x3590   :  { %v8305_v34 = vpop.eup %8304  ;;  %v4823_v35 = vadd.f32 %v4819_v61, %v12429_v12 }
0x3591   :  { %v4793_v13 = vmul.f32 %v8305_v34, %v4770_v46  ;;  %vm4799_vm1 = vweird.f32 %v8305_v34 }
0x3592   :  { %v4879_v24 = vmul.f32 %v8534_v3, %v4823_v35  ;;  %vm4800_vm5 = vmor %vm4798_vm3, %vm4799_vm1 }
0x3593   :  { %v4794_v38 = vmul.f32 %v8305_v34, %v4793_v13 }
0x3594   :  { %v11048_v27 = vadd.f32 %v4879_v24, %v12432_v63 }
0x3595   :  { %v4795_v25 = vmul.f32 0.5, %v4794_v38 }
0x3596   :  { %4896 = vrot.lane.b32.xlu0 %v11048_v27, %s8568_s25 }
0x3597   :  { %v4796_v41 = vsub.f32 1.5, %v4795_v25 }
0x3599   :  { %v4797_v9 = vmul.f32 %v8305_v34, %v4796_v41 }
0x359b   :  { %v4801_v49 = vsel %vm4800_vm5, %v8305_v34, %v4797_v9 }
0x359c   :  { %v4814_v31 = vmul.f32 %v4801_v49, %v11002_v23 }
0x359e   :  { %v4818_v5 = vmul.f32 %v4814_v31, %v12428_v15 }
0x35a0   :  { %v4822_v21 = vadd.f32 %v4818_v5, %v12429_v12 }
0x35a2   :  { %v4878_v8 = vmul.f32 %v8535_v28, %v4822_v21 }
0x35a4   :  { %v11059_v45 = vadd.f32 %v4878_v8, %v12433_v0 }
0x35a6   :  { %4894 = vrot.lane.b32.xlu2 %v11059_v45, %s8568_s25 }
0x35ba   :  { %v4891_v29 = vpop.permute.xlu0 %4890 }
0x35bb   :  { %v4902_v56 = vsel %vm132_vm2, %v4891_v29, 0.0 }
0x35bc   :  { %4903 = vadd.xlane.f32.xlu1 %v4902_v56 }
0x35da   :  { %v4893_v23 = vpop.permute.xlu1 %4892 }
0x35db   :  { %v4905_v26 = vsel %vm132_vm2, %v4893_v23, 0.0 }
0x35dc   :  { %4906 = vadd.xlane.f32.xlu2 %v4905_v26 }
0x3600   :  { %v4895_v15 = vpop.permute.xlu2 %4894 }
0x3601   :  { %v4908_v16 = vsel %vm132_vm2, %v4895_v15, 0.0 }
0x3602   :  { %4909 = vadd.xlane.f32.xlu0 %v4908_v16 }
0x3608   :  { %v4897_v12 = vpop.permute.xlu0 %4896 }
0x3609   :  { %v4911_v57 = vsel %vm132_vm2, %v4897_v12, 0.0 }
0x360a   :  { %4912 = vadd.xlane.f32.xlu1 %v4911_v57 }
0x362f   :  { %v4904_v37 = vpop.xlane.xlu1 %4903 }
0x3630   :  { %v4914_v19 = vmul.f32 %v4904_v37, %v12415_v33  ;;  %v11131_v37 = vld [vmem:[%s12304_s4 + $0x30] sm:$0xff] }
0x3632   :  { %v4918_v50 = vsub.f32 %v11021_v39, %v4914_v19  ;;  %v11136_v19 = vld [vmem:[%s12304_s4 + $0x20] sm:$0xff] }
0x3634   :  { %v4922_v48 = vmul.f32 %v4918_v50, %v4918_v50 }
0x3636   :  { %4930 = vrot.lane.b32.xlu2 %v4922_v48, %s8568_s25  ;;  %v11143_v48 = vld [vmem:[%s12304_s4 + $0x10] sm:$0xff] }
0x364f   :  { %v4907_v7 = vpop.xlane.xlu2 %4906 }
0x3650   :  { %v4915_v4 = vmul.f32 %v4907_v7, %v12415_v33  ;;  %v11148_v7 = vld [vmem:[%s12304_s4] sm:$0xff] }
0x3652   :  { %v11072_v55 = vsub.f32 %v11035_v40, %v4915_v4  ;;  %v8040_v4 = vpack.i.bf16 %v11148_v7, %v11143_v48 }
0x3654   :  { %v4923_v51 = vmul.f32 %v11072_v55, %v11072_v55 }
0x3656   :  { %4932 = vrot.lane.b32.xlu0 %v4923_v51, %s8568_s25 }
0x3675   :  { %v4910_v6 = vpop.xlane.xlu0 %4909 }
0x3676   :  { %v4916_v52 = vmul.f32 %v4910_v6, %v12415_v33 }
0x3678   :  { %v11079_v54 = vsub.f32 %v11059_v45, %v4916_v52 }
0x367a   :  { %v4924_v36 = vmul.f32 %v11079_v54, %v11079_v54 }
0x367c   :  { %4934 = vrot.lane.b32.xlu1 %v4924_v36, %s8568_s25 }
0x367d   :  { %v4913_v17 = vpop.xlane.xlu1 %4912 }
0x367e   :  { %v4917_v59 = vmul.f32 %v4913_v17, %v12415_v33 }
0x3680   :  { %v11086_v43 = vsub.f32 %v11048_v27, %v4917_v59 }
0x3682   :  { %v4925_v10 = vmul.f32 %v11086_v43, %v11086_v43 }
0x3684   :  { %4936 = vrot.lane.b32.xlu0 %v4925_v10, %s8568_s25  ;;  %4841 = vrot.lane.b32.xlu1 %v4823_v35, %s8568_s25 }
0x368c   :  { %5008 = vrot.lane.b32.xlu0 %v11095_v53, %s8570_s28 }
0x3690   :  { %v4931_v32 = vpop.permute.xlu2 %4930 }
0x3691   :  { %v4942_v60 = vsel %vm132_vm2, %v4931_v32, 0.0 }
0x3692   :  { %4943 = vadd.xlane.f32.xlu2 %v4942_v60 }
0x36aa   :  { %5017 = vrot.lane.b32.xlu2 %v8119_v44, %s8567_s19 }
0x36c8   :  { %v4933_v30 = vpop.permute.xlu0 %4932 }
0x36c9   :  { %v4945_v20 = vsel %vm132_vm2, %v4933_v30, 0.0 }
0x36ca   :  { %4946 = vadd.xlane.f32.xlu0 %v4945_v20 }
0x36de   :  { %4839 = vrot.lane.b32.xlu0 %v4822_v21, %s8568_s25 }
0x36ee   :  { %v4935_v58 = vpop.permute.xlu1 %4934 }
0x36ef   :  { %v4948_v18 = vsel %vm132_vm2, %v4935_v58, 0.0 }
0x36f0   :  { %4949 = vadd.xlane.f32.xlu1 %v4948_v18 }
0x36f6   :  { %v4842_v22 = vpop.permute.xlu1 %4841  ;;  %v4937_v62 = vpop.permute.xlu0 %4936 }
0x36f7   :  { %7585 = vmatpush.xpose.msk.msra.mxu3 %vm132_vm2, %v4842_v22  ;;  %v4951_v2 = vsel %vm132_vm2, %v4937_v62, 0.0 }
0x36f8   :  { %4952 = vadd.xlane.f32.xlu2 %v4951_v2 }
0x36fe   :  { %v11114_v38 = vpop.permute.xlu0 %5008 }
0x3705   :  { %v4944_v46 = vpop.xlane.xlu2 %4943 }
0x3706   :  { %v4954_v47 = vmul.f32 %v4944_v46, %v12415_v33  ;;  %v4824_v46 = vld [vmem:[%s12300_s7 + $0x7] sm:$0x1] }
0x3708   :  { %v4958_v14 = vadd.f32 1e-05, %v4954_v47 }
0x3709   :  { %4835 = vrot.lane.b32.xlu1 %v11014_v42, %s8568_s25 }
0x370a   :  { %8306 = vrsqrt.f32 %v4958_v14  ;;  %vm4968_vm7 = vweird.f32 %v4958_v14 }
0x370d   :  { %v11116_v25 = vpop.permute.xlu2 %5017 }
0x3710   :  { %v8307_v1 = vpop.eup %8306  ;;  %4837 = vrot.lane.b32.xlu2 %v11028_v11, %s8568_s25 }
0x3711   :  { %v4963_v61 = vmul.f32 %v8307_v1, %v4958_v14  ;;  %vm4969_vm6 = vweird.f32 %v8307_v1 }
0x3712   :  { %vm4970_vm8 = vmor %vm4968_vm7, %vm4969_vm6 }
0x3713   :  { %v4964_v34 = vmul.f32 %v8307_v1, %v4963_v61 }
0x3715   :  { %v4965_v35 = vmul.f32 0.5, %v4964_v34 }
0x3717   :  { %v4966_v13 = vsub.f32 1.5, %v4965_v35 }
0x3719   :  { %v4967_v3 = vmul.f32 %v8307_v1, %v4966_v13 }
0x371b   :  { %v4971_v24 = vsel %vm4970_vm8, %v8307_v1, %v4967_v3 }
0x371c   :  { %v5002_v63 = vmul.f32 %v4971_v24, %v4918_v50  ;;  %v8035_v50 = vpack.i.bf16 %v11136_v19, %v11131_v37 }
0x371e   :  { %v5011_v42 = vmul.f32 %v11114_v38, %v5002_v63 }
0x3720   :  { %v5020_v41 = vadd.f32 %v11116_v25, %v5011_v42 }
0x3722   :  { %5032 = vrot.lane.b32.xlu0 %v5020_v41, %s8568_s25 }
0x373d   :  { %v4947_v11 = vpop.xlane.xlu0 %4946 }
0x373e   :  { %v4955_v9 = vmul.f32 %v4947_v11, %v12415_v33 }
0x3740   :  { %v4959_v49 = vadd.f32 1e-05, %v4955_v9 }
0x3742   :  { %8308 = vrsqrt.f32 %v4959_v49  ;;  %vm4978_vm10 = vweird.f32 %v4959_v49 }
0x3748   :  { %v8309_v31 = vpop.eup %8308 }
0x3749   :  { %v4973_v5 = vmul.f32 %v8309_v31, %v4959_v49  ;;  %vm4979_vm9 = vweird.f32 %v8309_v31 }
0x374a   :  { %vm4980_vm11 = vmor %vm4978_vm10, %vm4979_vm9 }
0x374b   :  { %v4974_v21 = vmul.f32 %v8309_v31, %v4973_v5 }
0x374d   :  { %v4975_v28 = vmul.f32 0.5, %v4974_v21 }
0x374f   :  { %v4976_v8 = vsub.f32 1.5, %v4975_v28 }
0x3750   :  { %v4840_v0 = vpop.permute.xlu0 %4839 }
0x3751   :  { %v4977_v29 = vmul.f32 %v8309_v31, %v4976_v8  ;;  %7586 = vmatpush.xpose.msk.msra.mxu3 %vm132_vm2, %v4840_v0  ;;  %v5132_v0 = vld [vmem:[%s12302_s1 + $0x48] sm:$0xff] }
0x3752   :  { %5157 = vmatpush.msra.mxu0 %v5132_v0 }
0x3753   :  { %v4981_v56 = vsel %vm4980_vm11, %v8309_v31, %v4977_v29  ;;  %v5131_v29 = vld [vmem:[%s12302_s1 + $0x30] sm:$0xff] }
0x3754   :  { %v5003_v23 = vmul.f32 %v4981_v56, %v11072_v55  ;;  %5158 = vmatpush.msra.mxu0 %v5131_v29  ;;  %v5129_v56 = vld [vmem:[%s12302_s1] sm:$0xff] }
0x3756   :  { %v5012_v26 = vmul.f32 %v11114_v38, %v5003_v23 }
0x3758   :  { %v5021_v15 = vadd.f32 %v11116_v25, %v5012_v26 }
0x375a   :  { %5034 = vrot.lane.b32.xlu2 %v5021_v15, %s8568_s25 }
0x3763   :  { %v4950_v16 = vpop.xlane.xlu1 %4949 }
0x3764   :  { %v4956_v12 = vmul.f32 %v4950_v16, %v12415_v33 }
0x3766   :  { %v4960_v57 = vadd.f32 1e-05, %v4956_v12 }
0x3768   :  { %8310 = vrsqrt.f32 %v4960_v57  ;;  %vm4988_vm13 = vweird.f32 %v4960_v57 }
0x376b   :  { %v4953_v55 = vpop.xlane.xlu2 %4952 }
0x376c   :  { %v4957_v51 = vmul.f32 %v4953_v55, %v12415_v33 }
0x376e   :  { %v8311_v6 = vpop.eup %8310  ;;  %v4961_v52 = vadd.f32 1e-05, %v4957_v51 }
0x376f   :  { %v4983_v36 = vmul.f32 %v8311_v6, %v4960_v57  ;;  %vm4989_vm12 = vweird.f32 %v8311_v6 }
0x3770   :  { %8312 = vrsqrt.f32 %v4961_v52  ;;  %vm4990_vm14 = vmor %vm4988_vm13, %vm4989_vm12  ;;  %vm4998_vm0 = vweird.f32 %v4961_v52 }
0x3771   :  { %v4984_v17 = vmul.f32 %v8311_v6, %v4983_v36  ;;  %v5079_v36 = vld [vmem:[%s12306_s2 + $0x10] sm:$0xff] }
0x3773   :  { %v4985_v59 = vmul.f32 0.5, %v4984_v17  ;;  %v4838_v10 = vpop.permute.xlu2 %4837 }
0x3774   :  { %7587 = vmatpush.xpose.msk.msra.mxu3 %vm132_vm2, %v4838_v10  ;;  %v5078_v10 = vld [vmem:[%s12306_s2 + $0x8] sm:$0xff] }
0x3775   :  { %v4986_v32 = vsub.f32 1.5, %v4985_v59 }
0x3776   :  { %v8313_v60 = vpop.eup %8312 }
0x3777   :  { %v4987_v44 = vmul.f32 %v8311_v6, %v4986_v32  ;;  %v4993_v30 = vmul.f32 %v8313_v60, %v4961_v52  ;;  %vm4999_vm15 = vweird.f32 %v8313_v60  ;;  %v5080_v52 = vld [vmem:[%s12306_s2 + $0x18] sm:$0xff] }
0x3778   :  { %vm5000_vm1 = vmor %vm4998_vm0, %vm4999_vm15 }
0x3779   :  { %v4991_v20 = vsel %vm4990_vm14, %v8311_v6, %v4987_v44  ;;  %v4994_v58 = vmul.f32 %v8313_v60, %v4993_v30 }
0x377a   :  { %v5004_v18 = vmul.f32 %v4991_v20, %v11079_v54 }
0x377b   :  { %v4995_v22 = vmul.f32 0.5, %v4994_v58  ;;  %v4836_v62 = vpop.permute.xlu1 %4835 }
0x377c   :  { %7588 = vmatpush.xpose.msk.msra.mxu3 %vm132_vm2, %v4836_v62  ;;  %v5013_v2 = vmul.f32 %v11114_v38, %v5004_v18 }
0x377d   :  { %v4996_v47 = vsub.f32 1.5, %v4995_v22 }
0x377e   :  { %v5022_v14 = vadd.f32 %v11116_v25, %v5013_v2 }
0x377f   :  { %v4997_v1 = vmul.f32 %v8313_v60, %v4996_v47  ;;  %7589 = vmatmul.msk.f32.vlgmr.msra.gmra.mxu3 %vm132_vm2, %v4824_v46  ;;  %v11226_v46 = vld [vmem:[%s12305_s3 + $0x70] sm:$0xff]  ;;  %v11231_v47 = vld [vmem:[%s12305_s3 + $0x78] sm:$0xff] }
0x3780   :  { %5060 = vmatpush.msrb.mxu3 %v11131_v37  ;;  %5036 = vrot.lane.b32.xlu1 %v5022_v14, %s8568_s25  ;;  %v7955_v14 = vpack.i.bf16 %v11226_v46, %v11231_v47 }
0x3781   :  { %v5001_v54 = vsel %vm5000_vm1, %v8313_v60, %v4997_v1  ;;  %v5077_v60 = vld [vmem:[%s12306_s2] sm:$0xff]  ;;  %v11240_v1 = vld [vmem:[%s12305_s3 + $0x50] sm:$0xff] }
0x3782   :  { %5061 = vmatpush.msrb.mxu3 %v11136_v19  ;;  %v5005_v61 = vmul.f32 %v5001_v54, %v11086_v43  ;;  %v11245_v54 = vld [vmem:[%s12305_s3 + $0x58] sm:$0xff] }
0x3784   :  { %5062 = vmatpush.msrb.mxu3 %v11143_v48  ;;  %v5014_v34 = vmul.f32 %v11114_v38, %v5005_v61  ;;  %v7965_v61 = vpack.i.bf16 %v11240_v1, %v11245_v54 }
0x3786   :  { %5063 = vmatpush.msrb.mxu3 %v11148_v7  ;;  %v5023_v35 = vadd.f32 %v11116_v25, %v5014_v34  ;;  %v11253_v34 = vld [vmem:[%s12305_s3] sm:$0xff] }
0x3788   :  { %5038 = vrot.lane.b32.xlu0 %v5023_v35, %s8568_s25  ;;  %v11260_v35 = vld [vmem:[%s12305_s3 + $0x8] sm:$0xff] }
0x3794   :  { %v5033_v13 = vpop.permute.xlu0 %5032 }
0x3795   :  { %7590 = vmatmul.msk.f32.vlgmr.msrb.gmra.mxu3 %vm132_vm2, %v5033_v13  ;;  %v11267_v13 = vld [vmem:[%s12305_s3 + $0x10] sm:$0xff] }
0x37b4   :  { %v5035_v3 = vpop.permute.xlu2 %5034 }
0x37b5   :  { %7591 = vmatmul.msk.f32.gmra.mxu3 %vm132_vm2, %v5035_v3  ;;  %v11272_v3 = vld [vmem:[%s12305_s3 + $0x30] sm:$0xff] }
0x37f2   :  { %v5037_v24 = vpop.permute.xlu1 %5036 }
0x37f3   :  { %7592 = vmatmul.msk.f32.gmra.mxu3 %vm132_vm2, %v5037_v24  ;;  %v11279_v24 = vld [vmem:[%s12305_s3 + $0x38] sm:$0xff] }
0x37fa   :  { %v5039_v43 = vpop.permute.xlu0 %5038 }
0x37fb   :  { %7593 = vmatmul.msk.f32.gmra.mxu3 %vm132_vm2, %v5039_v43  ;;  %v11284_v43 = vld [vmem:[%s12305_s3 + $0x60] sm:$0xff] }
0x3802   :  { %v11175_v63 = vpop.f32.mrf.mxu3 }
0x3818   :  { %v5065_v38 = vpop.f32.mrf.mxu3 }
0x3819   :  { %v5066_v42 = vadd.f32 %v11095_v53, %v5065_v38  ;;  %v11289_v38 = vld [vmem:[%s12305_s3 + $0x68] sm:$0xff] }
0x381b   :  { %5085 = vrot.lane.b32.xlu2 %v5066_v42, %s8568_s25 }
0x3838   :  { %v5068_v25 = vpop.f32.mrf.mxu3 }
0x3839   :  { %v11180_v41 = vadd.f32 %v11095_v53, %v5068_v25  ;;  %v7960_v25 = vpack.i.bf16 %v11284_v43, %v11289_v38 }
0x383b   :  { %5087 = vrot.lane.b32.xlu1 %v11180_v41, %s8568_s25  ;;  %v7950_v28 = vpack.i.bf16 %v5066_v42, %v11180_v41 }
0x3875   :  { %v5086_v11 = vpop.permute.xlu2 %5085 }
0x3876   :  { %v5071_v9 = vpop.f32.mrf.mxu3  ;;  %5097 = vxpose.xlu1.b32.start [1/4] (short) (narrow) %v5086_v11, 32  ;;  %v11305_v11 = vld [vmem:[%s12305_s3 + $0x20] sm:$0xff] }
0x3877   :  { %v5072_v49 = vadd.f32 %v11095_v53, %v5071_v9  ;;  %v11310_v9 = vld [vmem:[%s12305_s3 + $0x28] sm:$0xff] }
0x3879   :  { %5089 = vrot.lane.b32.xlu0 %v5072_v49, %s8568_s25 }
0x387e   :  { %v5074_v31 = vpop.f32.mrf.mxu3 }
0x387f   :  { %v5075_v5 = vadd.f32 %v11095_v53, %v5074_v31  ;;  %v5130_v53 = vld [vmem:[%s12302_s1 + $0x18] sm:$0xff]  ;;  %v11319_v31 = vld [vmem:[%s12305_s3 + $0x40] sm:$0xff] }
0x3880   :  { %5159 = vmatpush.msra.mxu0 %v5130_v53 }
0x3881   :  { %v7945_v21 = vpack.i.bf16 %v5072_v49, %v5075_v5  ;;  %5091 = vrot.lane.b32.xlu2 %v5075_v5, %s8568_s25 }
0x3882   :  { %5160 = vmatpush.msra.mxu0 %v5129_v56 }
0x3883   :  { %7946 = vrot.lane.b32.xlu0 %v7945_v21, %s8570_s28 }
0x3889   :  { %7951 = vrot.lane.b32.xlu2 %v7950_v28, %s8570_s28 }
0x388b   :  { %7956 = vrot.lane.b32.xlu0 %v7955_v14, %s8570_s28 }
0x3891   :  { %7961 = vrot.lane.b32.xlu2 %v7960_v25, %s8570_s28 }
0x3893   :  { %7966 = vrot.lane.b32.xlu0 %v7965_v61, %s8570_s28 }
0x38ad   :  { %v5088_v8 = vpop.permute.xlu1 %5087 }
0x38ae   :  { %5098 = vxpose.xlu1.b32.cont [2/4] (short) (narrow) %v5088_v8, 32  ;;  %v5178_v8 = vld [vmem:[%s12302_s1 + $0x8] sm:$0xff] }
0x38db   :  { %v5092_v26 = vpop.permute.xlu2 %5091 }
0x38e3   :  { %v7952_v18 = vpop.permute.xlu2 %7951 }
0x38e4   :  { %v7953_v62 = vunpack.i.l.bf16 %v7952_v18  ;;  %v7954_v2 = vunpack.i.h.bf16 %v7952_v18 }
0x38eb   :  { %v5090_v23 = vpop.permute.xlu0 %5089 }
0x38ec   :  { %5099 = vxpose.xlu1.b32.cont [3/4] (short) (narrow) %v5090_v23, 32 }
0x38f4   :  { %5100 = vxpose.xlu1.b32.end [4/4] (short) (narrow) %v5092_v26, 32  ;;  %v5179_v26 = vld [vmem:[%s12302_s1 + $0x20] sm:$0xff] }
0x38f5   :  { %v7947_v30 = vpop.permute.xlu0 %7946 }
0x38f6   :  { %v7948_v58 = vunpack.i.l.bf16 %v7947_v30  ;;  %v7949_v22 = vunpack.i.h.bf16 %v7947_v30  ;;  %v7990_v30 = vpack.i.bf16 %v11253_v34, %v11260_v35 }
0x38fd   :  { %v11356_v53 = vpop.permute.xlu0 %7956 }
0x38fe   :  { %v7959_v56 = vunpack.i.h.bf16 %v11356_v53  ;;  %v7958_v23 = vunpack.i.l.bf16 %v11356_v53 }
0x3900   :  { %5319 = vmatpush.msra.mxu3 %v7958_v23 }
0x3902   :  { %5320 = vmatpush.msra.mxu3 %v7959_v56 }
0x3980   :  { %v5113_v15 = vpop.trf.xlu1 }
0x3981   :  { %7594 = vmatmul.msk.f32.vlgmr.msra.gmra.mxu0 %vm132_vm2, %v5113_v15 }
0x3988   :  { %v5114_v16 = vpop.trf.xlu1 }
0x3989   :  { %7595 = vmatmul.msk.f32.gmra.mxu0 %vm132_vm2, %v5114_v16 }
0x3990   :  { %v5115_v12 = vpop.trf.xlu1 }
0x3991   :  { %7596 = vmatmul.msk.f32.gmra.mxu0 %vm132_vm2, %v5115_v12  ;;  %v11372_v12 = vpop.permute.xlu2 %7961 }
0x3998   :  { %v5116_v57 = vpop.trf.xlu1 }
0x3999   :  { %7597 = vmatmul.msk.f32.gmra.mxu0 %vm132_vm2, %v5116_v57  ;;  %v11374_v57 = vpop.permute.xlu0 %7966 }
0x39fe   :  { %v5162_v55 = vpop.f32.mrf.mxu0 }
0x39ff   :  { %v5174_v20 = vmul.f32 %v5162_v55, %v5077_v60  ;;  %v7964_v55 = vunpack.i.h.bf16 %v11372_v12 }
0x3a06   :  { %v5165_v51 = vpop.f32.mrf.mxu0 }
0x3a07   :  { %v5175_v44 = vmul.f32 %v5165_v51, %v5078_v10  ;;  %v7963_v51 = vunpack.i.l.bf16 %v11372_v12 }
0x3a09   :  { %5321 = vmatpush.msra.mxu3 %v7963_v51 }
0x3a0b   :  { %5322 = vmatpush.msra.mxu3 %v7964_v55 }
0x3a0e   :  { %v5168_v6 = vpop.f32.mrf.mxu0 }
0x3a0f   :  { %v5176_v32 = vmul.f32 %v5168_v6, %v5079_v36  ;;  %v7968_v6 = vunpack.i.l.bf16 %v11374_v57  ;;  %v12371_v36 = vunpack.i.h.bf16 %v11374_v57 }
0x3a11   :  { %5323 = vmatpush.msra.mxu3 %v7968_v6 }
0x3a13   :  { %5324 = vmatpush.msra.mxu3 %v12371_v36 }
0x3a16   :  { %v5171_v17 = vpop.f32.mrf.mxu0 }
0x3a17   :  { %v5177_v59 = vmul.f32 %v5171_v17, %v5080_v52  ;;  %v5180_v52 = vld [vmem:[%s12302_s1 + $0x38] sm:$0xff] }
0x3a19   :  { %5202 = vmatpush.msrb.mxu2 %v5177_v59 }
0x3a1b   :  { %5203 = vmatpush.msrb.mxu2 %v5176_v32 }
0x3a1d   :  { %5204 = vmatpush.msrb.mxu2 %v5175_v44  ;;  %v5181_v44 = vld [vmem:[%s12302_s1 + $0x50] sm:$0xff] }
0x3a1f   :  { %5205 = vmatpush.msrb.mxu2 %v5174_v20 }
0x3a20   :  { %7598 = vmatmul.msk.f32.vlgmr.msrb.gmra.mxu2 %vm132_vm2, %v5066_v42  ;;  %v7975_v42 = vpack.i.bf16 %v11272_v3, %v11279_v24 }
0x3a21   :  { %5510 = vmatpush.msra.mxu2 %v7948_v58 }
0x3a22   :  { %7976 = vrot.lane.b32.xlu0 %v7975_v42, %s8570_s28 }
0x3a23   :  { %5511 = vmatpush.msra.mxu2 %v7949_v22 }
0x3a25   :  { %5512 = vmatpush.msra.mxu2 %v7953_v62 }
0x3a27   :  { %5513 = vmatpush.msra.mxu2 %v7954_v2 }
0x3a28   :  { %7599 = vmatmul.msk.f32.gmra.mxu2 %vm132_vm2, %v11180_v41  ;;  %v11300_v41 = vld [vmem:[%s12305_s3 + $0x18] sm:$0xff] }
0x3a29   :  { %v7985_v28 = vpack.i.bf16 %v11267_v13, %v11300_v41 }
0x3a30   :  { %7600 = vmatmul.msk.f32.gmra.mxu2 %vm132_vm2, %v5072_v49  ;;  %v7980_v49 = vpack.i.bf16 %v11305_v11, %v11310_v9 }
0x3a32   :  { %7981 = vrot.lane.b32.xlu0 %v7980_v49, %s8570_s28 }
0x3a38   :  { %7601 = vmatmul.msk.f32.gmra.mxu2 %vm132_vm2, %v5075_v5  ;;  %v11324_v5 = vld [vmem:[%s12305_s3 + $0x48] sm:$0xff] }
0x3a39   :  { %v7970_v21 = vpack.i.bf16 %v11319_v31, %v11324_v5 }
0x3a3a   :  { %7986 = vrot.lane.b32.xlu0 %v7985_v28, %s8570_s28 }
0x3a3b   :  { %7971 = vrot.lane.b32.xlu2 %v7970_v21, %s8570_s28 }
0x3a40   :  { %7606 = vmatmul.msk.f32.vlgmr.msra.gmra.mxu2 %vm132_vm2, %v11253_v34 }
0x3a48   :  { %7607 = vmatmul.msk.f32.gmra.mxu2 %vm132_vm2, %v11260_v35 }
0x3a50   :  { %7608 = vmatmul.msk.f32.gmra.mxu2 %vm132_vm2, %v11267_v13 }
0x3a58   :  { %7609 = vmatmul.msk.f32.gmra.mxu2 %vm132_vm2, %v11300_v41 }
0x3a60   :  { %7610 = vmatmul.msk.f32.gmra.mxu2 %vm132_vm2, %v11305_v11 }
0x3a68   :  { %7611 = vmatmul.msk.f32.gmra.mxu2 %vm132_vm2, %v11310_v9 }
0x3a70   :  { %7612 = vmatmul.msk.f32.gmra.mxu2 %vm132_vm2, %v11272_v3 }
0x3a78   :  { %7613 = vmatmul.msk.f32.gmra.mxu2 %vm132_vm2, %v11279_v24 }
0x3a80   :  { %7614 = vmatmul.msk.f32.gmra.mxu2 %vm132_vm2, %v11319_v31 }
0x3a88   :  { %7615 = vmatmul.msk.f32.gmra.mxu2 %vm132_vm2, %v11324_v5 }
0x3a90   :  { %7616 = vmatmul.msk.f32.gmra.mxu2 %vm132_vm2, %v11240_v1 }
0x3a94   :  { %v11415_v22 = vpop.permute.xlu0 %7976 }
0x3a95   :  { %v11394_v10 = vpop.permute.xlu2 %7971  ;;  %v12366_v62 = vunpack.i.h.bf16 %v11415_v22  ;;  %v12368_v2 = vunpack.i.l.bf16 %v11415_v22  ;;  %v12437_v12 = vunpack.i.l.bf16 %v11415_v22 }
0x3a96   :  { %v12369_v32 = vunpack.i.h.bf16 %v11394_v10  ;;  %v12370_v60 = vunpack.i.l.bf16 %v11394_v10  ;;  %v12436_v53 = vunpack.i.h.bf16 %v11394_v10 }
0x3a98   :  { %7617 = vmatmul.msk.f32.gmra.mxu2 %vm132_vm2, %v11245_v54  ;;  %5325 = vmatpush.msra.mxu3 %v12370_v60 }
0x3a9a   :  { %5326 = vmatpush.msra.mxu3 %v12369_v32 }
0x3a9c   :  { %5327 = vmatpush.msra.mxu3 %v12368_v2 }
0x3a9e   :  { %5328 = vmatpush.msra.mxu3 %v12366_v62 }
0x3aa0   :  { %7618 = vmatmul.msk.f32.gmra.mxu2 %vm132_vm2, %v11284_v43 }
0x3aa3   :  { %v5207_v0 = vpop.f32.mrf.mxu2 }
0x3aa4   :  { %v11354_v29 = vadd.f32 %v5207_v0, %v5178_v8  ;;  %v11425_v61 = vpop.permute.xlu0 %7981 }
0x3aa5   :  { %v12363_v42 = vunpack.i.h.bf16 %v11425_v61  ;;  %v12365_v25 = vunpack.i.l.bf16 %v11425_v61 }
0x3aa6   :  { %5219 = vmax.xlane.f32.xlu2 %v11354_v29 }
0x3aa7   :  { %5329 = vmatpush.msra.mxu3 %v12365_v25 }
0x3aa8   :  { %7619 = vmatmul.msk.f32.gmra.mxu2 %vm132_vm2, %v11289_v38 }
0x3aa9   :  { %5330 = vmatpush.msra.mxu3 %v12363_v42 }
0x3aab   :  { %v5210_v15 = vpop.f32.mrf.mxu2 }
0x3aac   :  { %v11370_v16 = vadd.f32 %v5210_v15, %v5179_v26  ;;  %v11433_v21 = vpop.permute.xlu0 %7986 }
0x3aad   :  { %v12367_v28 = vunpack.i.h.bf16 %v11433_v21  ;;  %v12364_v8 = vunpack.i.l.bf16 %v11433_v21 }
0x3aae   :  { %5221 = vmax.xlane.f32.xlu0 %v11370_v16 }
0x3aaf   :  { %5331 = vmatpush.msra.mxu3 %v12364_v8 }
0x3ab0   :  { %7620 = vmatmul.msk.f32.gmra.mxu2 %vm132_vm2, %v11226_v46 }
0x3ab1   :  { %5332 = vmatpush.msra.mxu3 %v12367_v28 }
0x3ab3   :  { %v5213_v17 = vpop.f32.mrf.mxu2 }
0x3ab4   :  { %v11390_v59 = vadd.f32 %v5213_v17, %v5180_v52 }
0x3ab6   :  { %5223 = vmax.xlane.f32.xlu1 %v11390_v59 }
0x3ab8   :  { %7621 = vmatmul.msk.f32.gmra.mxu2 %vm132_vm2, %v11231_v47 }
0x3abb   :  { %v5216_v20 = vpop.f32.mrf.mxu2 }
0x3abc   :  { %v5217_v58 = vadd.f32 %v5216_v20, %v5181_v44 }
0x3abe   :  { %5225 = vmax.xlane.f32.xlu0 %v5217_v58  ;;  %7991 = vrot.lane.b32.xlu2 %v7990_v30, %s8570_s28 }
0x3ac3   :  { %v11413_v18 = vpop.f32.mrf.mxu2 }
0x3acb   :  { %v11423_v14 = vpop.f32.mrf.mxu2 }
0x3ad3   :  { %v5521_v49 = vpop.f32.mrf.mxu2 }
0x3adb   :  { %v5524_v0 = vpop.f32.mrf.mxu2 }
0x3ae3   :  { %v5527_v26 = vpop.f32.mrf.mxu2 }
0x3aeb   :  { %v5530_v15 = vpop.f32.mrf.mxu2 }
0x3af3   :  { %v5533_v52 = vpop.f32.mrf.mxu2 }
0x3afb   :  { %v5536_v17 = vpop.f32.mrf.mxu2 }
0x3b03   :  { %v5539_v44 = vpop.f32.mrf.mxu2 }
0x3b04   :  { %5595 = vrot.lane.b32.xlu0 %v5539_v44, %s8567_s19 }
0x3b0b   :  { %v5542_v30 = vpop.f32.mrf.mxu2 }
0x3b0c   :  { %5597 = vrot.lane.b32.xlu2 %v5542_v30, %s8567_s19 }
0x3b13   :  { %v5545_v20 = vpop.f32.mrf.mxu2 }
0x3b14   :  { %5599 = vrot.lane.b32.xlu0 %v5545_v20, %s8567_s19 }
0x3b19   :  { %v5220_v42 = vpop.xlane.xlu2 %5219 }
0x3b1a   :  { %v5227_v8 = vsub.f32 %v11354_v29, %v5220_v42 }
0x3b1b   :  { %v5548_v25 = vpop.f32.mrf.mxu2 }
0x3b1c   :  { %v5231_v62 = vmul.f32 1.442695, %v5227_v8  ;;  %5601 = vrot.lane.b32.xlu2 %v5548_v25, %s8567_s19 }
0x3b1e   :  { %8314 = vpow2.f32 %v5231_v62 }
0x3b21   :  { %v5222_v28 = vpop.xlane.xlu0 %5221  ;;  %v11446_v2 = vpop.permute.xlu2 %7991 }
0x3b22   :  { %v5228_v32 = vsub.f32 %v11370_v16, %v5222_v28  ;;  %v12372_v44 = vunpack.i.h.bf16 %v11446_v2  ;;  %v7993_v30 = vunpack.i.l.bf16 %v11446_v2 }
0x3b23   :  { %v5551_v60 = vpop.f32.mrf.mxu2 }
0x3b24   :  { %v5233_v36 = vmul.f32 1.442695, %v5228_v32  ;;  %5603 = vrot.lane.b32.xlu2 %v5551_v60, %s8567_s19  ;;  %5333 = vmatpush.msra.mxu3 %v7993_v30  ;;  %v11454_v29 = vpop.eup %8314 }
0x3b26   :  { %5334 = vmatpush.msra.mxu3 %v12372_v44  ;;  %8316 = vpow2.f32 %v5233_v36 }
0x3b27   :  { %5335 = vmatmul.f32.vlgmr.msra.gmra.mxu3 %v11454_v29 }
0x3b29   :  { %v5224_v16 = vpop.xlane.xlu1 %5223 }
0x3b2a   :  { %v5229_v62 = vsub.f32 %v11390_v59, %v5224_v16 }
0x3b2b   :  { %v5554_v42 = vpop.f32.mrf.mxu2 }
0x3b2c   :  { %v5235_v25 = vmul.f32 1.442695, %v5229_v62  ;;  %5605 = vrot.lane.b32.xlu2 %v5554_v42, %s8567_s19  ;;  %v11461_v32 = vpop.eup %8316 }
0x3b2e   :  { %8318 = vpow2.f32 %v5235_v25 }
0x3b2f   :  { %5338 = vmatmul.f32.gmra.mxu3 %v11461_v32 }
0x3b31   :  { %v5226_v60 = vpop.xlane.xlu0 %5225 }
0x3b32   :  { %v5230_v28 = vsub.f32 %v5217_v58, %v5226_v60 }
0x3b33   :  { %v5557_v8 = vpop.f32.mrf.mxu2 }
0x3b34   :  { %v5237_v20 = vmul.f32 1.442695, %v5230_v28  ;;  %5607 = vrot.lane.b32.xlu0 %v5557_v8, %s8567_s19  ;;  %v11465_v44 = vpop.eup %8318 }
0x3b36   :  { %8320 = vpow2.f32 %v5237_v20 }
0x3b37   :  { %5341 = vmatmul.f32.gmra.mxu3 %v11465_v44 }
0x3b3b   :  { %v5560_v36 = vpop.f32.mrf.mxu2 }
0x3b3c   :  { %5591 = vrot.lane.b32.xlu0 %v5533_v52, %s8567_s19  ;;  %5609 = vrot.lane.b32.xlu2 %v5560_v36, %s8567_s19  ;;  %v11470_v59 = vpop.eup %8320 }
0x3b3f   :  { %5344 = vmatmul.f32.gmra.mxu3 %v11470_v59 }
0x3b44   :  { %5587 = vrot.lane.b32.xlu0 %v5527_v26, %s8567_s19  ;;  %5593 = vrot.lane.b32.xlu2 %v5536_v17, %s8567_s19 }
0x3b4c   :  { %5583 = vrot.lane.b32.xlu0 %v5521_v49, %s8567_s19  ;;  %5589 = vrot.lane.b32.xlu2 %v5530_v15, %s8567_s19 }
0x3b54   :  { %5579 = vrot.lane.b32.xlu0 %v11413_v18, %s8567_s19  ;;  %5585 = vrot.lane.b32.xlu2 %v5524_v0, %s8567_s19 }
0x3b5c   :  { %5581 = vrot.lane.b32.xlu2 %v11423_v14, %s8567_s19 }
0x3b66   :  { %v5598_v58 = vpop.permute.xlu2 %5597 }
0x3b76   :  { %v5602_v52 = vpop.permute.xlu2 %5601  ;;  %v5596_v16 = vpop.permute.xlu0 %5595 }
0x3b77   :  { %v5638_v17 = vmul.f32 %v5602_v52, %v11245_v54  ;;  %v11495_v54 = vld [vmem:[%s12306_s2 + $0x20] sm:$0xff]  ;;  %v5635_v48 = vmul.f32 %v5596_v16, %v11319_v31 }
0x3b78   :  { %5436 = vmatpush.msrb.mxu0 %v11495_v54 }
0x3b7e   :  { %v5604_v62 = vpop.permute.xlu2 %5603 }
0x3b7f   :  { %v5639_v49 = vmul.f32 %v5604_v62, %v11284_v43 }
0x3b86   :  { %v5600_v42 = vpop.permute.xlu0 %5599  ;;  %v5606_v26 = vpop.permute.xlu2 %5605 }
0x3b87   :  { %v5637_v15 = vmul.f32 %v5600_v42, %v11240_v1  ;;  %v5640_v25 = vmul.f32 %v5606_v26, %v11289_v38 }
0x3b89   :  { %v8005_v18 = vpack.i.bf16 %v5637_v15, %v5638_v17  ;;  %v8000_v60 = vpack.i.bf16 %v5639_v49, %v5640_v25 }
0x3b8b   :  { %8006 = vrot.lane.b32.xlu1 %v8005_v18, %s8568_s25  ;;  %8001 = vrot.lane.b32.xlu0 %v8000_v60, %s8568_s25 }
0x3b93   :  { %8041 = vrot.lane.b32.xlu1 %v8040_v4, %s8567_s19  ;;  %v5636_v4 = vmul.f32 %v5598_v58, %v11324_v5 }
0x3b95   :  { %v8010_v62 = vpack.i.bf16 %v5635_v48, %v5636_v4 }
0x3b96   :  { %v5610_v14 = vpop.permute.xlu2 %5609 }
0x3b97   :  { %v5642_v1 = vmul.f32 %v5610_v14, %v11231_v47 }
0x3b9e   :  { %v5594_v43 = vpop.permute.xlu2 %5593 }
0x3b9f   :  { %v5634_v36 = vmul.f32 %v5594_v43, %v11279_v24 }
0x3ba6   :  { %v5608_v38 = vpop.permute.xlu0 %5607  ;;  %v5590_v47 = vpop.permute.xlu2 %5589 }
0x3ba7   :  { %v5641_v0 = vmul.f32 %v5608_v38, %v11226_v46  ;;  %v5632_v5 = vmul.f32 %v5590_v47, %v11310_v9 }
0x3ba9   :  { %v7995_v28 = vpack.i.bf16 %v5641_v0, %v5642_v1 }
0x3baa   :  { %v5336_v8 = vpop.f32.mrf.mxu3 }
0x3bab   :  { %v5348_v20 = vmax.f32 %v5336_v8, 1e-30  ;;  %7996 = vrot.lane.b32.xlu2 %v7995_v28, %s8568_s25 }
0x3bad   :  { %8322 = vrcp.f32 %v5348_v20  ;;  %v5363_v58 = vand.u32 2147483648, %v5348_v20  ;;  %v5361_v15 = vand.u32 2147483647, %v5348_v20  ;;  %vm5357_vm5 = vweird.f32 %v5348_v20 }
0x3bae   :  { %v5592_v7 = vpop.permute.xlu0 %5591  ;;  %v5586_v18 = vpop.permute.xlu2 %5585 }
0x3baf   :  { %v5633_v52 = vmul.f32 %v5592_v7, %v11272_v3  ;;  %v5364_v38 = vor.u32 1.1754944e-38, %v5363_v58  ;;  %vm5362_vm7 = vcmp.eq.f32.partialorder %v5361_v15, 8.507059e+37  ;;  %v5630_v48 = vmul.f32 %v5586_v18, %v11300_v41 }
0x3bb1   :  { %v8015_v42 = vpack.i.bf16 %v5633_v52, %v5634_v36 }
0x3bb2   :  { %v5339_v26 = vpop.f32.mrf.mxu3 }
0x3bb3   :  { %v8323_v46 = vpop.eup %8322  ;;  %v5349_v17 = vmax.f32 %v5339_v26, 1e-30  ;;  %8011 = vrot.lane.b32.xlu2 %v8010_v62, %s8568_s25  ;;  %8016 = vrot.lane.b32.xlu0 %v8015_v42, %s8568_s25 }
0x3bb4   :  { %v5353_v49 = vmul.f32 %v8323_v46, %v5348_v20  ;;  %vm5358_vm3 = vweird.f32 %v8323_v46 }
0x3bb5   :  { %8324 = vrcp.f32 %v5349_v17  ;;  %vm5359_vm6 = vmor %vm5357_vm5, %vm5358_vm3  ;;  %v5377_v20 = vand.u32 2147483648, %v5349_v17  ;;  %v5375_v36 = vand.u32 2147483647, %v5349_v17  ;;  %vm5371_vm9 = vweird.f32 %v5349_v17 }
0x3bb6   :  { %v5354_v31 = vsub.f32 1.0, %v5353_v49  ;;  %v5588_v16 = vpop.permute.xlu0 %5587  ;;  %v5582_v49 = vpop.permute.xlu2 %5581 }
0x3bb7   :  { %v5631_v24 = vmul.f32 %v5588_v16, %v11305_v11  ;;  %vm5376_vm11 = vcmp.eq.f32.partialorder %v5375_v36, 8.507059e+37 }
0x3bb8   :  { %v5355_v3 = vmul.f32 %v8323_v46, %v5354_v31 }
0x3bb9   :  { %v8020_v25 = vpack.i.bf16 %v5631_v24, %v5632_v5  ;;  %v5628_v24 = vmul.f32 %v5582_v49, %v11260_v35 }
0x3bba   :  { %v5342_v60 = vpop.f32.mrf.mxu3  ;;  %v5356_v14 = vadd.f32 %v8323_v46, %v5355_v3 }
0x3bbb   :  { %v8325_v1 = vpop.eup %8324  ;;  %v5350_v43 = vmax.f32 %v5342_v60, 1e-30  ;;  %8021 = vrot.lane.b32.xlu2 %v8020_v25, %s8568_s25 }
0x3bbc   :  { %v5367_v0 = vmul.f32 %v8325_v1, %v5349_v17  ;;  %v5360_v28 = vsel %vm5359_vm6, %v8323_v46, %v5356_v14  ;;  %vm5372_vm8 = vweird.f32 %v8325_v1  ;;  %v5378_v46 = vor.u32 1.1754944e-38, %v5377_v20 }
0x3bbd   :  { %8326 = vrcp.f32 %v5350_v43  ;;  %v5365_v11 = vsel %vm5362_vm7, %v5364_v38, %v5360_v28  ;;  %vm5373_vm10 = vmor %vm5371_vm9, %vm5372_vm8  ;;  %v5391_v58 = vand.u32 2147483648, %v5350_v43  ;;  %v5389_v15 = vand.u32 2147483647, %v5350_v43 }
0x3bbe   :  { %v5584_v9 = vpop.permute.xlu0 %5583  ;;  %7602 = vmatmul.msk.f32.vlgmr.msrb.gmra.mxu0 %vm647_vm4, %v5365_v11  ;;  %v5368_v8 = vsub.f32 1.0, %v5367_v0  ;;  %vm5385_vm13 = vweird.f32 %v5350_v43 }
0x3bbf   :  { %v5629_v7 = vmul.f32 %v5584_v9, %v11267_v13  ;;  %v5392_v14 = vor.u32 1.1754944e-38, %v5391_v58  ;;  %vm5390_vm15 = vcmp.eq.f32.partialorder %v5389_v15, 8.507059e+37  ;;  %v11527_v58 = vld [vmem:[%s12304_s4 + $0x70] sm:$0xff] }
0x3bc0   :  { %v5369_v4 = vmul.f32 %v8325_v1, %v5368_v8 }
0x3bc1   :  { %v8025_v52 = vpack.i.bf16 %v5629_v7, %v5630_v48 }
0x3bc2   :  { %v5345_v47 = vpop.f32.mrf.mxu3  ;;  %v5370_v62 = vadd.f32 %v8325_v1, %v5369_v4 }
0x3bc3   :  { %v8327_v42 = vpop.eup %8326  ;;  %v5351_v26 = vmax.f32 %v5345_v47, 1e-30  ;;  %8026 = vrot.lane.b32.xlu0 %v8025_v52, %s8568_s25 }
0x3bc4   :  { %v5381_v31 = vmul.f32 %v8327_v42, %v5350_v43  ;;  %v5374_v16 = vsel %vm5373_vm10, %v8325_v1, %v5370_v62  ;;  %vm5386_vm12 = vweird.f32 %v8327_v42 }
0x3bc5   :  { %8328 = vrcp.f32 %v5351_v26  ;;  %v5379_v13 = vsel %vm5376_vm11, %v5378_v46, %v5374_v16  ;;  %vm5387_vm14 = vmor %vm5385_vm13, %vm5386_vm12  ;;  %v5405_v0 = vand.u32 2147483648, %v5351_v26  ;;  %v5403_v43 = vand.u32 2147483647, %v5351_v26 }
0x3bc6   :  { %v5580_v41 = vpop.permute.xlu0 %5579  ;;  %7603 = vmatmul.msk.f32.gmra.mxu0 %vm647_vm4, %v5379_v13  ;;  %v5382_v5 = vsub.f32 1.0, %v5381_v31  ;;  %vm5399_vm1 = vweird.f32 %v5351_v26 }
0x3bc7   :  { %v5627_v17 = vmul.f32 %v5580_v41, %v11253_v34  ;;  %v5406_v9 = vor.u32 1.1754944e-38, %v5405_v0  ;;  %vm5404_vm5 = vcmp.eq.f32.partialorder %v5403_v43, 8.507059e+37 }
0x3bc8   :  { %v5383_v3 = vmul.f32 %v8327_v42, %v5382_v5 }
0x3bc9   :  { %v8030_v25 = vpack.i.bf16 %v5627_v17, %v5628_v24 }
0x3bca   :  { %v5384_v18 = vadd.f32 %v8327_v42, %v5383_v3  ;;  %v11532_v3 = vld [vmem:[%s12304_s4 + $0x60] sm:$0xff] }
0x3bcb   :  { %v8329_v60 = vpop.eup %8328  ;;  %8031 = vrot.lane.b32.xlu2 %v8030_v25, %s8568_s25  ;;  %8036 = vrot.lane.b32.xlu0 %v8035_v50, %s8567_s19  ;;  %v8095_v25 = vpack.i.bf16 %v11532_v3, %v11527_v58 }
0x3bcc   :  { %v5395_v35 = vmul.f32 %v8329_v60, %v5351_v26  ;;  %v5388_v1 = vsel %vm5387_vm14, %v8327_v42, %v5384_v18  ;;  %vm5400_vm0 = vweird.f32 %v8329_v60 }
0x3bcd   :  { %v5393_v34 = vsel %vm5390_vm15, %v5392_v14, %v5388_v1  ;;  %vm5401_vm3 = vmor %vm5399_vm1, %vm5400_vm0 }
0x3bce   :  { %7604 = vmatmul.msk.f32.gmra.mxu0 %vm647_vm4, %v5393_v34  ;;  %v5396_v38 = vsub.f32 1.0, %v5395_v35 }
0x3bd0   :  { %v5397_v28 = vmul.f32 %v8329_v60, %v5396_v38 }
0x3bd2   :  { %v5398_v11 = vadd.f32 %v8329_v60, %v5397_v28 }
0x3bd4   :  { %v5402_v8 = vsel %vm5401_vm3, %v8329_v60, %v5398_v11 }
0x3bd5   :  { %v5407_v48 = vsel %vm5404_vm5, %v5406_v9, %v5402_v8 }
0x3bd6   :  { %7605 = vmatmul.msk.f32.gmra.mxu0 %vm647_vm4, %v5407_v48 }
0x3bfd   :  { %v8002_v50 = vpop.permute.xlu0 %8001  ;;  %v8007_v4 = vpop.permute.xlu1 %8006 }
0x3bfe   :  { %v8003_v20 = vunpack.i.l.bf16 %v8002_v50  ;;  %v8004_v36 = vunpack.i.h.bf16 %v8002_v50  ;;  %v8008_v52 = vunpack.i.l.bf16 %v8007_v4  ;;  %v8009_v62 = vunpack.i.h.bf16 %v8007_v4 }
0x3c05   :  { %v7997_v37 = vpop.permute.xlu2 %7996  ;;  %v8042_v34 = vpop.permute.xlu1 %8041 }
0x3c06   :  { %v7998_v19 = vunpack.i.l.bf16 %v7997_v37  ;;  %v7999_v7 = vunpack.i.h.bf16 %v7997_v37  ;;  %v8043_v28 = vunpack.i.l.bf16 %v8042_v34  ;;  %v8044_v43 = vunpack.i.h.bf16 %v8042_v34 }
0x3c08   :  { %5707 = vmatpush.msrb.mxu3 %v7998_v19 }
0x3c0a   :  { %5708 = vmatpush.msrb.mxu3 %v7999_v7  ;;  %v12442_v7 = vunpack.i.h.bf16 %v11433_v21 }
0x3c0c   :  { %5709 = vmatpush.msrb.mxu3 %v8003_v20 }
0x3c0d   :  { %v8012_v47 = vpop.permute.xlu2 %8011 }
0x3c0e   :  { %5710 = vmatpush.msrb.mxu3 %v8004_v36  ;;  %v8013_v42 = vunpack.i.l.bf16 %v8012_v47  ;;  %v8014_v26 = vunpack.i.h.bf16 %v8012_v47 }
0x3c10   :  { %5711 = vmatpush.msrb.mxu3 %v8008_v52 }
0x3c12   :  { %5712 = vmatpush.msrb.mxu3 %v8009_v62 }
0x3c14   :  { %5713 = vmatpush.msrb.mxu3 %v8013_v42 }
0x3c15   :  { %v8022_v31 = vpop.permute.xlu2 %8021 }
0x3c16   :  { %5714 = vmatpush.msrb.mxu3 %v8014_v26  ;;  %v8023_v13 = vunpack.i.l.bf16 %v8022_v31  ;;  %v8024_v41 = vunpack.i.h.bf16 %v8022_v31 }
0x3c25   :  { %v8017_v46 = vpop.permute.xlu0 %8016  ;;  %v8032_v17 = vpop.permute.xlu2 %8031 }
0x3c26   :  { %v8018_v49 = vunpack.i.l.bf16 %v8017_v46  ;;  %v8019_v16 = vunpack.i.h.bf16 %v8017_v46  ;;  %v8033_v18 = vunpack.i.l.bf16 %v8032_v17  ;;  %v8034_v14 = vunpack.i.h.bf16 %v8032_v17 }
0x3c28   :  { %5715 = vmatpush.msrb.mxu3 %v8018_v49 }
0x3c2a   :  { %5716 = vmatpush.msrb.mxu3 %v8019_v16 }
0x3c2c   :  { %5717 = vmatpush.msrb.mxu3 %v8023_v13 }
0x3c2e   :  { %5718 = vmatpush.msrb.mxu3 %v8024_v41 }
0x3c35   :  { %v8027_v5 = vpop.permute.xlu0 %8026 }
0x3c36   :  { %v8028_v24 = vunpack.i.l.bf16 %v8027_v5  ;;  %v8029_v15 = vunpack.i.h.bf16 %v8027_v5 }
0x3c38   :  { %5719 = vmatpush.msrb.mxu3 %v8028_v24 }
0x3c3a   :  { %5720 = vmatpush.msrb.mxu3 %v8029_v15 }
0x3c3b   :  { %v5438_v60 = vpop.f32.mrf.mxu0 }
0x3c3c   :  { %v5450_v35 = vmul.f32 %v11454_v29, %v5438_v60  ;;  %5721 = vmatpush.msrb.mxu3 %v8033_v18  ;;  %v6258_v29 = vld [vmem:[%s12304_s4 + $0x50] sm:$0xff] }
0x3c3d   :  { %v8037_v1 = vpop.permute.xlu0 %8036 }
0x3c3e   :  { %5722 = vmatpush.msrb.mxu3 %v8034_v14  ;;  %v8039_v38 = vunpack.i.h.bf16 %v8037_v1  ;;  %v8038_v0 = vunpack.i.l.bf16 %v8037_v1 }
0x3c3f   :  { %5723 = vmatmul.f32.vlgmr.msrb.gmra.mxu3 %v5450_v35 }
0x3c40   :  { %5776 = vmatpush.msra.mxu0 %v8038_v0 }
0x3c42   :  { %5777 = vmatpush.msra.mxu0 %v8039_v38 }
0x3c43   :  { %v5441_v11 = vpop.f32.mrf.mxu0 }
0x3c44   :  { %v5451_v9 = vmul.f32 %v11461_v32, %v5441_v11  ;;  %5778 = vmatpush.msra.mxu0 %v8043_v28  ;;  %v6257_v32 = vld [vmem:[%s12304_s4 + $0x40] sm:$0xff] }
0x3c46   :  { %5779 = vmatpush.msra.mxu0 %v8044_v43 }
0x3c47   :  { %5726 = vmatmul.f32.gmra.mxu3 %v5451_v9 }
0x3c48   :  { %6293 = vmatpush.msrb.mxu0 %v11527_v58 }
0x3c4a   :  { %6294 = vmatpush.msrb.mxu0 %v11532_v3 }
0x3c4b   :  { %v5444_v8 = vpop.f32.mrf.mxu0 }
0x3c4c   :  { %6295 = vmatpush.msrb.mxu0 %v6258_v29  ;;  %v5452_v48 = vmul.f32 %v11465_v44, %v5444_v8 }
0x3c4e   :  { %6296 = vmatpush.msrb.mxu0 %v6257_v32 }
0x3c4f   :  { %5729 = vmatmul.f32.gmra.mxu3 %v5452_v48 }
0x3c53   :  { %v5447_v37 = vpop.f32.mrf.mxu0 }
0x3c54   :  { %v5453_v19 = vmul.f32 %v11470_v59, %v5447_v37  ;;  %v12434_v59 = vunpack.i.h.bf16 %v11374_v57  ;;  %v12440_v57 = vunpack.i.h.bf16 %v11425_v61 }
0x3c57   :  { %5732 = vmatmul.f32.gmra.mxu3 %v5453_v19 }
0x3cc2   :  { %v5724_v50 = vpop.f32.mrf.mxu3 }
0x3cc3   :  { %7622 = vmatmul.msk.f32.vlgmr.msra.gmra.mxu0 %vm132_vm2, %v5724_v50 }
0x3cc4   :  { %6460 = vmatpush.msra.mxu0 %v7958_v23  ;;  %v12435_v23 = vunpack.i.l.bf16 %v11394_v10  ;;  %v12441_v10 = vunpack.i.l.bf16 %v11433_v21 }
0x3cc6   :  { %6461 = vmatpush.msra.mxu0 %v7959_v56 }
0x3cc8   :  { %6462 = vmatpush.msra.mxu0 %v7963_v51  ;;  %v12439_v51 = vunpack.i.l.bf16 %v11425_v61 }
0x3cca   :  { %6463 = vmatpush.msra.mxu0 %v7964_v55  ;;  %v5727_v44 = vpop.f32.mrf.mxu3  ;;  %v12438_v55 = vunpack.i.h.bf16 %v11415_v22  ;;  %v12443_v22 = vunpack.i.h.bf16 %v11446_v2  ;;  %v8536_v2 = vld [vmem:[%s12303_s6 + $0x4] ss:$0 sm:$0xff] }
0x3ccb   :  { %7623 = vmatmul.msk.f32.gmra.mxu0 %vm132_vm2, %v5727_v44 }
0x3ccc   :  { %6464 = vmatpush.msra.mxu0 %v7968_v6 }
0x3cce   :  { %6465 = vmatpush.msra.mxu0 %v12434_v59 }
0x3cd0   :  { %6466 = vmatpush.msra.mxu0 %v12435_v23 }
0x3cd2   :  { %6467 = vmatpush.msra.mxu0 %v12436_v53  ;;  %v5730_v56 = vpop.f32.mrf.mxu3 }
0x3cd3   :  { %7624 = vmatmul.msk.f32.gmra.mxu0 %vm132_vm2, %v5730_v56 }
0x3cd4   :  { %6468 = vmatpush.msra.mxu0 %v12437_v12 }
0x3cd6   :  { %6469 = vmatpush.msra.mxu0 %v12438_v55 }
0x3cd8   :  { %6470 = vmatpush.msra.mxu0 %v12439_v51 }
0x3cda   :  { %6471 = vmatpush.msra.mxu0 %v12440_v57  ;;  %v5733_v6 = vpop.f32.mrf.mxu3 }
0x3cdb   :  { %7625 = vmatmul.msk.f32.gmra.mxu0 %vm132_vm2, %v5733_v6 }
0x3cdc   :  { %6472 = vmatpush.msra.mxu0 %v12441_v10 }
0x3cde   :  { %6473 = vmatpush.msra.mxu0 %v12442_v7 }
0x3ce0   :  { %6474 = vmatpush.msra.mxu0 %v7993_v30 }
0x3ce2   :  { %6475 = vmatpush.msra.mxu0 %v12443_v22 }
0x3d40   :  { %v5781_v20 = vpop.f32.mrf.mxu0 }
0x3d41   :  { %5797 = vrot.lane.b32.xlu2 %v5781_v20, %s8567_s19 }
0x3d48   :  { %v5784_v61 = vpop.f32.mrf.mxu0 }
0x3d49   :  { %5799 = vrot.lane.b32.xlu0 %v5784_v61, %s8567_s19 }
0x3d50   :  { %v5787_v4 = vpop.f32.mrf.mxu0 }
0x3d51   :  { %5801 = vrot.lane.b32.xlu1 %v5787_v4, %s8567_s19 }
0x3d58   :  { %v5790_v36 = vpop.f32.mrf.mxu0 }
0x3d59   :  { %5803 = vrot.lane.b32.xlu2 %v5790_v36, %s8567_s19 }
0x3d9b   :  { %v5798_v21 = vpop.permute.xlu2 %5797 }
0x3d9c   :  { %v5809_v52 = vadd.f32 %v5798_v21, %v11021_v39 }
0x3d9e   :  { %v11592_v30 = vadd.f32 %v8536_v2, %v5809_v52 }
0x3da0   :  { %5821 = vrot.lane.b32.xlu0 %v11592_v30, %s8568_s25 }
0x3db3   :  { %v5804_v47 = vpop.permute.xlu2 %5803 }
0x3db4   :  { %v5812_v62 = vadd.f32 %v5804_v47, %v11048_v27 }
0x3db6   :  { %v11597_v42 = vadd.f32 %v8536_v2, %v5812_v62 }
0x3db8   :  { %5827 = vrot.lane.b32.xlu0 %v11597_v42, %s8568_s25 }
0x3dbb   :  { %v5800_v26 = vpop.permute.xlu0 %5799 }
0x3dbc   :  { %v5810_v39 = vadd.f32 %v5800_v26, %v11035_v40 }
0x3dbe   :  { %v11602_v46 = vadd.f32 %v8536_v2, %v5810_v39 }
0x3dc0   :  { %5823 = vrot.lane.b32.xlu1 %v11602_v46, %s8568_s25 }
0x3dc3   :  { %v5802_v49 = vpop.permute.xlu1 %5801 }
0x3dc4   :  { %v5811_v31 = vadd.f32 %v5802_v49, %v11059_v45 }
0x3dc6   :  { %v11607_v16 = vadd.f32 %v8536_v2, %v5811_v31 }
0x3dc8   :  { %5825 = vrot.lane.b32.xlu2 %v11607_v16, %s8568_s25 }
0x3e12   :  { %v5822_v27 = vpop.permute.xlu0 %5821 }
0x3e13   :  { %v5833_v13 = vsel %vm132_vm2, %v5822_v27, 0.0 }
0x3e14   :  { %5834 = vadd.xlane.f32.xlu1 %v5833_v13 }
0x3e22   :  { %v5826_v41 = vpop.permute.xlu2 %5825 }
0x3e23   :  { %v5839_v40 = vsel %vm132_vm2, %v5826_v41, 0.0 }
0x3e24   :  { %5840 = vadd.xlane.f32.xlu0 %v5839_v40 }
0x3e2a   :  { %v5828_v17 = vpop.permute.xlu0 %5827 }
0x3e2b   :  { %v5842_v45 = vsel %vm132_vm2, %v5828_v17, 0.0 }
0x3e32   :  { %v5824_v5 = vpop.permute.xlu1 %5823 }
0x3e33   :  { %v5836_v24 = vsel %vm132_vm2, %v5824_v5, 0.0 }
0x3e34   :  { %5837 = vadd.xlane.f32.xlu2 %v5836_v24 }
0x3e3c   :  { %5843 = vadd.xlane.f32.xlu2 %v5842_v45 }
0x3e87   :  { %v5835_v15 = vpop.xlane.xlu1 %5834 }
0x3e88   :  { %v5845_v18 = vmul.f32 %v5835_v15, %v12415_v33 }
0x3e8a   :  { %v11617_v60 = vsub.f32 %v11592_v30, %v5845_v18 }
0x3e8c   :  { %v5853_v14 = vmul.f32 %v11617_v60, %v11617_v60 }
0x3e8e   :  { %5861 = vrot.lane.b32.xlu1 %v5853_v14, %s8568_s25 }
0x3e97   :  { %v5841_v35 = vpop.xlane.xlu0 %5840 }
0x3e98   :  { %v5847_v1 = vmul.f32 %v5841_v35, %v12415_v33 }
0x3e9a   :  { %v11624_v34 = vsub.f32 %v11607_v16, %v5847_v1 }
0x3e9c   :  { %v5855_v38 = vmul.f32 %v11624_v34, %v11624_v34 }
0x3e9e   :  { %5865 = vrot.lane.b32.xlu2 %v5855_v38, %s8568_s25 }
0x3ea7   :  { %v5838_v0 = vpop.xlane.xlu2 %5837 }
0x3ea8   :  { %v5846_v28 = vmul.f32 %v5838_v0, %v12415_v33 }
0x3eaa   :  { %v11631_v43 = vsub.f32 %v11602_v46, %v5846_v28 }
0x3eac   :  { %v5854_v11 = vmul.f32 %v11631_v43, %v11631_v43 }
0x3eae   :  { %5863 = vrot.lane.b32.xlu0 %v5854_v11, %s8568_s25 }
0x3eaf   :  { %v5844_v9 = vpop.xlane.xlu2 %5843 }
0x3eb0   :  { %v5848_v29 = vmul.f32 %v5844_v9, %v12415_v33 }
0x3eb2   :  { %v11638_v8 = vsub.f32 %v11597_v42, %v5848_v29 }
0x3eb4   :  { %v5856_v48 = vmul.f32 %v11638_v8, %v11638_v8 }
0x3eb6   :  { %5867 = vrot.lane.b32.xlu0 %v5856_v48, %s8568_s25 }
0x3ef8   :  { %v5866_v37 = vpop.permute.xlu2 %5865 }
0x3ef9   :  { %v5879_v19 = vsel %vm132_vm2, %v5866_v37, 0.0 }
0x3efa   :  { %5880 = vadd.xlane.f32.xlu2 %v5879_v19 }
0x3f00   :  { %v5862_v32 = vpop.permute.xlu1 %5861 }
0x3f01   :  { %v5873_v50 = vsel %vm132_vm2, %v5862_v32, 0.0 }
0x3f02   :  { %5874 = vadd.xlane.f32.xlu1 %v5873_v50 }
0x3f12   :  { %5944 = vrot.lane.b32.xlu2 %v8536_v2, %s8570_s28 }
0x3f20   :  { %v5864_v44 = vpop.permute.xlu0 %5863 }
0x3f21   :  { %v5876_v59 = vsel %vm132_vm2, %v5864_v44, 0.0 }
0x3f22   :  { %5877 = vadd.xlane.f32.xlu0 %v5876_v59 }
0x3f28   :  { %v5868_v23 = vpop.permute.xlu0 %5867 }
0x3f29   :  { %v5882_v53 = vsel %vm132_vm2, %v5868_v23, 0.0 }
0x3f2a   :  { %5883 = vadd.xlane.f32.xlu1 %v5882_v53 }
0x3f36   :  { %5937 = vrot.lane.b32.xlu0 %v8536_v2, %s8568_s25 }
0x3f6d   :  { %v5881_v12 = vpop.xlane.xlu2 %5880 }
0x3f6e   :  { %v5887_v51 = vmul.f32 %v5881_v12, %v12415_v33  ;;  %v5954_v12 = vld [vmem:[%s12304_s4 + $0x38] sm:$0xff] }
0x3f6f   :  { %5989 = vmatpush.msrb.mxu1 %v5954_v12 }
0x3f70   :  { %v5891_v6 = vadd.f32 1e-05, %v5887_v51  ;;  %v5952_v51 = vld [vmem:[%s12304_s4 + $0x18] sm:$0xff] }
0x3f72   :  { %vm5919_vm9 = vweird.f32 %v5891_v6 }
0x3f75   :  { %v5875_v56 = vpop.xlane.xlu1 %5874  ;;  %v5945_v38 = vpop.permute.xlu2 %5944 }
0x3f76   :  { %v5885_v55 = vmul.f32 %v5875_v56, %v12415_v33 }
0x3f78   :  { %v5889_v57 = vadd.f32 1e-05, %v5885_v55  ;;  %v5953_v55 = vld [vmem:[%s12304_s4 + $0x28] sm:$0xff] }
0x3f79   :  { %5990 = vmatpush.msrb.mxu1 %v5953_v55 }
0x3f7a   :  { %8330 = vrsqrt.f32 %v5889_v57  ;;  %vm5899_vm8 = vweird.f32 %v5889_v57 }
0x3f7b   :  { %8332 = vrsqrt.f32 %v5891_v6  ;;  %5991 = vmatpush.msrb.mxu1 %v5952_v51 }
0x3f80   :  { %v8331_v10 = vpop.eup %8330 }
0x3f81   :  { %v8333_v7 = vpop.eup %8332  ;;  %v5894_v22 = vmul.f32 %v8331_v10, %v5889_v57  ;;  %vm5900_vm6 = vweird.f32 %v8331_v10  ;;  %v8537_v57 = vld [vmem:[%s12302_s1 + $0x48] sm:$0xff] }
0x3f82   :  { %v5914_v20 = vmul.f32 %v8333_v7, %v5891_v6  ;;  %vm5920_vm7 = vweird.f32 %v8333_v7  ;;  %vm5901_vm10 = vmor %vm5899_vm8, %vm5900_vm6  ;;  %v8538_v6 = vld [vmem:[%s12302_s1 + $0x30] sm:$0xff] }
0x3f83   :  { %v5895_v61 = vmul.f32 %v8331_v10, %v5894_v22  ;;  %vm5921_vm11 = vmor %vm5919_vm9, %vm5920_vm7  ;;  %v6057_v22 = vld [vmem:[%s12307_s5 + $0x78] sm:$0xff] }
0x3f84   :  { %v5915_v4 = vmul.f32 %v8333_v7, %v5914_v20  ;;  %v6056_v20 = vld [vmem:[%s12307_s5 + $0x70] sm:$0xff]  ;;  %6058 = vmatpush.msra.mxu3 %v6057_v22 }
0x3f85   :  { %v5896_v52 = vmul.f32 0.5, %v5895_v61  ;;  %v6055_v61 = vld [vmem:[%s12307_s5 + $0x68] sm:$0xff] }
0x3f86   :  { %v5916_v47 = vmul.f32 0.5, %v5915_v4  ;;  %6059 = vmatpush.msra.mxu3 %v6056_v20  ;;  %v6054_v4 = vld [vmem:[%s12307_s5 + $0x60] sm:$0xff] }
0x3f87   :  { %v5897_v62 = vsub.f32 1.5, %v5896_v52 }
0x3f88   :  { %v5917_v26 = vsub.f32 1.5, %v5916_v47  ;;  %6060 = vmatpush.msra.mxu3 %v6055_v61  ;;  %v6053_v47 = vld [vmem:[%s12307_s5 + $0x58] sm:$0xff] }
0x3f89   :  { %v5898_v27 = vmul.f32 %v8331_v10, %v5897_v62  ;;  %v6052_v62 = vld [vmem:[%s12307_s5 + $0x50] sm:$0xff] }
0x3f8a   :  { %v5918_v41 = vmul.f32 %v8333_v7, %v5917_v26  ;;  %6061 = vmatpush.msra.mxu3 %v6054_v4  ;;  %v6050_v26 = vld [vmem:[%s12307_s5 + $0x40] sm:$0xff] }
0x3f8b   :  { %v5902_v24 = vsel %vm5901_vm10, %v8331_v10, %v5898_v27  ;;  %v8539_v10 = vld [vmem:[%s12302_s1 + $0x18] sm:$0xff]  ;;  %v6046_v27 = vld [vmem:[%s12307_s5 + $0x20] sm:$0xff] }
0x3f8c   :  { %v5922_v45 = vsel %vm5921_vm11, %v8333_v7, %v5918_v41  ;;  %v5933_v18 = vmul.f32 %v5902_v24, %v11617_v60  ;;  %v8540_v7 = vld [vmem:[%s12302_s1] sm:$0xff]  ;;  %6062 = vmatpush.msra.mxu3 %v6053_v47  ;;  %v6044_v41 = vld [vmem:[%s12307_s5 + $0x10] sm:$0xff] }
0x3f8d   :  { %v5935_v1 = vmul.f32 %v5922_v45, %v11624_v34  ;;  %v8120_v24 = vld [vmem:[%s12303_s6 + $0x2] ss:$0 sm:$0xff] }
0x3f8e   :  { %6063 = vmatpush.msra.mxu3 %v6052_v62 }
0x3f95   :  { %v5878_v36 = vpop.xlane.xlu0 %5877 }
0x3f96   :  { %v5886_v21 = vmul.f32 %v5878_v36, %v12415_v33 }
0x3f98   :  { %v5890_v2 = vadd.f32 1e-05, %v5886_v21 }
0x3f9a   :  { %8334 = vrsqrt.f32 %v5890_v2  ;;  %vm5909_vm13 = vweird.f32 %v5890_v2 }
0x3f9d   :  { %v5884_v39 = vpop.xlane.xlu1 %5883 }
0x3f9e   :  { %v5888_v49 = vmul.f32 %v5884_v39, %v12415_v33  ;;  %v6049_v39 = vld [vmem:[%s12307_s5 + $0x38] sm:$0xff] }
0x3fa0   :  { %v8335_v31 = vpop.eup %8334  ;;  %v5892_v13 = vadd.f32 1e-05, %v5888_v49  ;;  %v6048_v49 = vld [vmem:[%s12307_s5 + $0x30] sm:$0xff] }
0x3fa1   :  { %v5904_v40 = vmul.f32 %v8335_v31, %v5890_v2  ;;  %vm5910_vm12 = vweird.f32 %v8335_v31 }
0x3fa2   :  { %8336 = vrsqrt.f32 %v5892_v13  ;;  %vm5911_vm14 = vmor %vm5909_vm13, %vm5910_vm12  ;;  %vm5929_vm0 = vweird.f32 %v5892_v13 }
0x3fa3   :  { %v5905_v5 = vmul.f32 %v8335_v31, %v5904_v40  ;;  %v6043_v40 = vld [vmem:[%s12307_s5 + $0x8] sm:$0xff] }
0x3fa5   :  { %v5906_v17 = vmul.f32 0.5, %v5905_v5  ;;  %v6042_v5 = vld [vmem:[%s12307_s5] sm:$0xff] }
0x3fa7   :  { %v5907_v15 = vsub.f32 1.5, %v5906_v17 }
0x3fa8   :  { %v8337_v14 = vpop.eup %8336  ;;  %v5938_v35 = vpop.permute.xlu0 %5937 }
0x3fa9   :  { %v5908_v0 = vmul.f32 %v8335_v31, %v5907_v15  ;;  %v5924_v28 = vmul.f32 %v8337_v14, %v5892_v13  ;;  %v5940_v11 = vmul.f32 %v5938_v35, %v5933_v18  ;;  %v5942_v9 = vmul.f32 %v5938_v35, %v5935_v1  ;;  %v6045_v13 = vld [vmem:[%s12307_s5 + $0x18] sm:$0xff] }
0x3faa   :  { %vm5930_vm15 = vweird.f32 %v8337_v14 }
0x3fab   :  { %v5925_v29 = vmul.f32 %v8337_v14, %v5924_v28  ;;  %v5912_v48 = vsel %vm5911_vm14, %v8335_v31, %v5908_v0  ;;  %v5947_v37 = vadd.f32 %v5945_v38, %v5940_v11  ;;  %v5949_v32 = vadd.f32 %v5945_v38, %v5942_v9  ;;  %vm5931_vm1 = vmor %vm5929_vm0, %vm5930_vm15  ;;  %v6047_v31 = vld [vmem:[%s12307_s5 + $0x28] sm:$0xff] }
0x3fac   :  { %v5934_v19 = vmul.f32 %v5912_v48, %v11631_v43 }
0x3fad   :  { %v5926_v50 = vmul.f32 0.5, %v5925_v29  ;;  %5961 = vrot.lane.b32.xlu1 %v5947_v37, %s8568_s25  ;;  %5965 = vrot.lane.b32.xlu2 %v5949_v32, %s8568_s25 }
0x3fae   :  { %v5941_v60 = vmul.f32 %v5938_v35, %v5934_v19 }
0x3faf   :  { %v5927_v34 = vsub.f32 1.5, %v5926_v50 }
0x3fb0   :  { %v5948_v44 = vadd.f32 %v5945_v38, %v5941_v60 }
0x3fb1   :  { %v5928_v59 = vmul.f32 %v8337_v14, %v5927_v34 }
0x3fb2   :  { %5963 = vrot.lane.b32.xlu0 %v5948_v44, %s8568_s25 }
0x3fb3   :  { %v5932_v23 = vsel %vm5931_vm1, %v8337_v14, %v5928_v59 }
0x3fb4   :  { %v5936_v53 = vmul.f32 %v5932_v23, %v11638_v8  ;;  %v5951_v8 = vld [vmem:[%s12304_s4 + $0x8] sm:$0xff] }
0x3fb5   :  { %5992 = vmatpush.msrb.mxu1 %v5951_v8 }
0x3fb6   :  { %v5943_v56 = vmul.f32 %v5938_v35, %v5936_v53 }
0x3fb7   :  { %6382 = vmatpush.msra.mxu1 %v8537_v57 }
0x3fb8   :  { %v5950_v43 = vadd.f32 %v5945_v38, %v5943_v56 }
0x3fb9   :  { %6383 = vmatpush.msra.mxu1 %v8538_v6 }
0x3fba   :  { %5967 = vrot.lane.b32.xlu0 %v5950_v43, %s8568_s25 }
0x3fbb   :  { %6384 = vmatpush.msra.mxu1 %v8539_v10 }
0x3fbd   :  { %6385 = vmatpush.msra.mxu1 %v8540_v7 }
0x4007   :  { %v5966_v52 = vpop.permute.xlu2 %5965 }
0x401f   :  { %v5962_v36 = vpop.permute.xlu1 %5961 }
0x4020   :  { %7626 = vmatmul.msk.f32.vlgmr.msrb.gmra.mxu1 %vm132_vm2, %v5962_v36 }
0x4021   :  { %6576 = vmatpush.msrb.mxu1 %v11495_v54  ;;  %v6051_v54 = vld [vmem:[%s12307_s5 + $0x48] sm:$0xff] }
0x4022   :  { %6064 = vmatpush.msra.mxu3 %v6051_v54  ;;  %v8121_v54 = vld [vmem:[%s12303_s6 + $0x6] ss:$0 sm:$0xff] }
0x4023   :  { %6110 = vrot.lane.b32.xlu2 %v8121_v54, %s8567_s19 }
0x4024   :  { %v5964_v21 = vpop.permute.xlu0 %5963  ;;  %6065 = vmatpush.msra.mxu3 %v6050_v26 }
0x4026   :  { %6066 = vmatpush.msra.mxu3 %v6049_v39 }
0x4028   :  { %7627 = vmatmul.msk.f32.gmra.mxu1 %vm132_vm2, %v5964_v21  ;;  %6067 = vmatpush.msra.mxu3 %v6048_v49 }
0x402a   :  { %6068 = vmatpush.msra.mxu3 %v6047_v31 }
0x402c   :  { %v5968_v2 = vpop.permute.xlu0 %5967  ;;  %6069 = vmatpush.msra.mxu3 %v6046_v27 }
0x402e   :  { %6070 = vmatpush.msra.mxu3 %v6045_v13 }
0x4030   :  { %7628 = vmatmul.msk.f32.gmra.mxu1 %vm132_vm2, %v5966_v52  ;;  %6071 = vmatpush.msra.mxu3 %v6044_v41 }
0x4032   :  { %6072 = vmatpush.msra.mxu3 %v6043_v40 }
0x4034   :  { %6073 = vmatpush.msra.mxu3 %v6042_v5 }
0x4038   :  { %7629 = vmatmul.msk.f32.gmra.mxu1 %vm132_vm2, %v5968_v2 }
0x407d   :  { %v6111_v27 = vpop.permute.xlu2 %6110 }
0x409d   :  { %v5994_v17 = vpop.f32.mrf.mxu1 }
0x409e   :  { %v5995_v45 = vadd.f32 %v8120_v24, %v5994_v17 }
0x40a0   :  { %v6010_v15 = vmul.f32 0.044715, %v5995_v45  ;;  %v6006_v60 = vmul.f32 0.5, %v5995_v45 }
0x40a2   :  { %v6014_v18 = vmul.f32 %v6010_v15, %v5995_v45 }
0x40a4   :  { %v6018_v14 = vmul.f32 %v6014_v18, %v5995_v45 }
0x40a5   :  { %v5997_v35 = vpop.f32.mrf.mxu1 }
0x40a6   :  { %v6022_v1 = vadd.f32 %v6018_v14, %v5995_v45  ;;  %v5998_v38 = vadd.f32 %v8120_v24, %v5997_v35 }
0x40a8   :  { %v6026_v0 = vmul.f32 0.7978846, %v6022_v1  ;;  %v6011_v28 = vmul.f32 0.044715, %v5998_v38  ;;  %v6007_v8 = vmul.f32 0.5, %v5998_v38 }
0x40aa   :  { %8338 = vtanh.f32 %v6026_v0  ;;  %v6015_v11 = vmul.f32 %v6011_v28, %v5998_v38 }
0x40ac   :  { %v6019_v9 = vmul.f32 %v6015_v11, %v5998_v38 }
0x40ad   :  { %v6000_v29 = vpop.f32.mrf.mxu1 }
0x40ae   :  { %v6001_v48 = vadd.f32 %v8120_v24, %v6000_v29  ;;  %v6023_v37 = vadd.f32 %v6019_v9, %v5998_v38 }
0x40b0   :  { %v8339_v19 = vpop.eup %8338  ;;  %v6012_v32 = vmul.f32 0.044715, %v6001_v48  ;;  %v6027_v50 = vmul.f32 0.7978846, %v6023_v37  ;;  %v6008_v4 = vmul.f32 0.5, %v6001_v48 }
0x40b1   :  { %v6034_v34 = vadd.f32 1.0, %v8339_v19 }
0x40b2   :  { %8340 = vtanh.f32 %v6027_v50  ;;  %v6016_v44 = vmul.f32 %v6012_v32, %v6001_v48 }
0x40b3   :  { %v6038_v59 = vmul.f32 %v6034_v34, %v6006_v60 }
0x40b4   :  { %v6020_v23 = vmul.f32 %v6016_v44, %v6001_v48 }
0x40b5   :  { %v6003_v53 = vpop.f32.mrf.mxu1  ;;  %6074 = vmatmul.f32.vlgmr.msra.gmra.mxu3 %v6038_v59 }
0x40b6   :  { %v6004_v56 = vadd.f32 %v8120_v24, %v6003_v53  ;;  %v6024_v43 = vadd.f32 %v6020_v23, %v6001_v48 }
0x40b8   :  { %v8341_v12 = vpop.eup %8340  ;;  %v6013_v55 = vmul.f32 0.044715, %v6004_v56  ;;  %v6028_v51 = vmul.f32 0.7978846, %v6024_v43  ;;  %v6009_v2 = vmul.f32 0.5, %v6004_v56 }
0x40b9   :  { %v6035_v57 = vadd.f32 1.0, %v8341_v12 }
0x40ba   :  { %8342 = vtanh.f32 %v6028_v51  ;;  %v6017_v6 = vmul.f32 %v6013_v55, %v6004_v56 }
0x40bb   :  { %v6039_v10 = vmul.f32 %v6035_v57, %v6007_v8 }
0x40bc   :  { %v6021_v7 = vmul.f32 %v6017_v6, %v6004_v56 }
0x40bd   :  { %6077 = vmatmul.f32.gmra.mxu3 %v6039_v10 }
0x40be   :  { %v6025_v22 = vadd.f32 %v6021_v7, %v6004_v56 }
0x40c0   :  { %v8343_v20 = vpop.eup %8342  ;;  %v6029_v61 = vmul.f32 0.7978846, %v6025_v22 }
0x40c1   :  { %v6036_v36 = vadd.f32 1.0, %v8343_v20  ;;  %v11808_v20 = vld [vmem:[%s12303_s6 + $0x1] ss:$0 sm:$0xff] }
0x40c2   :  { %8344 = vtanh.f32 %v6029_v61  ;;  %v11815_v61 = vld [vmem:[%s12303_s6 + $0x5] ss:$0 sm:$0xff] }
0x40c3   :  { %v6040_v21 = vmul.f32 %v6036_v36, %v6008_v4 }
0x40c5   :  { %6080 = vmatmul.f32.gmra.mxu3 %v6040_v21 }
0x40c8   :  { %v8345_v52 = vpop.eup %8344 }
0x40c9   :  { %v6037_v47 = vadd.f32 1.0, %v8345_v52 }
0x40cb   :  { %v6041_v62 = vmul.f32 %v6037_v47, %v6009_v2 }
0x40cd   :  { %6083 = vmatmul.f32.gmra.mxu3 %v6041_v62 }
0x4138   :  { %v6075_v26 = vpop.f32.mrf.mxu3 }
0x4139   :  { %6091 = vrot.lane.b32.xlu1 %v6075_v26, %s8567_s19 }
0x4140   :  { %v6078_v39 = vpop.f32.mrf.mxu3 }
0x4141   :  { %6093 = vrot.lane.b32.xlu0 %v6078_v39, %s8567_s19 }
0x4148   :  { %v6081_v49 = vpop.f32.mrf.mxu3 }
0x4149   :  { %6095 = vrot.lane.b32.xlu1 %v6081_v49, %s8567_s19 }
0x4150   :  { %v6084_v31 = vpop.f32.mrf.mxu3 }
0x4151   :  { %6097 = vrot.lane.b32.xlu2 %v6084_v31, %s8567_s19 }
0x41ab   :  { %v6092_v13 = vpop.permute.xlu1 %6091  ;;  %v6098_v5 = vpop.permute.xlu2 %6097 }
0x41ac   :  { %v6103_v41 = vadd.f32 %v6092_v13, %v11592_v30  ;;  %v6106_v24 = vadd.f32 %v6098_v5, %v11597_v42 }
0x41ae   :  { %v11750_v40 = vadd.f32 %v6111_v27, %v6103_v41  ;;  %v11756_v15 = vadd.f32 %v6111_v27, %v6106_v24 }
0x41b0   :  { %6123 = vrot.lane.b32.xlu0 %v11750_v40, %s8568_s25 }
0x41b3   :  { %v6094_v17 = vpop.permute.xlu0 %6093 }
0x41b4   :  { %v6104_v45 = vadd.f32 %v6094_v17, %v11602_v46 }
0x41b6   :  { %v11758_v18 = vadd.f32 %v6111_v27, %v6104_v45 }
0x41b8   :  { %6125 = vrot.lane.b32.xlu1 %v11758_v18, %s8568_s25  ;;  %6129 = vrot.lane.b32.xlu0 %v11756_v15, %s8568_s25 }
0x41bb   :  { %v6096_v30 = vpop.permute.xlu1 %6095 }
0x41bc   :  { %v6105_v14 = vadd.f32 %v6096_v30, %v11607_v16 }
0x41be   :  { %v11765_v35 = vadd.f32 %v6111_v27, %v6105_v14 }
0x41c0   :  { %6127 = vrot.lane.b32.xlu2 %v11765_v35, %s8568_s25 }
0x421a   :  { %v6128_v42 = vpop.permute.xlu2 %6127 }
0x421b   :  { %v6141_v46 = vsel %vm132_vm2, %v6128_v42, 0.0 }
0x421c   :  { %6142 = vadd.xlane.f32.xlu0 %v6141_v46 }
0x4222   :  { %v6124_v1 = vpop.permute.xlu0 %6123 }
0x4223   :  { %v6135_v38 = vsel %vm132_vm2, %v6124_v1, 0.0 }
0x4224   :  { %6136 = vadd.xlane.f32.xlu1 %v6135_v38 }
0x422a   :  { %v6126_v0 = vpop.permute.xlu1 %6125  ;;  %v6130_v28 = vpop.permute.xlu0 %6129 }
0x422b   :  { %v6138_v11 = vsel %vm132_vm2, %v6126_v0, 0.0  ;;  %v6144_v9 = vsel %vm132_vm2, %v6130_v28, 0.0 }
0x422c   :  { %6139 = vadd.xlane.f32.xlu2 %v6138_v11  ;;  %6145 = vadd.xlane.f32.xlu1 %v6144_v9 }
0x428f   :  { %v6143_v16 = vpop.xlane.xlu0 %6142 }
0x4290   :  { %v6149_v29 = vmul.f32 %v6143_v16, %v12415_v33 }
0x4292   :  { %v11775_v48 = vsub.f32 %v11765_v35, %v6149_v29 }
0x4294   :  { %v6157_v37 = vmul.f32 %v11775_v48, %v11775_v48 }
0x4296   :  { %6167 = vrot.lane.b32.xlu1 %v6157_v37, %s8568_s25 }
0x4297   :  { %v6137_v19 = vpop.xlane.xlu1 %6136 }
0x4298   :  { %v6147_v32 = vmul.f32 %v6137_v19, %v12415_v33 }
0x429a   :  { %v11782_v50 = vsub.f32 %v11750_v40, %v6147_v32 }
0x429c   :  { %v6155_v60 = vmul.f32 %v11782_v50, %v11782_v50 }
0x429e   :  { %6163 = vrot.lane.b32.xlu2 %v6155_v60, %s8568_s25 }
0x429f   :  { %v6140_v34 = vpop.xlane.xlu2 %6139  ;;  %v6146_v59 = vpop.xlane.xlu1 %6145 }
0x42a0   :  { %v6148_v44 = vmul.f32 %v6140_v34, %v12415_v33  ;;  %v6150_v53 = vmul.f32 %v6146_v59, %v12415_v33 }
0x42a2   :  { %v11789_v23 = vsub.f32 %v11758_v18, %v6148_v44  ;;  %v11796_v43 = vsub.f32 %v11756_v15, %v6150_v53 }
0x42a4   :  { %v6156_v56 = vmul.f32 %v11789_v23, %v11789_v23  ;;  %v6158_v12 = vmul.f32 %v11796_v43, %v11796_v43 }
0x42a6   :  { %6165 = vrot.lane.b32.xlu0 %v6156_v56, %s8568_s25 }
0x42ae   :  { %6169 = vrot.lane.b32.xlu0 %v6158_v12, %s8568_s25 }
0x42f8   :  { %v6164_v55 = vpop.permute.xlu2 %6163 }
0x42f9   :  { %v6175_v51 = vsel %vm132_vm2, %v6164_v55, 0.0 }
0x42fa   :  { %6176 = vadd.xlane.f32.xlu2 %v6175_v51 }
0x4308   :  { %v6168_v8 = vpop.permute.xlu1 %6167 }
0x4309   :  { %v6181_v57 = vsel %vm132_vm2, %v6168_v8, 0.0 }
0x430a   :  { %6182 = vadd.xlane.f32.xlu0 %v6181_v57 }
0x4318   :  { %v6166_v6 = vpop.permute.xlu0 %6165 }
0x4319   :  { %v6178_v10 = vsel %vm132_vm2, %v6166_v6, 0.0 }
0x431a   :  { %6179 = vadd.xlane.f32.xlu1 %v6178_v10 }
0x4320   :  { %v6170_v7 = vpop.permute.xlu0 %6169 }
0x4321   :  { %v6184_v22 = vsel %vm132_vm2, %v6170_v7, 0.0 }
0x4322   :  { %6185 = vadd.xlane.f32.xlu2 %v6184_v22 }
0x4333   :  { %6241 = vrot.lane.b32.xlu1 %v11808_v20, %s8570_s28 }
0x433a   :  { %6250 = vrot.lane.b32.xlu2 %v11815_v61, %s8567_s19 }
0x436d   :  { %v6177_v4 = vpop.xlane.xlu2 %6176 }
0x436e   :  { %v6187_v36 = vmul.f32 %v6177_v4, %v12415_v33 }
0x4370   :  { %v6191_v2 = vadd.f32 1e-05, %v6187_v36 }
0x4372   :  { %8346 = vrsqrt.f32 %v6191_v2  ;;  %vm6201_vm6 = vweird.f32 %v6191_v2 }
0x4378   :  { %v8347_v62 = vpop.eup %8346 }
0x4379   :  { %v6196_v26 = vmul.f32 %v8347_v62, %v6191_v2  ;;  %vm6202_vm3 = vweird.f32 %v8347_v62 }
0x437a   :  { %vm6203_vm7 = vmor %vm6201_vm6, %vm6202_vm3 }
0x437b   :  { %v6197_v27 = vmul.f32 %v8347_v62, %v6196_v26 }
0x437d   :  { %v6183_v21 = vpop.xlane.xlu0 %6182  ;;  %v6198_v5 = vmul.f32 0.5, %v6197_v27 }
0x437e   :  { %v6189_v52 = vmul.f32 %v6183_v21, %v12415_v33 }
0x437f   :  { %v6199_v14 = vsub.f32 1.5, %v6198_v5 }
0x4380   :  { %v6193_v47 = vadd.f32 1e-05, %v6189_v52 }
0x4381   :  { %v6200_v0 = vmul.f32 %v8347_v62, %v6199_v14 }
0x4382   :  { %8348 = vrsqrt.f32 %v6193_v47  ;;  %vm6221_vm8 = vweird.f32 %v6193_v47 }
0x4383   :  { %v6204_v29 = vsel %vm6203_vm7, %v8347_v62, %v6200_v0 }
0x4384   :  { %v6235_v34 = vmul.f32 %v6204_v29, %v11782_v50  ;;  %v8543_v29 = vld [vmem:[%s12306_s2 + $0x8] sm:$0xff] }
0x4388   :  { %v8349_v54 = vpop.eup %8348 }
0x4389   :  { %v6216_v39 = vmul.f32 %v8349_v54, %v6193_v47  ;;  %vm6222_vm5 = vweird.f32 %v8349_v54 }
0x438a   :  { %vm6223_vm9 = vmor %vm6221_vm8, %vm6222_vm5 }
0x438b   :  { %v6217_v41 = vmul.f32 %v8349_v54, %v6216_v39 }
0x438d   :  { %v6180_v49 = vpop.xlane.xlu1 %6179  ;;  %v6218_v24 = vmul.f32 0.5, %v6217_v41 }
0x438e   :  { %v6188_v31 = vmul.f32 %v6180_v49, %v12415_v33 }
0x438f   :  { %v6219_v46 = vsub.f32 1.5, %v6218_v24 }
0x4390   :  { %v6192_v13 = vadd.f32 1e-05, %v6188_v31 }
0x4391   :  { %v6220_v28 = vmul.f32 %v8349_v54, %v6219_v46 }
0x4392   :  { %8350 = vrsqrt.f32 %v6192_v13  ;;  %vm6211_vm11 = vweird.f32 %v6192_v13 }
0x4393   :  { %v6224_v32 = vsel %vm6223_vm9, %v8349_v54, %v6220_v28  ;;  %v8541_v28 = vld [vmem:[%s12306_s2 + $0x18] sm:$0xff] }
0x4394   :  { %v6237_v44 = vmul.f32 %v6224_v32, %v11775_v48  ;;  %v8544_v32 = vld [vmem:[%s12306_s2] sm:$0xff] }
0x4395   :  { %v6186_v17 = vpop.xlane.xlu2 %6185 }
0x4396   :  { %v6190_v45 = vmul.f32 %v6186_v17, %v12415_v33 }
0x4398   :  { %v8351_v30 = vpop.eup %8350  ;;  %v6194_v42 = vadd.f32 1e-05, %v6190_v45 }
0x4399   :  { %v6206_v1 = vmul.f32 %v8351_v30, %v6192_v13  ;;  %vm6212_vm10 = vweird.f32 %v8351_v30 }
0x439a   :  { %8352 = vrsqrt.f32 %v6194_v42  ;;  %vm6213_vm12 = vmor %vm6211_vm11, %vm6212_vm10  ;;  %vm6231_vm14 = vweird.f32 %v6194_v42 }
0x439b   :  { %v6207_v38 = vmul.f32 %v8351_v30, %v6206_v1 }
0x439d   :  { %v6208_v11 = vmul.f32 0.5, %v6207_v38  ;;  %v6251_v12 = vpop.permute.xlu2 %6250 }
0x439f   :  { %v6209_v9 = vsub.f32 1.5, %v6208_v11 }
0x43a0   :  { %v8353_v16 = vpop.eup %8352 }
0x43a1   :  { %v6210_v37 = vmul.f32 %v8351_v30, %v6209_v9  ;;  %v6226_v19 = vmul.f32 %v8353_v16, %v6194_v42  ;;  %vm6232_vm13 = vweird.f32 %v8353_v16  ;;  %v8542_v9 = vld [vmem:[%s12306_s2 + $0x10] sm:$0xff] }
0x43a2   :  { %vm6233_vm15 = vmor %vm6231_vm14, %vm6232_vm13 }
0x43a3   :  { %v6227_v60 = vmul.f32 %v8353_v16, %v6226_v19  ;;  %v6214_v53 = vsel %vm6213_vm12, %v8351_v30, %v6210_v37 }
0x43a4   :  { %v6236_v57 = vmul.f32 %v6214_v53, %v11789_v23 }
0x43a5   :  { %v6228_v59 = vmul.f32 0.5, %v6227_v60  ;;  %v6242_v56 = vpop.permute.xlu1 %6241 }
0x43a6   :  { %v6244_v55 = vmul.f32 %v6242_v56, %v6235_v34  ;;  %v6246_v51 = vmul.f32 %v6242_v56, %v6237_v44  ;;  %v6245_v22 = vmul.f32 %v6242_v56, %v6236_v57  ;;  %v11896_v57 = vld [vmem:[%s12305_s3 + $0x20] sm:$0xff] }
0x43a7   :  { %v6229_v8 = vsub.f32 1.5, %v6228_v59 }
0x43a8   :  { %v6253_v6 = vadd.f32 %v6251_v12, %v6244_v55  ;;  %v6255_v10 = vadd.f32 %v6251_v12, %v6246_v51  ;;  %v6254_v36 = vadd.f32 %v6251_v12, %v6245_v22  ;;  %v11875_v55 = vld [vmem:[%s12305_s3 + $0x8] sm:$0xff]  ;;  %v11882_v51 = vld [vmem:[%s12305_s3 + $0x10] sm:$0xff] }
0x43a9   :  { %v6230_v7 = vmul.f32 %v8353_v16, %v6229_v8  ;;  %v11889_v8 = vld [vmem:[%s12305_s3 + $0x18] sm:$0xff]  ;;  %v11938_v22 = vld [vmem:[%s12305_s3 + $0x50] sm:$0xff] }
0x43aa   :  { %6269 = vrot.lane.b32.xlu1 %v6255_v10, %s8568_s25  ;;  %6265 = vrot.lane.b32.xlu0 %v6253_v6, %s8568_s25  ;;  %v11903_v6 = vld [vmem:[%s12305_s3 + $0x28] sm:$0xff]  ;;  %v11910_v10 = vld [vmem:[%s12305_s3 + $0x30] sm:$0xff] }
0x43ab   :  { %v6234_v48 = vsel %vm6233_vm15, %v8353_v16, %v6230_v7  ;;  %v11917_v7 = vld [vmem:[%s12305_s3 + $0x38] sm:$0xff] }
0x43ac   :  { %v6238_v50 = vmul.f32 %v6234_v48, %v11796_v43  ;;  %v11924_v48 = vld [vmem:[%s12305_s3 + $0x40] sm:$0xff] }
0x43ae   :  { %v6247_v4 = vmul.f32 %v6242_v56, %v6238_v50  ;;  %v11931_v50 = vld [vmem:[%s12305_s3 + $0x48] sm:$0xff] }
0x43b0   :  { %v6256_v21 = vadd.f32 %v6251_v12, %v6247_v4  ;;  %v11868_v12 = vld [vmem:[%s12305_s3] sm:$0xff]  ;;  %v11945_v4 = vld [vmem:[%s12305_s3 + $0x58] sm:$0xff] }
0x43b2   :  { %6271 = vrot.lane.b32.xlu2 %v6256_v21, %s8568_s25  ;;  %6267 = vrot.lane.b32.xlu0 %v6254_v36, %s8568_s25  ;;  %v11952_v36 = vld [vmem:[%s12305_s3 + $0x60] sm:$0xff] }
0x440c   :  { %v6272_v47 = vpop.permute.xlu2 %6271 }
0x441c   :  { %v6266_v23 = vpop.permute.xlu0 %6265  ;;  %v6270_v2 = vpop.permute.xlu1 %6269 }
0x441d   :  { %7630 = vmatmul.msk.f32.vlgmr.msrb.gmra.mxu0 %vm132_vm2, %v6266_v23  ;;  %v8558_v23 = vld [vmem:[%s12302_s1 + $0x8] sm:$0xff] }
0x4424   :  { %v6268_v52 = vpop.permute.xlu0 %6267 }
0x4425   :  { %7631 = vmatmul.msk.f32.gmra.mxu0 %vm132_vm2, %v6268_v52 }
0x442d   :  { %7632 = vmatmul.msk.f32.gmra.mxu0 %vm132_vm2, %v6270_v2  ;;  %v11962_v2 = vld [vmem:[%s12305_s3 + $0x68] sm:$0xff] }
0x4435   :  { %7633 = vmatmul.msk.f32.gmra.mxu0 %vm132_vm2, %v6272_v47 }
0x449a   :  { %v6298_v43 = vpop.f32.mrf.mxu0 }
0x449b   :  { %v6299_v62 = vadd.f32 %v11808_v20, %v6298_v43  ;;  %v8560_v43 = vld [vmem:[%s12302_s1 + $0x20] sm:$0xff] }
0x449d   :  { %6314 = vrot.lane.b32.xlu0 %v6299_v62, %s8568_s25 }
0x44a2   :  { %v6301_v54 = vpop.f32.mrf.mxu0 }
0x44a3   :  { %v6302_v26 = vadd.f32 %v11808_v20, %v6301_v54  ;;  %v11972_v54 = vld [vmem:[%s12305_s3 + $0x70] sm:$0xff] }
0x44a5   :  { %6316 = vrot.lane.b32.xlu1 %v6302_v26, %s8568_s25  ;;  %v8050_v41 = vpack.i.bf16 %v6299_v62, %v6302_v26 }
0x44aa   :  { %v6304_v39 = vpop.f32.mrf.mxu0 }
0x44ab   :  { %v6305_v49 = vadd.f32 %v11808_v20, %v6304_v39  ;;  %v8562_v39 = vld [vmem:[%s12302_s1 + $0x38] sm:$0xff] }
0x44ad   :  { %6318 = vrot.lane.b32.xlu2 %v6305_v49, %s8568_s25 }
0x44b2   :  { %v6307_v31 = vpop.f32.mrf.mxu0 }
0x44b3   :  { %v6308_v27 = vadd.f32 %v11808_v20, %v6307_v31  ;;  %v11982_v31 = vld [vmem:[%s12305_s3 + $0x78] sm:$0xff] }
0x44b5   :  { %v8045_v13 = vpack.i.bf16 %v6305_v49, %v6308_v27  ;;  %6320 = vrot.lane.b32.xlu0 %v6308_v27, %s8568_s25 }
0x44b7   :  { %8046 = vrot.lane.b32.xlu2 %v8045_v13, %s8570_s28  ;;  %v8564_v13 = vld [vmem:[%s12302_s1 + $0x50] sm:$0xff] }
0x44bd   :  { %8051 = vrot.lane.b32.xlu0 %v8050_v41, %s8570_s28 }
0x4507   :  { %v6319_v17 = vpop.permute.xlu2 %6318 }
0x450f   :  { %v6315_v5 = vpop.permute.xlu0 %6314 }
0x4510   :  { %6326 = vxpose.xlu1.b32.start [1/4] (short) (narrow) %v6315_v5, 32 }
0x4511   :  { %v8047_v19 = vpop.permute.xlu2 %8046 }
0x4512   :  { %v8048_v34 = vunpack.i.l.bf16 %v8047_v19  ;;  %v8049_v59 = vunpack.i.h.bf16 %v8047_v19 }
0x4517   :  { %v6317_v24 = vpop.permute.xlu1 %6316 }
0x4518   :  { %6327 = vxpose.xlu1.b32.cont [2/4] (short) (narrow) %v6317_v24, 32 }
0x4520   :  { %6328 = vxpose.xlu1.b32.cont [3/4] (short) (narrow) %v6319_v17, 32 }
0x4527   :  { %v6321_v45 = vpop.permute.xlu0 %6320 }
0x4528   :  { %6329 = vxpose.xlu1.b32.end [4/4] (short) (narrow) %v6321_v45, 32 }
0x452f   :  { %v8052_v44 = vpop.permute.xlu0 %8051 }
0x4530   :  { %v8053_v53 = vunpack.i.l.bf16 %v8052_v44  ;;  %v8054_v56 = vunpack.i.h.bf16 %v8052_v44 }
0x45b4   :  { %v6342_v30 = vpop.trf.xlu1 }
0x45b5   :  { %7634 = vmatmul.msk.f32.vlgmr.msra.gmra.mxu1 %vm132_vm2, %v6342_v30 }
0x45bc   :  { %v6343_v20 = vpop.trf.xlu1 }
0x45bd   :  { %7635 = vmatmul.msk.f32.gmra.mxu1 %vm132_vm2, %v6343_v20 }
0x45c4   :  { %v6344_v14 = vpop.trf.xlu1 }
0x45c5   :  { %7636 = vmatmul.msk.f32.gmra.mxu1 %vm132_vm2, %v6344_v14 }
0x45cc   :  { %v6345_v42 = vpop.trf.xlu1 }
0x45cd   :  { %7637 = vmatmul.msk.f32.gmra.mxu1 %vm132_vm2, %v6345_v42 }
0x4632   :  { %v6387_v46 = vpop.f32.mrf.mxu1 }
0x4633   :  { %v6399_v60 = vmul.f32 %v8544_v32, %v6387_v46 }
0x463a   :  { %v6390_v1 = vpop.f32.mrf.mxu1 }
0x463b   :  { %v6400_v37 = vmul.f32 %v8543_v29, %v6390_v1 }
0x4642   :  { %v6393_v38 = vpop.f32.mrf.mxu1 }
0x4643   :  { %v6401_v16 = vmul.f32 %v8542_v9, %v6393_v38 }
0x464a   :  { %v6396_v0 = vpop.f32.mrf.mxu1 }
0x464b   :  { %v6402_v11 = vmul.f32 %v8541_v28, %v6396_v0 }
0x464d   :  { %6423 = vmatpush.msrb.mxu3 %v6402_v11 }
0x464f   :  { %6424 = vmatpush.msrb.mxu3 %v6401_v16 }
0x4651   :  { %6425 = vmatpush.msrb.mxu3 %v6400_v37 }
0x4653   :  { %6426 = vmatpush.msrb.mxu3 %v6399_v60 }
0x4654   :  { %7638 = vmatmul.msk.f32.vlgmr.msrb.gmra.mxu3 %vm132_vm2, %v6299_v62 }
0x4655   :  { %6618 = vmatpush.msra.mxu3 %v8048_v34 }
0x4657   :  { %6619 = vmatpush.msra.mxu3 %v8049_v59 }
0x4659   :  { %6620 = vmatpush.msra.mxu3 %v8053_v53 }
0x465b   :  { %6621 = vmatpush.msra.mxu3 %v8054_v56  ;;  %v8565_v56 = vld [vmem:[%s12304_s4 + $0x50] sm:$0xff] }
0x465c   :  { %7639 = vmatmul.msk.f32.gmra.mxu3 %vm132_vm2, %v6302_v26 }
0x4664   :  { %7640 = vmatmul.msk.f32.gmra.mxu3 %vm132_vm2, %v6305_v49 }
0x466c   :  { %7641 = vmatmul.msk.f32.gmra.mxu3 %vm132_vm2, %v6308_v27 }
0x4674   :  { %7646 = vmatmul.msk.f32.vlgmr.msra.gmra.mxu3 %vm132_vm2, %v11868_v12 }
0x467c   :  { %7647 = vmatmul.msk.f32.gmra.mxu3 %vm132_vm2, %v11875_v55 }
0x4684   :  { %7648 = vmatmul.msk.f32.gmra.mxu3 %vm132_vm2, %v11882_v51 }
0x468c   :  { %7649 = vmatmul.msk.f32.gmra.mxu3 %vm132_vm2, %v11889_v8 }
0x4694   :  { %7650 = vmatmul.msk.f32.gmra.mxu3 %vm132_vm2, %v11896_v57 }
0x469c   :  { %7651 = vmatmul.msk.f32.gmra.mxu3 %vm132_vm2, %v11903_v6 }
0x46a4   :  { %7652 = vmatmul.msk.f32.gmra.mxu3 %vm132_vm2, %v11910_v10 }
0x46ac   :  { %7653 = vmatmul.msk.f32.gmra.mxu3 %vm132_vm2, %v11917_v7 }
0x46b4   :  { %7654 = vmatmul.msk.f32.gmra.mxu3 %vm132_vm2, %v11924_v48 }
0x46bc   :  { %7655 = vmatmul.msk.f32.gmra.mxu3 %vm132_vm2, %v11931_v50 }
0x46c4   :  { %7656 = vmatmul.msk.f32.gmra.mxu3 %vm132_vm2, %v11938_v22 }
0x46cc   :  { %7657 = vmatmul.msk.f32.gmra.mxu3 %vm132_vm2, %v11945_v4 }
0x46d4   :  { %7658 = vmatmul.msk.f32.gmra.mxu3 %vm132_vm2, %v11952_v36 }
0x46d7   :  { %v6428_v21 = vpop.f32.mrf.mxu3 }
0x46d8   :  { %v6429_v52 = vadd.f32 %v8558_v23, %v6428_v21  ;;  %v8566_v21 = vld [vmem:[%s12304_s4 + $0x40] sm:$0xff] }
0x46d9   :  { %v8100_v23 = vpack.i.bf16 %v8566_v21, %v8565_v56 }
0x46da   :  { %6440 = vmax.xlane.f32.xlu2 %v6429_v52 }
0x46dc   :  { %7659 = vmatmul.msk.f32.gmra.mxu3 %vm132_vm2, %v11962_v2 }
0x46df   :  { %v6431_v47 = vpop.f32.mrf.mxu3 }
0x46e0   :  { %v6432_v62 = vadd.f32 %v8560_v43, %v6431_v47 }
0x46e2   :  { %6442 = vmax.xlane.f32.xlu0 %v6432_v62 }
0x46e4   :  { %7660 = vmatmul.msk.f32.gmra.mxu3 %vm132_vm2, %v11972_v54 }
0x46e7   :  { %v6434_v26 = vpop.f32.mrf.mxu3 }
0x46e8   :  { %v6435_v49 = vadd.f32 %v8562_v39, %v6434_v26 }
0x46ea   :  { %6444 = vmax.xlane.f32.xlu2 %v6435_v49 }
0x46ec   :  { %7661 = vmatmul.msk.f32.gmra.mxu3 %vm132_vm2, %v11982_v31 }
0x46ef   :  { %v6437_v27 = vpop.f32.mrf.mxu3 }
0x46f0   :  { %v6438_v41 = vadd.f32 %v8564_v13, %v6437_v27 }
0x46f2   :  { %6446 = vmax.xlane.f32.xlu0 %v6438_v41 }
0x46f7   :  { %v6623_v5 = vpop.f32.mrf.mxu3 }
0x46ff   :  { %v6626_v24 = vpop.f32.mrf.mxu3 }
0x4707   :  { %v6629_v17 = vpop.f32.mrf.mxu3 }
0x470f   :  { %v6632_v45 = vpop.f32.mrf.mxu3 }
0x4717   :  { %v6635_v30 = vpop.f32.mrf.mxu3 }
0x471f   :  { %v6638_v20 = vpop.f32.mrf.mxu3 }
0x4727   :  { %v6641_v14 = vpop.f32.mrf.mxu3 }
0x472f   :  { %v6644_v42 = vpop.f32.mrf.mxu3 }
0x4737   :  { %v6647_v46 = vpop.f32.mrf.mxu3 }
0x473f   :  { %v6650_v1 = vpop.f32.mrf.mxu3 }
0x4747   :  { %v6653_v38 = vpop.f32.mrf.mxu3 }
0x474d   :  { %v6441_v0 = vpop.xlane.xlu2 %6440 }
0x474e   :  { %v6448_v28 = vsub.f32 %v6429_v52, %v6441_v0 }
0x474f   :  { %v6656_v11 = vpop.f32.mrf.mxu3 }
0x4750   :  { %v6452_v9 = vmul.f32 1.442695, %v6448_v28  ;;  %6709 = vrot.lane.b32.xlu0 %v6656_v11, %s8567_s19 }
0x4752   :  { %8354 = vpow2.f32 %v6452_v9 }
0x4755   :  { %v6443_v16 = vpop.xlane.xlu0 %6442 }
0x4756   :  { %v6449_v29 = vsub.f32 %v6432_v62, %v6443_v16 }
0x4757   :  { %v6659_v37 = vpop.f32.mrf.mxu3 }
0x4758   :  { %v11990_v19 = vpop.eup %8354  ;;  %v6454_v32 = vmul.f32 1.442695, %v6449_v29  ;;  %6705 = vrot.lane.b32.xlu0 %v6650_v1, %s8567_s19  ;;  %6711 = vrot.lane.b32.xlu2 %v6659_v37, %s8567_s19 }
0x4759   :  { %6476 = vmatmul.f32.vlgmr.msra.gmra.mxu0 %v11990_v19 }
0x475a   :  { %8356 = vpow2.f32 %v6454_v32 }
0x475d   :  { %v6445_v60 = vpop.xlane.xlu2 %6444 }
0x475e   :  { %v6450_v34 = vsub.f32 %v6435_v49, %v6445_v60 }
0x475f   :  { %v6662_v44 = vpop.f32.mrf.mxu3 }
0x4760   :  { %v11995_v59 = vpop.eup %8356  ;;  %v6456_v53 = vmul.f32 1.442695, %v6450_v34  ;;  %6713 = vrot.lane.b32.xlu1 %v6662_v44, %s8567_s19  ;;  %6707 = vrot.lane.b32.xlu2 %v6653_v38, %s8567_s19 }
0x4761   :  { %6479 = vmatmul.f32.gmra.mxu0 %v11995_v59 }
0x4762   :  { %8358 = vpow2.f32 %v6456_v53 }
0x4765   :  { %v6447_v52 = vpop.xlane.xlu0 %6446 }
0x4766   :  { %v6451_v47 = vsub.f32 %v6438_v41, %v6447_v52 }
0x4767   :  { %v6665_v43 = vpop.f32.mrf.mxu3 }
0x4768   :  { %v12006_v62 = vpop.eup %8358  ;;  %v6458_v26 = vmul.f32 1.442695, %v6451_v47  ;;  %6715 = vrot.lane.b32.xlu0 %v6665_v43, %s8567_s19  ;;  %6703 = vrot.lane.b32.xlu2 %v6647_v46, %s8567_s19 }
0x4769   :  { %6482 = vmatmul.f32.gmra.mxu0 %v12006_v62  ;;  %8101 = vrot.lane.b32.xlu1 %v8100_v23, %s8567_s19 }
0x476a   :  { %8360 = vpow2.f32 %v6458_v26 }
0x476f   :  { %v6668_v39 = vpop.f32.mrf.mxu3 }
0x4770   :  { %v12012_v49 = vpop.eup %8360  ;;  %6701 = vrot.lane.b32.xlu0 %v6644_v42, %s8567_s19  ;;  %6717 = vrot.lane.b32.xlu2 %v6668_v39, %s8567_s19 }
0x4771   :  { %6485 = vmatmul.f32.gmra.mxu0 %v12012_v49 }
0x4778   :  { %6697 = vrot.lane.b32.xlu0 %v6638_v20, %s8567_s19  ;;  %6699 = vrot.lane.b32.xlu2 %v6641_v14, %s8567_s19 }
0x4780   :  { %6693 = vrot.lane.b32.xlu0 %v6632_v45, %s8567_s19  ;;  %6695 = vrot.lane.b32.xlu2 %v6635_v30, %s8567_s19 }
0x4788   :  { %6689 = vrot.lane.b32.xlu0 %v6626_v24, %s8567_s19  ;;  %6691 = vrot.lane.b32.xlu2 %v6629_v17, %s8567_s19 }
0x4790   :  { %6687 = vrot.lane.b32.xlu2 %v6623_v5, %s8567_s19 }
0x47b2   :  { %v6712_v27 = vpop.permute.xlu2 %6711 }
0x47b3   :  { %v6747_v20 = vmul.f32 %v11952_v36, %v6712_v27 }
0x47ba   :  { %v6708_v13 = vpop.permute.xlu2 %6707 }
0x47bb   :  { %v6745_v34 = vmul.f32 %v11938_v22, %v6708_v13 }
0x47c2   :  { %v6704_v41 = vpop.permute.xlu2 %6703  ;;  %v6710_v42 = vpop.permute.xlu0 %6709 }
0x47c3   :  { %v6743_v11 = vmul.f32 %v11924_v48, %v6704_v41 }
0x47ca   :  { %v6718_v46 = vpop.permute.xlu2 %6717  ;;  %v6706_v1 = vpop.permute.xlu0 %6705 }
0x47cb   :  { %v6744_v24 = vmul.f32 %v11931_v50, %v6706_v1  ;;  %v6750_v5 = vmul.f32 %v11982_v31, %v6718_v46  ;;  %v6746_v50 = vmul.f32 %v11945_v4, %v6710_v42 }
0x47cd   :  { %v8070_v16 = vpack.i.bf16 %v6743_v11, %v6744_v24  ;;  %v8065_v56 = vpack.i.bf16 %v6745_v34, %v6746_v50 }
0x47d2   :  { %v6714_v38 = vpop.permute.xlu1 %6713  ;;  %v6700_v17 = vpop.permute.xlu2 %6699 }
0x47d3   :  { %v6748_v14 = vmul.f32 %v11962_v2, %v6714_v38  ;;  %v6741_v41 = vmul.f32 %v11910_v10, %v6700_v17 }
0x47d5   :  { %v8055_v45 = vpack.i.bf16 %v6747_v20, %v6748_v14 }
0x47d6   :  { %v6477_v0 = vpop.f32.mrf.mxu0 }
0x47d7   :  { %v6489_v30 = vmax.f32 %v6477_v0, 1e-30  ;;  %8056 = vrot.lane.b32.xlu2 %v8055_v45, %s8568_s25 }
0x47d9   :  { %8362 = vrcp.f32 %v6489_v30  ;;  %v6504_v48 = vand.u32 2147483648, %v6489_v30  ;;  %v6502_v53 = vand.u32 2147483647, %v6489_v30  ;;  %vm6498_vm1 = vweird.f32 %v6489_v30 }
0x47da   :  { %v6716_v28 = vpop.permute.xlu0 %6715 }
0x47db   :  { %v6749_v9 = vmul.f32 %v11972_v54, %v6716_v28  ;;  %v6696_v54 = vpop.permute.xlu2 %6695  ;;  %v6505_v4 = vor.u32 1.1754944e-38, %v6504_v48  ;;  %vm6503_vm5 = vcmp.eq.f32.partialorder %v6502_v53, 8.507059e+37 }
0x47dc   :  { %v6739_v42 = vmul.f32 %v11896_v57, %v6696_v54 }
0x47dd   :  { %v8060_v36 = vpack.i.bf16 %v6749_v9, %v6750_v5 }
0x47de   :  { %v6480_v29 = vpop.f32.mrf.mxu0 }
0x47df   :  { %v8363_v2 = vpop.eup %8362  ;;  %v6490_v37 = vmax.f32 %v6480_v29, 1e-30  ;;  %8071 = vrot.lane.b32.xlu2 %v8070_v16, %s8568_s25  ;;  %8061 = vrot.lane.b32.xlu0 %v8060_v36, %s8568_s25 }
0x47e0   :  { %v6494_v32 = vmul.f32 %v8363_v2, %v6489_v30  ;;  %vm6499_vm0 = vweird.f32 %v8363_v2 }
0x47e1   :  { %8364 = vrcp.f32 %v6490_v37  ;;  %vm6500_vm3 = vmor %vm6498_vm1, %vm6499_vm0  ;;  %v6518_v1 = vand.u32 2147483648, %v6490_v37  ;;  %v6516_v20 = vand.u32 2147483647, %v6490_v37  ;;  %vm6512_vm7 = vweird.f32 %v6490_v37 }
0x47e2   :  { %v6495_v31 = vsub.f32 1.0, %v6494_v32  ;;  %v6702_v60 = vpop.permute.xlu0 %6701 }
0x47e3   :  { %v6742_v22 = vmul.f32 %v11917_v7, %v6702_v60  ;;  %v6692_v0 = vpop.permute.xlu2 %6691  ;;  %v6519_v57 = vor.u32 1.1754944e-38, %v6518_v1  ;;  %vm6517_vm9 = vcmp.eq.f32.partialorder %v6516_v20, 8.507059e+37 }
0x47e4   :  { %v6496_v44 = vmul.f32 %v8363_v2, %v6495_v31  ;;  %v6737_v9 = vmul.f32 %v11882_v51, %v6692_v0 }
0x47e5   :  { %v8075_v14 = vpack.i.bf16 %v6741_v41, %v6742_v22 }
0x47e6   :  { %v6483_v21 = vpop.f32.mrf.mxu0  ;;  %v6497_v23 = vadd.f32 %v8363_v2, %v6496_v44 }
0x47e7   :  { %v8365_v52 = vpop.eup %8364  ;;  %v6491_v47 = vmax.f32 %v6483_v21, 1e-30  ;;  %8066 = vrot.lane.b32.xlu0 %v8065_v56, %s8568_s25 }
0x47e8   :  { %v6508_v43 = vmul.f32 %v8365_v52, %v6490_v37  ;;  %v6501_v26 = vsel %vm6500_vm3, %v8363_v2, %v6497_v23  ;;  %vm6513_vm6 = vweird.f32 %v8365_v52 }
0x47e9   :  { %8366 = vrcp.f32 %v6491_v47  ;;  %v6506_v39 = vsel %vm6503_vm5, %v6505_v4, %v6501_v26  ;;  %vm6514_vm8 = vmor %vm6512_vm7, %vm6513_vm6  ;;  %v6532_v36 = vand.u32 2147483648, %v6491_v47  ;;  %v6530_v2 = vand.u32 2147483647, %v6491_v47 }
0x47ea   :  { %v6509_v27 = vsub.f32 1.0, %v6508_v43  ;;  %v6698_v13 = vpop.permute.xlu0 %6697  ;;  %7642 = vmatmul.msk.f32.vlgmr.msrb.gmra.mxu1 %vm647_vm4, %v6506_v39  ;;  %vm6526_vm11 = vweird.f32 %v6491_v47 }
0x47eb   :  { %v6740_v46 = vmul.f32 %v11903_v6, %v6698_v13  ;;  %v6533_v31 = vor.u32 1.1754944e-38, %v6532_v36  ;;  %v6688_v60 = vpop.permute.xlu2 %6687  ;;  %vm6531_vm13 = vcmp.eq.f32.partialorder %v6530_v2, 8.507059e+37 }
0x47ec   :  { %v6510_v38 = vmul.f32 %v8365_v52, %v6509_v27 }
0x47ed   :  { %v8080_v45 = vpack.i.bf16 %v6739_v42, %v6740_v46 }
0x47ee   :  { %v6486_v7 = vpop.f32.mrf.mxu0  ;;  %v6511_v30 = vadd.f32 %v8365_v52, %v6510_v38 }
0x47ef   :  { %v8367_v24 = vpop.eup %8366  ;;  %v6492_v5 = vmax.f32 %v6486_v7, 1e-30  ;;  %8076 = vrot.lane.b32.xlu0 %v8075_v14, %s8568_s25  ;;  %8081 = vrot.lane.b32.xlu2 %v8080_v45, %s8568_s25 }
0x47f0   :  { %v6522_v10 = vmul.f32 %v8367_v24, %v6491_v47  ;;  %v6515_v6 = vsel %vm6514_vm8, %v8365_v52, %v6511_v30  ;;  %vm6527_vm10 = vweird.f32 %v8367_v24 }
0x47f1   :  { %8368 = vrcp.f32 %v6492_v5  ;;  %v6520_v17 = vsel %vm6517_vm9, %v6519_v57, %v6515_v6  ;;  %vm6528_vm12 = vmor %vm6526_vm11, %vm6527_vm10  ;;  %v6546_v56 = vand.u32 2147483648, %v6492_v5  ;;  %v6544_v23 = vand.u32 2147483647, %v6492_v5 }
0x47f2   :  { %v6523_v28 = vsub.f32 1.0, %v6522_v10  ;;  %v6694_v11 = vpop.permute.xlu0 %6693  ;;  %7643 = vmatmul.msk.f32.gmra.mxu1 %vm647_vm4, %v6520_v17  ;;  %vm6540_vm15 = vweird.f32 %v6492_v5 }
0x47f3   :  { %v6738_v16 = vmul.f32 %v11889_v8, %v6694_v11  ;;  %v6735_v8 = vmul.f32 %v11868_v12, %v6688_v60  ;;  %v6547_v4 = vor.u32 1.1754944e-38, %v6546_v56  ;;  %vm6545_vm1 = vcmp.eq.f32.partialorder %v6544_v23, 8.507059e+37  ;;  %v8102_v11 = vpop.permute.xlu1 %8101 }
0x47f4   :  { %v6524_v29 = vmul.f32 %v8367_v24, %v6523_v28  ;;  %v8104_v2 = vunpack.i.h.bf16 %v8102_v11 }
0x47f5   :  { %v8085_v37 = vpack.i.bf16 %v6737_v9, %v6738_v16 }
0x47f6   :  { %v6525_v32 = vadd.f32 %v8367_v24, %v6524_v29  ;;  %v8103_v29 = vunpack.i.l.bf16 %v8102_v11 }
0x47f7   :  { %v8369_v50 = vpop.eup %8368  ;;  %8086 = vrot.lane.b32.xlu0 %v8085_v37, %s8568_s25 }
0x47f8   :  { %v6536_v34 = vmul.f32 %v8369_v50, %v6492_v5  ;;  %v6529_v48 = vsel %vm6528_vm12, %v8367_v24, %v6525_v32  ;;  %vm6541_vm14 = vweird.f32 %v8369_v50 }
0x47f9   :  { %v6534_v44 = vsel %vm6531_vm13, %v6533_v31, %v6529_v48  ;;  %vm6542_vm0 = vmor %vm6540_vm15, %vm6541_vm14 }
0x47fa   :  { %v6537_v51 = vsub.f32 1.0, %v6536_v34  ;;  %v6690_v54 = vpop.permute.xlu0 %6689  ;;  %7644 = vmatmul.msk.f32.gmra.mxu1 %vm647_vm4, %v6534_v44 }
0x47fb   :  { %v6736_v53 = vmul.f32 %v11875_v55, %v6690_v54 }
0x47fc   :  { %v6538_v21 = vmul.f32 %v8369_v50, %v6537_v51 }
0x47fd   :  { %v8090_v52 = vpack.i.bf16 %v6735_v8, %v6736_v53 }
0x47fe   :  { %v6539_v47 = vadd.f32 %v8369_v50, %v6538_v21 }
0x47ff   :  { %8091 = vrot.lane.b32.xlu2 %v8090_v52, %s8568_s25  ;;  %8096 = vrot.lane.b32.xlu0 %v8095_v25, %s8567_s19 }
0x4800   :  { %v6543_v43 = vsel %vm6542_vm0, %v8369_v50, %v6539_v47 }
0x4801   :  { %v6548_v12 = vsel %vm6545_vm1, %v6547_v4, %v6543_v43 }
0x4802   :  { %7645 = vmatmul.msk.f32.gmra.mxu1 %vm647_vm4, %v6548_v12 }
0x4831   :  { %v8057_v55 = vpop.permute.xlu2 %8056 }
0x4832   :  { %v8058_v27 = vunpack.i.l.bf16 %v8057_v55  ;;  %v8059_v13 = vunpack.i.h.bf16 %v8057_v55 }
0x4839   :  { %v8072_v46 = vpop.permute.xlu2 %8071 }
0x483a   :  { %v8073_v3 = vunpack.i.l.bf16 %v8072_v46  ;;  %v8074_v25 = vunpack.i.h.bf16 %v8072_v46 }
0x4849   :  { %v8082_v20 = vpop.permute.xlu2 %8081 }
0x484a   :  { %v8083_v45 = vunpack.i.l.bf16 %v8082_v20  ;;  %v8084_v0 = vunpack.i.h.bf16 %v8082_v20 }
0x4851   :  { %v8062_v26 = vpop.permute.xlu0 %8061 }
0x4852   :  { %v8063_v22 = vunpack.i.l.bf16 %v8062_v26  ;;  %v8064_v39 = vunpack.i.h.bf16 %v8062_v26 }
0x4854   :  { %6815 = vmatpush.msrb.mxu0 %v8063_v22 }
0x4856   :  { %6816 = vmatpush.msrb.mxu0 %v8064_v39 }
0x4858   :  { %6817 = vmatpush.msrb.mxu0 %v8058_v27 }
0x4859   :  { %v8067_v41 = vpop.permute.xlu0 %8066  ;;  %v8092_v5 = vpop.permute.xlu2 %8091 }
0x485a   :  { %v8068_v42 = vunpack.i.l.bf16 %v8067_v41  ;;  %6818 = vmatpush.msrb.mxu0 %v8059_v13  ;;  %v8069_v58 = vunpack.i.h.bf16 %v8067_v41  ;;  %v8093_v10 = vunpack.i.l.bf16 %v8092_v5  ;;  %v8094_v6 = vunpack.i.h.bf16 %v8092_v5 }
0x485c   :  { %6819 = vmatpush.msrb.mxu0 %v8068_v42 }
0x485e   :  { %6820 = vmatpush.msrb.mxu0 %v8069_v58 }
0x4860   :  { %6821 = vmatpush.msrb.mxu0 %v8073_v3 }
0x4861   :  { %v8077_v1 = vpop.permute.xlu0 %8076 }
0x4862   :  { %v8078_v38 = vunpack.i.l.bf16 %v8077_v1  ;;  %6822 = vmatpush.msrb.mxu0 %v8074_v25  ;;  %v8079_v14 = vunpack.i.h.bf16 %v8077_v1 }
0x4864   :  { %6823 = vmatpush.msrb.mxu0 %v8078_v38 }
0x4866   :  { %6824 = vmatpush.msrb.mxu0 %v8079_v14 }
0x4867   :  { %v6578_v7 = vpop.f32.mrf.mxu1 }
0x4868   :  { %6825 = vmatpush.msrb.mxu0 %v8083_v45  ;;  %v6590_v17 = vmul.f32 %v11990_v19, %v6578_v7 }
0x4869   :  { %v8087_v30 = vpop.permute.xlu0 %8086 }
0x486a   :  { %v8088_v24 = vunpack.i.l.bf16 %v8087_v30  ;;  %6826 = vmatpush.msrb.mxu0 %v8084_v0  ;;  %v8089_v57 = vunpack.i.h.bf16 %v8087_v30 }
0x486c   :  { %6827 = vmatpush.msrb.mxu0 %v8088_v24 }
0x486e   :  { %6828 = vmatpush.msrb.mxu0 %v8089_v57 }
0x486f   :  { %v6581_v9 = vpop.f32.mrf.mxu1 }
0x4870   :  { %6829 = vmatpush.msrb.mxu0 %v8093_v10  ;;  %v6591_v37 = vmul.f32 %v11995_v59, %v6581_v9 }
0x4871   :  { %v8097_v28 = vpop.permute.xlu0 %8096 }
0x4872   :  { %6830 = vmatpush.msrb.mxu0 %v8094_v6  ;;  %v8099_v16 = vunpack.i.h.bf16 %v8097_v28  ;;  %v8098_v36 = vunpack.i.l.bf16 %v8097_v28 }
0x4873   :  { %6831 = vmatmul.f32.vlgmr.msrb.gmra.mxu0 %v6590_v17 }
0x4874   :  { %6884 = vmatpush.msra.mxu1 %v8098_v36 }
0x4876   :  { %6885 = vmatpush.msra.mxu1 %v8099_v16 }
0x4877   :  { %v6584_v32 = vpop.f32.mrf.mxu1 }
0x4878   :  { %6886 = vmatpush.msra.mxu1 %v8103_v29  ;;  %v6592_v50 = vmul.f32 %v12006_v62, %v6584_v32 }
0x487a   :  { %6887 = vmatpush.msra.mxu1 %v8104_v2 }
0x487b   :  { %6834 = vmatmul.f32.gmra.mxu0 %v6591_v37 }
0x487f   :  { %v6587_v19 = vpop.f32.mrf.mxu1 }
0x4880   :  { %v6593_v31 = vmul.f32 %v12012_v49, %v6587_v19 }
0x4883   :  { %6837 = vmatmul.f32.gmra.mxu0 %v6592_v50 }
0x488b   :  { %6840 = vmatmul.f32.gmra.mxu0 %v6593_v31 }
0x48f0   :  { %v6832_v60 = vpop.f32.mrf.mxu0 }
0x48f1   :  { %7662 = vmatmul.msk.f32.vlgmr.msra.gmra.mxu1 %vm132_vm2, %v6832_v60 }
0x48f8   :  { %v6835_v34 = vpop.f32.mrf.mxu0 }
0x48f9   :  { %7663 = vmatmul.msk.f32.gmra.mxu1 %vm132_vm2, %v6835_v34 }
0x4900   :  { %v6838_v48 = vpop.f32.mrf.mxu0 }
0x4901   :  { %7664 = vmatmul.msk.f32.gmra.mxu1 %vm132_vm2, %v6838_v48 }
0x4908   :  { %v6841_v59 = vpop.f32.mrf.mxu0 }
0x4909   :  { %7665 = vmatmul.msk.f32.gmra.mxu1 %vm132_vm2, %v6841_v59 }
0x496e   :  { %v6889_v44 = vpop.f32.mrf.mxu1 }
0x496f   :  { %6905 = vrot.lane.b32.xlu2 %v6889_v44, %s8567_s19 }
0x4976   :  { %v6892_v62 = vpop.f32.mrf.mxu1 }
0x4977   :  { %6907 = vrot.lane.b32.xlu0 %v6892_v62, %s8567_s19 }
0x497e   :  { %v6895_v49 = vpop.f32.mrf.mxu1 }
0x497f   :  { %6909 = vrot.lane.b32.xlu1 %v6895_v49, %s8567_s19  ;;  %v7062_v49 = vld [vmem:[%s12304_s4 + $0x78] sm:$0xff] }
0x4980   :  { %7097 = vmatpush.msrb.mxu2 %v7062_v49  ;;  %v7153_v49 = vld [vmem:[%s12307_s5 + $0x98] sm:$0xff] }
0x4986   :  { %v6898_v51 = vpop.f32.mrf.mxu1 }
0x4987   :  { %6911 = vrot.lane.b32.xlu2 %v6898_v51, %s8567_s19 }
0x49c9   :  { %v6906_v54 = vpop.permute.xlu2 %6905 }
0x49ca   :  { %v6917_v8 = vadd.f32 %v6906_v54, %v11750_v40  ;;  %v7061_v54 = vld [vmem:[%s12304_s4 + $0x68] sm:$0xff] }
0x49cb   :  { %7098 = vmatpush.msrb.mxu2 %v7061_v54  ;;  %v7151_v54 = vld [vmem:[%s12307_s5 + $0x88] sm:$0xff] }
0x49cc   :  { %v12070_v53 = vadd.f32 %v11815_v61, %v6917_v8  ;;  %v7060_v8 = vld [vmem:[%s12304_s4 + $0x58] sm:$0xff] }
0x49cd   :  { %7099 = vmatpush.msrb.mxu2 %v7060_v8  ;;  %v7150_v8 = vld [vmem:[%s12307_s5 + $0x80] sm:$0xff] }
0x49ce   :  { %6929 = vrot.lane.b32.xlu0 %v12070_v53, %s8568_s25 }
0x49e1   :  { %v6912_v56 = vpop.permute.xlu2 %6911 }
0x49e2   :  { %v6920_v21 = vadd.f32 %v6912_v56, %v11756_v15 }
0x49e4   :  { %v12076_v23 = vadd.f32 %v11815_v61, %v6920_v21 }
0x49e6   :  { %6935 = vrot.lane.b32.xlu0 %v12076_v23, %s8568_s25 }
0x49e9   :  { %v6908_v52 = vpop.permute.xlu0 %6907 }
0x49ea   :  { %v6918_v47 = vadd.f32 %v6908_v52, %v11758_v18 }
0x49ec   :  { %v12082_v40 = vadd.f32 %v11815_v61, %v6918_v47 }
0x49ee   :  { %6931 = vrot.lane.b32.xlu1 %v12082_v40, %s8568_s25 }
0x49f1   :  { %v6910_v4 = vpop.permute.xlu1 %6909 }
0x49f2   :  { %v6919_v43 = vadd.f32 %v6910_v4, %v11765_v35 }
0x49f4   :  { %v12088_v15 = vadd.f32 %v11815_v61, %v6919_v43 }
0x49f6   :  { %6933 = vrot.lane.b32.xlu2 %v12088_v15, %s8568_s25 }
0x4a40   :  { %v6930_v12 = vpop.permute.xlu0 %6929 }
0x4a41   :  { %v6941_v55 = vsel %vm132_vm2, %v6930_v12, 0.0 }
0x4a42   :  { %6942 = vadd.xlane.f32.xlu1 %v6941_v55 }
0x4a50   :  { %v6934_v18 = vpop.permute.xlu2 %6933 }
0x4a51   :  { %v6947_v26 = vsel %vm132_vm2, %v6934_v18, 0.0 }
0x4a52   :  { %6948 = vadd.xlane.f32.xlu0 %v6947_v26 }
0x4a58   :  { %v6936_v22 = vpop.permute.xlu0 %6935 }
0x4a59   :  { %v6950_v39 = vsel %vm132_vm2, %v6936_v22, 0.0 }
0x4a5a   :  { %6951 = vadd.xlane.f32.xlu1 %v6950_v39 }
0x4a60   :  { %v6932_v27 = vpop.permute.xlu1 %6931 }
0x4a61   :  { %v6944_v35 = vsel %vm132_vm2, %v6932_v27, 0.0 }
0x4a62   :  { %6945 = vadd.xlane.f32.xlu2 %v6944_v35 }
0x4ab5   :  { %v6943_v13 = vpop.xlane.xlu1 %6942 }
0x4ab6   :  { %v6953_v41 = vmul.f32 %v6943_v13, %v12415_v33 }
0x4ab8   :  { %v12098_v42 = vsub.f32 %v12070_v53, %v6953_v41 }
0x4aba   :  { %v6961_v46 = vmul.f32 %v12098_v42, %v12098_v42 }
0x4abc   :  { %6969 = vrot.lane.b32.xlu2 %v6961_v46, %s8568_s25 }
0x4ac5   :  { %v6949_v58 = vpop.xlane.xlu0 %6948 }
0x4ac6   :  { %v6955_v3 = vmul.f32 %v6949_v58, %v12415_v33 }
0x4ac8   :  { %v12105_v25 = vsub.f32 %v12088_v15, %v6955_v3 }
0x4aca   :  { %v6963_v1 = vmul.f32 %v12105_v25, %v12105_v25 }
0x4acc   :  { %6973 = vrot.lane.b32.xlu1 %v6963_v1, %s8568_s25 }
0x4acd   :  { %v6952_v14 = vpop.xlane.xlu1 %6951 }
0x4ace   :  { %v6956_v0 = vmul.f32 %v6952_v14, %v12415_v33 }
0x4ad0   :  { %v12119_v30 = vsub.f32 %v12076_v23, %v6956_v0 }
0x4ad2   :  { %v6964_v24 = vmul.f32 %v12119_v30, %v12119_v30 }
0x4ad5   :  { %v6946_v38 = vpop.xlane.xlu2 %6945 }
0x4ad6   :  { %v6954_v20 = vmul.f32 %v6946_v38, %v12415_v33 }
0x4ad8   :  { %v12112_v45 = vsub.f32 %v12082_v40, %v6954_v20 }
0x4ada   :  { %v6962_v7 = vmul.f32 %v12112_v45, %v12112_v45 }
0x4adc   :  { %6971 = vrot.lane.b32.xlu0 %v6962_v7, %s8568_s25 }
0x4ae4   :  { %6975 = vrot.lane.b32.xlu0 %v6964_v24, %s8568_s25 }
0x4b16   :  { %v6970_v5 = vpop.permute.xlu2 %6969 }
0x4b17   :  { %v6981_v57 = vsel %vm132_vm2, %v6970_v5, 0.0 }
0x4b18   :  { %6982 = vadd.xlane.f32.xlu2 %v6981_v57 }
0x4b3e   :  { %v6974_v10 = vpop.permute.xlu1 %6973 }
0x4b3f   :  { %v6987_v6 = vsel %vm132_vm2, %v6974_v10, 0.0 }
0x4b40   :  { %6988 = vadd.xlane.f32.xlu1 %v6987_v6 }
0x4b4e   :  { %v6972_v17 = vpop.permute.xlu0 %6971 }
0x4b4f   :  { %v6984_v28 = vsel %vm132_vm2, %v6972_v17, 0.0 }
0x4b50   :  { %6985 = vadd.xlane.f32.xlu0 %v6984_v28 }
0x4b56   :  { %v6976_v11 = vpop.permute.xlu0 %6975 }
0x4b57   :  { %v6990_v9 = vsel %vm132_vm2, %v6976_v11, 0.0 }
0x4b58   :  { %6991 = vadd.xlane.f32.xlu2 %v6990_v9 }
0x4b64   :  { %7045 = vrot.lane.b32.xlu0 %v11815_v61, %s8568_s25 }
0x4b70   :  { %7052 = vrot.lane.b32.xlu2 %v11815_v61, %s8570_s28 }
0x4b8b   :  { %v6983_v16 = vpop.xlane.xlu2 %6982 }
0x4b8c   :  { %v6993_v36 = vmul.f32 %v6983_v16, %v12415_v33  ;;  %v7059_v16 = vld [vmem:[%s12304_s4 + $0x48] sm:$0xff] }
0x4b8d   :  { %7100 = vmatpush.msrb.mxu2 %v7059_v16 }
0x4b8e   :  { %v6997_v29 = vadd.f32 1e-05, %v6993_v36  ;;  %v7165_v36 = vld [vmem:[%s12307_s5 + $0xf8] sm:$0xff] }
0x4b8f   :  { %7166 = vmatpush.msra.mxu0 %v7165_v36 }
0x4b90   :  { %8370 = vrsqrt.f32 %v6997_v29  ;;  %vm7007_vm5 = vweird.f32 %v6997_v29 }
0x4b96   :  { %v8371_v50 = vpop.eup %8370 }
0x4b97   :  { %v7002_v31 = vmul.f32 %v8371_v50, %v6997_v29  ;;  %vm7008_vm4 = vweird.f32 %v8371_v50  ;;  %v7164_v29 = vld [vmem:[%s12307_s5 + $0xf0] sm:$0xff] }
0x4b98   :  { %vm7009_vm6 = vmor %vm7007_vm5, %vm7008_vm4  ;;  %7167 = vmatpush.msra.mxu0 %v7164_v29 }
0x4b99   :  { %v7003_v34 = vmul.f32 %v8371_v50, %v7002_v31  ;;  %v7161_v31 = vld [vmem:[%s12307_s5 + $0xd8] sm:$0xff] }
0x4b9b   :  { %v7004_v61 = vmul.f32 0.5, %v7003_v34  ;;  %v7159_v34 = vld [vmem:[%s12307_s5 + $0xc8] sm:$0xff] }
0x4b9d   :  { %v7005_v56 = vsub.f32 1.5, %v7004_v61  ;;  %v7155_v61 = vld [vmem:[%s12307_s5 + $0xa8] sm:$0xff] }
0x4b9f   :  { %v7006_v43 = vmul.f32 %v8371_v50, %v7005_v56  ;;  %v8124_v56 = vld [vmem:[%s12303_s6 + $0x3] ss:$0 sm:$0xff] }
0x4ba1   :  { %v7010_v22 = vsel %vm7009_vm6, %v8371_v50, %v7006_v43 }
0x4ba2   :  { %v7041_v13 = vmul.f32 %v7010_v22, %v12098_v42 }
0x4bb3   :  { %v6989_v2 = vpop.xlane.xlu1 %6988 }
0x4bb4   :  { %v6995_v37 = vmul.f32 %v6989_v2, %v12415_v33  ;;  %v7162_v2 = vld [vmem:[%s12307_s5 + $0xe0] sm:$0xff] }
0x4bb6   :  { %v6999_v32 = vadd.f32 1e-05, %v6995_v37 }
0x4bb8   :  { %8372 = vrsqrt.f32 %v6999_v32  ;;  %vm7027_vm7 = vweird.f32 %v6999_v32 }
0x4bbe   :  { %v8373_v19 = vpop.eup %8372 }
0x4bbf   :  { %v7022_v60 = vmul.f32 %v8373_v19, %v6999_v32  ;;  %vm7028_vm3 = vweird.f32 %v8373_v19 }
0x4bc0   :  { %vm7029_vm8 = vmor %vm7027_vm7, %vm7028_vm3 }
0x4bc1   :  { %v7023_v48 = vmul.f32 %v8373_v19, %v7022_v60  ;;  %v7160_v60 = vld [vmem:[%s12307_s5 + $0xd0] sm:$0xff] }
0x4bc3   :  { %v6986_v59 = vpop.xlane.xlu0 %6985  ;;  %v7024_v51 = vmul.f32 0.5, %v7023_v48  ;;  %v7158_v48 = vld [vmem:[%s12307_s5 + $0xc0] sm:$0xff] }
0x4bc4   :  { %v6994_v44 = vmul.f32 %v6986_v59, %v12415_v33  ;;  %v7157_v59 = vld [vmem:[%s12307_s5 + $0xb8] sm:$0xff] }
0x4bc5   :  { %v7025_v21 = vsub.f32 1.5, %v7024_v51  ;;  %v7152_v51 = vld [vmem:[%s12307_s5 + $0x90] sm:$0xff] }
0x4bc6   :  { %v6998_v62 = vadd.f32 1e-05, %v6994_v44  ;;  %v7156_v44 = vld [vmem:[%s12307_s5 + $0xb0] sm:$0xff] }
0x4bc7   :  { %v7026_v55 = vmul.f32 %v8373_v19, %v7025_v21 }
0x4bc8   :  { %8374 = vrsqrt.f32 %v6998_v62  ;;  %vm7017_vm10 = vweird.f32 %v6998_v62 }
0x4bc9   :  { %v7030_v27 = vsel %vm7029_vm8, %v8373_v19, %v7026_v55 }
0x4bca   :  { %v7043_v46 = vmul.f32 %v7030_v27, %v12105_v25 }
0x4bcb   :  { %v6992_v52 = vpop.xlane.xlu2 %6991 }
0x4bcc   :  { %v6996_v47 = vmul.f32 %v6992_v52, %v12415_v33 }
0x4bce   :  { %v8375_v4 = vpop.eup %8374  ;;  %v7000_v12 = vadd.f32 1e-05, %v6996_v47 }
0x4bcf   :  { %v7012_v18 = vmul.f32 %v8375_v4, %v6998_v62  ;;  %vm7018_vm9 = vweird.f32 %v8375_v4  ;;  %v7154_v62 = vld [vmem:[%s12307_s5 + $0xa0] sm:$0xff] }
0x4bd0   :  { %8376 = vrsqrt.f32 %v7000_v12  ;;  %vm7019_vm11 = vmor %vm7017_vm10, %vm7018_vm9  ;;  %vm7037_vm13 = vweird.f32 %v7000_v12 }
0x4bd1   :  { %v7013_v26 = vmul.f32 %v8375_v4, %v7012_v18 }
0x4bd3   :  { %v7014_v39 = vmul.f32 0.5, %v7013_v26  ;;  %v7053_v3 = vpop.permute.xlu2 %7052 }
0x4bd5   :  { %v7015_v35 = vsub.f32 1.5, %v7014_v39 }
0x4bd6   :  { %v8377_v41 = vpop.eup %8376  ;;  %v7046_v58 = vpop.permute.xlu0 %7045 }
0x4bd7   :  { %v7016_v1 = vmul.f32 %v8375_v4, %v7015_v35  ;;  %v7032_v38 = vmul.f32 %v8377_v41, %v7000_v12  ;;  %v7048_v20 = vmul.f32 %v7046_v58, %v7041_v13  ;;  %v7050_v14 = vmul.f32 %v7046_v58, %v7043_v46  ;;  %v8125_v13 = vld [vmem:[%s12303_s6 + $0x7] ss:$0 sm:$0xff] }
0x4bd8   :  { %vm7038_vm12 = vweird.f32 %v8377_v41 }
0x4bd9   :  { %v7033_v0 = vmul.f32 %v8377_v41, %v7032_v38  ;;  %v7020_v7 = vsel %vm7019_vm11, %v8375_v4, %v7016_v1  ;;  %v7055_v24 = vadd.f32 %v7053_v3, %v7048_v20  ;;  %v7057_v57 = vadd.f32 %v7053_v3, %v7050_v14  ;;  %vm7039_vm14 = vmor %vm7037_vm13, %vm7038_vm12 }
0x4bda   :  { %v7042_v5 = vmul.f32 %v7020_v7, %v12112_v45  ;;  %vm4874_vm12 = vcmask 253952  }
0x4bdb   :  { %v7034_v10 = vmul.f32 0.5, %v7033_v0  ;;  %7069 = vrot.lane.b32.xlu1 %v7055_v24, %s8568_s25  ;;  %7073 = vrot.lane.b32.xlu2 %v7057_v57, %s8568_s25 }
0x4bdc   :  { %v7049_v42 = vmul.f32 %v7046_v58, %v7042_v5 }
0x4bdd   :  { %v7035_v25 = vsub.f32 1.5, %v7034_v10 }
0x4bde   :  { %v7056_v6 = vadd.f32 %v7053_v3, %v7049_v42 }
0x4bdf   :  { %v7036_v17 = vmul.f32 %v8377_v41, %v7035_v25 }
0x4be0   :  { %7071 = vrot.lane.b32.xlu0 %v7056_v6, %s8568_s25 }
0x4be1   :  { %v7040_v28 = vsel %vm7039_vm14, %v8377_v41, %v7036_v17 }
0x4be2   :  { %v7044_v11 = vmul.f32 %v7040_v28, %v12119_v30  ;;  %v7163_v30 = vld [vmem:[%s12307_s5 + $0xe8] sm:$0xff] }
0x4be3   :  { %7168 = vmatpush.msra.mxu0 %v7163_v30  ;;  %7218 = vrot.lane.b32.xlu2 %v8125_v13, %s8567_s19 }
0x4be4   :  { %v7051_v9 = vmul.f32 %v7046_v58, %v7044_v11 }
0x4be5   :  { %7169 = vmatpush.msra.mxu0 %v7162_v2 }
0x4be6   :  { %v7058_v45 = vadd.f32 %v7053_v3, %v7051_v9 }
0x4be7   :  { %7170 = vmatpush.msra.mxu0 %v7161_v31 }
0x4be8   :  { %7075 = vrot.lane.b32.xlu1 %v7058_v45, %s8568_s25 }
0x4be9   :  { %7171 = vmatpush.msra.mxu0 %v7160_v60 }
0x4beb   :  { %7172 = vmatpush.msra.mxu0 %v7159_v34 }
0x4bed   :  { %7173 = vmatpush.msra.mxu0 %v7158_v48 }
0x4bef   :  { %7174 = vmatpush.msra.mxu0 %v7157_v59 }
0x4bf1   :  { %7175 = vmatpush.msra.mxu0 %v7156_v44 }
0x4bf3   :  { %7176 = vmatpush.msra.mxu0 %v7155_v61 }
0x4bf5   :  { %7177 = vmatpush.msra.mxu0 %v7154_v62 }
0x4bf7   :  { %7178 = vmatpush.msra.mxu0 %v7153_v49 }
0x4bf9   :  { %7179 = vmatpush.msra.mxu0 %v7152_v51 }
0x4bfb   :  { %7180 = vmatpush.msra.mxu0 %v7151_v54 }
0x4bfd   :  { %7181 = vmatpush.msra.mxu0 %v7150_v8 }
0x4c35   :  { %v7074_v50 = vpop.permute.xlu2 %7073 }
0x4c3d   :  { %v7219_v61 = vpop.permute.xlu2 %7218 }
0x4c4d   :  { %v7070_v37 = vpop.permute.xlu1 %7069 }
0x4c4e   :  { %7666 = vmatmul.msk.f32.vlgmr.msrb.gmra.mxu2 %vm132_vm2, %v7070_v37 }
0x4c52   :  { %v7072_v32 = vpop.permute.xlu0 %7071 }
0x4c56   :  { %7667 = vmatmul.msk.f32.gmra.mxu2 %vm132_vm2, %v7072_v32 }
0x4c5a   :  { %v7076_v19 = vpop.permute.xlu1 %7075 }
0x4c5e   :  { %7668 = vmatmul.msk.f32.gmra.mxu2 %vm132_vm2, %v7074_v50 }
0x4c66   :  { %7669 = vmatmul.msk.f32.gmra.mxu2 %vm132_vm2, %v7076_v19 }
0x4cd1   :  { %v7102_v21 = vpop.f32.mrf.mxu2 }
0x4cd2   :  { %v7103_v52 = vadd.f32 %v8124_v56, %v7102_v21 }
0x4cd4   :  { %v7118_v47 = vmul.f32 0.044715, %v7103_v52  ;;  %v7114_v38 = vmul.f32 0.5, %v7103_v52 }
0x4cd6   :  { %v7122_v4 = vmul.f32 %v7118_v47, %v7103_v52 }
0x4cd8   :  { %v7126_v43 = vmul.f32 %v7122_v4, %v7103_v52 }
0x4cd9   :  { %v7105_v12 = vpop.f32.mrf.mxu2 }
0x4cda   :  { %v7130_v55 = vadd.f32 %v7126_v43, %v7103_v52  ;;  %v7106_v18 = vadd.f32 %v8124_v56, %v7105_v12 }
0x4cdc   :  { %v7134_v26 = vmul.f32 0.7978846, %v7130_v55  ;;  %v7119_v22 = vmul.f32 0.044715, %v7106_v18  ;;  %v7115_v6 = vmul.f32 0.5, %v7106_v18 }
0x4cde   :  { %8378 = vtanh.f32 %v7134_v26  ;;  %v7123_v39 = vmul.f32 %v7119_v22, %v7106_v18 }
0x4ce0   :  { %v7127_v27 = vmul.f32 %v7123_v39, %v7106_v18 }
0x4ce1   :  { %v7108_v35 = vpop.f32.mrf.mxu2 }
0x4ce2   :  { %v7109_v41 = vadd.f32 %v8124_v56, %v7108_v35  ;;  %v7131_v46 = vadd.f32 %v7127_v27, %v7106_v18 }
0x4ce4   :  { %v8379_v58 = vpop.eup %8378  ;;  %v7120_v3 = vmul.f32 0.044715, %v7109_v41  ;;  %v7135_v1 = vmul.f32 0.7978846, %v7131_v46  ;;  %v7116_v29 = vmul.f32 0.5, %v7109_v41 }
0x4ce5   :  { %v7142_v20 = vadd.f32 1.0, %v8379_v58 }
0x4ce6   :  { %8380 = vtanh.f32 %v7135_v1  ;;  %v7124_v14 = vmul.f32 %v7120_v3, %v7109_v41 }
0x4ce7   :  { %v7146_v0 = vmul.f32 %v7142_v20, %v7114_v38 }
0x4ce8   :  { %v7128_v7 = vmul.f32 %v7124_v14, %v7109_v41 }
0x4ce9   :  { %v7111_v24 = vpop.f32.mrf.mxu2  ;;  %7182 = vmatmul.f32.vlgmr.msra.gmra.mxu0 %v7146_v0 }
0x4cea   :  { %v7112_v5 = vadd.f32 %v8124_v56, %v7111_v24  ;;  %v7132_v57 = vadd.f32 %v7128_v7, %v7109_v41 }
0x4cec   :  { %v8381_v10 = vpop.eup %8380  ;;  %v7121_v42 = vmul.f32 0.044715, %v7112_v5  ;;  %v7136_v25 = vmul.f32 0.7978846, %v7132_v57  ;;  %v7117_v32 = vmul.f32 0.5, %v7112_v5 }
0x4ced   :  { %v7143_v17 = vadd.f32 1.0, %v8381_v10 }
0x4cee   :  { %8382 = vtanh.f32 %v7136_v25  ;;  %v7125_v28 = vmul.f32 %v7121_v42, %v7112_v5 }
0x4cef   :  { %v7147_v11 = vmul.f32 %v7143_v17, %v7115_v6 }
0x4cf0   :  { %v7129_v9 = vmul.f32 %v7125_v28, %v7112_v5  ;;  %v8127_v28 = vld [vmem:[%s12300_s7 + $0x6] ss:$0 sm:$0xff] }
0x4cf1   :  { %7185 = vmatmul.f32.gmra.mxu0 %v7147_v11  ;;  %v8126_v11 = vld [vmem:[%s12300_s7 + $0x5] ss:$0 sm:$0xff] }
0x4cf2   :  { %v7133_v45 = vadd.f32 %v7129_v9, %v7112_v5 }
0x4cf4   :  { %v8383_v16 = vpop.eup %8382  ;;  %v7137_v36 = vmul.f32 0.7978846, %v7133_v45 }
0x4cf5   :  { %v7144_v30 = vadd.f32 1.0, %v8383_v16 }
0x4cf6   :  { %8384 = vtanh.f32 %v7137_v36 }
0x4cf7   :  { %v7148_v2 = vmul.f32 %v7144_v30, %v7116_v29 }
0x4cf9   :  { %7188 = vmatmul.f32.gmra.mxu0 %v7148_v2 }
0x4cfc   :  { %v8385_v37 = vpop.eup %8384 }
0x4cfd   :  { %v7145_v50 = vadd.f32 1.0, %v8385_v37 }
0x4cff   :  { %v7149_v19 = vmul.f32 %v7145_v50, %v7117_v32 }
0x4d01   :  { %7191 = vmatmul.f32.gmra.mxu0 %v7149_v19 }
0x4d66   :  { %v7183_v31 = vpop.f32.mrf.mxu0 }
0x4d67   :  { %7199 = vrot.lane.b32.xlu2 %v7183_v31, %s8567_s19 }
0x4d6e   :  { %v7186_v60 = vpop.f32.mrf.mxu0 }
0x4d76   :  { %v7189_v34 = vpop.f32.mrf.mxu0 }
0x4d77   :  { %7203 = vrot.lane.b32.xlu1 %v7189_v34, %s8567_s19 }
0x4d7e   :  { %v7192_v48 = vpop.f32.mrf.mxu0 }
0x4d7f   :  { %7205 = vrot.lane.b32.xlu0 %v7192_v48, %s8567_s19 }
0x4d87   :  { %7201 = vrot.lane.b32.xlu0 %v7186_v60, %s8567_s19 }
0x4dc1   :  { %v7200_v8 = vpop.permute.xlu2 %7199 }
0x4dc2   :  { %v7211_v56 = vadd.f32 %v7200_v8, %v12070_v53  ;;  %v8571_v8 = vmov 0  }
0x4dc3   :  { %8105 = vset.pattern.permute.xlu0 %v8571_v8  ;;  %8106 = vset.pattern.permute.xlu1 %v8571_v8 }
0x4dc4   :  { %v7221_v47 = vadd.f32 %v7219_v61, %v7211_v56 }
0x4de9   :  { %v7204_v59 = vpop.permute.xlu1 %7203 }
0x4dea   :  { %v7213_v44 = vadd.f32 %v7204_v59, %v12088_v15 }
0x4dec   :  { %v7223_v62 = vadd.f32 %v7219_v61, %v7213_v44 }
0x4dee   :  { %7235 = vrot.lane.b32.xlu0 %v7223_v62, %s8568_s25 }
0x4df1   :  { %v7206_v49 = vpop.permute.xlu0 %7205 }
0x4df2   :  { %v7214_v51 = vadd.f32 %v7206_v49, %v12076_v23 }
0x4df4   :  { %v7224_v54 = vadd.f32 %v7219_v61, %v7214_v51 }
0x4df6   :  { %7237 = vrot.lane.b32.xlu1 %v7224_v54, %s8568_s25 }
0x4df9   :  { %v7202_v21 = vpop.permute.xlu0 %7201 }
0x4dfa   :  { %v7212_v52 = vadd.f32 %v7202_v21, %v12082_v40 }
0x4dfc   :  { %v7222_v4 = vadd.f32 %v7219_v61, %v7212_v52 }
0x4dfe   :  { %7231 = vrot.lane.b32.xlu1 %v7221_v47, %s8568_s25  ;;  %7233 = vrot.lane.b32.xlu2 %v7222_v4, %s8568_s25 }
0x4e58   :  { %v7234_v15 = vpop.permute.xlu2 %7233 }
0x4e59   :  { %v7246_v43 = vsel %vm132_vm2, %v7234_v15, 0.0 }
0x4e5a   :  { %7247 = vadd.xlane.f32.xlu1 %v7246_v43 }
0x4e60   :  { %v7236_v23 = vpop.permute.xlu0 %7235 }
0x4e61   :  { %v7249_v12 = vsel %vm132_vm2, %v7236_v23, 0.0 }
0x4e62   :  { %7250 = vadd.xlane.f32.xlu2 %v7249_v12 }
0x4e68   :  { %v7238_v55 = vpop.permute.xlu1 %7237 }
0x4e69   :  { %v7252_v53 = vsel %vm132_vm2, %v7238_v55, 0.0 }
0x4e6a   :  { %7253 = vadd.xlane.f32.xlu0 %v7252_v53 }
0x4e70   :  { %v7232_v18 = vpop.permute.xlu1 %7231 }
0x4e71   :  { %v7243_v40 = vsel %vm132_vm2, %v7232_v18, 0.0 }
0x4e72   :  { %7244 = vadd.xlane.f32.xlu0 %v7243_v40 }
0x4ecd   :  { %v7248_v26 = vpop.xlane.xlu1 %7247 }
0x4ece   :  { %v7256_v22 = vmul.f32 %v7248_v26, %v12415_v33 }
0x4ed0   :  { %v12232_v39 = vsub.f32 %v7222_v4, %v7256_v22 }
0x4ed2   :  { %v7264_v27 = vmul.f32 %v12232_v39, %v12232_v39 }
0x4ed4   :  { %7273 = vrot.lane.b32.xlu0 %v7264_v27, %s8568_s25 }
0x4ed5   :  { %v7251_v35 = vpop.xlane.xlu2 %7250 }
0x4ed6   :  { %v7257_v13 = vmul.f32 %v7251_v35, %v12415_v33 }
0x4ed8   :  { %v12238_v41 = vsub.f32 %v7223_v62, %v7257_v13 }
0x4eda   :  { %v7265_v46 = vmul.f32 %v12238_v41, %v12238_v41 }
0x4edc   :  { %7275 = vrot.lane.b32.xlu1 %v7265_v46, %s8568_s25 }
0x4edd   :  { %v7254_v58 = vpop.xlane.xlu0 %7253 }
0x4ede   :  { %v7258_v3 = vmul.f32 %v7254_v58, %v12415_v33 }
0x4ee0   :  { %v12244_v1 = vsub.f32 %v7224_v54, %v7258_v3 }
0x4ee2   :  { %v7266_v38 = vmul.f32 %v12244_v1, %v12244_v1 }
0x4ee4   :  { %7277 = vrot.lane.b32.xlu2 %v7266_v38, %s8568_s25 }
0x4ee5   :  { %v7245_v20 = vpop.xlane.xlu0 %7244 }
0x4ee6   :  { %v7255_v14 = vmul.f32 %v7245_v20, %v12415_v33 }
0x4ee8   :  { %v12250_v0 = vsub.f32 %v7221_v47, %v7255_v14 }
0x4eea   :  { %v7263_v7 = vmul.f32 %v12250_v0, %v12250_v0 }
0x4eec   :  { %7271 = vrot.lane.b32.xlu2 %v7263_v7, %s8568_s25 }
0x4f3e   :  { %v7278_v24 = vpop.permute.xlu2 %7277 }
0x4f3f   :  { %v7292_v5 = vsel %vm132_vm2, %v7278_v24, 0.0 }
0x4f40   :  { %7293 = vadd.xlane.f32.xlu0 %v7292_v5 }
0x4f46   :  { %v7272_v57 = vpop.permute.xlu2 %7271  ;;  %v7274_v10 = vpop.permute.xlu0 %7273 }
0x4f47   :  { %v7283_v42 = vsel %vm132_vm2, %v7272_v57, 0.0  ;;  %v7286_v25 = vsel %vm132_vm2, %v7274_v10, 0.0 }
0x4f48   :  { %7284 = vadd.xlane.f32.xlu0 %v7283_v42  ;;  %7287 = vadd.xlane.f32.xlu2 %v7286_v25 }
0x4f4e   :  { %v7276_v6 = vpop.permute.xlu1 %7275 }
0x4f4f   :  { %v7289_v17 = vsel %vm132_vm2, %v7276_v6, 0.0 }
0x4f50   :  { %7290 = vadd.xlane.f32.xlu1 %v7289_v17 }
0x4f60   :  { %7358 = vrot.lane.b32.xlu2 %v8127_v28, %s8567_s19 }
0x4f69   :  { %7349 = vrot.lane.b32.xlu1 %v8126_v11, %s8567_s19 }
0x4fb3   :  { %v7294_v9 = vpop.xlane.xlu0 %7293 }
0x4fb4   :  { %v7298_v45 = vmul.f32 %v7294_v9, %v12415_v33  ;;  %v7365_v9 = vld [vmem:[%s12300_s7 + $0x7] sm:$0x1] }
0x4fb6   :  { %v7302_v16 = vadd.f32 1e-05, %v7298_v45 }
0x4fb8   :  { %8386 = vrsqrt.f32 %v7302_v16  ;;  %vm7339_vm0 = vweird.f32 %v7302_v16 }
0x4fbb   :  { %v7288_v36 = vpop.xlane.xlu2 %7287  ;;  %v7285_v29 = vpop.xlane.xlu0 %7284 }
0x4fbc   :  { %v7296_v30 = vmul.f32 %v7288_v36, %v12415_v33  ;;  %v7295_v2 = vmul.f32 %v7285_v29, %v12415_v33 }
0x4fbe   :  { %v7300_v37 = vadd.f32 1e-05, %v7296_v30  ;;  %v7299_v32 = vadd.f32 1e-05, %v7295_v2  ;;  %v8387_v50 = vpop.eup %8386 }
0x4fbf   :  { %v7334_v19 = vmul.f32 %v8387_v50, %v7302_v16  ;;  %vm7340_vm15 = vweird.f32 %v8387_v50 }
0x4fc0   :  { %8388 = vrsqrt.f32 %v7300_v37  ;;  %vm7341_vm3 = vmor %vm7339_vm0, %vm7340_vm15  ;;  %vm7319_vm5 = vweird.f32 %v7300_v37  ;;  %vm7309_vm7 = vweird.f32 %v7299_v32 }
0x4fc1   :  { %8390 = vrsqrt.f32 %v7299_v32  ;;  %v7335_v48 = vmul.f32 %v8387_v50, %v7334_v19 }
0x4fc3   :  { %v7291_v31 = vpop.xlane.xlu1 %7290  ;;  %v7336_v51 = vmul.f32 0.5, %v7335_v48  ;;  %v7359_v38 = vpop.permute.xlu2 %7358 }
0x4fc4   :  { %v7297_v60 = vmul.f32 %v7291_v31, %v12415_v33 }
0x4fc5   :  { %v7337_v47 = vsub.f32 1.5, %v7336_v51 }
0x4fc6   :  { %v8389_v34 = vpop.eup %8388  ;;  %v7301_v59 = vadd.f32 1e-05, %v7297_v60 }
0x4fc7   :  { %v8391_v44 = vpop.eup %8390  ;;  %v7314_v61 = vmul.f32 %v8389_v34, %v7300_v37  ;;  %v7338_v23 = vmul.f32 %v8387_v50, %v7337_v47  ;;  %vm7320_vm1 = vweird.f32 %v8389_v34 }
0x4fc8   :  { %v7304_v62 = vmul.f32 %v8391_v44, %v7299_v32  ;;  %8392 = vrsqrt.f32 %v7301_v59  ;;  %vm7310_vm4 = vweird.f32 %v8391_v44  ;;  %vm7321_vm6 = vmor %vm7319_vm5, %vm7320_vm1  ;;  %vm7329_vm10 = vweird.f32 %v7301_v59 }
0x4fc9   :  { %v7315_v49 = vmul.f32 %v8389_v34, %v7314_v61  ;;  %vm7311_vm8 = vmor %vm7309_vm7, %vm7310_vm4  ;;  %v7342_v40 = vsel %vm7341_vm3, %v8387_v50, %v7338_v23 }
0x4fca   :  { %v7305_v54 = vmul.f32 %v8391_v44, %v7304_v62  ;;  %v7346_v46 = vmul.f32 %v7342_v40, %v12244_v1  ;;  %v4825_v1 = vld [vmem:[%s12300_s7 + $0x8] sm:$0x1] }
0x4fcb   :  { %v7316_v56 = vmul.f32 0.5, %v7315_v49 }
0x4fcc   :  { %v7306_v21 = vmul.f32 0.5, %v7305_v54 }
0x4fcd   :  { %v7317_v4 = vsub.f32 1.5, %v7316_v56 }
0x4fce   :  { %v8393_v52 = vpop.eup %8392  ;;  %v7307_v15 = vsub.f32 1.5, %v7306_v21 }
0x4fcf   :  { %v7324_v33 = vmul.f32 %v8393_v52, %v7301_v59  ;;  %v7318_v12 = vmul.f32 %v8389_v34, %v7317_v4  ;;  %vm7330_vm9 = vweird.f32 %v8393_v52 }
0x4fd0   :  { %v7308_v55 = vmul.f32 %v8391_v44, %v7307_v15  ;;  %vm7331_vm11 = vmor %vm7329_vm10, %vm7330_vm9 }
0x4fd1   :  { %v7325_v43 = vmul.f32 %v8393_v52, %v7324_v33  ;;  %v7322_v27 = vsel %vm7321_vm6, %v8389_v34, %v7318_v12 }
0x4fd2   :  { %v7312_v22 = vsel %vm7311_vm8, %v8391_v44, %v7308_v55  ;;  %v7344_v13 = vmul.f32 %v7322_v27, %v12232_v39 }
0x4fd3   :  { %v7326_v53 = vmul.f32 0.5, %v7325_v43  ;;  %v7343_v35 = vmul.f32 %v7312_v22, %v12250_v0 }
0x4fd5   :  { %v7327_v18 = vsub.f32 1.5, %v7326_v53 }
0x4fd7   :  { %v7328_v26 = vmul.f32 %v8393_v52, %v7327_v18 }
0x4fd9   :  { %v7332_v58 = vsel %vm7331_vm11, %v8393_v52, %v7328_v26 }
0x4fda   :  { %v7345_v24 = vmul.f32 %v7332_v58, %v12238_v41  ;;  %v7366_v41 = vld [vmem:[%s12300_s7 + $0x8] sm:$0x1] }
0x4fdb   :  { %v7350_v3 = vpop.permute.xlu1 %7349 }
0x4fdc   :  { %v7352_v20 = vmul.f32 %v7350_v3, %v7343_v35  ;;  %v7353_v14 = vmul.f32 %v7350_v3, %v7344_v13  ;;  %v7355_v7 = vmul.f32 %v7350_v3, %v7346_v46  ;;  %v7354_v39 = vmul.f32 %v7350_v3, %v7345_v24 }
0x4fde   :  { %v7361_v5 = vadd.f32 %v7359_v38, %v7352_v20  ;;  %v7362_v57 = vadd.f32 %v7359_v38, %v7353_v14  ;;  %v7364_v10 = vadd.f32 %v7359_v38, %v7355_v7  ;;  %v7363_v0 = vadd.f32 %v7359_v38, %v7354_v39 }
0x4fe0   :  { %7382 = vrot.lane.b32.xlu0 %v7364_v10, %s8568_s25  ;;  %7378 = vrot.lane.b32.xlu1 %v7362_v57, %s8568_s25 }
0x4fe1   :  { %7376 = vrot.lane.b32.xlu2 %v7361_v5, %s8568_s25 }
0x4fe8   :  { %7380 = vrot.lane.b32.xlu0 %v7363_v0, %s8568_s25  ;;  %7369 = vperm.xlu1 %8106, %v7366_v41  }
0x4ff0   :  { %4828 = vperm.xlu0 %8105, %v4825_v1  }
0x503b   :  { %v7377_v17 = vpop.permute.xlu2 %7376 }
0x5052   :  { %v7383_v42 = vpop.permute.xlu0 %7382  ;;  %v7379_v6 = vpop.permute.xlu1 %7378 }
0x5053   :  { %7670 = vmatpush.xpose.msk.msrb.mxu1 %vm132_vm2, %v7383_v42 }
0x505a   :  { %v7381_v25 = vpop.permute.xlu0 %7380  ;;  %v7370_v45 = vpop.permute.xlu1 %7369 }
0x505b   :  { %7671 = vmatpush.xpose.msk.msrb.mxu1 %vm132_vm2, %v7381_v25 }
0x505f   :  { %7672 = vmatpush.xpose.msk.msrb.mxu1 %vm132_vm2, %v7379_v6 }
0x5062   :  { %v4829_v28 = vpop.permute.xlu0 %4828 }
0x5063   :  { %v4872_v11 = vadd.f32 %v11175_v63, %v4829_v28  ;;  %7673 = vmatpush.xpose.msk.msrb.mxu1 %vm132_vm2, %v7377_v17 }
0x5065   :  { %4875 = vst.msk [vmem:[%s12308_s8] sm:$0x1] %vm4874_vm12, %v4872_v11 }
0x5066   :  { %7674 = vmatmul.msk.f32.vlgmr.msrb.gmra.mxu1 %vm132_vm2, %v7365_v9 }
0x50e3   :  { %v7412_v16 = vpop.f32.mrf.mxu1 }
0x50e4   :  { %v7413_v36 = vadd.f32 %v7412_v16, %v7370_v45 }
0x50e6   :  { %7415 = vst.msk [vmem:[%s12308_s8 + $0x1] sm:$0x1] %vm4874_vm12, %v7413_v36 }

</bundles_post_ra>
